<compile_context>
chip_gen: v5e
topology: v5e:2x2
jax: 0.10.0
libtpu: 0.0.40
codegen_flags: <defaults>
</compile_context>

<pallas_src>
import functools

import jax
import jax.numpy as jnp
from jax.experimental import pallas as pl
from jax.experimental.pallas import tpu as pltpu


# ---------------------------------------------------------------------------
# Kernel 1: encoder frontend (LayerNorm over [T, dim] per batch row, then
#           Linear(dim -> dim_z) + ReLU).  Grid = batch ("parallel").
# ---------------------------------------------------------------------------
def _enc_frontend_kernel(x_ref, lnw_ref, lnb_ref, w_ref, b_ref, o_ref):
    # x_ref/lnw/lnb: (T, D)   w_ref: (D, Z)   b_ref: (1, Z)   o_ref: (T, Z)
    x = x_ref[...].astype(jnp.float32)
    n = x.shape[0] * x.shape[1]
    total = jnp.sum(jnp.sum(x, axis=1, keepdims=True), axis=0, keepdims=True)
    mean = total * (1.0 / n)
    d = x - mean
    var = jnp.sum(jnp.sum(d * d, axis=1, keepdims=True), axis=0, keepdims=True) * (1.0 / n)
    xn = d * jax.lax.rsqrt(var + 1e-5)
    xn = xn * lnw_ref[...] + lnb_ref[...]
    h = jnp.dot(xn, w_ref[...], preferred_element_type=jnp.float32) + b_ref[...]
    o_ref[...] = jnp.maximum(h, 0.0).astype(o_ref.dtype)


# ---------------------------------------------------------------------------
# Kernel 2: bidirectional LSTM with length masking + masked mean pool.
#   len_ref: (B, 1) int32     hs_ref: (T, B, Z)   (time-major)
#   wih*: (4, Z, H)  whh*: (4, H, H)  b*: (4, 1, H)   (per gate i,f,g,o)
#   o_ref: (2, B, H)   [0] = forward pooled, [1] = backward pooled
# ---------------------------------------------------------------------------
def _bilstm_pool_kernel(len_ref, hs_ref, wihf_ref, whhf_ref, bf_ref,
                        wihb_ref, whhb_ref, bb_ref, o_ref):
    T = hs_ref.shape[0]
    Bn = hs_ref.shape[1]
    H = whhf_ref.shape[1]
    lens = len_ref[...]                              # (B, 1) int32
    inv_len = 1.0 / lens.astype(jnp.float32)         # (B, 1)

    def run_direction(wih_ref, whh_ref, b_ref, reverse):
        # hoist the per-gate weights out of the time loop
        wih = [wih_ref[k] for k in range(4)]
        whh = [whh_ref[k] for k in range(4)]
        bias = [b_ref[k] for k in range(4)]
        h = jnp.zeros((Bn, H), jnp.float32)
        c = jnp.zeros((Bn, H), jnp.float32)
        s = jnp.zeros((Bn, H), jnp.float32)
        order = range(T - 1, -1, -1) if reverse else range(T)
        for t in order:
            x_t = hs_ref[t]                          # (B, Z)

            def gate(k, act):
                return act(jnp.dot(x_t, wih[k], preferred_element_type=jnp.float32)
                           + jnp.dot(h, whh[k], preferred_element_type=jnp.float32)
                           + bias[k])

            i = gate(0, jax.nn.sigmoid)
            f = gate(1, jax.nn.sigmoid)
            g = gate(2, jnp.tanh)
            o = gate(3, jax.nn.sigmoid)
            c_n = f * c + i * g
            h_n = o * jnp.tanh(c_n)
            # packed-sequence semantics: only rows with t < length update/emit
            m = (t < lens).astype(jnp.float32)       # (B, 1)
            h = m * h_n + (1.0 - m) * h
            c = m * c_n + (1.0 - m) * c
            s = s + m * h_n
        return s

    s_f = run_direction(wihf_ref, whhf_ref, bf_ref, reverse=False)
    s_b = run_direction(wihb_ref, whhb_ref, bb_ref, reverse=True)
    o_ref[0] = (s_f * inv_len).astype(o_ref.dtype)
    o_ref[1] = (s_b * inv_len).astype(o_ref.dtype)


# ---------------------------------------------------------------------------
# Kernel 3: encoder head (linear1+ReLU, linear2) + feedback decoder
#           (linear+ReLU, pose MLP, LSTMCell loop with pose feedback).
# ---------------------------------------------------------------------------
def _head_decoder_kernel(pooled_ref, ew1_ref, eb1_ref, ew2_ref, eb2_ref,
                         dw_ref, db_ref, p1w_ref, p1b_ref, p2w_ref, p2b_ref,
                         wcx_ref, wcp_ref, wch_ref, bc_ref,
                         l1w_ref, l1b_ref, l2w_ref, l2b_ref,
                         o_ref, *, residual):
    # pooled_ref: (B, 4Z)   o_ref: (T, B, D)
    T, Bn, _ = o_ref.shape
    H = wch_ref.shape[1]

    def linear(v, w_ref, b_ref):
        return jnp.dot(v, w_ref[...], preferred_element_type=jnp.float32) + b_ref[...]

    pooled = pooled_ref[...].astype(jnp.float32)

    # encoder head: z = linear2(relu(linear1(pooled)))
    z = linear(jnp.maximum(linear(pooled, ew1_ref, eb1_ref), 0.0), ew2_ref, eb2_ref)

    # decoder preamble
    xd = jnp.maximum(linear(z, dw_ref, db_ref), 0.0)                       # (B, dz)
    pose = linear(jnp.maximum(linear(xd, p1w_ref, p1b_ref), 0.0),
                  p2w_ref, p2b_ref)                                        # (B, dim)

    # The x part of the LSTMCell input is constant across steps; its per-gate
    # contribution (with b_ih + b_hh folded in) is computed once.
    gx = [jnp.dot(xd, wcx_ref[k], preferred_element_type=jnp.float32) + bc_ref[k]
          for k in range(4)]
    wcp = [wcp_ref[k] for k in range(4)]
    wch = [wch_ref[k] for k in range(4)]
    l1w, l1b = l1w_ref[...], l1b_ref[...]
    l2w, l2b = l2w_ref[...], l2b_ref[...]

    h = jnp.zeros((Bn, H), jnp.float32)
    c = jnp.zeros((Bn, H), jnp.float32)

    # input_len is small & static here, so the recurrence unrolls at trace
    # time; for long sequences switch to lax.fori_loop with (h, c, pose) carry.
    for t in range(T):
        def gate(k, act):
            return act(gx[k]
                       + jnp.dot(pose, wcp[k], preferred_element_type=jnp.float32)
                       + jnp.dot(h, wch[k], preferred_element_type=jnp.float32))

        i = gate(0, jax.nn.sigmoid)
        f = gate(1, jax.nn.sigmoid)
        g = gate(2, jnp.tanh)
        o = gate(3, jax.nn.sigmoid)
        c = f * c + i * g
        h = o * jnp.tanh(c)
        h_lin = jnp.maximum(jnp.dot(h, l1w, preferred_element_type=jnp.float32) + l1b, 0.0)
        new_pose = jnp.dot(h_lin, l2w, preferred_element_type=jnp.float32) + l2b
        if residual:
            new_pose = new_pose + pose
        o_ref[t] = new_pose.astype(o_ref.dtype)
        pose = new_pose


# ---------------------------------------------------------------------------
# Wrapper helpers
# ---------------------------------------------------------------------------
def _stack_gate_weights_T(w, H):
    """PyTorch LSTM weight (4H, in) -> per-gate transposed stack (4, in, H)."""
    return jnp.stack([jnp.transpose(w[k * H:(k + 1) * H, :]) for k in range(4)], axis=0)


def _stack_gate_bias(b, H):
    """Combined bias (4H,) -> (4, 1, H)."""
    return jnp.stack([b[k * H:(k + 1) * H] for k in range(4)], axis=0).reshape(4, 1, H)


def _full_spec(shape):
    n = len(shape)
    return pl.BlockSpec(shape, lambda i, _n=n: (0,) * _n)


def lstm_ae_feedback_forward(p, x, x_lengths, *, residual=False):
    """Equivalent of lstmAE_feedback.forward(x, x_lengths) -> [x, decoded, x_lengths]."""
    B, T, D = x.shape
    dz = p["enc_lin_w"].shape[0]
    H = 2 * dz  # hidden size of both the encoder LSTM and the decoder LSTMCell

    # -------- K1: LayerNorm([T, D]) + Linear(D -> dz) + ReLU --------
    w_enc_t = jnp.transpose(p["enc_lin_w"])            # (D, dz)
    b_enc = p["enc_lin_b"].reshape(1, dz)
    hseq = pl.pallas_call(
        _enc_frontend_kernel,
        out_shape=jax.ShapeDtypeStruct((B, T, dz), jnp.float32),
        grid_spec=pltpu.PrefetchScalarGridSpec(
            num_scalar_prefetch=0,
            grid=(B,),
            in_specs=[
                pl.BlockSpec((None, T, D), lambda b: (b, 0, 0)),
                pl.BlockSpec((T, D), lambda b: (0, 0)),
                pl.BlockSpec((T, D), lambda b: (0, 0)),
                pl.BlockSpec((D, dz), lambda b: (0, 0)),
                pl.BlockSpec((1, dz), lambda b: (0, 0)),
            ],
            out_specs=pl.BlockSpec((None, T, dz), lambda b: (b, 0, 0)),
        ),
        compiler_params=pltpu.CompilerParams(dimension_semantics=("parallel",)),
    )(x, p["ln_w"], p["ln_b"], w_enc_t, b_enc)

    # -------- K2: bidirectional masked LSTM + mean pool over valid steps --------
    hseq_t = jnp.transpose(hseq, (1, 0, 2))            # (T, B, dz), time-major
    lens = x_lengths.astype(jnp.int32).reshape(B, 1)

    wih_f = _stack_gate_weights_T(p["w_ih_f"], H)
    whh_f = _stack_gate_weights_T(p["w_hh_f"], H)
    b_f = _stack_gate_bias(p["b_ih_f"] + p["b_hh_f"], H)
    wih_b = _stack_gate_weights_T(p["w_ih_b"], H)
    whh_b = _stack_gate_weights_T(p["w_hh_b"], H)
    b_b = _stack_gate_bias(p["b_ih_b"] + p["b_hh_b"], H)

    lstm_args = (lens, hseq_t, wih_f, whh_f, b_f, wih_b, whh_b, b_b)
    pooled2 = pl.pallas_call(
        _bilstm_pool_kernel,
        out_shape=jax.ShapeDtypeStruct((2, B, H), jnp.float32),
        grid_spec=pltpu.PrefetchScalarGridSpec(
            num_scalar_prefetch=0,
            grid=(1,),
            in_specs=[_full_spec(a.shape) for a in lstm_args],
            out_specs=_full_spec((2, B, H)),
        ),
        compiler_params=pltpu.CompilerParams(dimension_semantics=("arbitrary",)),
        cost_estimate=pl.CostEstimate(
            flops=2 * T * 4 * (2 * B * dz * H + 2 * B * H * H),
            transcendentals=2 * T * 5 * B * H,
            bytes_accessed=4 * (T * B * dz + 2 * (4 * dz * H + 4 * H * H + 4 * H) + 2 * B * H),
        ),
    )(*lstm_args)
    pooled = jnp.concatenate([pooled2[0], pooled2[1]], axis=-1)  # (B, 4*dz)

    # -------- K3: encoder head + feedback decoder --------
    args3 = (
        pooled,
        jnp.transpose(p["enc_l1_w"]), p["enc_l1_b"].reshape(1, -1),
        jnp.transpose(p["enc_l2_w"]), p["enc_l2_b"].reshape(1, -1),
        jnp.transpose(p["dec_lin_w"]), p["dec_lin_b"].reshape(1, -1),
        jnp.transpose(p["pose1_w"]), p["pose1_b"].reshape(1, -1),
        jnp.transpose(p["pose2_w"]), p["pose2_b"].reshape(1, -1),
        _stack_gate_weights_T(p["cell_w_ih"][:, :dz], H),   # x part   (4, dz, H)
        _stack_gate_weights_T(p["cell_w_ih"][:, dz:], H),   # pose part (4, D, H)
        _stack_gate_weights_T(p["cell_w_hh"], H),            # (4, H, H)
        _stack_gate_bias(p["cell_b_ih"] + p["cell_b_hh"], H),
        jnp.transpose(p["dec_l1_w"]), p["dec_l1_b"].reshape(1, -1),
        jnp.transpose(p["dec_l2_w"]), p["dec_l2_b"].reshape(1, -1),
    )
    dec_flops = (2 * B * (4 * dz * 2 * dz + 2 * dz * dz + 3 * dz * dz + dz * D + 4 * dz * H)
                 + T * (4 * (2 * B * D * H + 2 * B * H * H) + 2 * B * H * dz + 2 * B * dz * D))
    dec_out = pl.pallas_call(
        functools.partial(_head_decoder_kernel, residual=residual),
        out_shape=jax.ShapeDtypeStruct((T, B, D), jnp.float32),
        grid_spec=pltpu.PrefetchScalarGridSpec(
            num_scalar_prefetch=0,
            grid=(1,),
            in_specs=[_full_spec(a.shape) for a in args3],
            out_specs=_full_spec((T, B, D)),
        ),
        compiler_params=pltpu.CompilerParams(dimension_semantics=("arbitrary",)),
        cost_estimate=pl.CostEstimate(
            flops=dec_flops,
            transcendentals=T * 5 * B * H,
            bytes_accessed=4 * (B * 4 * dz + T * B * D + 4 * (dz + D + H) * H),
        ),
    )(*args3)
    decoded = jnp.transpose(dec_out, (1, 0, 2))        # (B, T, D)

    return [x, decoded, x_lengths]


# ---------------------------------------------------------------------------
# Deterministic parameter init (PyTorch-style U(-1/sqrt(fan_in), 1/sqrt(fan_in)))
# ---------------------------------------------------------------------------
def _init_params(key, T, dim, dz, dtype=jnp.float32):
    H = 2 * dz
    keys = iter(jax.random.split(key, 30))

    def lin(out_f, in_f):
        lim = 1.0 / (in_f ** 0.5)
        w = jax.random.uniform(next(keys), (out_f, in_f), dtype, -lim, lim)
        b = jax.random.uniform(next(keys), (out_f,), dtype, -lim, lim)
        return w, b

    def lstm(in_f):
        lim = 1.0 / (H ** 0.5)
        return (jax.random.uniform(next(keys), (4 * H, in_f), dtype, -lim, lim),
                jax.random.uniform(next(keys), (4 * H, H), dtype, -lim, lim),
                jax.random.uniform(next(keys), (4 * H,), dtype, -lim, lim),
                jax.random.uniform(next(keys), (4 * H,), dtype, -lim, lim))

    p = {}
    p["ln_w"] = 1.0 + 0.05 * jax.random.normal(next(keys), (T, dim), dtype)
    p["ln_b"] = 0.05 * jax.random.normal(next(keys), (T, dim), dtype)
    p["enc_lin_w"], p["enc_lin_b"] = lin(dz, dim)
    p["w_ih_f"], p["w_hh_f"], p["b_ih_f"], p["b_hh_f"] = lstm(dz)
    p["w_ih_b"], p["w_hh_b"], p["b_ih_b"], p["b_hh_b"] = lstm(dz)
    p["enc_l1_w"], p["enc_l1_b"] = lin(2 * dz, 4 * dz)
    p["enc_l2_w"], p["enc_l2_b"] = lin(dz, 2 * dz)
    p["dec_lin_w"], p["dec_lin_b"] = lin(dz, dz)
    p["pose1_w"], p["pose1_b"] = lin(dz, dz)
    p["pose2_w"], p["pose2_b"] = lin(dim, dz)
    p["cell_w_ih"], p["cell_w_hh"], p["cell_b_ih"], p["cell_b_hh"] = lstm(dz + dim)
    p["dec_l1_w"], p["dec_l1_b"] = lin(dz, 2 * dz)
    p["dec_l2_w"], p["dec_l2_b"] = lin(dim, dz)
    return p


# ---------------------------------------------------------------------------
# Pure-JAX reference of the same forward pass
# ---------------------------------------------------------------------------
def _ref_lstm_cell(x, h, c, w_ih, w_hh, b_ih, b_hh):
    gates = x @ w_ih.T + b_ih + h @ w_hh.T + b_hh
    H = h.shape[-1]
    i = jax.nn.sigmoid(gates[:, 0 * H:1 * H])
    f = jax.nn.sigmoid(gates[:, 1 * H:2 * H])
    g = jnp.tanh(gates[:, 2 * H:3 * H])
    o = jax.nn.sigmoid(gates[:, 3 * H:4 * H])
    c_n = f * c + i * g
    return o * jnp.tanh(c_n), c_n


def _ref_forward(p, x, lengths, residual=False):
    B, T, D = x.shape
    dz = p["enc_lin_w"].shape[0]
    H = 2 * dz
    mean = x.mean(axis=(1, 2), keepdims=True)
    var = ((x - mean) ** 2).mean(axis=(1, 2), keepdims=True)
    xn = (x - mean) / jnp.sqrt(var + 1e-5) * p["ln_w"] + p["ln_b"]
    hseq = jax.nn.relu(xn @ p["enc_lin_w"].T + p["enc_lin_b"])

    def run_dir(w_ih, w_hh, b_ih, b_hh, order):
        h = jnp.zeros((B, H)); c = jnp.zeros((B, H)); s = jnp.zeros((B, H))
        for t in order:
            h_n, c_n = _ref_lstm_cell(hseq[:, t], h, c, w_ih, w_hh, b_ih, b_hh)
            m = (t < lengths)[:, None].astype(jnp.float32)
            h = m * h_n + (1 - m) * h
            c = m * c_n + (1 - m) * c
            s = s + m * h_n
        return s

    s_f = run_dir(p["w_ih_f"], p["w_hh_f"], p["b_ih_f"], p["b_hh_f"], range(T))
    s_b = run_dir(p["w_ih_b"], p["w_hh_b"], p["b_ih_b"], p["b_hh_b"], range(T - 1, -1, -1))
    pooled = jnp.concatenate([s_f, s_b], axis=-1) / lengths[:, None].astype(jnp.float32)

    o1 = jax.nn.relu(pooled @ p["enc_l1_w"].T + p["enc_l1_b"])
    z = o1 @ p["enc_l2_w"].T + p["enc_l2_b"]

    xd = jax.nn.relu(z @ p["dec_lin_w"].T + p["dec_lin_b"])
    pose = jax.nn.relu(xd @ p["pose1_w"].T + p["pose1_b"]) @ p["pose2_w"].T + p["pose2_b"]
    h = jnp.zeros((B, H)); c = jnp.zeros((B, H))
    outs = []
    for _ in range(T):
        inp = jnp.concatenate([xd, pose], axis=-1)
        h, c = _ref_lstm_cell(inp, h, c, p["cell_w_ih"], p["cell_w_hh"],
                              p["cell_b_ih"], p["cell_b_hh"])
        h_lin = jax.nn.relu(h @ p["dec_l1_w"].T + p["dec_l1_b"])
        new_pose = h_lin @ p["dec_l2_w"].T + p["dec_l2_b"]
        if residual:
            new_pose = new_pose + pose
        outs.append(new_pose)
        pose = new_pose
    return jnp.stack(outs, axis=1)


if __name__ == "__main__":
    B, T, DIM, DIM_Z = 2, 8, 16, 32

    key = jax.random.PRNGKey(0)
    kx, kp = jax.random.split(key)
    x = jax.random.normal(kx, (B, T, DIM), dtype=jnp.float32)
    x_lengths = jnp.array([T, 5], dtype=jnp.int32)
    params = _init_params(kp, T, DIM, DIM_Z)

    fwd = jax.jit(functools.partial(lstm_ae_feedback_forward, residual=False))
    out = fwd(params, x, x_lengths)
    for o in out:
        jax.block_until_ready(o)

    assert out[1].shape == (B, T, DIM)
    with jax.default_matmul_precision("highest"):
        ref = _ref_forward(params, x, x_lengths, residual=False)
    max_err = float(jnp.max(jnp.abs(out[1] - ref)))
    assert jnp.allclose(out[1], ref, atol=2e-3, rtol=2e-3), max_err
    assert jnp.allclose(out[0], x)

    print("KERNEL_OK")
</pallas_src>

<mosaic_0001>
module attributes {stable_mosaic.version = 11 : i64} {
  func.func @_enc_frontend_kernel(%arg0: i32, %arg1: memref<1x8x16xf32, #tpu.memory_space<vmem>>, %arg2: memref<8x16xf32, #tpu.memory_space<vmem>>, %arg3: memref<8x16xf32, #tpu.memory_space<vmem>>, %arg4: memref<16x32xf32, #tpu.memory_space<vmem>>, %arg5: memref<1x32xf32, #tpu.memory_space<vmem>>, %arg6: memref<1x8x32xf32, #tpu.memory_space<vmem>>) attributes {dimension_semantics = [#tpu.dimension_semantics<parallel>], iteration_bounds = array<i64: 2>, scalar_prefetch = 0 : i64, scratch_operands = 0 : i64, tpu.core_type = #tpu.core_type<tc>, window_params = [{transform_indices = @transform_0, window_bounds = array<i64: 1, 8, 16>}, {pipeline_mode = #tpu.pipeline_mode<synchronous>, transform_indices = @transform_1, window_bounds = array<i64: 8, 16>}, {pipeline_mode = #tpu.pipeline_mode<synchronous>, transform_indices = @transform_2, window_bounds = array<i64: 8, 16>}, {pipeline_mode = #tpu.pipeline_mode<synchronous>, transform_indices = @transform_3, window_bounds = array<i64: 16, 32>}, {pipeline_mode = #tpu.pipeline_mode<synchronous>, transform_indices = @transform_4, window_bounds = array<i64: 1, 32>}, {transform_indices = @transform_5, window_bounds = array<i64: 1, 8, 32>}]} {
    %c0 = arith.constant 0 : index
    %c0_0 = arith.constant 0 : index
    %c0_1 = arith.constant 0 : index
    %0 = vector.load %arg1[%c0, %c0_0, %c0_1] : memref<1x8x16xf32, #tpu.memory_space<vmem>>, vector<1x8x16xf32>
    %1 = vector.shape_cast %0 : vector<1x8x16xf32> to vector<8x16xf32>
    %cst = arith.constant dense<0.000000e+00> : vector<8xf32>
    %2 = vector.multi_reduction <add>, %1, %cst [1] : vector<8x16xf32> to vector<8xf32>
    %3 = vector.shape_cast %2 : vector<8xf32> to vector<8x1xf32>
    %cst_2 = arith.constant dense<0.000000e+00> : vector<1xf32>
    %4 = vector.multi_reduction <add>, %3, %cst_2 [0] : vector<8x1xf32> to vector<1xf32>
    %5 = vector.shape_cast %4 : vector<1xf32> to vector<1x1xf32>
    %cst_3 = arith.constant 7.812500e-03 : f32
    %6 = vector.broadcast %cst_3 : f32 to vector<1x1xf32>
    %7 = arith.mulf %5, %6 : vector<1x1xf32>
    %8 = vector.broadcast %7 : vector<1x1xf32> to vector<8x16xf32>
    %9 = arith.subf %1, %8 : vector<8x16xf32>
    %10 = arith.mulf %9, %9 : vector<8x16xf32>
    %cst_4 = arith.constant dense<0.000000e+00> : vector<8xf32>
    %11 = vector.multi_reduction <add>, %10, %cst_4 [1] : vector<8x16xf32> to vector<8xf32>
    %12 = vector.shape_cast %11 : vector<8xf32> to vector<8x1xf32>
    %cst_5 = arith.constant dense<0.000000e+00> : vector<1xf32>
    %13 = vector.multi_reduction <add>, %12, %cst_5 [0] : vector<8x1xf32> to vector<1xf32>
    %14 = vector.shape_cast %13 : vector<1xf32> to vector<1x1xf32>
    %cst_6 = arith.constant 7.812500e-03 : f32
    %15 = vector.broadcast %cst_6 : f32 to vector<1x1xf32>
    %16 = arith.mulf %14, %15 : vector<1x1xf32>
    %cst_7 = arith.constant 9.99999974E-6 : f32
    %17 = vector.broadcast %cst_7 : f32 to vector<1x1xf32>
    %18 = arith.addf %16, %17 : vector<1x1xf32>
    %19 = math.rsqrt %18 : vector<1x1xf32>
    %20 = vector.broadcast %19 : vector<1x1xf32> to vector<8x16xf32>
    %21 = arith.mulf %9, %20 : vector<8x16xf32>
    %c0_8 = arith.constant 0 : index
    %c0_9 = arith.constant 0 : index
    %22 = vector.load %arg2[%c0_8, %c0_9] : memref<8x16xf32, #tpu.memory_space<vmem>>, vector<8x16xf32>
    %23 = arith.mulf %21, %22 : vector<8x16xf32>
    %c0_10 = arith.constant 0 : index
    %c0_11 = arith.constant 0 : index
    %24 = vector.load %arg3[%c0_10, %c0_11] : memref<8x16xf32, #tpu.memory_space<vmem>>, vector<8x16xf32>
    %25 = arith.addf %23, %24 : vector<8x16xf32>
    %c0_12 = arith.constant 0 : index
    %c0_13 = arith.constant 0 : index
    %26 = vector.load %arg4[%c0_12, %c0_13] : memref<16x32xf32, #tpu.memory_space<vmem>>, vector<16x32xf32>
    %cst_14 = arith.constant dense<0.000000e+00> : vector<8x32xf32>
    %27 = tpu.matmul %25, %26, %cst_14 {dimension_numbers = #tpu.dot_dimension_numbers<[1], [0], [0], [1], [0, 0, 1, 1], [], []>} : vector<8x16xf32>, vector<16x32xf32>, vector<8x32xf32> -> vector<8x32xf32>
    %c0_15 = arith.constant 0 : index
    %c0_16 = arith.constant 0 : index
    %28 = vector.load %arg5[%c0_15, %c0_16] : memref<1x32xf32, #tpu.memory_space<vmem>>, vector<1x32xf32>
    %29 = vector.broadcast %28 : vector<1x32xf32> to vector<8x32xf32>
    %30 = arith.addf %27, %29 : vector<8x32xf32>
    %cst_17 = arith.constant 0.000000e+00 : f32
    %31 = vector.broadcast %cst_17 : f32 to vector<8x32xf32>
    %32 = arith.maximumf %30, %31 : vector<8x32xf32>
    %c0_18 = arith.constant 0 : index
    %c0_19 = arith.constant 0 : index
    %c0_20 = arith.constant 0 : index
    %33 = vector.load %arg6[%c0_18, %c0_19, %c0_20] : memref<1x8x32xf32, #tpu.memory_space<vmem>>, vector<1x8x32xf32>
    %34 = vector.shape_cast %33 : vector<1x8x32xf32> to vector<8x32xf32>
    %35 = vector.shape_cast %32 : vector<8x32xf32> to vector<1x8x32xf32>
    tpu.vector_store %arg6[%c0_18, %c0_19, %c0_20], %35 {strides = array<i32>} : memref<1x8x32xf32, #tpu.memory_space<vmem>>, vector<1x8x32xf32>,
    return
  }
  func.func @transform_0(%arg0: i32) -> (i32, i32, i32) {
    %c0_i32 = arith.constant 0 : i32
    %c0_i32_0 = arith.constant 0 : i32
    %c0_i32_1 = arith.constant 0 : i32
    return %arg0, %c0_i32, %c0_i32_0 : i32, i32, i32
  }
  func.func @transform_1(%arg0: i32) -> (i32, i32) {
    %c0_i32 = arith.constant 0 : i32
    %c0_i32_0 = arith.constant 0 : i32
    %c0_i32_1 = arith.constant 0 : i32
    return %c0_i32, %c0_i32_0 : i32, i32
  }
  func.func @transform_2(%arg0: i32) -> (i32, i32) {
    %c0_i32 = arith.constant 0 : i32
    %c0_i32_0 = arith.constant 0 : i32
    %c0_i32_1 = arith.constant 0 : i32
    return %c0_i32, %c0_i32_0 : i32, i32
  }
  func.func @transform_3(%arg0: i32) -> (i32, i32) {
    %c0_i32 = arith.constant 0 : i32
    %c0_i32_0 = arith.constant 0 : i32
    %c0_i32_1 = arith.constant 0 : i32
    return %c0_i32, %c0_i32_0 : i32, i32
  }
  func.func @transform_4(%arg0: i32) -> (i32, i32) {
    %c0_i32 = arith.constant 0 : i32
    %c0_i32_0 = arith.constant 0 : i32
    %c0_i32_1 = arith.constant 0 : i32
    return %c0_i32, %c0_i32_0 : i32, i32
  }
  func.func @transform_5(%arg0: i32) -> (i32, i32, i32) {
    %c0_i32 = arith.constant 0 : i32
    %c0_i32_0 = arith.constant 0 : i32
    %c0_i32_1 = arith.constant 0 : i32
    return %arg0, %c0_i32, %c0_i32_0 : i32, i32, i32
  }
}

module attributes {stable_mosaic.version = 11 : i64} {
  func.func @_bilstm_pool_kernel(%arg0: i32, %arg1: memref<2x1xi32, #tpu.memory_space<vmem>>, %arg2: memref<8x2x32xf32, #tpu.memory_space<vmem>>, %arg3: memref<4x32x64xf32, #tpu.memory_space<vmem>>, %arg4: memref<4x64x64xf32, #tpu.memory_space<vmem>>, %arg5: memref<4x1x64xf32, #tpu.memory_space<vmem>>, %arg6: memref<4x32x64xf32, #tpu.memory_space<vmem>>, %arg7: memref<4x64x64xf32, #tpu.memory_space<vmem>>, %arg8: memref<4x1x64xf32, #tpu.memory_space<vmem>>, %arg9: memref<2x2x64xf32, #tpu.memory_space<vmem>>) attributes {dimension_semantics = [#tpu.dimension_semantics<arbitrary>], iteration_bounds = array<i64: 1>, scalar_prefetch = 0 : i64, scratch_operands = 0 : i64, tpu.core_type = #tpu.core_type<tc>, window_params = [{pipeline_mode = #tpu.pipeline_mode<synchronous>, transform_indices = @transform_0, window_bounds = array<i64: 2, 1>}, {pipeline_mode = #tpu.pipeline_mode<synchronous>, transform_indices = @transform_1, window_bounds = array<i64: 8, 2, 32>}, {pipeline_mode = #tpu.pipeline_mode<synchronous>, transform_indices = @transform_2, window_bounds = array<i64: 4, 32, 64>}, {pipeline_mode = #tpu.pipeline_mode<synchronous>, transform_indices = @transform_3, window_bounds = array<i64: 4, 64, 64>}, {pipeline_mode = #tpu.pipeline_mode<synchronous>, transform_indices = @transform_4, window_bounds = array<i64: 4, 1, 64>}, {pipeline_mode = #tpu.pipeline_mode<synchronous>, transform_indices = @transform_5, window_bounds = array<i64: 4, 32, 64>}, {pipeline_mode = #tpu.pipeline_mode<synchronous>, transform_indices = @transform_6, window_bounds = array<i64: 4, 64, 64>}, {pipeline_mode = #tpu.pipeline_mode<synchronous>, transform_indices = @transform_7, window_bounds = array<i64: 4, 1, 64>}, {pipeline_mode = #tpu.pipeline_mode<synchronous>, transform_indices = @transform_8, window_bounds = array<i64: 2, 2, 64>}]} {
    %c0 = arith.constant 0 : index
    %c0_0 = arith.constant 0 : index
    %0 = vector.load %arg1[%c0, %c0_0] : memref<2x1xi32, #tpu.memory_space<vmem>>, vector<2x1xi32>
    %1 = arith.sitofp %0 : vector<2x1xi32> to vector<2x1xf32>
    %cst = arith.constant 1.000000e+00 : f32
    %2 = vector.broadcast %cst : f32 to vector<2x1xf32>
    %3 = arith.divf %2, %1 : vector<2x1xf32>
    %c0_1 = arith.constant 0 : index
    %c0_2 = arith.constant 0 : index
    %c0_3 = arith.constant 0 : index
    %4 = vector.load %arg3[%c0_1, %c0_2, %c0_3] : memref<4x32x64xf32, #tpu.memory_space<vmem>>, vector<1x32x64xf32>
    %5 = vector.shape_cast %4 : vector<1x32x64xf32> to vector<32x64xf32>
    %c1 = arith.constant 1 : index
    %c0_4 = arith.constant 0 : index
    %c0_5 = arith.constant 0 : index
    %6 = vector.load %arg3[%c1, %c0_4, %c0_5] : memref<4x32x64xf32, #tpu.memory_space<vmem>>, vector<1x32x64xf32>
    %7 = vector.shape_cast %6 : vector<1x32x64xf32> to vector<32x64xf32>
    %c2 = arith.constant 2 : index
    %c0_6 = arith.constant 0 : index
    %c0_7 = arith.constant 0 : index
    %8 = vector.load %arg3[%c2, %c0_6, %c0_7] : memref<4x32x64xf32, #tpu.memory_space<vmem>>, vector<1x32x64xf32>
    %9 = vector.shape_cast %8 : vector<1x32x64xf32> to vector<32x64xf32>
    %c3 = arith.constant 3 : index
    %c0_8 = arith.constant 0 : index
    %c0_9 = arith.constant 0 : index
    %10 = vector.load %arg3[%c3, %c0_8, %c0_9] : memref<4x32x64xf32, #tpu.memory_space<vmem>>, vector<1x32x64xf32>
    %11 = vector.shape_cast %10 : vector<1x32x64xf32> to vector<32x64xf32>
    %c0_10 = arith.constant 0 : index
    %c0_11 = arith.constant 0 : index
    %c0_12 = arith.constant 0 : index
    %12 = vector.load %arg4[%c0_10, %c0_11, %c0_12] : memref<4x64x64xf32, #tpu.memory_space<vmem>>, vector<1x64x64xf32>
    %13 = vector.shape_cast %12 : vector<1x64x64xf32> to vector<64x64xf32>
    %c1_13 = arith.constant 1 : index
    %c0_14 = arith.constant 0 : index
    %c0_15 = arith.constant 0 : index
    %14 = vector.load %arg4[%c1_13, %c0_14, %c0_15] : memref<4x64x64xf32, #tpu.memory_space<vmem>>, vector<1x64x64xf32>
    %15 = vector.shape_cast %14 : vector<1x64x64xf32> to vector<64x64xf32>
    %c2_16 = arith.constant 2 : index
    %c0_17 = arith.constant 0 : index
    %c0_18 = arith.constant 0 : index
    %16 = vector.load %arg4[%c2_16, %c0_17, %c0_18] : memref<4x64x64xf32, #tpu.memory_space<vmem>>, vector<1x64x64xf32>
    %17 = vector.shape_cast %16 : vector<1x64x64xf32> to vector<64x64xf32>
    %c3_19 = arith.constant 3 : index
    %c0_20 = arith.constant 0 : index
    %c0_21 = arith.constant 0 : index
    %18 = vector.load %arg4[%c3_19, %c0_20, %c0_21] : memref<4x64x64xf32, #tpu.memory_space<vmem>>, vector<1x64x64xf32>
    %19 = vector.shape_cast %18 : vector<1x64x64xf32> to vector<64x64xf32>
    %c0_22 = arith.constant 0 : index
    %c0_23 = arith.constant 0 : index
    %c0_24 = arith.constant 0 : index
    %20 = vector.load %arg5[%c0_22, %c0_23, %c0_24] : memref<4x1x64xf32, #tpu.memory_space<vmem>>, vector<1x1x64xf32>
    %21 = vector.shape_cast %20 : vector<1x1x64xf32> to vector<1x64xf32>
    %c1_25 = arith.constant 1 : index
    %c0_26 = arith.constant 0 : index
    %c0_27 = arith.constant 0 : index
    %22 = vector.load %arg5[%c1_25, %c0_26, %c0_27] : memref<4x1x64xf32, #tpu.memory_space<vmem>>, vector<1x1x64xf32>
    %23 = vector.shape_cast %22 : vector<1x1x64xf32> to vector<1x64xf32>
    %c2_28 = arith.constant 2 : index
    %c0_29 = arith.constant 0 : index
    %c0_30 = arith.constant 0 : index
    %24 = vector.load %arg5[%c2_28, %c0_29, %c0_30] : memref<4x1x64xf32, #tpu.memory_space<vmem>>, vector<1x1x64xf32>
    %25 = vector.shape_cast %24 : vector<1x1x64xf32> to vector<1x64xf32>
    %c3_31 = arith.constant 3 : index
    %c0_32 = arith.constant 0 : index
    %c0_33 = arith.constant 0 : index
    %26 = vector.load %arg5[%c3_31, %c0_32, %c0_33] : memref<4x1x64xf32, #tpu.memory_space<vmem>>, vector<1x1x64xf32>
    %27 = vector.shape_cast %26 : vector<1x1x64xf32> to vector<1x64xf32>
    %cst_34 = arith.constant 0.000000e+00 : f32
    %28 = vector.broadcast %cst_34 : f32 to vector<2x64xf32>
    %cst_35 = arith.constant 0.000000e+00 : f32
    %29 = vector.broadcast %cst_35 : f32 to vector<2x64xf32>
    %cst_36 = arith.constant 0.000000e+00 : f32
    %30 = vector.broadcast %cst_36 : f32 to vector<2x64xf32>
    %c0_37 = arith.constant 0 : index
    %c0_38 = arith.constant 0 : index
    %c0_39 = arith.constant 0 : index
    %31 = vector.load %arg2[%c0_37, %c0_38, %c0_39] : memref<8x2x32xf32, #tpu.memory_space<vmem>>, vector<1x2x32xf32>
    %32 = vector.shape_cast %31 : vector<1x2x32xf32> to vector<2x32xf32>
    %cst_40 = arith.constant dense<0.000000e+00> : vector<2x64xf32>
    %33 = tpu.matmul %32, %5, %cst_40 {dimension_numbers = #tpu.dot_dimension_numbers<[1], [0], [0], [1], [0, 0, 1, 1], [], []>} : vector<2x32xf32>, vector<32x64xf32>, vector<2x64xf32> -> vector<2x64xf32>
    %cst_41 = arith.constant dense<0.000000e+00> : vector<2x64xf32>
    %34 = tpu.matmul %28, %13, %cst_41 {dimension_numbers = #tpu.dot_dimension_numbers<[1], [0], [0], [1], [0, 0, 1, 1], [], []>} : vector<2x64xf32>, vector<64x64xf32>, vector<2x64xf32> -> vector<2x64xf32>
    %35 = arith.addf %33, %34 : vector<2x64xf32>
    %36 = vector.broadcast %21 : vector<1x64xf32> to vector<2x64xf32>
    %37 = arith.addf %35, %36 : vector<2x64xf32>
    %38 = arith.negf %37 : vector<2x64xf32>
    %39 = math.exp %38 : vector<2x64xf32>
    %cst_42 = arith.constant 1.000000e+00 : f32
    %40 = vector.broadcast %cst_42 : f32 to vector<2x64xf32>
    %41 = arith.addf %40, %39 : vector<2x64xf32>
    %42 = arith.divf %40, %41 : vector<2x64xf32>
    %cst_43 = arith.constant dense<0.000000e+00> : vector<2x64xf32>
    %43 = tpu.matmul %32, %7, %cst_43 {dimension_numbers = #tpu.dot_dimension_numbers<[1], [0], [0], [1], [0, 0, 1, 1], [], []>} : vector<2x32xf32>, vector<32x64xf32>, vector<2x64xf32> -> vector<2x64xf32>
    %cst_44 = arith.constant dense<0.000000e+00> : vector<2x64xf32>
    %44 = tpu.matmul %28, %15, %cst_44 {dimension_numbers = #tpu.dot_dimension_numbers<[1], [0], [0], [1], [0, 0, 1, 1], [], []>} : vector<2x64xf32>, vector<64x64xf32>, vector<2x64xf32> -> vector<2x64xf32>
    %45 = arith.addf %43, %44 : vector<2x64xf32>
    %46 = vector.broadcast %23 : vector<1x64xf32> to vector<2x64xf32>
    %47 = arith.addf %45, %46 : vector<2x64xf32>
    %48 = arith.negf %47 : vector<2x64xf32>
    %49 = math.exp %48 : vector<2x64xf32>
    %cst_45 = arith.constant 1.000000e+00 : f32
    %50 = vector.broadcast %cst_45 : f32 to vector<2x64xf32>
    %51 = arith.addf %50, %49 : vector<2x64xf32>
    %52 = arith.divf %50, %51 : vector<2x64xf32>
    %cst_46 = arith.constant dense<0.000000e+00> : vector<2x64xf32>
    %53 = tpu.matmul %32, %9, %cst_46 {dimension_numbers = #tpu.dot_dimension_numbers<[1], [0], [0], [1], [0, 0, 1, 1], [], []>} : vector<2x32xf32>, vector<32x64xf32>, vector<2x64xf32> -> vector<2x64xf32>
    %cst_47 = arith.constant dense<0.000000e+00> : vector<2x64xf32>
    %54 = tpu.matmul %28, %17, %cst_47 {dimension_numbers = #tpu.dot_dimension_numbers<[1], [0], [0], [1], [0, 0, 1, 1], [], []>} : vector<2x64xf32>, vector<64x64xf32>, vector<2x64xf32> -> vector<2x64xf32>
    %55 = arith.addf %53, %54 : vector<2x64xf32>
    %56 = vector.broadcast %25 : vector<1x64xf32> to vector<2x64xf32>
    %57 = arith.addf %55, %56 : vector<2x64xf32>
    %58 = math.tanh %57 : vector<2x64xf32>
    %cst_48 = arith.constant dense<0.000000e+00> : vector<2x64xf32>
    %59 = tpu.matmul %32, %11, %cst_48 {dimension_numbers = #tpu.dot_dimension_numbers<[1], [0], [0], [1], [0, 0, 1, 1], [], []>} : vector<2x32xf32>, vector<32x64xf32>, vector<2x64xf32> -> vector<2x64xf32>
    %cst_49 = arith.constant dense<0.000000e+00> : vector<2x64xf32>
    %60 = tpu.matmul %28, %19, %cst_49 {dimension_numbers = #tpu.dot_dimension_numbers<[1], [0], [0], [1], [0, 0, 1, 1], [], []>} : vector<2x64xf32>, vector<64x64xf32>, vector<2x64xf32> -> vector<2x64xf32>
    %61 = arith.addf %59, %60 : vector<2x64xf32>
    %62 = vector.broadcast %27 : vector<1x64xf32> to vector<2x64xf32>
    %63 = arith.addf %61, %62 : vector<2x64xf32>
    %64 = arith.negf %63 : vector<2x64xf32>
    %65 = math.exp %64 : vector<2x64xf32>
    %cst_50 = arith.constant 1.000000e+00 : f32
    %66 = vector.broadcast %cst_50 : f32 to vector<2x64xf32>
    %67 = arith.addf %66, %65 : vector<2x64xf32>
    %68 = arith.divf %66, %67 : vector<2x64xf32>
    %69 = arith.mulf %52, %29 : vector<2x64xf32>
    %70 = arith.mulf %42, %58 : vector<2x64xf32>
    %71 = arith.addf %69, %70 : vector<2x64xf32>
    %72 = math.tanh %71 : vector<2x64xf32>
    %73 = arith.mulf %68, %72 : vector<2x64xf32>
    %c0_i32 = arith.constant 0 : i32
    %74 = vector.broadcast %c0_i32 : i32 to vector<2x1xi32>
    %75 = arith.cmpi sgt, %0, %74 : vector<2x1xi32>
    %76 = arith.extui %75 : vector<2x1xi1> to vector<2x1xi32>
    %77 = arith.sitofp %76 : vector<2x1xi32> to vector<2x1xf32>
    %78 = vector.broadcast %77 : vector<2x1xf32> to vector<2x64xf32>
    %79 = arith.mulf %78, %73 : vector<2x64xf32>
    %cst_51 = arith.constant 1.000000e+00 : f32
    %80 = vector.broadcast %cst_51 : f32 to vector<2x1xf32>
    %81 = arith.subf %80, %77 : vector<2x1xf32>
    %82 = vector.broadcast %81 : vector<2x1xf32> to vector<2x64xf32>
    %83 = arith.mulf %82, %28 : vector<2x64xf32>
    %84 = arith.addf %79, %83 : vector<2x64xf32>
    %85 = vector.broadcast %77 : vector<2x1xf32> to vector<2x64xf32>
    %86 = arith.mulf %85, %71 : vector<2x64xf32>
    %cst_52 = arith.constant 1.000000e+00 : f32
    %87 = vector.broadcast %cst_52 : f32 to vector<2x1xf32>
    %88 = arith.subf %87, %77 : vector<2x1xf32>
    %89 = vector.broadcast %88 : vector<2x1xf32> to vector<2x64xf32>
    %90 = arith.mulf %89, %29 : vector<2x64xf32>
    %91 = arith.addf %86, %90 : vector<2x64xf32>
    %92 = vector.broadcast %77 : vector<2x1xf32> to vector<2x64xf32>
    %93 = arith.mulf %92, %73 : vector<2x64xf32>
    %94 = arith.addf %30, %93 : vector<2x64xf32>
    %c1_53 = arith.constant 1 : index
    %c0_54 = arith.constant 0 : index
    %c0_55 = arith.constant 0 : index
    %95 = vector.load %arg2[%c1_53, %c0_54, %c0_55] : memref<8x2x32xf32, #tpu.memory_space<vmem>>, vector<1x2x32xf32>
    %96 = vector.shape_cast %95 : vector<1x2x32xf32> to vector<2x32xf32>
    %cst_56 = arith.constant dense<0.000000e+00> : vector<2x64xf32>
    %97 = tpu.matmul %96, %5, %cst_56 {dimension_numbers = #tpu.dot_dimension_numbers<[1], [0], [0], [1], [0, 0, 1, 1], [], []>} : vector<2x32xf32>, vector<32x64xf32>, vector<2x64xf32> -> vector<2x64xf32>
    %cst_57 = arith.constant dense<0.000000e+00> : vector<2x64xf32>
    %98 = tpu.matmul %84, %13, %cst_57 {dimension_numbers = #tpu.dot_dimension_numbers<[1], [0], [0], [1], [0, 0, 1, 1], [], []>} : vector<2x64xf32>, vector<64x64xf32>, vector<2x64xf32> -> vector<2x64xf32>
    %99 = arith.addf %97, %98 : vector<2x64xf32>
    %100 = vector.broadcast %21 : vector<1x64xf32> to vector<2x64xf32>
    %101 = arith.addf %99, %100 : vector<2x64xf32>
    %102 = arith.negf %101 : vector<2x64xf32>
    %103 = math.exp %102 : vector<2x64xf32>
    %cst_58 = arith.constant 1.000000e+00 : f32
    %104 = vector.broadcast %cst_58 : f32 to vector<2x64xf32>
    %105 = arith.addf %104, %103 : vector<2x64xf32>
    %106 = arith.divf %104, %105 : vector<2x64xf32>
    %cst_59 = arith.constant dense<0.000000e+00> : vector<2x64xf32>
    %107 = tpu.matmul %96, %7, %cst_59 {dimension_numbers = #tpu.dot_dimension_numbers<[1], [0], [0], [1], [0, 0, 1, 1], [], []>} : vector<2x32xf32>, vector<32x64xf32>, vector<2x64xf32> -> vector<2x64xf32>
    %cst_60 = arith.constant dense<0.000000e+00> : vector<2x64xf32>
    %108 = tpu.matmul %84, %15, %cst_60 {dimension_numbers = #tpu.dot_dimension_numbers<[1], [0], [0], [1], [0, 0, 1, 1], [], []>} : vector<2x64xf32>, vector<64x64xf32>, vector<2x64xf32> -> vector<2x64xf32>
    %109 = arith.addf %107, %108 : vector<2x64xf32>
    %110 = vector.broadcast %23 : vector<1x64xf32> to vector<2x64xf32>
    %111 = arith.addf %109, %110 : vector<2x64xf32>
    %112 = arith.negf %111 : vector<2x64xf32>
    %113 = math.exp %112 : vector<2x64xf32>
    %cst_61 = arith.constant 1.000000e+00 : f32
    %114 = vector.broadcast %cst_61 : f32 to vector<2x64xf32>
    %115 = arith.addf %114, %113 : vector<2x64xf32>
    %116 = arith.divf %114, %115 : vector<2x64xf32>
    %cst_62 = arith.constant dense<0.000000e+00> : vector<2x64xf32>
    %117 = tpu.matmul %96, %9, %cst_62 {dimension_numbers = #tpu.dot_dimension_numbers<[1], [0], [0], [1], [0, 0, 1, 1], [], []>} : vector<2x32xf32>, vector<32x64xf32>, vector<2x64xf32> -> vector<2x64xf32>
    %cst_63 = arith.constant dense<0.000000e+00> : vector<2x64xf32>
    %118 = tpu.matmul %84, %17, %cst_63 {dimension_numbers = #tpu.dot_dimension_numbers<[1], [0], [0], [1], [0, 0, 1, 1], [], []>} : vector<2x64xf32>, vector<64x64xf32>, vector<2x64xf32> -> vector<2x64xf32>
    %119 = arith.addf %117, %118 : vector<2x64xf32>
    %120 = vector.broadcast %25 : vector<1x64xf32> to vector<2x64xf32>
    %121 = arith.addf %119, %120 : vector<2x64xf32>
    %122 = math.tanh %121 : vector<2x64xf32>
    %cst_64 = arith.constant dense<0.000000e+00> : vector<2x64xf32>
    %123 = tpu.matmul %96, %11, %cst_64 {dimension_numbers = #tpu.dot_dimension_numbers<[1], [0], [0], [1], [0, 0, 1, 1], [], []>} : vector<2x32xf32>, vector<32x64xf32>, vector<2x64xf32> -> vector<2x64xf32>
    %cst_65 = arith.constant dense<0.000000e+00> : vector<2x64xf32>
    %124 = tpu.matmul %84, %19, %cst_65 {dimension_numbers = #tpu.dot_dimension_numbers<[1], [0], [0], [1], [0, 0, 1, 1], [], []>} : vector<2x64xf32>, vector<64x64xf32>, vector<2x64xf32> -> vector<2x64xf32>
    %125 = arith.addf %123, %124 : vector<2x64xf32>
    %126 = vector.broadcast %27 : vector<1x64xf32> to vector<2x64xf32>
    %127 = arith.addf %125, %126 : vector<2x64xf32>
    %128 = arith.negf %127 : vector<2x64xf32>
    %129 = math.exp %128 : vector<2x64xf32>
    %cst_66 = arith.constant 1.000000e+00 : f32
    %130 = vector.broadcast %cst_66 : f32 to vector<2x64xf32>
    %131 = arith.addf %130, %129 : vector<2x64xf32>
    %132 = arith.divf %130, %131 : vector<2x64xf32>
    %133 = arith.mulf %116, %91 : vector<2x64xf32>
    %134 = arith.mulf %106, %122 : vector<2x64xf32>
    %135 = arith.addf %133, %134 : vector<2x64xf32>
    %136 = math.tanh %135 : vector<2x64xf32>
    %137 = arith.mulf %132, %136 : vector<2x64xf32>
    %c1_i32 = arith.constant 1 : i32
    %138 = vector.broadcast %c1_i32 : i32 to vector<2x1xi32>
    %139 = arith.cmpi sgt, %0, %138 : vector<2x1xi32>
    %140 = arith.extui %139 : vector<2x1xi1> to vector<2x1xi32>
    %141 = arith.sitofp %140 : vector<2x1xi32> to vector<2x1xf32>
    %142 = vector.broadcast %141 : vector<2x1xf32> to vector<2x64xf32>
    %143 = arith.mulf %142, %137 : vector<2x64xf32>
    %cst_67 = arith.constant 1.000000e+00 : f32
    %144 = vector.broadcast %cst_67 : f32 to vector<2x1xf32>
    %145 = arith.subf %144, %141 : vector<2x1xf32>
    %146 = vector.broadcast %145 : vector<2x1xf32> to vector<2x64xf32>
    %147 = arith.mulf %146, %84 : vector<2x64xf32>
    %148 = arith.addf %143, %147 : vector<2x64xf32>
    %149 = vector.broadcast %141 : vector<2x1xf32> to vector<2x64xf32>
    %150 = arith.mulf %149, %135 : vector<2x64xf32>
    %cst_68 = arith.constant 1.000000e+00 : f32
    %151 = vector.broadcast %cst_68 : f32 to vector<2x1xf32>
    %152 = arith.subf %151, %141 : vector<2x1xf32>
    %153 = vector.broadcast %152 : vector<2x1xf32> to vector<2x64xf32>
    %154 = arith.mulf %153, %91 : vector<2x64xf32>
    %155 = arith.addf %150, %154 : vector<2x64xf32>
    %156 = vector.broadcast %141 : vector<2x1xf32> to vector<2x64xf32>
    %157 = arith.mulf %156, %137 : vector<2x64xf32>
    %158 = arith.addf %94, %157 : vector<2x64xf32>
    %c2_69 = arith.constant 2 : index
    %c0_70 = arith.constant 0 : index
    %c0_71 = arith.constant 0 : index
    %159 = vector.load %arg2[%c2_69, %c0_70, %c0_71] : memref<8x2x32xf32, #tpu.memory_space<vmem>>, vector<1x2x32xf32>
    %160 = vector.shape_cast %159 : vector<1x2x32xf32> to vector<2x32xf32>
    %cst_72 = arith.constant dense<0.000000e+00> : vector<2x64xf32>
    %161 = tpu.matmul %160, %5, %cst_72 {dimension_numbers = #tpu.dot_dimension_numbers<[1], [0], [0], [1], [0, 0, 1, 1], [], []>} : vector<2x32xf32>, vector<32x64xf32>, vector<2x64xf32> -> vector<2x64xf32>
    %cst_73 = arith.constant dense<0.000000e+00> : vector<2x64xf32>
    %162 = tpu.matmul %148, %13, %cst_73 {dimension_numbers = #tpu.dot_dimension_numbers<[1], [0], [0], [1], [0, 0, 1, 1], [], []>} : vector<2x64xf32>, vector<64x64xf32>, vector<2x64xf32> -> vector<2x64xf32>
    %163 = arith.addf %161, %162 : vector<2x64xf32>
    %164 = vector.broadcast %21 : vector<1x64xf32> to vector<2x64xf32>
    %165 = arith.addf %163, %164 : vector<2x64xf32>
    %166 = arith.negf %165 : vector<2x64xf32>
    %167 = math.exp %166 : vector<2x64xf32>
    %cst_74 = arith.constant 1.000000e+00 : f32
    %168 = vector.broadcast %cst_74 : f32 to vector<2x64xf32>
    %169 = arith.addf %168, %167 : vector<2x64xf32>
    %170 = arith.divf %168, %169 : vector<2x64xf32>
    %cst_75 = arith.constant dense<0.000000e+00> : vector<2x64xf32>
    %171 = tpu.matmul %160, %7, %cst_75 {dimension_numbers = #tpu.dot_dimension_numbers<[1], [0], [0], [1], [0, 0, 1, 1], [], []>} : vector<2x32xf32>, vector<32x64xf32>, vector<2x64xf32> -> vector<2x64xf32>
    %cst_76 = arith.constant dense<0.000000e+00> : vector<2x64xf32>
    %172 = tpu.matmul %148, %15, %cst_76 {dimension_numbers = #tpu.dot_dimension_numbers<[1], [0], [0], [1], [0, 0, 1, 1], [], []>} : vector<2x64xf32>, vector<64x64xf32>, vector<2x64xf32> -> vector<2x64xf32>
    %173 = arith.addf %171, %172 : vector<2x64xf32>
    %174 = vector.broadcast %23 : vector<1x64xf32> to vector<2x64xf32>
    %175 = arith.addf %173, %174 : vector<2x64xf32>
    %176 = arith.negf %175 : vector<2x64xf32>
    %177 = math.exp %176 : vector<2x64xf32>
    %cst_77 = arith.constant 1.000000e+00 : f32
    %178 = vector.broadcast %cst_77 : f32 to vector<2x64xf32>
    %179 = arith.addf %178, %177 : vector<2x64xf32>
    %180 = arith.divf %178, %179 : vector<2x64xf32>
    %cst_78 = arith.constant dense<0.000000e+00> : vector<2x64xf32>
    %181 = tpu.matmul %160, %9, %cst_78 {dimension_numbers = #tpu.dot_dimension_numbers<[1], [0], [0], [1], [0, 0, 1, 1], [], []>} : vector<2x32xf32>, vector<32x64xf32>, vector<2x64xf32> -> vector<2x64xf32>
    %cst_79 = arith.constant dense<0.000000e+00> : vector<2x64xf32>
    %182 = tpu.matmul %148, %17, %cst_79 {dimension_numbers = #tpu.dot_dimension_numbers<[1], [0], [0], [1], [0, 0, 1, 1], [], []>} : vector<2x64xf32>, vector<64x64xf32>, vector<2x64xf32> -> vector<2x64xf32>
    %183 = arith.addf %181, %182 : vector<2x64xf32>
    %184 = vector.broadcast %25 : vector<1x64xf32> to vector<2x64xf32>
    %185 = arith.addf %183, %184 : vector<2x64xf32>
    %186 = math.tanh %185 : vector<2x64xf32>
    %cst_80 = arith.constant dense<0.000000e+00> : vector<2x64xf32>
    %187 = tpu.matmul %160, %11, %cst_80 {dimension_numbers = #tpu.dot_dimension_numbers<[1], [0], [0], [1], [0, 0, 1, 1], [], []>} : vector<2x32xf32>, vector<32x64xf32>, vector<2x64xf32> -> vector<2x64xf32>
    %cst_81 = arith.constant dense<0.000000e+00> : vector<2x64xf32>
    %188 = tpu.matmul %148, %19, %cst_81 {dimension_numbers = #tpu.dot_dimension_numbers<[1], [0], [0], [1], [0, 0, 1, 1], [], []>} : vector<2x64xf32>, vector<64x64xf32>, vector<2x64xf32> -> vector<2x64xf32>
    %189 = arith.addf %187, %188 : vector<2x64xf32>
    %190 = vector.broadcast %27 : vector<1x64xf32> to vector<2x64xf32>
    %191 = arith.addf %189, %190 : vector<2x64xf32>
    %192 = arith.negf %191 : vector<2x64xf32>
    %193 = math.exp %192 : vector<2x64xf32>
    %cst_82 = arith.constant 1.000000e+00 : f32
    %194 = vector.broadcast %cst_82 : f32 to vector<2x64xf32>
    %195 = arith.addf %194, %193 : vector<2x64xf32>
    %196 = arith.divf %194, %195 : vector<2x64xf32>
    %197 = arith.mulf %180, %155 : vector<2x64xf32>
    %198 = arith.mulf %170, %186 : vector<2x64xf32>
    %199 = arith.addf %197, %198 : vector<2x64xf32>
    %200 = math.tanh %199 : vector<2x64xf32>
    %201 = arith.mulf %196, %200 : vector<2x64xf32>
    %c2_i32 = arith.constant 2 : i32
    %202 = vector.broadcast %c2_i32 : i32 to vector<2x1xi32>
    %203 = arith.cmpi sgt, %0, %202 : vector<2x1xi32>
    %204 = arith.extui %203 : vector<2x1xi1> to vector<2x1xi32>
    %205 = arith.sitofp %204 : vector<2x1xi32> to vector<2x1xf32>
    %206 = vector.broadcast %205 : vector<2x1xf32> to vector<2x64xf32>
    %207 = arith.mulf %206, %201 : vector<2x64xf32>
    %cst_83 = arith.constant 1.000000e+00 : f32
    %208 = vector.broadcast %cst_83 : f32 to vector<2x1xf32>
    %209 = arith.subf %208, %205 : vector<2x1xf32>
    %210 = vector.broadcast %209 : vector<2x1xf32> to vector<2x64xf32>
    %211 = arith.mulf %210, %148 : vector<2x64xf32>
    %212 = arith.addf %207, %211 : vector<2x64xf32>
    %213 = vector.broadcast %205 : vector<2x1xf32> to vector<2x64xf32>
    %214 = arith.mulf %213, %199 : vector<2x64xf32>
    %cst_84 = arith.constant 1.000000e+00 : f32
    %215 = vector.broadcast %cst_84 : f32 to vector<2x1xf32>
    %216 = arith.subf %215, %205 : vector<2x1xf32>
    %217 = vector.broadcast %216 : vector<2x1xf32> to vector<2x64xf32>
    %218 = arith.mulf %217, %155 : vector<2x64xf32>
    %219 = arith.addf %214, %218 : vector<2x64xf32>
    %220 = vector.broadcast %205 : vector<2x1xf32> to vector<2x64xf32>
    %221 = arith.mulf %220, %201 : vector<2x64xf32>
    %222 = arith.addf %158, %221 : vector<2x64xf32>
    %c3_85 = arith.constant 3 : index
    %c0_86 = arith.constant 0 : index
    %c0_87 = arith.constant 0 : index
    %223 = vector.load %arg2[%c3_85, %c0_86, %c0_87] : memref<8x2x32xf32, #tpu.memory_space<vmem>>, vector<1x2x32xf32>
    %224 = vector.shape_cast %223 : vector<1x2x32xf32> to vector<2x32xf32>
    %cst_88 = arith.constant dense<0.000000e+00> : vector<2x64xf32>
    %225 = tpu.matmul %224, %5, %cst_88 {dimension_numbers = #tpu.dot_dimension_numbers<[1], [0], [0], [1], [0, 0, 1, 1], [], []>} : vector<2x32xf32>, vector<32x64xf32>, vector<2x64xf32> -> vector<2x64xf32>
    %cst_89 = arith.constant dense<0.000000e+00> : vector<2x64xf32>
    %226 = tpu.matmul %212, %13, %cst_89 {dimension_numbers = #tpu.dot_dimension_numbers<[1], [0], [0], [1], [0, 0, 1, 1], [], []>} : vector<2x64xf32>, vector<64x64xf32>, vector<2x64xf32> -> vector<2x64xf32>
    %227 = arith.addf %225, %226 : vector<2x64xf32>
    %228 = vector.broadcast %21 : vector<1x64xf32> to vector<2x64xf32>
    %229 = arith.addf %227, %228 : vector<2x64xf32>
    %230 = arith.negf %229 : vector<2x64xf32>
    %231 = math.exp %230 : vector<2x64xf32>
    %cst_90 = arith.constant 1.000000e+00 : f32
    %232 = vector.broadcast %cst_90 : f32 to vector<2x64xf32>
    %233 = arith.addf %232, %231 : vector<2x64xf32>
    %234 = arith.divf %232, %233 : vector<2x64xf32>
    %cst_91 = arith.constant dense<0.000000e+00> : vector<2x64xf32>
    %235 = tpu.matmul %224, %7, %cst_91 {dimension_numbers = #tpu.dot_dimension_numbers<[1], [0], [0], [1], [0, 0, 1, 1], [], []>} : vector<2x32xf32>, vector<32x64xf32>, vector<2x64xf32> -> vector<2x64xf32>
    %cst_92 = arith.constant dense<0.000000e+00> : vector<2x64xf32>
    %236 = tpu.matmul %212, %15, %cst_92 {dimension_numbers = #tpu.dot_dimension_numbers<[1], [0], [0], [1], [0, 0, 1, 1], [], []>} : vector<2x64xf32>, vector<64x64xf32>, vector<2x64xf32> -> vector<2x64xf32>
    %237 = arith.addf %235, %236 : vector<2x64xf32>
    %238 = vector.broadcast %23 : vector<1x64xf32> to vector<2x64xf32>
    %239 = arith.addf %237, %238 : vector<2x64xf32>
    %240 = arith.negf %239 : vector<2x64xf32>
    %241 = math.exp %240 : vector<2x64xf32>
    %cst_93 = arith.constant 1.000000e+00 : f32
    %242 = vector.broadcast %cst_93 : f32 to vector<2x64xf32>
    %243 = arith.addf %242, %241 : vector<2x64xf32>
    %244 = arith.divf %242, %243 : vector<2x64xf32>
    %cst_94 = arith.constant dense<0.000000e+00> : vector<2x64xf32>
    %245 = tpu.matmul %224, %9, %cst_94 {dimension_numbers = #tpu.dot_dimension_numbers<[1], [0], [0], [1], [0, 0, 1, 1], [], []>} : vector<2x32xf32>, vector<32x64xf32>, vector<2x64xf32> -> vector<2x64xf32>
    %cst_95 = arith.constant dense<0.000000e+00> : vector<2x64xf32>
    %246 = tpu.matmul %212, %17, %cst_95 {dimension_numbers = #tpu.dot_dimension_numbers<[1], [0], [0], [1], [0, 0, 1, 1], [], []>} : vector<2x64xf32>, vector<64x64xf32>, vector<2x64xf32> -> vector<2x64xf32>
    %247 = arith.addf %245, %246 : vector<2x64xf32>
    %248 = vector.broadcast %25 : vector<1x64xf32> to vector<2x64xf32>
    %249 = arith.addf %247, %248 : vector<2x64xf32>
    %250 = math.tanh %249 : vector<2x64xf32>
    %cst_96 = arith.constant dense<0.000000e+00> : vector<2x64xf32>
    %251 = tpu.matmul %224, %11, %cst_96 {dimension_numbers = #tpu.dot_dimension_numbers<[1], [0], [0], [1], [0, 0, 1, 1], [], []>} : vector<2x32xf32>, vector<32x64xf32>, vector<2x64xf32> -> vector<2x64xf32>
    %cst_97 = arith.constant dense<0.000000e+00> : vector<2x64xf32>
    %252 = tpu.matmul %212, %19, %cst_97 {dimension_numbers = #tpu.dot_dimension_numbers<[1], [0], [0], [1], [0, 0, 1, 1], [], []>} : vector<2x64xf32>, vector<64x64xf32>, vector<2x64xf32> -> vector<2x64xf32>
    %253 = arith.addf %251, %252 : vector<2x64xf32>
    %254 = vector.broadcast %27 : vector<1x64xf32> to vector<2x64xf32>
    %255 = arith.addf %253, %254 : vector<2x64xf32>
    %256 = arith.negf %255 : vector<2x64xf32>
    %257 = math.exp %256 : vector<2x64xf32>
    %cst_98 = arith.constant 1.000000e+00 : f32
    %258 = vector.broadcast %cst_98 : f32 to vector<2x64xf32>
    %259 = arith.addf %258, %257 : vector<2x64xf32>
    %260 = arith.divf %258, %259 : vector<2x64xf32>
    %261 = arith.mulf %244, %219 : vector<2x64xf32>
    %262 = arith.mulf %234, %250 : vector<2x64xf32>
    %263 = arith.addf %261, %262 : vector<2x64xf32>
    %264 = math.tanh %263 : vector<2x64xf32>
    %265 = arith.mulf %260, %264 : vector<2x64xf32>
    %c3_i32 = arith.constant 3 : i32
    %266 = vector.broadcast %c3_i32 : i32 to vector<2x1xi32>
    %267 = arith.cmpi sgt, %0, %266 : vector<2x1xi32>
    %268 = arith.extui %267 : vector<2x1xi1> to vector<2x1xi32>
    %269 = arith.sitofp %268 : vector<2x1xi32> to vector<2x1xf32>
    %270 = vector.broadcast %269 : vector<2x1xf32> to vector<2x64xf32>
    %271 = arith.mulf %270, %265 : vector<2x64xf32>
    %cst_99 = arith.constant 1.000000e+00 : f32
    %272 = vector.broadcast %cst_99 : f32 to vector<2x1xf32>
    %273 = arith.subf %272, %269 : vector<2x1xf32>
    %274 = vector.broadcast %273 : vector<2x1xf32> to vector<2x64xf32>
    %275 = arith.mulf %274, %212 : vector<2x64xf32>
    %276 = arith.addf %271, %275 : vector<2x64xf32>
    %277 = vector.broadcast %269 : vector<2x1xf32> to vector<2x64xf32>
    %278 = arith.mulf %277, %263 : vector<2x64xf32>
    %cst_100 = arith.constant 1.000000e+00 : f32
    %279 = vector.broadcast %cst_100 : f32 to vector<2x1xf32>
    %280 = arith.subf %279, %269 : vector<2x1xf32>
    %281 = vector.broadcast %280 : vector<2x1xf32> to vector<2x64xf32>
    %282 = arith.mulf %281, %219 : vector<2x64xf32>
    %283 = arith.addf %278, %282 : vector<2x64xf32>
    %284 = vector.broadcast %269 : vector<2x1xf32> to vector<2x64xf32>
    %285 = arith.mulf %284, %265 : vector<2x64xf32>
    %286 = arith.addf %222, %285 : vector<2x64xf32>
    %c4 = arith.constant 4 : index
    %c0_101 = arith.constant 0 : index
    %c0_102 = arith.constant 0 : index
    %287 = vector.load %arg2[%c4, %c0_101, %c0_102] : memref<8x2x32xf32, #tpu.memory_space<vmem>>, vector<1x2x32xf32>
    %288 = vector.shape_cast %287 : vector<1x2x32xf32> to vector<2x32xf32>
    %cst_103 = arith.constant dense<0.000000e+00> : vector<2x64xf32>
    %289 = tpu.matmul %288, %5, %cst_103 {dimension_numbers = #tpu.dot_dimension_numbers<[1], [0], [0], [1], [0, 0, 1, 1], [], []>} : vector<2x32xf32>, vector<32x64xf32>, vector<2x64xf32> -> vector<2x64xf32>
    %cst_104 = arith.constant dense<0.000000e+00> : vector<2x64xf32>
    %290 = tpu.matmul %276, %13, %cst_104 {dimension_numbers = #tpu.dot_dimension_numbers<[1], [0], [0], [1], [0, 0, 1, 1], [], []>} : vector<2x64xf32>, vector<64x64xf32>, vector<2x64xf32> -> vector<2x64xf32>
    %291 = arith.addf %289, %290 : vector<2x64xf32>
    %292 = vector.broadcast %21 : vector<1x64xf32> to vector<2x64xf32>
    %293 = arith.addf %291, %292 : vector<2x64xf32>
    %294 = arith.negf %293 : vector<2x64xf32>
    %295 = math.exp %294 : vector<2x64xf32>
    %cst_105 = arith.constant 1.000000e+00 : f32
    %296 = vector.broadcast %cst_105 : f32 to vector<2x64xf32>
    %297 = arith.addf %296, %295 : vector<2x64xf32>
    %298 = arith.divf %296, %297 : vector<2x64xf32>
    %cst_106 = arith.constant dense<0.000000e+00> : vector<2x64xf32>
    %299 = tpu.matmul %288, %7, %cst_106 {dimension_numbers = #tpu.dot_dimension_numbers<[1], [0], [0], [1], [0, 0, 1, 1], [], []>} : vector<2x32xf32>, vector<32x64xf32>, vector<2x64xf32> -> vector<2x64xf32>
    %cst_107 = arith.constant dense<0.000000e+00> : vector<2x64xf32>
    %300 = tpu.matmul %276, %15, %cst_107 {dimension_numbers = #tpu.dot_dimension_numbers<[1], [0], [0], [1], [0, 0, 1, 1], [], []>} : vector<2x64xf32>, vector<64x64xf32>, vector<2x64xf32> -> vector<2x64xf32>
    %301 = arith.addf %299, %300 : vector<2x64xf32>
    %302 = vector.broadcast %23 : vector<1x64xf32> to vector<2x64xf32>
    %303 = arith.addf %301, %302 : vector<2x64xf32>
    %304 = arith.negf %303 : vector<2x64xf32>
    %305 = math.exp %304 : vector<2x64xf32>
    %cst_108 = arith.constant 1.000000e+00 : f32
    %306 = vector.broadcast %cst_108 : f32 to vector<2x64xf32>
    %307 = arith.addf %306, %305 : vector<2x64xf32>
    %308 = arith.divf %306, %307 : vector<2x64xf32>
    %cst_109 = arith.constant dense<0.000000e+00> : vector<2x64xf32>
    %309 = tpu.matmul %288, %9, %cst_109 {dimension_numbers = #tpu.dot_dimension_numbers<[1], [0], [0], [1], [0, 0, 1, 1], [], []>} : vector<2x32xf32>, vector<32x64xf32>, vector<2x64xf32> -> vector<2x64xf32>
    %cst_110 = arith.constant dense<0.000000e+00> : vector<2x64xf32>
    %310 = tpu.matmul %276, %17, %cst_110 {dimension_numbers = #tpu.dot_dimension_numbers<[1], [0], [0], [1], [0, 0, 1, 1], [], []>} : vector<2x64xf32>, vector<64x64xf32>, vector<2x64xf32> -> vector<2x64xf32>
    %311 = arith.addf %309, %310 : vector<2x64xf32>
    %312 = vector.broadcast %25 : vector<1x64xf32> to vector<2x64xf32>
    %313 = arith.addf %311, %312 : vector<2x64xf32>
    %314 = math.tanh %313 : vector<2x64xf32>
    %cst_111 = arith.constant dense<0.000000e+00> : vector<2x64xf32>
    %315 = tpu.matmul %288, %11, %cst_111 {dimension_numbers = #tpu.dot_dimension_numbers<[1], [0], [0], [1], [0, 0, 1, 1], [], []>} : vector<2x32xf32>, vector<32x64xf32>, vector<2x64xf32> -> vector<2x64xf32>
    %cst_112 = arith.constant dense<0.000000e+00> : vector<2x64xf32>
    %316 = tpu.matmul %276, %19, %cst_112 {dimension_numbers = #tpu.dot_dimension_numbers<[1], [0], [0], [1], [0, 0, 1, 1], [], []>} : vector<2x64xf32>, vector<64x64xf32>, vector<2x64xf32> -> vector<2x64xf32>
    %317 = arith.addf %315, %316 : vector<2x64xf32>
    %318 = vector.broadcast %27 : vector<1x64xf32> to vector<2x64xf32>
    %319 = arith.addf %317, %318 : vector<2x64xf32>
    %320 = arith.negf %319 : vector<2x64xf32>
    %321 = math.exp %320 : vector<2x64xf32>
    %cst_113 = arith.constant 1.000000e+00 : f32
    %322 = vector.broadcast %cst_113 : f32 to vector<2x64xf32>
    %323 = arith.addf %322, %321 : vector<2x64xf32>
    %324 = arith.divf %322, %323 : vector<2x64xf32>
    %325 = arith.mulf %308, %283 : vector<2x64xf32>
    %326 = arith.mulf %298, %314 : vector<2x64xf32>
    %327 = arith.addf %325, %326 : vector<2x64xf32>
    %328 = math.tanh %327 : vector<2x64xf32>
    %329 = arith.mulf %324, %328 : vector<2x64xf32>
    %c4_i32 = arith.constant 4 : i32
    %330 = vector.broadcast %c4_i32 : i32 to vector<2x1xi32>
    %331 = arith.cmpi sgt, %0, %330 : vector<2x1xi32>
    %332 = arith.extui %331 : vector<2x1xi1> to vector<2x1xi32>
    %333 = arith.sitofp %332 : vector<2x1xi32> to vector<2x1xf32>
    %334 = vector.broadcast %333 : vector<2x1xf32> to vector<2x64xf32>
    %335 = arith.mulf %334, %329 : vector<2x64xf32>
    %cst_114 = arith.constant 1.000000e+00 : f32
    %336 = vector.broadcast %cst_114 : f32 to vector<2x1xf32>
    %337 = arith.subf %336, %333 : vector<2x1xf32>
    %338 = vector.broadcast %337 : vector<2x1xf32> to vector<2x64xf32>
    %339 = arith.mulf %338, %276 : vector<2x64xf32>
    %340 = arith.addf %335, %339 : vector<2x64xf32>
    %341 = vector.broadcast %333 : vector<2x1xf32> to vector<2x64xf32>
    %342 = arith.mulf %341, %327 : vector<2x64xf32>
    %cst_115 = arith.constant 1.000000e+00 : f32
    %343 = vector.broadcast %cst_115 : f32 to vector<2x1xf32>
    %344 = arith.subf %343, %333 : vector<2x1xf32>
    %345 = vector.broadcast %344 : vector<2x1xf32> to vector<2x64xf32>
    %346 = arith.mulf %345, %283 : vector<2x64xf32>
    %347 = arith.addf %342, %346 : vector<2x64xf32>
    %348 = vector.broadcast %333 : vector<2x1xf32> to vector<2x64xf32>
    %349 = arith.mulf %348, %329 : vector<2x64xf32>
    %350 = arith.addf %286, %349 : vector<2x64xf32>
    %c5 = arith.constant 5 : index
    %c0_116 = arith.constant 0 : index
    %c0_117 = arith.constant 0 : index
    %351 = vector.load %arg2[%c5, %c0_116, %c0_117] : memref<8x2x32xf32, #tpu.memory_space<vmem>>, vector<1x2x32xf32>
    %352 = vector.shape_cast %351 : vector<1x2x32xf32> to vector<2x32xf32>
    %cst_118 = arith.constant dense<0.000000e+00> : vector<2x64xf32>
    %353 = tpu.matmul %352, %5, %cst_118 {dimension_numbers = #tpu.dot_dimension_numbers<[1], [0], [0], [1], [0, 0, 1, 1], [], []>} : vector<2x32xf32>, vector<32x64xf32>, vector<2x64xf32> -> vector<2x64xf32>
    %cst_119 = arith.constant dense<0.000000e+00> : vector<2x64xf32>
    %354 = tpu.matmul %340, %13, %cst_119 {dimension_numbers = #tpu.dot_dimension_numbers<[1], [0], [0], [1], [0, 0, 1, 1], [], []>} : vector<2x64xf32>, vector<64x64xf32>, vector<2x64xf32> -> vector<2x64xf32>
    %355 = arith.addf %353, %354 : vector<2x64xf32>
    %356 = vector.broadcast %21 : vector<1x64xf32> to vector<2x64xf32>
    %357 = arith.addf %355, %356 : vector<2x64xf32>
    %358 = arith.negf %357 : vector<2x64xf32>
    %359 = math.exp %358 : vector<2x64xf32>
    %cst_120 = arith.constant 1.000000e+00 : f32
    %360 = vector.broadcast %cst_120 : f32 to vector<2x64xf32>
    %361 = arith.addf %360, %359 : vector<2x64xf32>
    %362 = arith.divf %360, %361 : vector<2x64xf32>
    %cst_121 = arith.constant dense<0.000000e+00> : vector<2x64xf32>
    %363 = tpu.matmul %352, %7, %cst_121 {dimension_numbers = #tpu.dot_dimension_numbers<[1], [0], [0], [1], [0, 0, 1, 1], [], []>} : vector<2x32xf32>, vector<32x64xf32>, vector<2x64xf32> -> vector<2x64xf32>
    %cst_122 = arith.constant dense<0.000000e+00> : vector<2x64xf32>
    %364 = tpu.matmul %340, %15, %cst_122 {dimension_numbers = #tpu.dot_dimension_numbers<[1], [0], [0], [1], [0, 0, 1, 1], [], []>} : vector<2x64xf32>, vector<64x64xf32>, vector<2x64xf32> -> vector<2x64xf32>
    %365 = arith.addf %363, %364 : vector<2x64xf32>
    %366 = vector.broadcast %23 : vector<1x64xf32> to vector<2x64xf32>
    %367 = arith.addf %365, %366 : vector<2x64xf32>
    %368 = arith.negf %367 : vector<2x64xf32>
    %369 = math.exp %368 : vector<2x64xf32>
    %cst_123 = arith.constant 1.000000e+00 : f32
    %370 = vector.broadcast %cst_123 : f32 to vector<2x64xf32>
    %371 = arith.addf %370, %369 : vector<2x64xf32>
    %372 = arith.divf %370, %371 : vector<2x64xf32>
    %cst_124 = arith.constant dense<0.000000e+00> : vector<2x64xf32>
    %373 = tpu.matmul %352, %9, %cst_124 {dimension_numbers = #tpu.dot_dimension_numbers<[1], [0], [0], [1], [0, 0, 1, 1], [], []>} : vector<2x32xf32>, vector<32x64xf32>, vector<2x64xf32> -> vector<2x64xf32>
    %cst_125 = arith.constant dense<0.000000e+00> : vector<2x64xf32>
    %374 = tpu.matmul %340, %17, %cst_125 {dimension_numbers = #tpu.dot_dimension_numbers<[1], [0], [0], [1], [0, 0, 1, 1], [], []>} : vector<2x64xf32>, vector<64x64xf32>, vector<2x64xf32> -> vector<2x64xf32>
    %375 = arith.addf %373, %374 : vector<2x64xf32>
    %376 = vector.broadcast %25 : vector<1x64xf32> to vector<2x64xf32>
    %377 = arith.addf %375, %376 : vector<2x64xf32>
    %378 = math.tanh %377 : vector<2x64xf32>
    %cst_126 = arith.constant dense<0.000000e+00> : vector<2x64xf32>
    %379 = tpu.matmul %352, %11, %cst_126 {dimension_numbers = #tpu.dot_dimension_numbers<[1], [0], [0], [1], [0, 0, 1, 1], [], []>} : vector<2x32xf32>, vector<32x64xf32>, vector<2x64xf32> -> vector<2x64xf32>
    %cst_127 = arith.constant dense<0.000000e+00> : vector<2x64xf32>
    %380 = tpu.matmul %340, %19, %cst_127 {dimension_numbers = #tpu.dot_dimension_numbers<[1], [0], [0], [1], [0, 0, 1, 1], [], []>} : vector<2x64xf32>, vector<64x64xf32>, vector<2x64xf32> -> vector<2x64xf32>
    %381 = arith.addf %379, %380 : vector<2x64xf32>
    %382 = vector.broadcast %27 : vector<1x64xf32> to vector<2x64xf32>
    %383 = arith.addf %381, %382 : vector<2x64xf32>
    %384 = arith.negf %383 : vector<2x64xf32>
    %385 = math.exp %384 : vector<2x64xf32>
    %cst_128 = arith.constant 1.000000e+00 : f32
    %386 = vector.broadcast %cst_128 : f32 to vector<2x64xf32>
    %387 = arith.addf %386, %385 : vector<2x64xf32>
    %388 = arith.divf %386, %387 : vector<2x64xf32>
    %389 = arith.mulf %372, %347 : vector<2x64xf32>
    %390 = arith.mulf %362, %378 : vector<2x64xf32>
    %391 = arith.addf %389, %390 : vector<2x64xf32>
    %392 = math.tanh %391 : vector<2x64xf32>
    %393 = arith.mulf %388, %392 : vector<2x64xf32>
    %c5_i32 = arith.constant 5 : i32
    %394 = vector.broadcast %c5_i32 : i32 to vector<2x1xi32>
    %395 = arith.cmpi sgt, %0, %394 : vector<2x1xi32>
    %396 = arith.extui %395 : vector<2x1xi1> to vector<2x1xi32>
    %397 = arith.sitofp %396 : vector<2x1xi32> to vector<2x1xf32>
    %398 = vector.broadcast %397 : vector<2x1xf32> to vector<2x64xf32>
    %399 = arith.mulf %398, %393 : vector<2x64xf32>
    %cst_129 = arith.constant 1.000000e+00 : f32
    %400 = vector.broadcast %cst_129 : f32 to vector<2x1xf32>
    %401 = arith.subf %400, %397 : vector<2x1xf32>
    %402 = vector.broadcast %401 : vector<2x1xf32> to vector<2x64xf32>
    %403 = arith.mulf %402, %340 : vector<2x64xf32>
    %404 = arith.addf %399, %403 : vector<2x64xf32>
    %405 = vector.broadcast %397 : vector<2x1xf32> to vector<2x64xf32>
    %406 = arith.mulf %405, %391 : vector<2x64xf32>
    %cst_130 = arith.constant 1.000000e+00 : f32
    %407 = vector.broadcast %cst_130 : f32 to vector<2x1xf32>
    %408 = arith.subf %407, %397 : vector<2x1xf32>
    %409 = vector.broadcast %408 : vector<2x1xf32> to vector<2x64xf32>
    %410 = arith.mulf %409, %347 : vector<2x64xf32>
    %411 = arith.addf %406, %410 : vector<2x64xf32>
    %412 = vector.broadcast %397 : vector<2x1xf32> to vector<2x64xf32>
    %413 = arith.mulf %412, %393 : vector<2x64xf32>
    %414 = arith.addf %350, %413 : vector<2x64xf32>
    %c6 = arith.constant 6 : index
    %c0_131 = arith.constant 0 : index
    %c0_132 = arith.constant 0 : index
    %415 = vector.load %arg2[%c6, %c0_131, %c0_132] : memref<8x2x32xf32, #tpu.memory_space<vmem>>, vector<1x2x32xf32>
    %416 = vector.shape_cast %415 : vector<1x2x32xf32> to vector<2x32xf32>
    %cst_133 = arith.constant dense<0.000000e+00> : vector<2x64xf32>
    %417 = tpu.matmul %416, %5, %cst_133 {dimension_numbers = #tpu.dot_dimension_numbers<[1], [0], [0], [1], [0, 0, 1, 1], [], []>} : vector<2x32xf32>, vector<32x64xf32>, vector<2x64xf32> -> vector<2x64xf32>
    %cst_134 = arith.constant dense<0.000000e+00> : vector<2x64xf32>
    %418 = tpu.matmul %404, %13, %cst_134 {dimension_numbers = #tpu.dot_dimension_numbers<[1], [0], [0], [1], [0, 0, 1, 1], [], []>} : vector<2x64xf32>, vector<64x64xf32>, vector<2x64xf32> -> vector<2x64xf32>
    %419 = arith.addf %417, %418 : vector<2x64xf32>
    %420 = vector.broadcast %21 : vector<1x64xf32> to vector<2x64xf32>
    %421 = arith.addf %419, %420 : vector<2x64xf32>
    %422 = arith.negf %421 : vector<2x64xf32>
    %423 = math.exp %422 : vector<2x64xf32>
    %cst_135 = arith.constant 1.000000e+00 : f32
    %424 = vector.broadcast %cst_135 : f32 to vector<2x64xf32>
    %425 = arith.addf %424, %423 : vector<2x64xf32>
    %426 = arith.divf %424, %425 : vector<2x64xf32>
    %cst_136 = arith.constant dense<0.000000e+00> : vector<2x64xf32>
    %427 = tpu.matmul %416, %7, %cst_136 {dimension_numbers = #tpu.dot_dimension_numbers<[1], [0], [0], [1], [0, 0, 1, 1], [], []>} : vector<2x32xf32>, vector<32x64xf32>, vector<2x64xf32> -> vector<2x64xf32>
    %cst_137 = arith.constant dense<0.000000e+00> : vector<2x64xf32>
    %428 = tpu.matmul %404, %15, %cst_137 {dimension_numbers = #tpu.dot_dimension_numbers<[1], [0], [0], [1], [0, 0, 1, 1], [], []>} : vector<2x64xf32>, vector<64x64xf32>, vector<2x64xf32> -> vector<2x64xf32>
    %429 = arith.addf %427, %428 : vector<2x64xf32>
    %430 = vector.broadcast %23 : vector<1x64xf32> to vector<2x64xf32>
    %431 = arith.addf %429, %430 : vector<2x64xf32>
    %432 = arith.negf %431 : vector<2x64xf32>
    %433 = math.exp %432 : vector<2x64xf32>
    %cst_138 = arith.constant 1.000000e+00 : f32
    %434 = vector.broadcast %cst_138 : f32 to vector<2x64xf32>
    %435 = arith.addf %434, %433 : vector<2x64xf32>
    %436 = arith.divf %434, %435 : vector<2x64xf32>
    %cst_139 = arith.constant dense<0.000000e+00> : vector<2x64xf32>
    %437 = tpu.matmul %416, %9, %cst_139 {dimension_numbers = #tpu.dot_dimension_numbers<[1], [0], [0], [1], [0, 0, 1, 1], [], []>} : vector<2x32xf32>, vector<32x64xf32>, vector<2x64xf32> -> vector<2x64xf32>
    %cst_140 = arith.constant dense<0.000000e+00> : vector<2x64xf32>
    %438 = tpu.matmul %404, %17, %cst_140 {dimension_numbers = #tpu.dot_dimension_numbers<[1], [0], [0], [1], [0, 0, 1, 1], [], []>} : vector<2x64xf32>, vector<64x64xf32>, vector<2x64xf32> -> vector<2x64xf32>
    %439 = arith.addf %437, %438 : vector<2x64xf32>
    %440 = vector.broadcast %25 : vector<1x64xf32> to vector<2x64xf32>
    %441 = arith.addf %439, %440 : vector<2x64xf32>
    %442 = math.tanh %441 : vector<2x64xf32>
    %cst_141 = arith.constant dense<0.000000e+00> : vector<2x64xf32>
    %443 = tpu.matmul %416, %11, %cst_141 {dimension_numbers = #tpu.dot_dimension_numbers<[1], [0], [0], [1], [0, 0, 1, 1], [], []>} : vector<2x32xf32>, vector<32x64xf32>, vector<2x64xf32> -> vector<2x64xf32>
    %cst_142 = arith.constant dense<0.000000e+00> : vector<2x64xf32>
    %444 = tpu.matmul %404, %19, %cst_142 {dimension_numbers = #tpu.dot_dimension_numbers<[1], [0], [0], [1], [0, 0, 1, 1], [], []>} : vector<2x64xf32>, vector<64x64xf32>, vector<2x64xf32> -> vector<2x64xf32>
    %445 = arith.addf %443, %444 : vector<2x64xf32>
    %446 = vector.broadcast %27 : vector<1x64xf32> to vector<2x64xf32>
    %447 = arith.addf %445, %446 : vector<2x64xf32>
    %448 = arith.negf %447 : vector<2x64xf32>
    %449 = math.exp %448 : vector<2x64xf32>
    %cst_143 = arith.constant 1.000000e+00 : f32
    %450 = vector.broadcast %cst_143 : f32 to vector<2x64xf32>
    %451 = arith.addf %450, %449 : vector<2x64xf32>
    %452 = arith.divf %450, %451 : vector<2x64xf32>
    %453 = arith.mulf %436, %411 : vector<2x64xf32>
    %454 = arith.mulf %426, %442 : vector<2x64xf32>
    %455 = arith.addf %453, %454 : vector<2x64xf32>
    %456 = math.tanh %455 : vector<2x64xf32>
    %457 = arith.mulf %452, %456 : vector<2x64xf32>
    %c6_i32 = arith.constant 6 : i32
    %458 = vector.broadcast %c6_i32 : i32 to vector<2x1xi32>
    %459 = arith.cmpi sgt, %0, %458 : vector<2x1xi32>
    %460 = arith.extui %459 : vector<2x1xi1> to vector<2x1xi32>
    %461 = arith.sitofp %460 : vector<2x1xi32> to vector<2x1xf32>
    %462 = vector.broadcast %461 : vector<2x1xf32> to vector<2x64xf32>
    %463 = arith.mulf %462, %457 : vector<2x64xf32>
    %cst_144 = arith.constant 1.000000e+00 : f32
    %464 = vector.broadcast %cst_144 : f32 to vector<2x1xf32>
    %465 = arith.subf %464, %461 : vector<2x1xf32>
    %466 = vector.broadcast %465 : vector<2x1xf32> to vector<2x64xf32>
    %467 = arith.mulf %466, %404 : vector<2x64xf32>
    %468 = arith.addf %463, %467 : vector<2x64xf32>
    %469 = vector.broadcast %461 : vector<2x1xf32> to vector<2x64xf32>
    %470 = arith.mulf %469, %455 : vector<2x64xf32>
    %cst_145 = arith.constant 1.000000e+00 : f32
    %471 = vector.broadcast %cst_145 : f32 to vector<2x1xf32>
    %472 = arith.subf %471, %461 : vector<2x1xf32>
    %473 = vector.broadcast %472 : vector<2x1xf32> to vector<2x64xf32>
    %474 = arith.mulf %473, %411 : vector<2x64xf32>
    %475 = arith.addf %470, %474 : vector<2x64xf32>
    %476 = vector.broadcast %461 : vector<2x1xf32> to vector<2x64xf32>
    %477 = arith.mulf %476, %457 : vector<2x64xf32>
    %478 = arith.addf %414, %477 : vector<2x64xf32>
    %c7 = arith.constant 7 : index
    %c0_146 = arith.constant 0 : index
    %c0_147 = arith.constant 0 : index
    %479 = vector.load %arg2[%c7, %c0_146, %c0_147] : memref<8x2x32xf32, #tpu.memory_space<vmem>>, vector<1x2x32xf32>
    %480 = vector.shape_cast %479 : vector<1x2x32xf32> to vector<2x32xf32>
    %cst_148 = arith.constant dense<0.000000e+00> : vector<2x64xf32>
    %481 = tpu.matmul %480, %5, %cst_148 {dimension_numbers = #tpu.dot_dimension_numbers<[1], [0], [0], [1], [0, 0, 1, 1], [], []>} : vector<2x32xf32>, vector<32x64xf32>, vector<2x64xf32> -> vector<2x64xf32>
    %cst_149 = arith.constant dense<0.000000e+00> : vector<2x64xf32>
    %482 = tpu.matmul %468, %13, %cst_149 {dimension_numbers = #tpu.dot_dimension_numbers<[1], [0], [0], [1], [0, 0, 1, 1], [], []>} : vector<2x64xf32>, vector<64x64xf32>, vector<2x64xf32> -> vector<2x64xf32>
    %483 = arith.addf %481, %482 : vector<2x64xf32>
    %484 = vector.broadcast %21 : vector<1x64xf32> to vector<2x64xf32>
    %485 = arith.addf %483, %484 : vector<2x64xf32>
    %486 = arith.negf %485 : vector<2x64xf32>
    %487 = math.exp %486 : vector<2x64xf32>
    %cst_150 = arith.constant 1.000000e+00 : f32
    %488 = vector.broadcast %cst_150 : f32 to vector<2x64xf32>
    %489 = arith.addf %488, %487 : vector<2x64xf32>
    %490 = arith.divf %488, %489 : vector<2x64xf32>
    %cst_151 = arith.constant dense<0.000000e+00> : vector<2x64xf32>
    %491 = tpu.matmul %480, %7, %cst_151 {dimension_numbers = #tpu.dot_dimension_numbers<[1], [0], [0], [1], [0, 0, 1, 1], [], []>} : vector<2x32xf32>, vector<32x64xf32>, vector<2x64xf32> -> vector<2x64xf32>
    %cst_152 = arith.constant dense<0.000000e+00> : vector<2x64xf32>
    %492 = tpu.matmul %468, %15, %cst_152 {dimension_numbers = #tpu.dot_dimension_numbers<[1], [0], [0], [1], [0, 0, 1, 1], [], []>} : vector<2x64xf32>, vector<64x64xf32>, vector<2x64xf32> -> vector<2x64xf32>
    %493 = arith.addf %491, %492 : vector<2x64xf32>
    %494 = vector.broadcast %23 : vector<1x64xf32> to vector<2x64xf32>
    %495 = arith.addf %493, %494 : vector<2x64xf32>
    %496 = arith.negf %495 : vector<2x64xf32>
    %497 = math.exp %496 : vector<2x64xf32>
    %cst_153 = arith.constant 1.000000e+00 : f32
    %498 = vector.broadcast %cst_153 : f32 to vector<2x64xf32>
    %499 = arith.addf %498, %497 : vector<2x64xf32>
    %500 = arith.divf %498, %499 : vector<2x64xf32>
    %cst_154 = arith.constant dense<0.000000e+00> : vector<2x64xf32>
    %501 = tpu.matmul %480, %9, %cst_154 {dimension_numbers = #tpu.dot_dimension_numbers<[1], [0], [0], [1], [0, 0, 1, 1], [], []>} : vector<2x32xf32>, vector<32x64xf32>, vector<2x64xf32> -> vector<2x64xf32>
    %cst_155 = arith.constant dense<0.000000e+00> : vector<2x64xf32>
    %502 = tpu.matmul %468, %17, %cst_155 {dimension_numbers = #tpu.dot_dimension_numbers<[1], [0], [0], [1], [0, 0, 1, 1], [], []>} : vector<2x64xf32>, vector<64x64xf32>, vector<2x64xf32> -> vector<2x64xf32>
    %503 = arith.addf %501, %502 : vector<2x64xf32>
    %504 = vector.broadcast %25 : vector<1x64xf32> to vector<2x64xf32>
    %505 = arith.addf %503, %504 : vector<2x64xf32>
    %506 = math.tanh %505 : vector<2x64xf32>
    %cst_156 = arith.constant dense<0.000000e+00> : vector<2x64xf32>
    %507 = tpu.matmul %480, %11, %cst_156 {dimension_numbers = #tpu.dot_dimension_numbers<[1], [0], [0], [1], [0, 0, 1, 1], [], []>} : vector<2x32xf32>, vector<32x64xf32>, vector<2x64xf32> -> vector<2x64xf32>
    %cst_157 = arith.constant dense<0.000000e+00> : vector<2x64xf32>
    %508 = tpu.matmul %468, %19, %cst_157 {dimension_numbers = #tpu.dot_dimension_numbers<[1], [0], [0], [1], [0, 0, 1, 1], [], []>} : vector<2x64xf32>, vector<64x64xf32>, vector<2x64xf32> -> vector<2x64xf32>
    %509 = arith.addf %507, %508 : vector<2x64xf32>
    %510 = vector.broadcast %27 : vector<1x64xf32> to vector<2x64xf32>
    %511 = arith.addf %509, %510 : vector<2x64xf32>
    %512 = arith.negf %511 : vector<2x64xf32>
    %513 = math.exp %512 : vector<2x64xf32>
    %cst_158 = arith.constant 1.000000e+00 : f32
    %514 = vector.broadcast %cst_158 : f32 to vector<2x64xf32>
    %515 = arith.addf %514, %513 : vector<2x64xf32>
    %516 = arith.divf %514, %515 : vector<2x64xf32>
    %517 = arith.mulf %500, %475 : vector<2x64xf32>
    %518 = arith.mulf %490, %506 : vector<2x64xf32>
    %519 = arith.addf %517, %518 : vector<2x64xf32>
    %520 = math.tanh %519 : vector<2x64xf32>
    %521 = arith.mulf %516, %520 : vector<2x64xf32>
    %c7_i32 = arith.constant 7 : i32
    %522 = vector.broadcast %c7_i32 : i32 to vector<2x1xi32>
    %523 = arith.cmpi sgt, %0, %522 : vector<2x1xi32>
    %524 = arith.extui %523 : vector<2x1xi1> to vector<2x1xi32>
    %525 = arith.sitofp %524 : vector<2x1xi32> to vector<2x1xf32>
    %526 = vector.broadcast %525 : vector<2x1xf32> to vector<2x64xf32>
    %527 = arith.mulf %526, %521 : vector<2x64xf32>
    %528 = arith.addf %478, %527 : vector<2x64xf32>
    %c0_159 = arith.constant 0 : index
    %c0_160 = arith.constant 0 : index
    %c0_161 = arith.constant 0 : index
    %529 = vector.load %arg6[%c0_159, %c0_160, %c0_161] : memref<4x32x64xf32, #tpu.memory_space<vmem>>, vector<1x32x64xf32>
    %530 = vector.shape_cast %529 : vector<1x32x64xf32> to vector<32x64xf32>
    %c1_162 = arith.constant 1 : index
    %c0_163 = arith.constant 0 : index
    %c0_164 = arith.constant 0 : index
    %531 = vector.load %arg6[%c1_162, %c0_163, %c0_164] : memref<4x32x64xf32, #tpu.memory_space<vmem>>, vector<1x32x64xf32>
    %532 = vector.shape_cast %531 : vector<1x32x64xf32> to vector<32x64xf32>
    %c2_165 = arith.constant 2 : index
    %c0_166 = arith.constant 0 : index
    %c0_167 = arith.constant 0 : index
    %533 = vector.load %arg6[%c2_165, %c0_166, %c0_167] : memref<4x32x64xf32, #tpu.memory_space<vmem>>, vector<1x32x64xf32>
    %534 = vector.shape_cast %533 : vector<1x32x64xf32> to vector<32x64xf32>
    %c3_168 = arith.constant 3 : index
    %c0_169 = arith.constant 0 : index
    %c0_170 = arith.constant 0 : index
    %535 = vector.load %arg6[%c3_168, %c0_169, %c0_170] : memref<4x32x64xf32, #tpu.memory_space<vmem>>, vector<1x32x64xf32>
    %536 = vector.shape_cast %535 : vector<1x32x64xf32> to vector<32x64xf32>
    %c0_171 = arith.constant 0 : index
    %c0_172 = arith.constant 0 : index
    %c0_173 = arith.constant 0 : index
    %537 = vector.load %arg7[%c0_171, %c0_172, %c0_173] : memref<4x64x64xf32, #tpu.memory_space<vmem>>, vector<1x64x64xf32>
    %538 = vector.shape_cast %537 : vector<1x64x64xf32> to vector<64x64xf32>
    %c1_174 = arith.constant 1 : index
    %c0_175 = arith.constant 0 : index
    %c0_176 = arith.constant 0 : index
    %539 = vector.load %arg7[%c1_174, %c0_175, %c0_176] : memref<4x64x64xf32, #tpu.memory_space<vmem>>, vector<1x64x64xf32>
    %540 = vector.shape_cast %539 : vector<1x64x64xf32> to vector<64x64xf32>
    %c2_177 = arith.constant 2 : index
    %c0_178 = arith.constant 0 : index
    %c0_179 = arith.constant 0 : index
    %541 = vector.load %arg7[%c2_177, %c0_178, %c0_179] : memref<4x64x64xf32, #tpu.memory_space<vmem>>, vector<1x64x64xf32>
    %542 = vector.shape_cast %541 : vector<1x64x64xf32> to vector<64x64xf32>
    %c3_180 = arith.constant 3 : index
    %c0_181 = arith.constant 0 : index
    %c0_182 = arith.constant 0 : index
    %543 = vector.load %arg7[%c3_180, %c0_181, %c0_182] : memref<4x64x64xf32, #tpu.memory_space<vmem>>, vector<1x64x64xf32>
    %544 = vector.shape_cast %543 : vector<1x64x64xf32> to vector<64x64xf32>
    %c0_183 = arith.constant 0 : index
    %c0_184 = arith.constant 0 : index
    %c0_185 = arith.constant 0 : index
    %545 = vector.load %arg8[%c0_183, %c0_184, %c0_185] : memref<4x1x64xf32, #tpu.memory_space<vmem>>, vector<1x1x64xf32>
    %546 = vector.shape_cast %545 : vector<1x1x64xf32> to vector<1x64xf32>
    %c1_186 = arith.constant 1 : index
    %c0_187 = arith.constant 0 : index
    %c0_188 = arith.constant 0 : index
    %547 = vector.load %arg8[%c1_186, %c0_187, %c0_188] : memref<4x1x64xf32, #tpu.memory_space<vmem>>, vector<1x1x64xf32>
    %548 = vector.shape_cast %547 : vector<1x1x64xf32> to vector<1x64xf32>
    %c2_189 = arith.constant 2 : index
    %c0_190 = arith.constant 0 : index
    %c0_191 = arith.constant 0 : index
    %549 = vector.load %arg8[%c2_189, %c0_190, %c0_191] : memref<4x1x64xf32, #tpu.memory_space<vmem>>, vector<1x1x64xf32>
    %550 = vector.shape_cast %549 : vector<1x1x64xf32> to vector<1x64xf32>
    %c3_192 = arith.constant 3 : index
    %c0_193 = arith.constant 0 : index
    %c0_194 = arith.constant 0 : index
    %551 = vector.load %arg8[%c3_192, %c0_193, %c0_194] : memref<4x1x64xf32, #tpu.memory_space<vmem>>, vector<1x1x64xf32>
    %552 = vector.shape_cast %551 : vector<1x1x64xf32> to vector<1x64xf32>
    %cst_195 = arith.constant 0.000000e+00 : f32
    %553 = vector.broadcast %cst_195 : f32 to vector<2x64xf32>
    %cst_196 = arith.constant 0.000000e+00 : f32
    %554 = vector.broadcast %cst_196 : f32 to vector<2x64xf32>
    %cst_197 = arith.constant 0.000000e+00 : f32
    %555 = vector.broadcast %cst_197 : f32 to vector<2x64xf32>
    %c7_198 = arith.constant 7 : index
    %c0_199 = arith.constant 0 : index
    %c0_200 = arith.constant 0 : index
    %556 = vector.load %arg2[%c7_198, %c0_199, %c0_200] : memref<8x2x32xf32, #tpu.memory_space<vmem>>, vector<1x2x32xf32>
    %557 = vector.shape_cast %556 : vector<1x2x32xf32> to vector<2x32xf32>
    %cst_201 = arith.constant dense<0.000000e+00> : vector<2x64xf32>
    %558 = tpu.matmul %557, %530, %cst_201 {dimension_numbers = #tpu.dot_dimension_numbers<[1], [0], [0], [1], [0, 0, 1, 1], [], []>} : vector<2x32xf32>, vector<32x64xf32>, vector<2x64xf32> -> vector<2x64xf32>
    %cst_202 = arith.constant dense<0.000000e+00> : vector<2x64xf32>
    %559 = tpu.matmul %553, %538, %cst_202 {dimension_numbers = #tpu.dot_dimension_numbers<[1], [0], [0], [1], [0, 0, 1, 1], [], []>} : vector<2x64xf32>, vector<64x64xf32>, vector<2x64xf32> -> vector<2x64xf32>
    %560 = arith.addf %558, %559 : vector<2x64xf32>
    %561 = vector.broadcast %546 : vector<1x64xf32> to vector<2x64xf32>
    %562 = arith.addf %560, %561 : vector<2x64xf32>
    %563 = arith.negf %562 : vector<2x64xf32>
    %564 = math.exp %563 : vector<2x64xf32>
    %cst_203 = arith.constant 1.000000e+00 : f32
    %565 = vector.broadcast %cst_203 : f32 to vector<2x64xf32>
    %566 = arith.addf %565, %564 : vector<2x64xf32>
    %567 = arith.divf %565, %566 : vector<2x64xf32>
    %cst_204 = arith.constant dense<0.000000e+00> : vector<2x64xf32>
    %568 = tpu.matmul %557, %532, %cst_204 {dimension_numbers = #tpu.dot_dimension_numbers<[1], [0], [0], [1], [0, 0, 1, 1], [], []>} : vector<2x32xf32>, vector<32x64xf32>, vector<2x64xf32> -> vector<2x64xf32>
    %cst_205 = arith.constant dense<0.000000e+00> : vector<2x64xf32>
    %569 = tpu.matmul %553, %540, %cst_205 {dimension_numbers = #tpu.dot_dimension_numbers<[1], [0], [0], [1], [0, 0, 1, 1], [], []>} : vector<2x64xf32>, vector<64x64xf32>, vector<2x64xf32> -> vector<2x64xf32>
    %570 = arith.addf %568, %569 : vector<2x64xf32>
    %571 = vector.broadcast %548 : vector<1x64xf32> to vector<2x64xf32>
    %572 = arith.addf %570, %571 : vector<2x64xf32>
    %573 = arith.negf %572 : vector<2x64xf32>
    %574 = math.exp %573 : vector<2x64xf32>
    %cst_206 = arith.constant 1.000000e+00 : f32
    %575 = vector.broadcast %cst_206 : f32 to vector<2x64xf32>
    %576 = arith.addf %575, %574 : vector<2x64xf32>
    %577 = arith.divf %575, %576 : vector<2x64xf32>
    %cst_207 = arith.constant dense<0.000000e+00> : vector<2x64xf32>
    %578 = tpu.matmul %557, %534, %cst_207 {dimension_numbers = #tpu.dot_dimension_numbers<[1], [0], [0], [1], [0, 0, 1, 1], [], []>} : vector<2x32xf32>, vector<32x64xf32>, vector<2x64xf32> -> vector<2x64xf32>
    %cst_208 = arith.constant dense<0.000000e+00> : vector<2x64xf32>
    %579 = tpu.matmul %553, %542, %cst_208 {dimension_numbers = #tpu.dot_dimension_numbers<[1], [0], [0], [1], [0, 0, 1, 1], [], []>} : vector<2x64xf32>, vector<64x64xf32>, vector<2x64xf32> -> vector<2x64xf32>
    %580 = arith.addf %578, %579 : vector<2x64xf32>
    %581 = vector.broadcast %550 : vector<1x64xf32> to vector<2x64xf32>
    %582 = arith.addf %580, %581 : vector<2x64xf32>
    %583 = math.tanh %582 : vector<2x64xf32>
    %cst_209 = arith.constant dense<0.000000e+00> : vector<2x64xf32>
    %584 = tpu.matmul %557, %536, %cst_209 {dimension_numbers = #tpu.dot_dimension_numbers<[1], [0], [0], [1], [0, 0, 1, 1], [], []>} : vector<2x32xf32>, vector<32x64xf32>, vector<2x64xf32> -> vector<2x64xf32>
    %cst_210 = arith.constant dense<0.000000e+00> : vector<2x64xf32>
    %585 = tpu.matmul %553, %544, %cst_210 {dimension_numbers = #tpu.dot_dimension_numbers<[1], [0], [0], [1], [0, 0, 1, 1], [], []>} : vector<2x64xf32>, vector<64x64xf32>, vector<2x64xf32> -> vector<2x64xf32>
    %586 = arith.addf %584, %585 : vector<2x64xf32>
    %587 = vector.broadcast %552 : vector<1x64xf32> to vector<2x64xf32>
    %588 = arith.addf %586, %587 : vector<2x64xf32>
    %589 = arith.negf %588 : vector<2x64xf32>
    %590 = math.exp %589 : vector<2x64xf32>
    %cst_211 = arith.constant 1.000000e+00 : f32
    %591 = vector.broadcast %cst_211 : f32 to vector<2x64xf32>
    %592 = arith.addf %591, %590 : vector<2x64xf32>
    %593 = arith.divf %591, %592 : vector<2x64xf32>
    %594 = arith.mulf %577, %554 : vector<2x64xf32>
    %595 = arith.mulf %567, %583 : vector<2x64xf32>
    %596 = arith.addf %594, %595 : vector<2x64xf32>
    %597 = math.tanh %596 : vector<2x64xf32>
    %598 = arith.mulf %593, %597 : vector<2x64xf32>
    %c7_i32_212 = arith.constant 7 : i32
    %599 = vector.broadcast %c7_i32_212 : i32 to vector<2x1xi32>
    %600 = arith.cmpi sgt, %0, %599 : vector<2x1xi32>
    %601 = arith.extui %600 : vector<2x1xi1> to vector<2x1xi32>
    %602 = arith.sitofp %601 : vector<2x1xi32> to vector<2x1xf32>
    %603 = vector.broadcast %602 : vector<2x1xf32> to vector<2x64xf32>
    %604 = arith.mulf %603, %598 : vector<2x64xf32>
    %cst_213 = arith.constant 1.000000e+00 : f32
    %605 = vector.broadcast %cst_213 : f32 to vector<2x1xf32>
    %606 = arith.subf %605, %602 : vector<2x1xf32>
    %607 = vector.broadcast %606 : vector<2x1xf32> to vector<2x64xf32>
    %608 = arith.mulf %607, %553 : vector<2x64xf32>
    %609 = arith.addf %604, %608 : vector<2x64xf32>
    %610 = vector.broadcast %602 : vector<2x1xf32> to vector<2x64xf32>
    %611 = arith.mulf %610, %596 : vector<2x64xf32>
    %cst_214 = arith.constant 1.000000e+00 : f32
    %612 = vector.broadcast %cst_214 : f32 to vector<2x1xf32>
    %613 = arith.subf %612, %602 : vector<2x1xf32>
    %614 = vector.broadcast %613 : vector<2x1xf32> to vector<2x64xf32>
    %615 = arith.mulf %614, %554 : vector<2x64xf32>
    %616 = arith.addf %611, %615 : vector<2x64xf32>
    %617 = vector.broadcast %602 : vector<2x1xf32> to vector<2x64xf32>
    %618 = arith.mulf %617, %598 : vector<2x64xf32>
    %619 = arith.addf %555, %618 : vector<2x64xf32>
    %c6_215 = arith.constant 6 : index
    %c0_216 = arith.constant 0 : index
    %c0_217 = arith.constant 0 : index
    %620 = vector.load %arg2[%c6_215, %c0_216, %c0_217] : memref<8x2x32xf32, #tpu.memory_space<vmem>>, vector<1x2x32xf32>
    %621 = vector.shape_cast %620 : vector<1x2x32xf32> to vector<2x32xf32>
    %cst_218 = arith.constant dense<0.000000e+00> : vector<2x64xf32>
    %622 = tpu.matmul %621, %530, %cst_218 {dimension_numbers = #tpu.dot_dimension_numbers<[1], [0], [0], [1], [0, 0, 1, 1], [], []>} : vector<2x32xf32>, vector<32x64xf32>, vector<2x64xf32> -> vector<2x64xf32>
    %cst_219 = arith.constant dense<0.000000e+00> : vector<2x64xf32>
    %623 = tpu.matmul %609, %538, %cst_219 {dimension_numbers = #tpu.dot_dimension_numbers<[1], [0], [0], [1], [0, 0, 1, 1], [], []>} : vector<2x64xf32>, vector<64x64xf32>, vector<2x64xf32> -> vector<2x64xf32>
    %624 = arith.addf %622, %623 : vector<2x64xf32>
    %625 = vector.broadcast %546 : vector<1x64xf32> to vector<2x64xf32>
    %626 = arith.addf %624, %625 : vector<2x64xf32>
    %627 = arith.negf %626 : vector<2x64xf32>
    %628 = math.exp %627 : vector<2x64xf32>
    %cst_220 = arith.constant 1.000000e+00 : f32
    %629 = vector.broadcast %cst_220 : f32 to vector<2x64xf32>
    %630 = arith.addf %629, %628 : vector<2x64xf32>
    %631 = arith.divf %629, %630 : vector<2x64xf32>
    %cst_221 = arith.constant dense<0.000000e+00> : vector<2x64xf32>
    %632 = tpu.matmul %621, %532, %cst_221 {dimension_numbers = #tpu.dot_dimension_numbers<[1], [0], [0], [1], [0, 0, 1, 1], [], []>} : vector<2x32xf32>, vector<32x64xf32>, vector<2x64xf32> -> vector<2x64xf32>
    %cst_222 = arith.constant dense<0.000000e+00> : vector<2x64xf32>
    %633 = tpu.matmul %609, %540, %cst_222 {dimension_numbers = #tpu.dot_dimension_numbers<[1], [0], [0], [1], [0, 0, 1, 1], [], []>} : vector<2x64xf32>, vector<64x64xf32>, vector<2x64xf32> -> vector<2x64xf32>
    %634 = arith.addf %632, %633 : vector<2x64xf32>
    %635 = vector.broadcast %548 : vector<1x64xf32> to vector<2x64xf32>
    %636 = arith.addf %634, %635 : vector<2x64xf32>
    %637 = arith.negf %636 : vector<2x64xf32>
    %638 = math.exp %637 : vector<2x64xf32>
    %cst_223 = arith.constant 1.000000e+00 : f32
    %639 = vector.broadcast %cst_223 : f32 to vector<2x64xf32>
    %640 = arith.addf %639, %638 : vector<2x64xf32>
    %641 = arith.divf %639, %640 : vector<2x64xf32>
    %cst_224 = arith.constant dense<0.000000e+00> : vector<2x64xf32>
    %642 = tpu.matmul %621, %534, %cst_224 {dimension_numbers = #tpu.dot_dimension_numbers<[1], [0], [0], [1], [0, 0, 1, 1], [], []>} : vector<2x32xf32>, vector<32x64xf32>, vector<2x64xf32> -> vector<2x64xf32>
    %cst_225 = arith.constant dense<0.000000e+00> : vector<2x64xf32>
    %643 = tpu.matmul %609, %542, %cst_225 {dimension_numbers = #tpu.dot_dimension_numbers<[1], [0], [0], [1], [0, 0, 1, 1], [], []>} : vector<2x64xf32>, vector<64x64xf32>, vector<2x64xf32> -> vector<2x64xf32>
    %644 = arith.addf %642, %643 : vector<2x64xf32>
    %645 = vector.broadcast %550 : vector<1x64xf32> to vector<2x64xf32>
    %646 = arith.addf %644, %645 : vector<2x64xf32>
    %647 = math.tanh %646 : vector<2x64xf32>
    %cst_226 = arith.constant dense<0.000000e+00> : vector<2x64xf32>
    %648 = tpu.matmul %621, %536, %cst_226 {dimension_numbers = #tpu.dot_dimension_numbers<[1], [0], [0], [1], [0, 0, 1, 1], [], []>} : vector<2x32xf32>, vector<32x64xf32>, vector<2x64xf32> -> vector<2x64xf32>
    %cst_227 = arith.constant dense<0.000000e+00> : vector<2x64xf32>
    %649 = tpu.matmul %609, %544, %cst_227 {dimension_numbers = #tpu.dot_dimension_numbers<[1], [0], [0], [1], [0, 0, 1, 1], [], []>} : vector<2x64xf32>, vector<64x64xf32>, vector<2x64xf32> -> vector<2x64xf32>
    %650 = arith.addf %648, %649 : vector<2x64xf32>
    %651 = vector.broadcast %552 : vector<1x64xf32> to vector<2x64xf32>
    %652 = arith.addf %650, %651 : vector<2x64xf32>
    %653 = arith.negf %652 : vector<2x64xf32>
    %654 = math.exp %653 : vector<2x64xf32>
    %cst_228 = arith.constant 1.000000e+00 : f32
    %655 = vector.broadcast %cst_228 : f32 to vector<2x64xf32>
    %656 = arith.addf %655, %654 : vector<2x64xf32>
    %657 = arith.divf %655, %656 : vector<2x64xf32>
    %658 = arith.mulf %641, %616 : vector<2x64xf32>
    %659 = arith.mulf %631, %647 : vector<2x64xf32>
    %660 = arith.addf %658, %659 : vector<2x64xf32>
    %661 = math.tanh %660 : vector<2x64xf32>
    %662 = arith.mulf %657, %661 : vector<2x64xf32>
    %c6_i32_229 = arith.constant 6 : i32
    %663 = vector.broadcast %c6_i32_229 : i32 to vector<2x1xi32>
    %664 = arith.cmpi sgt, %0, %663 : vector<2x1xi32>
    %665 = arith.extui %664 : vector<2x1xi1> to vector<2x1xi32>
    %666 = arith.sitofp %665 : vector<2x1xi32> to vector<2x1xf32>
    %667 = vector.broadcast %666 : vector<2x1xf32> to vector<2x64xf32>
    %668 = arith.mulf %667, %662 : vector<2x64xf32>
    %cst_230 = arith.constant 1.000000e+00 : f32
    %669 = vector.broadcast %cst_230 : f32 to vector<2x1xf32>
    %670 = arith.subf %669, %666 : vector<2x1xf32>
    %671 = vector.broadcast %670 : vector<2x1xf32> to vector<2x64xf32>
    %672 = arith.mulf %671, %609 : vector<2x64xf32>
    %673 = arith.addf %668, %672 : vector<2x64xf32>
    %674 = vector.broadcast %666 : vector<2x1xf32> to vector<2x64xf32>
    %675 = arith.mulf %674, %660 : vector<2x64xf32>
    %cst_231 = arith.constant 1.000000e+00 : f32
    %676 = vector.broadcast %cst_231 : f32 to vector<2x1xf32>
    %677 = arith.subf %676, %666 : vector<2x1xf32>
    %678 = vector.broadcast %677 : vector<2x1xf32> to vector<2x64xf32>
    %679 = arith.mulf %678, %616 : vector<2x64xf32>
    %680 = arith.addf %675, %679 : vector<2x64xf32>
    %681 = vector.broadcast %666 : vector<2x1xf32> to vector<2x64xf32>
    %682 = arith.mulf %681, %662 : vector<2x64xf32>
    %683 = arith.addf %619, %682 : vector<2x64xf32>
    %c5_232 = arith.constant 5 : index
    %c0_233 = arith.constant 0 : index
    %c0_234 = arith.constant 0 : index
    %684 = vector.load %arg2[%c5_232, %c0_233, %c0_234] : memref<8x2x32xf32, #tpu.memory_space<vmem>>, vector<1x2x32xf32>
    %685 = vector.shape_cast %684 : vector<1x2x32xf32> to vector<2x32xf32>
    %cst_235 = arith.constant dense<0.000000e+00> : vector<2x64xf32>
    %686 = tpu.matmul %685, %530, %cst_235 {dimension_numbers = #tpu.dot_dimension_numbers<[1], [0], [0], [1], [0, 0, 1, 1], [], []>} : vector<2x32xf32>, vector<32x64xf32>, vector<2x64xf32> -> vector<2x64xf32>
    %cst_236 = arith.constant dense<0.000000e+00> : vector<2x64xf32>
    %687 = tpu.matmul %673, %538, %cst_236 {dimension_numbers = #tpu.dot_dimension_numbers<[1], [0], [0], [1], [0, 0, 1, 1], [], []>} : vector<2x64xf32>, vector<64x64xf32>, vector<2x64xf32> -> vector<2x64xf32>
    %688 = arith.addf %686, %687 : vector<2x64xf32>
    %689 = vector.broadcast %546 : vector<1x64xf32> to vector<2x64xf32>
    %690 = arith.addf %688, %689 : vector<2x64xf32>
    %691 = arith.negf %690 : vector<2x64xf32>
    %692 = math.exp %691 : vector<2x64xf32>
    %cst_237 = arith.constant 1.000000e+00 : f32
    %693 = vector.broadcast %cst_237 : f32 to vector<2x64xf32>
    %694 = arith.addf %693, %692 : vector<2x64xf32>
    %695 = arith.divf %693, %694 : vector<2x64xf32>
    %cst_238 = arith.constant dense<0.000000e+00> : vector<2x64xf32>
    %696 = tpu.matmul %685, %532, %cst_238 {dimension_numbers = #tpu.dot_dimension_numbers<[1], [0], [0], [1], [0, 0, 1, 1], [], []>} : vector<2x32xf32>, vector<32x64xf32>, vector<2x64xf32> -> vector<2x64xf32>
    %cst_239 = arith.constant dense<0.000000e+00> : vector<2x64xf32>
    %697 = tpu.matmul %673, %540, %cst_239 {dimension_numbers = #tpu.dot_dimension_numbers<[1], [0], [0], [1], [0, 0, 1, 1], [], []>} : vector<2x64xf32>, vector<64x64xf32>, vector<2x64xf32> -> vector<2x64xf32>
    %698 = arith.addf %696, %697 : vector<2x64xf32>
    %699 = vector.broadcast %548 : vector<1x64xf32> to vector<2x64xf32>
    %700 = arith.addf %698, %699 : vector<2x64xf32>
    %701 = arith.negf %700 : vector<2x64xf32>
    %702 = math.exp %701 : vector<2x64xf32>
    %cst_240 = arith.constant 1.000000e+00 : f32
    %703 = vector.broadcast %cst_240 : f32 to vector<2x64xf32>
    %704 = arith.addf %703, %702 : vector<2x64xf32>
    %705 = arith.divf %703, %704 : vector<2x64xf32>
    %cst_241 = arith.constant dense<0.000000e+00> : vector<2x64xf32>
    %706 = tpu.matmul %685, %534, %cst_241 {dimension_numbers = #tpu.dot_dimension_numbers<[1], [0], [0], [1], [0, 0, 1, 1], [], []>} : vector<2x32xf32>, vector<32x64xf32>, vector<2x64xf32> -> vector<2x64xf32>
    %cst_242 = arith.constant dense<0.000000e+00> : vector<2x64xf32>
    %707 = tpu.matmul %673, %542, %cst_242 {dimension_numbers = #tpu.dot_dimension_numbers<[1], [0], [0], [1], [0, 0, 1, 1], [], []>} : vector<2x64xf32>, vector<64x64xf32>, vector<2x64xf32> -> vector<2x64xf32>
    %708 = arith.addf %706, %707 : vector<2x64xf32>
    %709 = vector.broadcast %550 : vector<1x64xf32> to vector<2x64xf32>
    %710 = arith.addf %708, %709 : vector<2x64xf32>
    %711 = math.tanh %710 : vector<2x64xf32>
    %cst_243 = arith.constant dense<0.000000e+00> : vector<2x64xf32>
    %712 = tpu.matmul %685, %536, %cst_243 {dimension_numbers = #tpu.dot_dimension_numbers<[1], [0], [0], [1], [0, 0, 1, 1], [], []>} : vector<2x32xf32>, vector<32x64xf32>, vector<2x64xf32> -> vector<2x64xf32>
    %cst_244 = arith.constant dense<0.000000e+00> : vector<2x64xf32>
    %713 = tpu.matmul %673, %544, %cst_244 {dimension_numbers = #tpu.dot_dimension_numbers<[1], [0], [0], [1], [0, 0, 1, 1], [], []>} : vector<2x64xf32>, vector<64x64xf32>, vector<2x64xf32> -> vector<2x64xf32>
    %714 = arith.addf %712, %713 : vector<2x64xf32>
    %715 = vector.broadcast %552 : vector<1x64xf32> to vector<2x64xf32>
    %716 = arith.addf %714, %715 : vector<2x64xf32>
    %717 = arith.negf %716 : vector<2x64xf32>
    %718 = math.exp %717 : vector<2x64xf32>
    %cst_245 = arith.constant 1.000000e+00 : f32
    %719 = vector.broadcast %cst_245 : f32 to vector<2x64xf32>
    %720 = arith.addf %719, %718 : vector<2x64xf32>
    %721 = arith.divf %719, %720 : vector<2x64xf32>
    %722 = arith.mulf %705, %680 : vector<2x64xf32>
    %723 = arith.mulf %695, %711 : vector<2x64xf32>
    %724 = arith.addf %722, %723 : vector<2x64xf32>
    %725 = math.tanh %724 : vector<2x64xf32>
    %726 = arith.mulf %721, %725 : vector<2x64xf32>
    %c5_i32_246 = arith.constant 5 : i32
    %727 = vector.broadcast %c5_i32_246 : i32 to vector<2x1xi32>
    %728 = arith.cmpi sgt, %0, %727 : vector<2x1xi32>
    %729 = arith.extui %728 : vector<2x1xi1> to vector<2x1xi32>
    %730 = arith.sitofp %729 : vector<2x1xi32> to vector<2x1xf32>
    %731 = vector.broadcast %730 : vector<2x1xf32> to vector<2x64xf32>
    %732 = arith.mulf %731, %726 : vector<2x64xf32>
    %cst_247 = arith.constant 1.000000e+00 : f32
    %733 = vector.broadcast %cst_247 : f32 to vector<2x1xf32>
    %734 = arith.subf %733, %730 : vector<2x1xf32>
    %735 = vector.broadcast %734 : vector<2x1xf32> to vector<2x64xf32>
    %736 = arith.mulf %735, %673 : vector<2x64xf32>
    %737 = arith.addf %732, %736 : vector<2x64xf32>
    %738 = vector.broadcast %730 : vector<2x1xf32> to vector<2x64xf32>
    %739 = arith.mulf %738, %724 : vector<2x64xf32>
    %cst_248 = arith.constant 1.000000e+00 : f32
    %740 = vector.broadcast %cst_248 : f32 to vector<2x1xf32>
    %741 = arith.subf %740, %730 : vector<2x1xf32>
    %742 = vector.broadcast %741 : vector<2x1xf32> to vector<2x64xf32>
    %743 = arith.mulf %742, %680 : vector<2x64xf32>
    %744 = arith.addf %739, %743 : vector<2x64xf32>
    %745 = vector.broadcast %730 : vector<2x1xf32> to vector<2x64xf32>
    %746 = arith.mulf %745, %726 : vector<2x64xf32>
    %747 = arith.addf %683, %746 : vector<2x64xf32>
    %c4_249 = arith.constant 4 : index
    %c0_250 = arith.constant 0 : index
    %c0_251 = arith.constant 0 : index
    %748 = vector.load %arg2[%c4_249, %c0_250, %c0_251] : memref<8x2x32xf32, #tpu.memory_space<vmem>>, vector<1x2x32xf32>
    %749 = vector.shape_cast %748 : vector<1x2x32xf32> to vector<2x32xf32>
    %cst_252 = arith.constant dense<0.000000e+00> : vector<2x64xf32>
    %750 = tpu.matmul %749, %530, %cst_252 {dimension_numbers = #tpu.dot_dimension_numbers<[1], [0], [0], [1], [0, 0, 1, 1], [], []>} : vector<2x32xf32>, vector<32x64xf32>, vector<2x64xf32> -> vector<2x64xf32>
    %cst_253 = arith.constant dense<0.000000e+00> : vector<2x64xf32>
    %751 = tpu.matmul %737, %538, %cst_253 {dimension_numbers = #tpu.dot_dimension_numbers<[1], [0], [0], [1], [0, 0, 1, 1], [], []>} : vector<2x64xf32>, vector<64x64xf32>, vector<2x64xf32> -> vector<2x64xf32>
    %752 = arith.addf %750, %751 : vector<2x64xf32>
    %753 = vector.broadcast %546 : vector<1x64xf32> to vector<2x64xf32>
    %754 = arith.addf %752, %753 : vector<2x64xf32>
    %755 = arith.negf %754 : vector<2x64xf32>
    %756 = math.exp %755 : vector<2x64xf32>
    %cst_254 = arith.constant 1.000000e+00 : f32
    %757 = vector.broadcast %cst_254 : f32 to vector<2x64xf32>
    %758 = arith.addf %757, %756 : vector<2x64xf32>
    %759 = arith.divf %757, %758 : vector<2x64xf32>
    %cst_255 = arith.constant dense<0.000000e+00> : vector<2x64xf32>
    %760 = tpu.matmul %749, %532, %cst_255 {dimension_numbers = #tpu.dot_dimension_numbers<[1], [0], [0], [1], [0, 0, 1, 1], [], []>} : vector<2x32xf32>, vector<32x64xf32>, vector<2x64xf32> -> vector<2x64xf32>
    %cst_256 = arith.constant dense<0.000000e+00> : vector<2x64xf32>
    %761 = tpu.matmul %737, %540, %cst_256 {dimension_numbers = #tpu.dot_dimension_numbers<[1], [0], [0], [1], [0, 0, 1, 1], [], []>} : vector<2x64xf32>, vector<64x64xf32>, vector<2x64xf32> -> vector<2x64xf32>
    %762 = arith.addf %760, %761 : vector<2x64xf32>
    %763 = vector.broadcast %548 : vector<1x64xf32> to vector<2x64xf32>
    %764 = arith.addf %762, %763 : vector<2x64xf32>
    %765 = arith.negf %764 : vector<2x64xf32>
    %766 = math.exp %765 : vector<2x64xf32>
    %cst_257 = arith.constant 1.000000e+00 : f32
    %767 = vector.broadcast %cst_257 : f32 to vector<2x64xf32>
    %768 = arith.addf %767, %766 : vector<2x64xf32>
    %769 = arith.divf %767, %768 : vector<2x64xf32>
    %cst_258 = arith.constant dense<0.000000e+00> : vector<2x64xf32>
    %770 = tpu.matmul %749, %534, %cst_258 {dimension_numbers = #tpu.dot_dimension_numbers<[1], [0], [0], [1], [0, 0, 1, 1], [], []>} : vector<2x32xf32>, vector<32x64xf32>, vector<2x64xf32> -> vector<2x64xf32>
    %cst_259 = arith.constant dense<0.000000e+00> : vector<2x64xf32>
    %771 = tpu.matmul %737, %542, %cst_259 {dimension_numbers = #tpu.dot_dimension_numbers<[1], [0], [0], [1], [0, 0, 1, 1], [], []>} : vector<2x64xf32>, vector<64x64xf32>, vector<2x64xf32> -> vector<2x64xf32>
    %772 = arith.addf %770, %771 : vector<2x64xf32>
    %773 = vector.broadcast %550 : vector<1x64xf32> to vector<2x64xf32>
    %774 = arith.addf %772, %773 : vector<2x64xf32>
    %775 = math.tanh %774 : vector<2x64xf32>
    %cst_260 = arith.constant dense<0.000000e+00> : vector<2x64xf32>
    %776 = tpu.matmul %749, %536, %cst_260 {dimension_numbers = #tpu.dot_dimension_numbers<[1], [0], [0], [1], [0, 0, 1, 1], [], []>} : vector<2x32xf32>, vector<32x64xf32>, vector<2x64xf32> -> vector<2x64xf32>
    %cst_261 = arith.constant dense<0.000000e+00> : vector<2x64xf32>
    %777 = tpu.matmul %737, %544, %cst_261 {dimension_numbers = #tpu.dot_dimension_numbers<[1], [0], [0], [1], [0, 0, 1, 1], [], []>} : vector<2x64xf32>, vector<64x64xf32>, vector<2x64xf32> -> vector<2x64xf32>
    %778 = arith.addf %776, %777 : vector<2x64xf32>
    %779 = vector.broadcast %552 : vector<1x64xf32> to vector<2x64xf32>
    %780 = arith.addf %778, %779 : vector<2x64xf32>
    %781 = arith.negf %780 : vector<2x64xf32>
    %782 = math.exp %781 : vector<2x64xf32>
    %cst_262 = arith.constant 1.000000e+00 : f32
    %783 = vector.broadcast %cst_262 : f32 to vector<2x64xf32>
    %784 = arith.addf %783, %782 : vector<2x64xf32>
    %785 = arith.divf %783, %784 : vector<2x64xf32>
    %786 = arith.mulf %769, %744 : vector<2x64xf32>
    %787 = arith.mulf %759, %775 : vector<2x64xf32>
    %788 = arith.addf %786, %787 : vector<2x64xf32>
    %789 = math.tanh %788 : vector<2x64xf32>
    %790 = arith.mulf %785, %789 : vector<2x64xf32>
    %c4_i32_263 = arith.constant 4 : i32
    %791 = vector.broadcast %c4_i32_263 : i32 to vector<2x1xi32>
    %792 = arith.cmpi sgt, %0, %791 : vector<2x1xi32>
    %793 = arith.extui %792 : vector<2x1xi1> to vector<2x1xi32>
    %794 = arith.sitofp %793 : vector<2x1xi32> to vector<2x1xf32>
    %795 = vector.broadcast %794 : vector<2x1xf32> to vector<2x64xf32>
    %796 = arith.mulf %795, %790 : vector<2x64xf32>
    %cst_264 = arith.constant 1.000000e+00 : f32
    %797 = vector.broadcast %cst_264 : f32 to vector<2x1xf32>
    %798 = arith.subf %797, %794 : vector<2x1xf32>
    %799 = vector.broadcast %798 : vector<2x1xf32> to vector<2x64xf32>
    %800 = arith.mulf %799, %737 : vector<2x64xf32>
    %801 = arith.addf %796, %800 : vector<2x64xf32>
    %802 = vector.broadcast %794 : vector<2x1xf32> to vector<2x64xf32>
    %803 = arith.mulf %802, %788 : vector<2x64xf32>
    %cst_265 = arith.constant 1.000000e+00 : f32
    %804 = vector.broadcast %cst_265 : f32 to vector<2x1xf32>
    %805 = arith.subf %804, %794 : vector<2x1xf32>
    %806 = vector.broadcast %805 : vector<2x1xf32> to vector<2x64xf32>
    %807 = arith.mulf %806, %744 : vector<2x64xf32>
    %808 = arith.addf %803, %807 : vector<2x64xf32>
    %809 = vector.broadcast %794 : vector<2x1xf32> to vector<2x64xf32>
    %810 = arith.mulf %809, %790 : vector<2x64xf32>
    %811 = arith.addf %747, %810 : vector<2x64xf32>
    %c3_266 = arith.constant 3 : index
    %c0_267 = arith.constant 0 : index
    %c0_268 = arith.constant 0 : index
    %812 = vector.load %arg2[%c3_266, %c0_267, %c0_268] : memref<8x2x32xf32, #tpu.memory_space<vmem>>, vector<1x2x32xf32>
    %813 = vector.shape_cast %812 : vector<1x2x32xf32> to vector<2x32xf32>
    %cst_269 = arith.constant dense<0.000000e+00> : vector<2x64xf32>
    %814 = tpu.matmul %813, %530, %cst_269 {dimension_numbers = #tpu.dot_dimension_numbers<[1], [0], [0], [1], [0, 0, 1, 1], [], []>} : vector<2x32xf32>, vector<32x64xf32>, vector<2x64xf32> -> vector<2x64xf32>
    %cst_270 = arith.constant dense<0.000000e+00> : vector<2x64xf32>
    %815 = tpu.matmul %801, %538, %cst_270 {dimension_numbers = #tpu.dot_dimension_numbers<[1], [0], [0], [1], [0, 0, 1, 1], [], []>} : vector<2x64xf32>, vector<64x64xf32>, vector<2x64xf32> -> vector<2x64xf32>
    %816 = arith.addf %814, %815 : vector<2x64xf32>
    %817 = vector.broadcast %546 : vector<1x64xf32> to vector<2x64xf32>
    %818 = arith.addf %816, %817 : vector<2x64xf32>
    %819 = arith.negf %818 : vector<2x64xf32>
    %820 = math.exp %819 : vector<2x64xf32>
    %cst_271 = arith.constant 1.000000e+00 : f32
    %821 = vector.broadcast %cst_271 : f32 to vector<2x64xf32>
    %822 = arith.addf %821, %820 : vector<2x64xf32>
    %823 = arith.divf %821, %822 : vector<2x64xf32>
    %cst_272 = arith.constant dense<0.000000e+00> : vector<2x64xf32>
    %824 = tpu.matmul %813, %532, %cst_272 {dimension_numbers = #tpu.dot_dimension_numbers<[1], [0], [0], [1], [0, 0, 1, 1], [], []>} : vector<2x32xf32>, vector<32x64xf32>, vector<2x64xf32> -> vector<2x64xf32>
    %cst_273 = arith.constant dense<0.000000e+00> : vector<2x64xf32>
    %825 = tpu.matmul %801, %540, %cst_273 {dimension_numbers = #tpu.dot_dimension_numbers<[1], [0], [0], [1], [0, 0, 1, 1], [], []>} : vector<2x64xf32>, vector<64x64xf32>, vector<2x64xf32> -> vector<2x64xf32>
    %826 = arith.addf %824, %825 : vector<2x64xf32>
    %827 = vector.broadcast %548 : vector<1x64xf32> to vector<2x64xf32>
    %828 = arith.addf %826, %827 : vector<2x64xf32>
    %829 = arith.negf %828 : vector<2x64xf32>
    %830 = math.exp %829 : vector<2x64xf32>
    %cst_274 = arith.constant 1.000000e+00 : f32
    %831 = vector.broadcast %cst_274 : f32 to vector<2x64xf32>
    %832 = arith.addf %831, %830 : vector<2x64xf32>
    %833 = arith.divf %831, %832 : vector<2x64xf32>
    %cst_275 = arith.constant dense<0.000000e+00> : vector<2x64xf32>
    %834 = tpu.matmul %813, %534, %cst_275 {dimension_numbers = #tpu.dot_dimension_numbers<[1], [0], [0], [1], [0, 0, 1, 1], [], []>} : vector<2x32xf32>, vector<32x64xf32>, vector<2x64xf32> -> vector<2x64xf32>
    %cst_276 = arith.constant dense<0.000000e+00> : vector<2x64xf32>
    %835 = tpu.matmul %801, %542, %cst_276 {dimension_numbers = #tpu.dot_dimension_numbers<[1], [0], [0], [1], [0, 0, 1, 1], [], []>} : vector<2x64xf32>, vector<64x64xf32>, vector<2x64xf32> -> vector<2x64xf32>
    %836 = arith.addf %834, %835 : vector<2x64xf32>
    %837 = vector.broadcast %550 : vector<1x64xf32> to vector<2x64xf32>
    %838 = arith.addf %836, %837 : vector<2x64xf32>
    %839 = math.tanh %838 : vector<2x64xf32>
    %cst_277 = arith.constant dense<0.000000e+00> : vector<2x64xf32>
    %840 = tpu.matmul %813, %536, %cst_277 {dimension_numbers = #tpu.dot_dimension_numbers<[1], [0], [0], [1], [0, 0, 1, 1], [], []>} : vector<2x32xf32>, vector<32x64xf32>, vector<2x64xf32> -> vector<2x64xf32>
    %cst_278 = arith.constant dense<0.000000e+00> : vector<2x64xf32>
    %841 = tpu.matmul %801, %544, %cst_278 {dimension_numbers = #tpu.dot_dimension_numbers<[1], [0], [0], [1], [0, 0, 1, 1], [], []>} : vector<2x64xf32>, vector<64x64xf32>, vector<2x64xf32> -> vector<2x64xf32>
    %842 = arith.addf %840, %841 : vector<2x64xf32>
    %843 = vector.broadcast %552 : vector<1x64xf32> to vector<2x64xf32>
    %844 = arith.addf %842, %843 : vector<2x64xf32>
    %845 = arith.negf %844 : vector<2x64xf32>
    %846 = math.exp %845 : vector<2x64xf32>
    %cst_279 = arith.constant 1.000000e+00 : f32
    %847 = vector.broadcast %cst_279 : f32 to vector<2x64xf32>
    %848 = arith.addf %847, %846 : vector<2x64xf32>
    %849 = arith.divf %847, %848 : vector<2x64xf32>
    %850 = arith.mulf %833, %808 : vector<2x64xf32>
    %851 = arith.mulf %823, %839 : vector<2x64xf32>
    %852 = arith.addf %850, %851 : vector<2x64xf32>
    %853 = math.tanh %852 : vector<2x64xf32>
    %854 = arith.mulf %849, %853 : vector<2x64xf32>
    %c3_i32_280 = arith.constant 3 : i32
    %855 = vector.broadcast %c3_i32_280 : i32 to vector<2x1xi32>
    %856 = arith.cmpi sgt, %0, %855 : vector<2x1xi32>
    %857 = arith.extui %856 : vector<2x1xi1> to vector<2x1xi32>
    %858 = arith.sitofp %857 : vector<2x1xi32> to vector<2x1xf32>
    %859 = vector.broadcast %858 : vector<2x1xf32> to vector<2x64xf32>
    %860 = arith.mulf %859, %854 : vector<2x64xf32>
    %cst_281 = arith.constant 1.000000e+00 : f32
    %861 = vector.broadcast %cst_281 : f32 to vector<2x1xf32>
    %862 = arith.subf %861, %858 : vector<2x1xf32>
    %863 = vector.broadcast %862 : vector<2x1xf32> to vector<2x64xf32>
    %864 = arith.mulf %863, %801 : vector<2x64xf32>
    %865 = arith.addf %860, %864 : vector<2x64xf32>
    %866 = vector.broadcast %858 : vector<2x1xf32> to vector<2x64xf32>
    %867 = arith.mulf %866, %852 : vector<2x64xf32>
    %cst_282 = arith.constant 1.000000e+00 : f32
    %868 = vector.broadcast %cst_282 : f32 to vector<2x1xf32>
    %869 = arith.subf %868, %858 : vector<2x1xf32>
    %870 = vector.broadcast %869 : vector<2x1xf32> to vector<2x64xf32>
    %871 = arith.mulf %870, %808 : vector<2x64xf32>
    %872 = arith.addf %867, %871 : vector<2x64xf32>
    %873 = vector.broadcast %858 : vector<2x1xf32> to vector<2x64xf32>
    %874 = arith.mulf %873, %854 : vector<2x64xf32>
    %875 = arith.addf %811, %874 : vector<2x64xf32>
    %c2_283 = arith.constant 2 : index
    %c0_284 = arith.constant 0 : index
    %c0_285 = arith.constant 0 : index
    %876 = vector.load %arg2[%c2_283, %c0_284, %c0_285] : memref<8x2x32xf32, #tpu.memory_space<vmem>>, vector<1x2x32xf32>
    %877 = vector.shape_cast %876 : vector<1x2x32xf32> to vector<2x32xf32>
    %cst_286 = arith.constant dense<0.000000e+00> : vector<2x64xf32>
    %878 = tpu.matmul %877, %530, %cst_286 {dimension_numbers = #tpu.dot_dimension_numbers<[1], [0], [0], [1], [0, 0, 1, 1], [], []>} : vector<2x32xf32>, vector<32x64xf32>, vector<2x64xf32> -> vector<2x64xf32>
    %cst_287 = arith.constant dense<0.000000e+00> : vector<2x64xf32>
    %879 = tpu.matmul %865, %538, %cst_287 {dimension_numbers = #tpu.dot_dimension_numbers<[1], [0], [0], [1], [0, 0, 1, 1], [], []>} : vector<2x64xf32>, vector<64x64xf32>, vector<2x64xf32> -> vector<2x64xf32>
    %880 = arith.addf %878, %879 : vector<2x64xf32>
    %881 = vector.broadcast %546 : vector<1x64xf32> to vector<2x64xf32>
    %882 = arith.addf %880, %881 : vector<2x64xf32>
    %883 = arith.negf %882 : vector<2x64xf32>
    %884 = math.exp %883 : vector<2x64xf32>
    %cst_288 = arith.constant 1.000000e+00 : f32
    %885 = vector.broadcast %cst_288 : f32 to vector<2x64xf32>
    %886 = arith.addf %885, %884 : vector<2x64xf32>
    %887 = arith.divf %885, %886 : vector<2x64xf32>
    %cst_289 = arith.constant dense<0.000000e+00> : vector<2x64xf32>
    %888 = tpu.matmul %877, %532, %cst_289 {dimension_numbers = #tpu.dot_dimension_numbers<[1], [0], [0], [1], [0, 0, 1, 1], [], []>} : vector<2x32xf32>, vector<32x64xf32>, vector<2x64xf32> -> vector<2x64xf32>
    %cst_290 = arith.constant dense<0.000000e+00> : vector<2x64xf32>
    %889 = tpu.matmul %865, %540, %cst_290 {dimension_numbers = #tpu.dot_dimension_numbers<[1], [0], [0], [1], [0, 0, 1, 1], [], []>} : vector<2x64xf32>, vector<64x64xf32>, vector<2x64xf32> -> vector<2x64xf32>
    %890 = arith.addf %888, %889 : vector<2x64xf32>
    %891 = vector.broadcast %548 : vector<1x64xf32> to vector<2x64xf32>
    %892 = arith.addf %890, %891 : vector<2x64xf32>
    %893 = arith.negf %892 : vector<2x64xf32>
    %894 = math.exp %893 : vector<2x64xf32>
    %cst_291 = arith.constant 1.000000e+00 : f32
    %895 = vector.broadcast %cst_291 : f32 to vector<2x64xf32>
    %896 = arith.addf %895, %894 : vector<2x64xf32>
    %897 = arith.divf %895, %896 : vector<2x64xf32>
    %cst_292 = arith.constant dense<0.000000e+00> : vector<2x64xf32>
    %898 = tpu.matmul %877, %534, %cst_292 {dimension_numbers = #tpu.dot_dimension_numbers<[1], [0], [0], [1], [0, 0, 1, 1], [], []>} : vector<2x32xf32>, vector<32x64xf32>, vector<2x64xf32> -> vector<2x64xf32>
    %cst_293 = arith.constant dense<0.000000e+00> : vector<2x64xf32>
    %899 = tpu.matmul %865, %542, %cst_293 {dimension_numbers = #tpu.dot_dimension_numbers<[1], [0], [0], [1], [0, 0, 1, 1], [], []>} : vector<2x64xf32>, vector<64x64xf32>, vector<2x64xf32> -> vector<2x64xf32>
    %900 = arith.addf %898, %899 : vector<2x64xf32>
    %901 = vector.broadcast %550 : vector<1x64xf32> to vector<2x64xf32>
    %902 = arith.addf %900, %901 : vector<2x64xf32>
    %903 = math.tanh %902 : vector<2x64xf32>
    %cst_294 = arith.constant dense<0.000000e+00> : vector<2x64xf32>
    %904 = tpu.matmul %877, %536, %cst_294 {dimension_numbers = #tpu.dot_dimension_numbers<[1], [0], [0], [1], [0, 0, 1, 1], [], []>} : vector<2x32xf32>, vector<32x64xf32>, vector<2x64xf32> -> vector<2x64xf32>
    %cst_295 = arith.constant dense<0.000000e+00> : vector<2x64xf32>
    %905 = tpu.matmul %865, %544, %cst_295 {dimension_numbers = #tpu.dot_dimension_numbers<[1], [0], [0], [1], [0, 0, 1, 1], [], []>} : vector<2x64xf32>, vector<64x64xf32>, vector<2x64xf32> -> vector<2x64xf32>
    %906 = arith.addf %904, %905 : vector<2x64xf32>
    %907 = vector.broadcast %552 : vector<1x64xf32> to vector<2x64xf32>
    %908 = arith.addf %906, %907 : vector<2x64xf32>
    %909 = arith.negf %908 : vector<2x64xf32>
    %910 = math.exp %909 : vector<2x64xf32>
    %cst_296 = arith.constant 1.000000e+00 : f32
    %911 = vector.broadcast %cst_296 : f32 to vector<2x64xf32>
    %912 = arith.addf %911, %910 : vector<2x64xf32>
    %913 = arith.divf %911, %912 : vector<2x64xf32>
    %914 = arith.mulf %897, %872 : vector<2x64xf32>
    %915 = arith.mulf %887, %903 : vector<2x64xf32>
    %916 = arith.addf %914, %915 : vector<2x64xf32>
    %917 = math.tanh %916 : vector<2x64xf32>
    %918 = arith.mulf %913, %917 : vector<2x64xf32>
    %c2_i32_297 = arith.constant 2 : i32
    %919 = vector.broadcast %c2_i32_297 : i32 to vector<2x1xi32>
    %920 = arith.cmpi sgt, %0, %919 : vector<2x1xi32>
    %921 = arith.extui %920 : vector<2x1xi1> to vector<2x1xi32>
    %922 = arith.sitofp %921 : vector<2x1xi32> to vector<2x1xf32>
    %923 = vector.broadcast %922 : vector<2x1xf32> to vector<2x64xf32>
    %924 = arith.mulf %923, %918 : vector<2x64xf32>
    %cst_298 = arith.constant 1.000000e+00 : f32
    %925 = vector.broadcast %cst_298 : f32 to vector<2x1xf32>
    %926 = arith.subf %925, %922 : vector<2x1xf32>
    %927 = vector.broadcast %926 : vector<2x1xf32> to vector<2x64xf32>
    %928 = arith.mulf %927, %865 : vector<2x64xf32>
    %929 = arith.addf %924, %928 : vector<2x64xf32>
    %930 = vector.broadcast %922 : vector<2x1xf32> to vector<2x64xf32>
    %931 = arith.mulf %930, %916 : vector<2x64xf32>
    %cst_299 = arith.constant 1.000000e+00 : f32
    %932 = vector.broadcast %cst_299 : f32 to vector<2x1xf32>
    %933 = arith.subf %932, %922 : vector<2x1xf32>
    %934 = vector.broadcast %933 : vector<2x1xf32> to vector<2x64xf32>
    %935 = arith.mulf %934, %872 : vector<2x64xf32>
    %936 = arith.addf %931, %935 : vector<2x64xf32>
    %937 = vector.broadcast %922 : vector<2x1xf32> to vector<2x64xf32>
    %938 = arith.mulf %937, %918 : vector<2x64xf32>
    %939 = arith.addf %875, %938 : vector<2x64xf32>
    %c1_300 = arith.constant 1 : index
    %c0_301 = arith.constant 0 : index
    %c0_302 = arith.constant 0 : index
    %940 = vector.load %arg2[%c1_300, %c0_301, %c0_302] : memref<8x2x32xf32, #tpu.memory_space<vmem>>, vector<1x2x32xf32>
    %941 = vector.shape_cast %940 : vector<1x2x32xf32> to vector<2x32xf32>
    %cst_303 = arith.constant dense<0.000000e+00> : vector<2x64xf32>
    %942 = tpu.matmul %941, %530, %cst_303 {dimension_numbers = #tpu.dot_dimension_numbers<[1], [0], [0], [1], [0, 0, 1, 1], [], []>} : vector<2x32xf32>, vector<32x64xf32>, vector<2x64xf32> -> vector<2x64xf32>
    %cst_304 = arith.constant dense<0.000000e+00> : vector<2x64xf32>
    %943 = tpu.matmul %929, %538, %cst_304 {dimension_numbers = #tpu.dot_dimension_numbers<[1], [0], [0], [1], [0, 0, 1, 1], [], []>} : vector<2x64xf32>, vector<64x64xf32>, vector<2x64xf32> -> vector<2x64xf32>
    %944 = arith.addf %942, %943 : vector<2x64xf32>
    %945 = vector.broadcast %546 : vector<1x64xf32> to vector<2x64xf32>
    %946 = arith.addf %944, %945 : vector<2x64xf32>
    %947 = arith.negf %946 : vector<2x64xf32>
    %948 = math.exp %947 : vector<2x64xf32>
    %cst_305 = arith.constant 1.000000e+00 : f32
    %949 = vector.broadcast %cst_305 : f32 to vector<2x64xf32>
    %950 = arith.addf %949, %948 : vector<2x64xf32>
    %951 = arith.divf %949, %950 : vector<2x64xf32>
    %cst_306 = arith.constant dense<0.000000e+00> : vector<2x64xf32>
    %952 = tpu.matmul %941, %532, %cst_306 {dimension_numbers = #tpu.dot_dimension_numbers<[1], [0], [0], [1], [0, 0, 1, 1], [], []>} : vector<2x32xf32>, vector<32x64xf32>, vector<2x64xf32> -> vector<2x64xf32>
    %cst_307 = arith.constant dense<0.000000e+00> : vector<2x64xf32>
    %953 = tpu.matmul %929, %540, %cst_307 {dimension_numbers = #tpu.dot_dimension_numbers<[1], [0], [0], [1], [0, 0, 1, 1], [], []>} : vector<2x64xf32>, vector<64x64xf32>, vector<2x64xf32> -> vector<2x64xf32>
    %954 = arith.addf %952, %953 : vector<2x64xf32>
    %955 = vector.broadcast %548 : vector<1x64xf32> to vector<2x64xf32>
    %956 = arith.addf %954, %955 : vector<2x64xf32>
    %957 = arith.negf %956 : vector<2x64xf32>
    %958 = math.exp %957 : vector<2x64xf32>
    %cst_308 = arith.constant 1.000000e+00 : f32
    %959 = vector.broadcast %cst_308 : f32 to vector<2x64xf32>
    %960 = arith.addf %959, %958 : vector<2x64xf32>
    %961 = arith.divf %959, %960 : vector<2x64xf32>
    %cst_309 = arith.constant dense<0.000000e+00> : vector<2x64xf32>
    %962 = tpu.matmul %941, %534, %cst_309 {dimension_numbers = #tpu.dot_dimension_numbers<[1], [0], [0], [1], [0, 0, 1, 1], [], []>} : vector<2x32xf32>, vector<32x64xf32>, vector<2x64xf32> -> vector<2x64xf32>
    %cst_310 = arith.constant dense<0.000000e+00> : vector<2x64xf32>
    %963 = tpu.matmul %929, %542, %cst_310 {dimension_numbers = #tpu.dot_dimension_numbers<[1], [0], [0], [1], [0, 0, 1, 1], [], []>} : vector<2x64xf32>, vector<64x64xf32>, vector<2x64xf32> -> vector<2x64xf32>
    %964 = arith.addf %962, %963 : vector<2x64xf32>
    %965 = vector.broadcast %550 : vector<1x64xf32> to vector<2x64xf32>
    %966 = arith.addf %964, %965 : vector<2x64xf32>
    %967 = math.tanh %966 : vector<2x64xf32>
    %cst_311 = arith.constant dense<0.000000e+00> : vector<2x64xf32>
    %968 = tpu.matmul %941, %536, %cst_311 {dimension_numbers = #tpu.dot_dimension_numbers<[1], [0], [0], [1], [0, 0, 1, 1], [], []>} : vector<2x32xf32>, vector<32x64xf32>, vector<2x64xf32> -> vector<2x64xf32>
    %cst_312 = arith.constant dense<0.000000e+00> : vector<2x64xf32>
    %969 = tpu.matmul %929, %544, %cst_312 {dimension_numbers = #tpu.dot_dimension_numbers<[1], [0], [0], [1], [0, 0, 1, 1], [], []>} : vector<2x64xf32>, vector<64x64xf32>, vector<2x64xf32> -> vector<2x64xf32>
    %970 = arith.addf %968, %969 : vector<2x64xf32>
    %971 = vector.broadcast %552 : vector<1x64xf32> to vector<2x64xf32>
    %972 = arith.addf %970, %971 : vector<2x64xf32>
    %973 = arith.negf %972 : vector<2x64xf32>
    %974 = math.exp %973 : vector<2x64xf32>
    %cst_313 = arith.constant 1.000000e+00 : f32
    %975 = vector.broadcast %cst_313 : f32 to vector<2x64xf32>
    %976 = arith.addf %975, %974 : vector<2x64xf32>
    %977 = arith.divf %975, %976 : vector<2x64xf32>
    %978 = arith.mulf %961, %936 : vector<2x64xf32>
    %979 = arith.mulf %951, %967 : vector<2x64xf32>
    %980 = arith.addf %978, %979 : vector<2x64xf32>
    %981 = math.tanh %980 : vector<2x64xf32>
    %982 = arith.mulf %977, %981 : vector<2x64xf32>
    %c1_i32_314 = arith.constant 1 : i32
    %983 = vector.broadcast %c1_i32_314 : i32 to vector<2x1xi32>
    %984 = arith.cmpi sgt, %0, %983 : vector<2x1xi32>
    %985 = arith.extui %984 : vector<2x1xi1> to vector<2x1xi32>
    %986 = arith.sitofp %985 : vector<2x1xi32> to vector<2x1xf32>
    %987 = vector.broadcast %986 : vector<2x1xf32> to vector<2x64xf32>
    %988 = arith.mulf %987, %982 : vector<2x64xf32>
    %cst_315 = arith.constant 1.000000e+00 : f32
    %989 = vector.broadcast %cst_315 : f32 to vector<2x1xf32>
    %990 = arith.subf %989, %986 : vector<2x1xf32>
    %991 = vector.broadcast %990 : vector<2x1xf32> to vector<2x64xf32>
    %992 = arith.mulf %991, %929 : vector<2x64xf32>
    %993 = arith.addf %988, %992 : vector<2x64xf32>
    %994 = vector.broadcast %986 : vector<2x1xf32> to vector<2x64xf32>
    %995 = arith.mulf %994, %980 : vector<2x64xf32>
    %cst_316 = arith.constant 1.000000e+00 : f32
    %996 = vector.broadcast %cst_316 : f32 to vector<2x1xf32>
    %997 = arith.subf %996, %986 : vector<2x1xf32>
    %998 = vector.broadcast %997 : vector<2x1xf32> to vector<2x64xf32>
    %999 = arith.mulf %998, %936 : vector<2x64xf32>
    %1000 = arith.addf %995, %999 : vector<2x64xf32>
    %1001 = vector.broadcast %986 : vector<2x1xf32> to vector<2x64xf32>
    %1002 = arith.mulf %1001, %982 : vector<2x64xf32>
    %1003 = arith.addf %939, %1002 : vector<2x64xf32>
    %c0_317 = arith.constant 0 : index
    %c0_318 = arith.constant 0 : index
    %c0_319 = arith.constant 0 : index
    %1004 = vector.load %arg2[%c0_317, %c0_318, %c0_319] : memref<8x2x32xf32, #tpu.memory_space<vmem>>, vector<1x2x32xf32>
    %1005 = vector.shape_cast %1004 : vector<1x2x32xf32> to vector<2x32xf32>
    %cst_320 = arith.constant dense<0.000000e+00> : vector<2x64xf32>
    %1006 = tpu.matmul %1005, %530, %cst_320 {dimension_numbers = #tpu.dot_dimension_numbers<[1], [0], [0], [1], [0, 0, 1, 1], [], []>} : vector<2x32xf32>, vector<32x64xf32>, vector<2x64xf32> -> vector<2x64xf32>
    %cst_321 = arith.constant dense<0.000000e+00> : vector<2x64xf32>
    %1007 = tpu.matmul %993, %538, %cst_321 {dimension_numbers = #tpu.dot_dimension_numbers<[1], [0], [0], [1], [0, 0, 1, 1], [], []>} : vector<2x64xf32>, vector<64x64xf32>, vector<2x64xf32> -> vector<2x64xf32>
    %1008 = arith.addf %1006, %1007 : vector<2x64xf32>
    %1009 = vector.broadcast %546 : vector<1x64xf32> to vector<2x64xf32>
    %1010 = arith.addf %1008, %1009 : vector<2x64xf32>
    %1011 = arith.negf %1010 : vector<2x64xf32>
    %1012 = math.exp %1011 : vector<2x64xf32>
    %cst_322 = arith.constant 1.000000e+00 : f32
    %1013 = vector.broadcast %cst_322 : f32 to vector<2x64xf32>
    %1014 = arith.addf %1013, %1012 : vector<2x64xf32>
    %1015 = arith.divf %1013, %1014 : vector<2x64xf32>
    %cst_323 = arith.constant dense<0.000000e+00> : vector<2x64xf32>
    %1016 = tpu.matmul %1005, %532, %cst_323 {dimension_numbers = #tpu.dot_dimension_numbers<[1], [0], [0], [1], [0, 0, 1, 1], [], []>} : vector<2x32xf32>, vector<32x64xf32>, vector<2x64xf32> -> vector<2x64xf32>
    %cst_324 = arith.constant dense<0.000000e+00> : vector<2x64xf32>
    %1017 = tpu.matmul %993, %540, %cst_324 {dimension_numbers = #tpu.dot_dimension_numbers<[1], [0], [0], [1], [0, 0, 1, 1], [], []>} : vector<2x64xf32>, vector<64x64xf32>, vector<2x64xf32> -> vector<2x64xf32>
    %1018 = arith.addf %1016, %1017 : vector<2x64xf32>
    %1019 = vector.broadcast %548 : vector<1x64xf32> to vector<2x64xf32>
    %1020 = arith.addf %1018, %1019 : vector<2x64xf32>
    %1021 = arith.negf %1020 : vector<2x64xf32>
    %1022 = math.exp %1021 : vector<2x64xf32>
    %cst_325 = arith.constant 1.000000e+00 : f32
    %1023 = vector.broadcast %cst_325 : f32 to vector<2x64xf32>
    %1024 = arith.addf %1023, %1022 : vector<2x64xf32>
    %1025 = arith.divf %1023, %1024 : vector<2x64xf32>
    %cst_326 = arith.constant dense<0.000000e+00> : vector<2x64xf32>
    %1026 = tpu.matmul %1005, %534, %cst_326 {dimension_numbers = #tpu.dot_dimension_numbers<[1], [0], [0], [1], [0, 0, 1, 1], [], []>} : vector<2x32xf32>, vector<32x64xf32>, vector<2x64xf32> -> vector<2x64xf32>
    %cst_327 = arith.constant dense<0.000000e+00> : vector<2x64xf32>
    %1027 = tpu.matmul %993, %542, %cst_327 {dimension_numbers = #tpu.dot_dimension_numbers<[1], [0], [0], [1], [0, 0, 1, 1], [], []>} : vector<2x64xf32>, vector<64x64xf32>, vector<2x64xf32> -> vector<2x64xf32>
    %1028 = arith.addf %1026, %1027 : vector<2x64xf32>
    %1029 = vector.broadcast %550 : vector<1x64xf32> to vector<2x64xf32>
    %1030 = arith.addf %1028, %1029 : vector<2x64xf32>
    %1031 = math.tanh %1030 : vector<2x64xf32>
    %cst_328 = arith.constant dense<0.000000e+00> : vector<2x64xf32>
    %1032 = tpu.matmul %1005, %536, %cst_328 {dimension_numbers = #tpu.dot_dimension_numbers<[1], [0], [0], [1], [0, 0, 1, 1], [], []>} : vector<2x32xf32>, vector<32x64xf32>, vector<2x64xf32> -> vector<2x64xf32>
    %cst_329 = arith.constant dense<0.000000e+00> : vector<2x64xf32>
    %1033 = tpu.matmul %993, %544, %cst_329 {dimension_numbers = #tpu.dot_dimension_numbers<[1], [0], [0], [1], [0, 0, 1, 1], [], []>} : vector<2x64xf32>, vector<64x64xf32>, vector<2x64xf32> -> vector<2x64xf32>
    %1034 = arith.addf %1032, %1033 : vector<2x64xf32>
    %1035 = vector.broadcast %552 : vector<1x64xf32> to vector<2x64xf32>
    %1036 = arith.addf %1034, %1035 : vector<2x64xf32>
    %1037 = arith.negf %1036 : vector<2x64xf32>
    %1038 = math.exp %1037 : vector<2x64xf32>
    %cst_330 = arith.constant 1.000000e+00 : f32
    %1039 = vector.broadcast %cst_330 : f32 to vector<2x64xf32>
    %1040 = arith.addf %1039, %1038 : vector<2x64xf32>
    %1041 = arith.divf %1039, %1040 : vector<2x64xf32>
    %1042 = arith.mulf %1025, %1000 : vector<2x64xf32>
    %1043 = arith.mulf %1015, %1031 : vector<2x64xf32>
    %1044 = arith.addf %1042, %1043 : vector<2x64xf32>
    %1045 = math.tanh %1044 : vector<2x64xf32>
    %1046 = arith.mulf %1041, %1045 : vector<2x64xf32>
    %c0_i32_331 = arith.constant 0 : i32
    %1047 = vector.broadcast %c0_i32_331 : i32 to vector<2x1xi32>
    %1048 = arith.cmpi sgt, %0, %1047 : vector<2x1xi32>
    %1049 = arith.extui %1048 : vector<2x1xi1> to vector<2x1xi32>
    %1050 = arith.sitofp %1049 : vector<2x1xi32> to vector<2x1xf32>
    %1051 = vector.broadcast %1050 : vector<2x1xf32> to vector<2x64xf32>
    %1052 = arith.mulf %1051, %1046 : vector<2x64xf32>
    %1053 = arith.addf %1003, %1052 : vector<2x64xf32>
    %1054 = vector.broadcast %3 : vector<2x1xf32> to vector<2x64xf32>
    %1055 = arith.mulf %528, %1054 : vector<2x64xf32>
    %c0_332 = arith.constant 0 : index
    %c0_333 = arith.constant 0 : index
    %c0_334 = arith.constant 0 : index
    %1056 = vector.load %arg9[%c0_332, %c0_333, %c0_334] : memref<2x2x64xf32, #tpu.memory_space<vmem>>, vector<1x2x64xf32>
    %1057 = vector.shape_cast %1056 : vector<1x2x64xf32> to vector<2x64xf32>
    %1058 = vector.shape_cast %1055 : vector<2x64xf32> to vector<1x2x64xf32>
    tpu.vector_store %arg9[%c0_332, %c0_333, %c0_334], %1058 {strides = array<i32>} : memref<2x2x64xf32, #tpu.memory_space<vmem>>, vector<1x2x64xf32>,
    %1059 = vector.broadcast %3 : vector<2x1xf32> to vector<2x64xf32>
    %1060 = arith.mulf %1053, %1059 : vector<2x64xf32>
    %c1_335 = arith.constant 1 : index
    %c0_336 = arith.constant 0 : index
    %c0_337 = arith.constant 0 : index
    %1061 = vector.load %arg9[%c1_335, %c0_336, %c0_337] : memref<2x2x64xf32, #tpu.memory_space<vmem>>, vector<1x2x64xf32>
    %1062 = vector.shape_cast %1061 : vector<1x2x64xf32> to vector<2x64xf32>
    %1063 = vector.shape_cast %1060 : vector<2x64xf32> to vector<1x2x64xf32>
    tpu.vector_store %arg9[%c1_335, %c0_336, %c0_337], %1063 {strides = array<i32>} : memref<2x2x64xf32, #tpu.memory_space<vmem>>, vector<1x2x64xf32>,
    return
  }
  func.func @transform_0(%arg0: i32) -> (i32, i32) {
    %c0_i32 = arith.constant 0 : i32
    %c0_i32_0 = arith.constant 0 : i32
    %c0_i32_1 = arith.constant 0 : i32
    return %c0_i32, %c0_i32_0 : i32, i32
  }
  func.func @transform_1(%arg0: i32) -> (i32, i32, i32) {
    %c0_i32 = arith.constant 0 : i32
    %c0_i32_0 = arith.constant 0 : i32
    %c0_i32_1 = arith.constant 0 : i32
    %c0_i32_2 = arith.constant 0 : i32
    return %c0_i32, %c0_i32_0, %c0_i32_1 : i32, i32, i32
  }
  func.func @transform_2(%arg0: i32) -> (i32, i32, i32) {
    %c0_i32 = arith.constant 0 : i32
    %c0_i32_0 = arith.constant 0 : i32
    %c0_i32_1 = arith.constant 0 : i32
    %c0_i32_2 = arith.constant 0 : i32
    return %c0_i32, %c0_i32_0, %c0_i32_1 : i32, i32, i32
  }
  func.func @transform_3(%arg0: i32) -> (i32, i32, i32) {
    %c0_i32 = arith.constant 0 : i32
    %c0_i32_0 = arith.constant 0 : i32
    %c0_i32_1 = arith.constant 0 : i32
    %c0_i32_2 = arith.constant 0 : i32
    return %c0_i32, %c0_i32_0, %c0_i32_1 : i32, i32, i32
  }
  func.func @transform_4(%arg0: i32) -> (i32, i32, i32) {
    %c0_i32 = arith.constant 0 : i32
    %c0_i32_0 = arith.constant 0 : i32
    %c0_i32_1 = arith.constant 0 : i32
    %c0_i32_2 = arith.constant 0 : i32
    return %c0_i32, %c0_i32_0, %c0_i32_1 : i32, i32, i32
  }
  func.func @transform_5(%arg0: i32) -> (i32, i32, i32) {
    %c0_i32 = arith.constant 0 : i32
    %c0_i32_0 = arith.constant 0 : i32
    %c0_i32_1 = arith.constant 0 : i32
    %c0_i32_2 = arith.constant 0 : i32
    return %c0_i32, %c0_i32_0, %c0_i32_1 : i32, i32, i32
  }
  func.func @transform_6(%arg0: i32) -> (i32, i32, i32) {
    %c0_i32 = arith.constant 0 : i32
    %c0_i32_0 = arith.constant 0 : i32
    %c0_i32_1 = arith.constant 0 : i32
    %c0_i32_2 = arith.constant 0 : i32
    return %c0_i32, %c0_i32_0, %c0_i32_1 : i32, i32, i32
  }
  func.func @transform_7(%arg0: i32) -> (i32, i32, i32) {
    %c0_i32 = arith.constant 0 : i32
    %c0_i32_0 = arith.constant 0 : i32
    %c0_i32_1 = arith.constant 0 : i32
    %c0_i32_2 = arith.constant 0 : i32
    return %c0_i32, %c0_i32_0, %c0_i32_1 : i32, i32, i32
  }
  func.func @transform_8(%arg0: i32) -> (i32, i32, i32) {
    %c0_i32 = arith.constant 0 : i32
    %c0_i32_0 = arith.constant 0 : i32
    %c0_i32_1 = arith.constant 0 : i32
    %c0_i32_2 = arith.constant 0 : i32
    return %c0_i32, %c0_i32_0, %c0_i32_1 : i32, i32, i32
  }
}

module attributes {stable_mosaic.version = 11 : i64} {
  func.func @_head_decoder_kernel(%arg0: i32, %arg1: memref<2x128xf32, #tpu.memory_space<vmem>>, %arg2: memref<128x64xf32, #tpu.memory_space<vmem>>, %arg3: memref<1x64xf32, #tpu.memory_space<vmem>>, %arg4: memref<64x32xf32, #tpu.memory_space<vmem>>, %arg5: memref<1x32xf32, #tpu.memory_space<vmem>>, %arg6: memref<32x32xf32, #tpu.memory_space<vmem>>, %arg7: memref<1x32xf32, #tpu.memory_space<vmem>>, %arg8: memref<32x32xf32, #tpu.memory_space<vmem>>, %arg9: memref<1x32xf32, #tpu.memory_space<vmem>>, %arg10: memref<32x16xf32, #tpu.memory_space<vmem>>, %arg11: memref<1x16xf32, #tpu.memory_space<vmem>>, %arg12: memref<4x32x64xf32, #tpu.memory_space<vmem>>, %arg13: memref<4x16x64xf32, #tpu.memory_space<vmem>>, %arg14: memref<4x64x64xf32, #tpu.memory_space<vmem>>, %arg15: memref<4x1x64xf32, #tpu.memory_space<vmem>>, %arg16: memref<64x32xf32, #tpu.memory_space<vmem>>, %arg17: memref<1x32xf32, #tpu.memory_space<vmem>>, %arg18: memref<32x16xf32, #tpu.memory_space<vmem>>, %arg19: memref<1x16xf32, #tpu.memory_space<vmem>>, %arg20: memref<8x2x16xf32, #tpu.memory_space<vmem>>) attributes {dimension_semantics = [#tpu.dimension_semantics<arbitrary>], iteration_bounds = array<i64: 1>, scalar_prefetch = 0 : i64, scratch_operands = 0 : i64, tpu.core_type = #tpu.core_type<tc>, window_params = [{pipeline_mode = #tpu.pipeline_mode<synchronous>, transform_indices = @transform_0, window_bounds = array<i64: 2, 128>}, {pipeline_mode = #tpu.pipeline_mode<synchronous>, transform_indices = @transform_1, window_bounds = array<i64: 128, 64>}, {pipeline_mode = #tpu.pipeline_mode<synchronous>, transform_indices = @transform_2, window_bounds = array<i64: 1, 64>}, {pipeline_mode = #tpu.pipeline_mode<synchronous>, transform_indices = @transform_3, window_bounds = array<i64: 64, 32>}, {pipeline_mode = #tpu.pipeline_mode<synchronous>, transform_indices = @transform_4, window_bounds = array<i64: 1, 32>}, {pipeline_mode = #tpu.pipeline_mode<synchronous>, transform_indices = @transform_5, window_bounds = array<i64: 32, 32>}, {pipeline_mode = #tpu.pipeline_mode<synchronous>, transform_indices = @transform_6, window_bounds = array<i64: 1, 32>}, {pipeline_mode = #tpu.pipeline_mode<synchronous>, transform_indices = @transform_7, window_bounds = array<i64: 32, 32>}, {pipeline_mode = #tpu.pipeline_mode<synchronous>, transform_indices = @transform_8, window_bounds = array<i64: 1, 32>}, {pipeline_mode = #tpu.pipeline_mode<synchronous>, transform_indices = @transform_9, window_bounds = array<i64: 32, 16>}, {pipeline_mode = #tpu.pipeline_mode<synchronous>, transform_indices = @transform_10, window_bounds = array<i64: 1, 16>}, {pipeline_mode = #tpu.pipeline_mode<synchronous>, transform_indices = @transform_11, window_bounds = array<i64: 4, 32, 64>}, {pipeline_mode = #tpu.pipeline_mode<synchronous>, transform_indices = @transform_12, window_bounds = array<i64: 4, 16, 64>}, {pipeline_mode = #tpu.pipeline_mode<synchronous>, transform_indices = @transform_13, window_bounds = array<i64: 4, 64, 64>}, {pipeline_mode = #tpu.pipeline_mode<synchronous>, transform_indices = @transform_14, window_bounds = array<i64: 4, 1, 64>}, {pipeline_mode = #tpu.pipeline_mode<synchronous>, transform_indices = @transform_15, window_bounds = array<i64: 64, 32>}, {pipeline_mode = #tpu.pipeline_mode<synchronous>, transform_indices = @transform_16, window_bounds = array<i64: 1, 32>}, {pipeline_mode = #tpu.pipeline_mode<synchronous>, transform_indices = @transform_17, window_bounds = array<i64: 32, 16>}, {pipeline_mode = #tpu.pipeline_mode<synchronous>, transform_indices = @transform_18, window_bounds = array<i64: 1, 16>}, {pipeline_mode = #tpu.pipeline_mode<synchronous>, transform_indices = @transform_19, window_bounds = array<i64: 8, 2, 16>}]} {
    %c0 = arith.constant 0 : index
    %c0_0 = arith.constant 0 : index
    %0 = vector.load %arg1[%c0, %c0_0] : memref<2x128xf32, #tpu.memory_space<vmem>>, vector<2x128xf32>
    %c0_1 = arith.constant 0 : index
    %c0_2 = arith.constant 0 : index
    %1 = vector.load %arg2[%c0_1, %c0_2] : memref<128x64xf32, #tpu.memory_space<vmem>>, vector<128x64xf32>
    %cst = arith.constant dense<0.000000e+00> : vector<2x64xf32>
    %2 = tpu.matmul %0, %1, %cst {dimension_numbers = #tpu.dot_dimension_numbers<[1], [0], [0], [1], [0, 0, 1, 1], [], []>} : vector<2x128xf32>, vector<128x64xf32>, vector<2x64xf32> -> vector<2x64xf32>
    %c0_3 = arith.constant 0 : index
    %c0_4 = arith.constant 0 : index
    %3 = vector.load %arg3[%c0_3, %c0_4] : memref<1x64xf32, #tpu.memory_space<vmem>>, vector<1x64xf32>
    %4 = vector.broadcast %3 : vector<1x64xf32> to vector<2x64xf32>
    %5 = arith.addf %2, %4 : vector<2x64xf32>
    %cst_5 = arith.constant 0.000000e+00 : f32
    %6 = vector.broadcast %cst_5 : f32 to vector<2x64xf32>
    %7 = arith.maximumf %5, %6 : vector<2x64xf32>
    %c0_6 = arith.constant 0 : index
    %c0_7 = arith.constant 0 : index
    %8 = vector.load %arg4[%c0_6, %c0_7] : memref<64x32xf32, #tpu.memory_space<vmem>>, vector<64x32xf32>
    %cst_8 = arith.constant dense<0.000000e+00> : vector<2x32xf32>
    %9 = tpu.matmul %7, %8, %cst_8 {dimension_numbers = #tpu.dot_dimension_numbers<[1], [0], [0], [1], [0, 0, 1, 1], [], []>} : vector<2x64xf32>, vector<64x32xf32>, vector<2x32xf32> -> vector<2x32xf32>
    %c0_9 = arith.constant 0 : index
    %c0_10 = arith.constant 0 : index
    %10 = vector.load %arg5[%c0_9, %c0_10] : memref<1x32xf32, #tpu.memory_space<vmem>>, vector<1x32xf32>
    %11 = vector.broadcast %10 : vector<1x32xf32> to vector<2x32xf32>
    %12 = arith.addf %9, %11 : vector<2x32xf32>
    %c0_11 = arith.constant 0 : index
    %c0_12 = arith.constant 0 : index
    %13 = vector.load %arg6[%c0_11, %c0_12] : memref<32x32xf32, #tpu.memory_space<vmem>>, vector<32x32xf32>
    %cst_13 = arith.constant dense<0.000000e+00> : vector<2x32xf32>
    %14 = tpu.matmul %12, %13, %cst_13 {dimension_numbers = #tpu.dot_dimension_numbers<[1], [0], [0], [1], [0, 0, 1, 1], [], []>} : vector<2x32xf32>, vector<32x32xf32>, vector<2x32xf32> -> vector<2x32xf32>
    %c0_14 = arith.constant 0 : index
    %c0_15 = arith.constant 0 : index
    %15 = vector.load %arg7[%c0_14, %c0_15] : memref<1x32xf32, #tpu.memory_space<vmem>>, vector<1x32xf32>
    %16 = vector.broadcast %15 : vector<1x32xf32> to vector<2x32xf32>
    %17 = arith.addf %14, %16 : vector<2x32xf32>
    %cst_16 = arith.constant 0.000000e+00 : f32
    %18 = vector.broadcast %cst_16 : f32 to vector<2x32xf32>
    %19 = arith.maximumf %17, %18 : vector<2x32xf32>
    %c0_17 = arith.constant 0 : index
    %c0_18 = arith.constant 0 : index
    %20 = vector.load %arg8[%c0_17, %c0_18] : memref<32x32xf32, #tpu.memory_space<vmem>>, vector<32x32xf32>
    %cst_19 = arith.constant dense<0.000000e+00> : vector<2x32xf32>
    %21 = tpu.matmul %19, %20, %cst_19 {dimension_numbers = #tpu.dot_dimension_numbers<[1], [0], [0], [1], [0, 0, 1, 1], [], []>} : vector<2x32xf32>, vector<32x32xf32>, vector<2x32xf32> -> vector<2x32xf32>
    %c0_20 = arith.constant 0 : index
    %c0_21 = arith.constant 0 : index
    %22 = vector.load %arg9[%c0_20, %c0_21] : memref<1x32xf32, #tpu.memory_space<vmem>>, vector<1x32xf32>
    %23 = vector.broadcast %22 : vector<1x32xf32> to vector<2x32xf32>
    %24 = arith.addf %21, %23 : vector<2x32xf32>
    %cst_22 = arith.constant 0.000000e+00 : f32
    %25 = vector.broadcast %cst_22 : f32 to vector<2x32xf32>
    %26 = arith.maximumf %24, %25 : vector<2x32xf32>
    %c0_23 = arith.constant 0 : index
    %c0_24 = arith.constant 0 : index
    %27 = vector.load %arg10[%c0_23, %c0_24] : memref<32x16xf32, #tpu.memory_space<vmem>>, vector<32x16xf32>
    %cst_25 = arith.constant dense<0.000000e+00> : vector<2x16xf32>
    %28 = tpu.matmul %26, %27, %cst_25 {dimension_numbers = #tpu.dot_dimension_numbers<[1], [0], [0], [1], [0, 0, 1, 1], [], []>} : vector<2x32xf32>, vector<32x16xf32>, vector<2x16xf32> -> vector<2x16xf32>
    %c0_26 = arith.constant 0 : index
    %c0_27 = arith.constant 0 : index
    %29 = vector.load %arg11[%c0_26, %c0_27] : memref<1x16xf32, #tpu.memory_space<vmem>>, vector<1x16xf32>
    %30 = vector.broadcast %29 : vector<1x16xf32> to vector<2x16xf32>
    %31 = arith.addf %28, %30 : vector<2x16xf32>
    %c0_28 = arith.constant 0 : index
    %c0_29 = arith.constant 0 : index
    %c0_30 = arith.constant 0 : index
    %32 = vector.load %arg12[%c0_28, %c0_29, %c0_30] : memref<4x32x64xf32, #tpu.memory_space<vmem>>, vector<1x32x64xf32>
    %33 = vector.shape_cast %32 : vector<1x32x64xf32> to vector<32x64xf32>
    %cst_31 = arith.constant dense<0.000000e+00> : vector<2x64xf32>
    %34 = tpu.matmul %19, %33, %cst_31 {dimension_numbers = #tpu.dot_dimension_numbers<[1], [0], [0], [1], [0, 0, 1, 1], [], []>} : vector<2x32xf32>, vector<32x64xf32>, vector<2x64xf32> -> vector<2x64xf32>
    %c0_32 = arith.constant 0 : index
    %c0_33 = arith.constant 0 : index
    %c0_34 = arith.constant 0 : index
    %35 = vector.load %arg15[%c0_32, %c0_33, %c0_34] : memref<4x1x64xf32, #tpu.memory_space<vmem>>, vector<1x1x64xf32>
    %36 = vector.shape_cast %35 : vector<1x1x64xf32> to vector<1x64xf32>
    %37 = vector.broadcast %36 : vector<1x64xf32> to vector<2x64xf32>
    %38 = arith.addf %34, %37 : vector<2x64xf32>
    %c1 = arith.constant 1 : index
    %c0_35 = arith.constant 0 : index
    %c0_36 = arith.constant 0 : index
    %39 = vector.load %arg12[%c1, %c0_35, %c0_36] : memref<4x32x64xf32, #tpu.memory_space<vmem>>, vector<1x32x64xf32>
    %40 = vector.shape_cast %39 : vector<1x32x64xf32> to vector<32x64xf32>
    %cst_37 = arith.constant dense<0.000000e+00> : vector<2x64xf32>
    %41 = tpu.matmul %19, %40, %cst_37 {dimension_numbers = #tpu.dot_dimension_numbers<[1], [0], [0], [1], [0, 0, 1, 1], [], []>} : vector<2x32xf32>, vector<32x64xf32>, vector<2x64xf32> -> vector<2x64xf32>
    %c1_38 = arith.constant 1 : index
    %c0_39 = arith.constant 0 : index
    %c0_40 = arith.constant 0 : index
    %42 = vector.load %arg15[%c1_38, %c0_39, %c0_40] : memref<4x1x64xf32, #tpu.memory_space<vmem>>, vector<1x1x64xf32>
    %43 = vector.shape_cast %42 : vector<1x1x64xf32> to vector<1x64xf32>
    %44 = vector.broadcast %43 : vector<1x64xf32> to vector<2x64xf32>
    %45 = arith.addf %41, %44 : vector<2x64xf32>
    %c2 = arith.constant 2 : index
    %c0_41 = arith.constant 0 : index
    %c0_42 = arith.constant 0 : index
    %46 = vector.load %arg12[%c2, %c0_41, %c0_42] : memref<4x32x64xf32, #tpu.memory_space<vmem>>, vector<1x32x64xf32>
    %47 = vector.shape_cast %46 : vector<1x32x64xf32> to vector<32x64xf32>
    %cst_43 = arith.constant dense<0.000000e+00> : vector<2x64xf32>
    %48 = tpu.matmul %19, %47, %cst_43 {dimension_numbers = #tpu.dot_dimension_numbers<[1], [0], [0], [1], [0, 0, 1, 1], [], []>} : vector<2x32xf32>, vector<32x64xf32>, vector<2x64xf32> -> vector<2x64xf32>
    %c2_44 = arith.constant 2 : index
    %c0_45 = arith.constant 0 : index
    %c0_46 = arith.constant 0 : index
    %49 = vector.load %arg15[%c2_44, %c0_45, %c0_46] : memref<4x1x64xf32, #tpu.memory_space<vmem>>, vector<1x1x64xf32>
    %50 = vector.shape_cast %49 : vector<1x1x64xf32> to vector<1x64xf32>
    %51 = vector.broadcast %50 : vector<1x64xf32> to vector<2x64xf32>
    %52 = arith.addf %48, %51 : vector<2x64xf32>
    %c3 = arith.constant 3 : index
    %c0_47 = arith.constant 0 : index
    %c0_48 = arith.constant 0 : index
    %53 = vector.load %arg12[%c3, %c0_47, %c0_48] : memref<4x32x64xf32, #tpu.memory_space<vmem>>, vector<1x32x64xf32>
    %54 = vector.shape_cast %53 : vector<1x32x64xf32> to vector<32x64xf32>
    %cst_49 = arith.constant dense<0.000000e+00> : vector<2x64xf32>
    %55 = tpu.matmul %19, %54, %cst_49 {dimension_numbers = #tpu.dot_dimension_numbers<[1], [0], [0], [1], [0, 0, 1, 1], [], []>} : vector<2x32xf32>, vector<32x64xf32>, vector<2x64xf32> -> vector<2x64xf32>
    %c3_50 = arith.constant 3 : index
    %c0_51 = arith.constant 0 : index
    %c0_52 = arith.constant 0 : index
    %56 = vector.load %arg15[%c3_50, %c0_51, %c0_52] : memref<4x1x64xf32, #tpu.memory_space<vmem>>, vector<1x1x64xf32>
    %57 = vector.shape_cast %56 : vector<1x1x64xf32> to vector<1x64xf32>
    %58 = vector.broadcast %57 : vector<1x64xf32> to vector<2x64xf32>
    %59 = arith.addf %55, %58 : vector<2x64xf32>
    %c0_53 = arith.constant 0 : index
    %c0_54 = arith.constant 0 : index
    %c0_55 = arith.constant 0 : index
    %60 = vector.load %arg13[%c0_53, %c0_54, %c0_55] : memref<4x16x64xf32, #tpu.memory_space<vmem>>, vector<1x16x64xf32>
    %61 = vector.shape_cast %60 : vector<1x16x64xf32> to vector<16x64xf32>
    %c1_56 = arith.constant 1 : index
    %c0_57 = arith.constant 0 : index
    %c0_58 = arith.constant 0 : index
    %62 = vector.load %arg13[%c1_56, %c0_57, %c0_58] : memref<4x16x64xf32, #tpu.memory_space<vmem>>, vector<1x16x64xf32>
    %63 = vector.shape_cast %62 : vector<1x16x64xf32> to vector<16x64xf32>
    %c2_59 = arith.constant 2 : index
    %c0_60 = arith.constant 0 : index
    %c0_61 = arith.constant 0 : index
    %64 = vector.load %arg13[%c2_59, %c0_60, %c0_61] : memref<4x16x64xf32, #tpu.memory_space<vmem>>, vector<1x16x64xf32>
    %65 = vector.shape_cast %64 : vector<1x16x64xf32> to vector<16x64xf32>
    %c3_62 = arith.constant 3 : index
    %c0_63 = arith.constant 0 : index
    %c0_64 = arith.constant 0 : index
    %66 = vector.load %arg13[%c3_62, %c0_63, %c0_64] : memref<4x16x64xf32, #tpu.memory_space<vmem>>, vector<1x16x64xf32>
    %67 = vector.shape_cast %66 : vector<1x16x64xf32> to vector<16x64xf32>
    %c0_65 = arith.constant 0 : index
    %c0_66 = arith.constant 0 : index
    %c0_67 = arith.constant 0 : index
    %68 = vector.load %arg14[%c0_65, %c0_66, %c0_67] : memref<4x64x64xf32, #tpu.memory_space<vmem>>, vector<1x64x64xf32>
    %69 = vector.shape_cast %68 : vector<1x64x64xf32> to vector<64x64xf32>
    %c1_68 = arith.constant 1 : index
    %c0_69 = arith.constant 0 : index
    %c0_70 = arith.constant 0 : index
    %70 = vector.load %arg14[%c1_68, %c0_69, %c0_70] : memref<4x64x64xf32, #tpu.memory_space<vmem>>, vector<1x64x64xf32>
    %71 = vector.shape_cast %70 : vector<1x64x64xf32> to vector<64x64xf32>
    %c2_71 = arith.constant 2 : index
    %c0_72 = arith.constant 0 : index
    %c0_73 = arith.constant 0 : index
    %72 = vector.load %arg14[%c2_71, %c0_72, %c0_73] : memref<4x64x64xf32, #tpu.memory_space<vmem>>, vector<1x64x64xf32>
    %73 = vector.shape_cast %72 : vector<1x64x64xf32> to vector<64x64xf32>
    %c3_74 = arith.constant 3 : index
    %c0_75 = arith.constant 0 : index
    %c0_76 = arith.constant 0 : index
    %74 = vector.load %arg14[%c3_74, %c0_75, %c0_76] : memref<4x64x64xf32, #tpu.memory_space<vmem>>, vector<1x64x64xf32>
    %75 = vector.shape_cast %74 : vector<1x64x64xf32> to vector<64x64xf32>
    %c0_77 = arith.constant 0 : index
    %c0_78 = arith.constant 0 : index
    %76 = vector.load %arg16[%c0_77, %c0_78] : memref<64x32xf32, #tpu.memory_space<vmem>>, vector<64x32xf32>
    %c0_79 = arith.constant 0 : index
    %c0_80 = arith.constant 0 : index
    %77 = vector.load %arg17[%c0_79, %c0_80] : memref<1x32xf32, #tpu.memory_space<vmem>>, vector<1x32xf32>
    %c0_81 = arith.constant 0 : index
    %c0_82 = arith.constant 0 : index
    %78 = vector.load %arg18[%c0_81, %c0_82] : memref<32x16xf32, #tpu.memory_space<vmem>>, vector<32x16xf32>
    %c0_83 = arith.constant 0 : index
    %c0_84 = arith.constant 0 : index
    %79 = vector.load %arg19[%c0_83, %c0_84] : memref<1x16xf32, #tpu.memory_space<vmem>>, vector<1x16xf32>
    %cst_85 = arith.constant 0.000000e+00 : f32
    %80 = vector.broadcast %cst_85 : f32 to vector<2x64xf32>
    %cst_86 = arith.constant 0.000000e+00 : f32
    %81 = vector.broadcast %cst_86 : f32 to vector<2x64xf32>
    %cst_87 = arith.constant dense<0.000000e+00> : vector<2x64xf32>
    %82 = tpu.matmul %31, %61, %cst_87 {dimension_numbers = #tpu.dot_dimension_numbers<[1], [0], [0], [1], [0, 0, 1, 1], [], []>} : vector<2x16xf32>, vector<16x64xf32>, vector<2x64xf32> -> vector<2x64xf32>
    %83 = arith.addf %38, %82 : vector<2x64xf32>
    %cst_88 = arith.constant dense<0.000000e+00> : vector<2x64xf32>
    %84 = tpu.matmul %80, %69, %cst_88 {dimension_numbers = #tpu.dot_dimension_numbers<[1], [0], [0], [1], [0, 0, 1, 1], [], []>} : vector<2x64xf32>, vector<64x64xf32>, vector<2x64xf32> -> vector<2x64xf32>
    %85 = arith.addf %83, %84 : vector<2x64xf32>
    %86 = arith.negf %85 : vector<2x64xf32>
    %87 = math.exp %86 : vector<2x64xf32>
    %cst_89 = arith.constant 1.000000e+00 : f32
    %88 = vector.broadcast %cst_89 : f32 to vector<2x64xf32>
    %89 = arith.addf %88, %87 : vector<2x64xf32>
    %90 = arith.divf %88, %89 : vector<2x64xf32>
    %cst_90 = arith.constant dense<0.000000e+00> : vector<2x64xf32>
    %91 = tpu.matmul %31, %63, %cst_90 {dimension_numbers = #tpu.dot_dimension_numbers<[1], [0], [0], [1], [0, 0, 1, 1], [], []>} : vector<2x16xf32>, vector<16x64xf32>, vector<2x64xf32> -> vector<2x64xf32>
    %92 = arith.addf %45, %91 : vector<2x64xf32>
    %cst_91 = arith.constant dense<0.000000e+00> : vector<2x64xf32>
    %93 = tpu.matmul %80, %71, %cst_91 {dimension_numbers = #tpu.dot_dimension_numbers<[1], [0], [0], [1], [0, 0, 1, 1], [], []>} : vector<2x64xf32>, vector<64x64xf32>, vector<2x64xf32> -> vector<2x64xf32>
    %94 = arith.addf %92, %93 : vector<2x64xf32>
    %95 = arith.negf %94 : vector<2x64xf32>
    %96 = math.exp %95 : vector<2x64xf32>
    %cst_92 = arith.constant 1.000000e+00 : f32
    %97 = vector.broadcast %cst_92 : f32 to vector<2x64xf32>
    %98 = arith.addf %97, %96 : vector<2x64xf32>
    %99 = arith.divf %97, %98 : vector<2x64xf32>
    %cst_93 = arith.constant dense<0.000000e+00> : vector<2x64xf32>
    %100 = tpu.matmul %31, %65, %cst_93 {dimension_numbers = #tpu.dot_dimension_numbers<[1], [0], [0], [1], [0, 0, 1, 1], [], []>} : vector<2x16xf32>, vector<16x64xf32>, vector<2x64xf32> -> vector<2x64xf32>
    %101 = arith.addf %52, %100 : vector<2x64xf32>
    %cst_94 = arith.constant dense<0.000000e+00> : vector<2x64xf32>
    %102 = tpu.matmul %80, %73, %cst_94 {dimension_numbers = #tpu.dot_dimension_numbers<[1], [0], [0], [1], [0, 0, 1, 1], [], []>} : vector<2x64xf32>, vector<64x64xf32>, vector<2x64xf32> -> vector<2x64xf32>
    %103 = arith.addf %101, %102 : vector<2x64xf32>
    %104 = math.tanh %103 : vector<2x64xf32>
    %cst_95 = arith.constant dense<0.000000e+00> : vector<2x64xf32>
    %105 = tpu.matmul %31, %67, %cst_95 {dimension_numbers = #tpu.dot_dimension_numbers<[1], [0], [0], [1], [0, 0, 1, 1], [], []>} : vector<2x16xf32>, vector<16x64xf32>, vector<2x64xf32> -> vector<2x64xf32>
    %106 = arith.addf %59, %105 : vector<2x64xf32>
    %cst_96 = arith.constant dense<0.000000e+00> : vector<2x64xf32>
    %107 = tpu.matmul %80, %75, %cst_96 {dimension_numbers = #tpu.dot_dimension_numbers<[1], [0], [0], [1], [0, 0, 1, 1], [], []>} : vector<2x64xf32>, vector<64x64xf32>, vector<2x64xf32> -> vector<2x64xf32>
    %108 = arith.addf %106, %107 : vector<2x64xf32>
    %109 = arith.negf %108 : vector<2x64xf32>
    %110 = math.exp %109 : vector<2x64xf32>
    %cst_97 = arith.constant 1.000000e+00 : f32
    %111 = vector.broadcast %cst_97 : f32 to vector<2x64xf32>
    %112 = arith.addf %111, %110 : vector<2x64xf32>
    %113 = arith.divf %111, %112 : vector<2x64xf32>
    %114 = arith.mulf %99, %81 : vector<2x64xf32>
    %115 = arith.mulf %90, %104 : vector<2x64xf32>
    %116 = arith.addf %114, %115 : vector<2x64xf32>
    %117 = math.tanh %116 : vector<2x64xf32>
    %118 = arith.mulf %113, %117 : vector<2x64xf32>
    %cst_98 = arith.constant dense<0.000000e+00> : vector<2x32xf32>
    %119 = tpu.matmul %118, %76, %cst_98 {dimension_numbers = #tpu.dot_dimension_numbers<[1], [0], [0], [1], [0, 0, 1, 1], [], []>} : vector<2x64xf32>, vector<64x32xf32>, vector<2x32xf32> -> vector<2x32xf32>
    %120 = vector.broadcast %77 : vector<1x32xf32> to vector<2x32xf32>
    %121 = arith.addf %119, %120 : vector<2x32xf32>
    %cst_99 = arith.constant 0.000000e+00 : f32
    %122 = vector.broadcast %cst_99 : f32 to vector<2x32xf32>
    %123 = arith.maximumf %121, %122 : vector<2x32xf32>
    %cst_100 = arith.constant dense<0.000000e+00> : vector<2x16xf32>
    %124 = tpu.matmul %123, %78, %cst_100 {dimension_numbers = #tpu.dot_dimension_numbers<[1], [0], [0], [1], [0, 0, 1, 1], [], []>} : vector<2x32xf32>, vector<32x16xf32>, vector<2x16xf32> -> vector<2x16xf32>
    %125 = vector.broadcast %79 : vector<1x16xf32> to vector<2x16xf32>
    %126 = arith.addf %124, %125 : vector<2x16xf32>
    %c0_101 = arith.constant 0 : index
    %c0_102 = arith.constant 0 : index
    %c0_103 = arith.constant 0 : index
    %127 = vector.load %arg20[%c0_101, %c0_102, %c0_103] : memref<8x2x16xf32, #tpu.memory_space<vmem>>, vector<1x2x16xf32>
    %128 = vector.shape_cast %127 : vector<1x2x16xf32> to vector<2x16xf32>
    %129 = vector.shape_cast %126 : vector<2x16xf32> to vector<1x2x16xf32>
    tpu.vector_store %arg20[%c0_101, %c0_102, %c0_103], %129 {strides = array<i32>} : memref<8x2x16xf32, #tpu.memory_space<vmem>>, vector<1x2x16xf32>,
    %cst_104 = arith.constant dense<0.000000e+00> : vector<2x64xf32>
    %130 = tpu.matmul %126, %61, %cst_104 {dimension_numbers = #tpu.dot_dimension_numbers<[1], [0], [0], [1], [0, 0, 1, 1], [], []>} : vector<2x16xf32>, vector<16x64xf32>, vector<2x64xf32> -> vector<2x64xf32>
    %131 = arith.addf %38, %130 : vector<2x64xf32>
    %cst_105 = arith.constant dense<0.000000e+00> : vector<2x64xf32>
    %132 = tpu.matmul %118, %69, %cst_105 {dimension_numbers = #tpu.dot_dimension_numbers<[1], [0], [0], [1], [0, 0, 1, 1], [], []>} : vector<2x64xf32>, vector<64x64xf32>, vector<2x64xf32> -> vector<2x64xf32>
    %133 = arith.addf %131, %132 : vector<2x64xf32>
    %134 = arith.negf %133 : vector<2x64xf32>
    %135 = math.exp %134 : vector<2x64xf32>
    %cst_106 = arith.constant 1.000000e+00 : f32
    %136 = vector.broadcast %cst_106 : f32 to vector<2x64xf32>
    %137 = arith.addf %136, %135 : vector<2x64xf32>
    %138 = arith.divf %136, %137 : vector<2x64xf32>
    %cst_107 = arith.constant dense<0.000000e+00> : vector<2x64xf32>
    %139 = tpu.matmul %126, %63, %cst_107 {dimension_numbers = #tpu.dot_dimension_numbers<[1], [0], [0], [1], [0, 0, 1, 1], [], []>} : vector<2x16xf32>, vector<16x64xf32>, vector<2x64xf32> -> vector<2x64xf32>
    %140 = arith.addf %45, %139 : vector<2x64xf32>
    %cst_108 = arith.constant dense<0.000000e+00> : vector<2x64xf32>
    %141 = tpu.matmul %118, %71, %cst_108 {dimension_numbers = #tpu.dot_dimension_numbers<[1], [0], [0], [1], [0, 0, 1, 1], [], []>} : vector<2x64xf32>, vector<64x64xf32>, vector<2x64xf32> -> vector<2x64xf32>
    %142 = arith.addf %140, %141 : vector<2x64xf32>
    %143 = arith.negf %142 : vector<2x64xf32>
    %144 = math.exp %143 : vector<2x64xf32>
    %cst_109 = arith.constant 1.000000e+00 : f32
    %145 = vector.broadcast %cst_109 : f32 to vector<2x64xf32>
    %146 = arith.addf %145, %144 : vector<2x64xf32>
    %147 = arith.divf %145, %146 : vector<2x64xf32>
    %cst_110 = arith.constant dense<0.000000e+00> : vector<2x64xf32>
    %148 = tpu.matmul %126, %65, %cst_110 {dimension_numbers = #tpu.dot_dimension_numbers<[1], [0], [0], [1], [0, 0, 1, 1], [], []>} : vector<2x16xf32>, vector<16x64xf32>, vector<2x64xf32> -> vector<2x64xf32>
    %149 = arith.addf %52, %148 : vector<2x64xf32>
    %cst_111 = arith.constant dense<0.000000e+00> : vector<2x64xf32>
    %150 = tpu.matmul %118, %73, %cst_111 {dimension_numbers = #tpu.dot_dimension_numbers<[1], [0], [0], [1], [0, 0, 1, 1], [], []>} : vector<2x64xf32>, vector<64x64xf32>, vector<2x64xf32> -> vector<2x64xf32>
    %151 = arith.addf %149, %150 : vector<2x64xf32>
    %152 = math.tanh %151 : vector<2x64xf32>
    %cst_112 = arith.constant dense<0.000000e+00> : vector<2x64xf32>
    %153 = tpu.matmul %126, %67, %cst_112 {dimension_numbers = #tpu.dot_dimension_numbers<[1], [0], [0], [1], [0, 0, 1, 1], [], []>} : vector<2x16xf32>, vector<16x64xf32>, vector<2x64xf32> -> vector<2x64xf32>
    %154 = arith.addf %59, %153 : vector<2x64xf32>
    %cst_113 = arith.constant dense<0.000000e+00> : vector<2x64xf32>
    %155 = tpu.matmul %118, %75, %cst_113 {dimension_numbers = #tpu.dot_dimension_numbers<[1], [0], [0], [1], [0, 0, 1, 1], [], []>} : vector<2x64xf32>, vector<64x64xf32>, vector<2x64xf32> -> vector<2x64xf32>
    %156 = arith.addf %154, %155 : vector<2x64xf32>
    %157 = arith.negf %156 : vector<2x64xf32>
    %158 = math.exp %157 : vector<2x64xf32>
    %cst_114 = arith.constant 1.000000e+00 : f32
    %159 = vector.broadcast %cst_114 : f32 to vector<2x64xf32>
    %160 = arith.addf %159, %158 : vector<2x64xf32>
    %161 = arith.divf %159, %160 : vector<2x64xf32>
    %162 = arith.mulf %147, %116 : vector<2x64xf32>
    %163 = arith.mulf %138, %152 : vector<2x64xf32>
    %164 = arith.addf %162, %163 : vector<2x64xf32>
    %165 = math.tanh %164 : vector<2x64xf32>
    %166 = arith.mulf %161, %165 : vector<2x64xf32>
    %cst_115 = arith.constant dense<0.000000e+00> : vector<2x32xf32>
    %167 = tpu.matmul %166, %76, %cst_115 {dimension_numbers = #tpu.dot_dimension_numbers<[1], [0], [0], [1], [0, 0, 1, 1], [], []>} : vector<2x64xf32>, vector<64x32xf32>, vector<2x32xf32> -> vector<2x32xf32>
    %168 = vector.broadcast %77 : vector<1x32xf32> to vector<2x32xf32>
    %169 = arith.addf %167, %168 : vector<2x32xf32>
    %cst_116 = arith.constant 0.000000e+00 : f32
    %170 = vector.broadcast %cst_116 : f32 to vector<2x32xf32>
    %171 = arith.maximumf %169, %170 : vector<2x32xf32>
    %cst_117 = arith.constant dense<0.000000e+00> : vector<2x16xf32>
    %172 = tpu.matmul %171, %78, %cst_117 {dimension_numbers = #tpu.dot_dimension_numbers<[1], [0], [0], [1], [0, 0, 1, 1], [], []>} : vector<2x32xf32>, vector<32x16xf32>, vector<2x16xf32> -> vector<2x16xf32>
    %173 = vector.broadcast %79 : vector<1x16xf32> to vector<2x16xf32>
    %174 = arith.addf %172, %173 : vector<2x16xf32>
    %c1_118 = arith.constant 1 : index
    %c0_119 = arith.constant 0 : index
    %c0_120 = arith.constant 0 : index
    %175 = vector.load %arg20[%c1_118, %c0_119, %c0_120] : memref<8x2x16xf32, #tpu.memory_space<vmem>>, vector<1x2x16xf32>
    %176 = vector.shape_cast %175 : vector<1x2x16xf32> to vector<2x16xf32>
    %177 = vector.shape_cast %174 : vector<2x16xf32> to vector<1x2x16xf32>
    tpu.vector_store %arg20[%c1_118, %c0_119, %c0_120], %177 {strides = array<i32>} : memref<8x2x16xf32, #tpu.memory_space<vmem>>, vector<1x2x16xf32>,
    %cst_121 = arith.constant dense<0.000000e+00> : vector<2x64xf32>
    %178 = tpu.matmul %174, %61, %cst_121 {dimension_numbers = #tpu.dot_dimension_numbers<[1], [0], [0], [1], [0, 0, 1, 1], [], []>} : vector<2x16xf32>, vector<16x64xf32>, vector<2x64xf32> -> vector<2x64xf32>
    %179 = arith.addf %38, %178 : vector<2x64xf32>
    %cst_122 = arith.constant dense<0.000000e+00> : vector<2x64xf32>
    %180 = tpu.matmul %166, %69, %cst_122 {dimension_numbers = #tpu.dot_dimension_numbers<[1], [0], [0], [1], [0, 0, 1, 1], [], []>} : vector<2x64xf32>, vector<64x64xf32>, vector<2x64xf32> -> vector<2x64xf32>
    %181 = arith.addf %179, %180 : vector<2x64xf32>
    %182 = arith.negf %181 : vector<2x64xf32>
    %183 = math.exp %182 : vector<2x64xf32>
    %cst_123 = arith.constant 1.000000e+00 : f32
    %184 = vector.broadcast %cst_123 : f32 to vector<2x64xf32>
    %185 = arith.addf %184, %183 : vector<2x64xf32>
    %186 = arith.divf %184, %185 : vector<2x64xf32>
    %cst_124 = arith.constant dense<0.000000e+00> : vector<2x64xf32>
    %187 = tpu.matmul %174, %63, %cst_124 {dimension_numbers = #tpu.dot_dimension_numbers<[1], [0], [0], [1], [0, 0, 1, 1], [], []>} : vector<2x16xf32>, vector<16x64xf32>, vector<2x64xf32> -> vector<2x64xf32>
    %188 = arith.addf %45, %187 : vector<2x64xf32>
    %cst_125 = arith.constant dense<0.000000e+00> : vector<2x64xf32>
    %189 = tpu.matmul %166, %71, %cst_125 {dimension_numbers = #tpu.dot_dimension_numbers<[1], [0], [0], [1], [0, 0, 1, 1], [], []>} : vector<2x64xf32>, vector<64x64xf32>, vector<2x64xf32> -> vector<2x64xf32>
    %190 = arith.addf %188, %189 : vector<2x64xf32>
    %191 = arith.negf %190 : vector<2x64xf32>
    %192 = math.exp %191 : vector<2x64xf32>
    %cst_126 = arith.constant 1.000000e+00 : f32
    %193 = vector.broadcast %cst_126 : f32 to vector<2x64xf32>
    %194 = arith.addf %193, %192 : vector<2x64xf32>
    %195 = arith.divf %193, %194 : vector<2x64xf32>
    %cst_127 = arith.constant dense<0.000000e+00> : vector<2x64xf32>
    %196 = tpu.matmul %174, %65, %cst_127 {dimension_numbers = #tpu.dot_dimension_numbers<[1], [0], [0], [1], [0, 0, 1, 1], [], []>} : vector<2x16xf32>, vector<16x64xf32>, vector<2x64xf32> -> vector<2x64xf32>
    %197 = arith.addf %52, %196 : vector<2x64xf32>
    %cst_128 = arith.constant dense<0.000000e+00> : vector<2x64xf32>
    %198 = tpu.matmul %166, %73, %cst_128 {dimension_numbers = #tpu.dot_dimension_numbers<[1], [0], [0], [1], [0, 0, 1, 1], [], []>} : vector<2x64xf32>, vector<64x64xf32>, vector<2x64xf32> -> vector<2x64xf32>
    %199 = arith.addf %197, %198 : vector<2x64xf32>
    %200 = math.tanh %199 : vector<2x64xf32>
    %cst_129 = arith.constant dense<0.000000e+00> : vector<2x64xf32>
    %201 = tpu.matmul %174, %67, %cst_129 {dimension_numbers = #tpu.dot_dimension_numbers<[1], [0], [0], [1], [0, 0, 1, 1], [], []>} : vector<2x16xf32>, vector<16x64xf32>, vector<2x64xf32> -> vector<2x64xf32>
    %202 = arith.addf %59, %201 : vector<2x64xf32>
    %cst_130 = arith.constant dense<0.000000e+00> : vector<2x64xf32>
    %203 = tpu.matmul %166, %75, %cst_130 {dimension_numbers = #tpu.dot_dimension_numbers<[1], [0], [0], [1], [0, 0, 1, 1], [], []>} : vector<2x64xf32>, vector<64x64xf32>, vector<2x64xf32> -> vector<2x64xf32>
    %204 = arith.addf %202, %203 : vector<2x64xf32>
    %205 = arith.negf %204 : vector<2x64xf32>
    %206 = math.exp %205 : vector<2x64xf32>
    %cst_131 = arith.constant 1.000000e+00 : f32
    %207 = vector.broadcast %cst_131 : f32 to vector<2x64xf32>
    %208 = arith.addf %207, %206 : vector<2x64xf32>
    %209 = arith.divf %207, %208 : vector<2x64xf32>
    %210 = arith.mulf %195, %164 : vector<2x64xf32>
    %211 = arith.mulf %186, %200 : vector<2x64xf32>
    %212 = arith.addf %210, %211 : vector<2x64xf32>
    %213 = math.tanh %212 : vector<2x64xf32>
    %214 = arith.mulf %209, %213 : vector<2x64xf32>
    %cst_132 = arith.constant dense<0.000000e+00> : vector<2x32xf32>
    %215 = tpu.matmul %214, %76, %cst_132 {dimension_numbers = #tpu.dot_dimension_numbers<[1], [0], [0], [1], [0, 0, 1, 1], [], []>} : vector<2x64xf32>, vector<64x32xf32>, vector<2x32xf32> -> vector<2x32xf32>
    %216 = vector.broadcast %77 : vector<1x32xf32> to vector<2x32xf32>
    %217 = arith.addf %215, %216 : vector<2x32xf32>
    %cst_133 = arith.constant 0.000000e+00 : f32
    %218 = vector.broadcast %cst_133 : f32 to vector<2x32xf32>
    %219 = arith.maximumf %217, %218 : vector<2x32xf32>
    %cst_134 = arith.constant dense<0.000000e+00> : vector<2x16xf32>
    %220 = tpu.matmul %219, %78, %cst_134 {dimension_numbers = #tpu.dot_dimension_numbers<[1], [0], [0], [1], [0, 0, 1, 1], [], []>} : vector<2x32xf32>, vector<32x16xf32>, vector<2x16xf32> -> vector<2x16xf32>
    %221 = vector.broadcast %79 : vector<1x16xf32> to vector<2x16xf32>
    %222 = arith.addf %220, %221 : vector<2x16xf32>
    %c2_135 = arith.constant 2 : index
    %c0_136 = arith.constant 0 : index
    %c0_137 = arith.constant 0 : index
    %223 = vector.load %arg20[%c2_135, %c0_136, %c0_137] : memref<8x2x16xf32, #tpu.memory_space<vmem>>, vector<1x2x16xf32>
    %224 = vector.shape_cast %223 : vector<1x2x16xf32> to vector<2x16xf32>
    %225 = vector.shape_cast %222 : vector<2x16xf32> to vector<1x2x16xf32>
    tpu.vector_store %arg20[%c2_135, %c0_136, %c0_137], %225 {strides = array<i32>} : memref<8x2x16xf32, #tpu.memory_space<vmem>>, vector<1x2x16xf32>,
    %cst_138 = arith.constant dense<0.000000e+00> : vector<2x64xf32>
    %226 = tpu.matmul %222, %61, %cst_138 {dimension_numbers = #tpu.dot_dimension_numbers<[1], [0], [0], [1], [0, 0, 1, 1], [], []>} : vector<2x16xf32>, vector<16x64xf32>, vector<2x64xf32> -> vector<2x64xf32>
    %227 = arith.addf %38, %226 : vector<2x64xf32>
    %cst_139 = arith.constant dense<0.000000e+00> : vector<2x64xf32>
    %228 = tpu.matmul %214, %69, %cst_139 {dimension_numbers = #tpu.dot_dimension_numbers<[1], [0], [0], [1], [0, 0, 1, 1], [], []>} : vector<2x64xf32>, vector<64x64xf32>, vector<2x64xf32> -> vector<2x64xf32>
    %229 = arith.addf %227, %228 : vector<2x64xf32>
    %230 = arith.negf %229 : vector<2x64xf32>
    %231 = math.exp %230 : vector<2x64xf32>
    %cst_140 = arith.constant 1.000000e+00 : f32
    %232 = vector.broadcast %cst_140 : f32 to vector<2x64xf32>
    %233 = arith.addf %232, %231 : vector<2x64xf32>
    %234 = arith.divf %232, %233 : vector<2x64xf32>
    %cst_141 = arith.constant dense<0.000000e+00> : vector<2x64xf32>
    %235 = tpu.matmul %222, %63, %cst_141 {dimension_numbers = #tpu.dot_dimension_numbers<[1], [0], [0], [1], [0, 0, 1, 1], [], []>} : vector<2x16xf32>, vector<16x64xf32>, vector<2x64xf32> -> vector<2x64xf32>
    %236 = arith.addf %45, %235 : vector<2x64xf32>
    %cst_142 = arith.constant dense<0.000000e+00> : vector<2x64xf32>
    %237 = tpu.matmul %214, %71, %cst_142 {dimension_numbers = #tpu.dot_dimension_numbers<[1], [0], [0], [1], [0, 0, 1, 1], [], []>} : vector<2x64xf32>, vector<64x64xf32>, vector<2x64xf32> -> vector<2x64xf32>
    %238 = arith.addf %236, %237 : vector<2x64xf32>
    %239 = arith.negf %238 : vector<2x64xf32>
    %240 = math.exp %239 : vector<2x64xf32>
    %cst_143 = arith.constant 1.000000e+00 : f32
    %241 = vector.broadcast %cst_143 : f32 to vector<2x64xf32>
    %242 = arith.addf %241, %240 : vector<2x64xf32>
    %243 = arith.divf %241, %242 : vector<2x64xf32>
    %cst_144 = arith.constant dense<0.000000e+00> : vector<2x64xf32>
    %244 = tpu.matmul %222, %65, %cst_144 {dimension_numbers = #tpu.dot_dimension_numbers<[1], [0], [0], [1], [0, 0, 1, 1], [], []>} : vector<2x16xf32>, vector<16x64xf32>, vector<2x64xf32> -> vector<2x64xf32>
    %245 = arith.addf %52, %244 : vector<2x64xf32>
    %cst_145 = arith.constant dense<0.000000e+00> : vector<2x64xf32>
    %246 = tpu.matmul %214, %73, %cst_145 {dimension_numbers = #tpu.dot_dimension_numbers<[1], [0], [0], [1], [0, 0, 1, 1], [], []>} : vector<2x64xf32>, vector<64x64xf32>, vector<2x64xf32> -> vector<2x64xf32>
    %247 = arith.addf %245, %246 : vector<2x64xf32>
    %248 = math.tanh %247 : vector<2x64xf32>
    %cst_146 = arith.constant dense<0.000000e+00> : vector<2x64xf32>
    %249 = tpu.matmul %222, %67, %cst_146 {dimension_numbers = #tpu.dot_dimension_numbers<[1], [0], [0], [1], [0, 0, 1, 1], [], []>} : vector<2x16xf32>, vector<16x64xf32>, vector<2x64xf32> -> vector<2x64xf32>
    %250 = arith.addf %59, %249 : vector<2x64xf32>
    %cst_147 = arith.constant dense<0.000000e+00> : vector<2x64xf32>
    %251 = tpu.matmul %214, %75, %cst_147 {dimension_numbers = #tpu.dot_dimension_numbers<[1], [0], [0], [1], [0, 0, 1, 1], [], []>} : vector<2x64xf32>, vector<64x64xf32>, vector<2x64xf32> -> vector<2x64xf32>
    %252 = arith.addf %250, %251 : vector<2x64xf32>
    %253 = arith.negf %252 : vector<2x64xf32>
    %254 = math.exp %253 : vector<2x64xf32>
    %cst_148 = arith.constant 1.000000e+00 : f32
    %255 = vector.broadcast %cst_148 : f32 to vector<2x64xf32>
    %256 = arith.addf %255, %254 : vector<2x64xf32>
    %257 = arith.divf %255, %256 : vector<2x64xf32>
    %258 = arith.mulf %243, %212 : vector<2x64xf32>
    %259 = arith.mulf %234, %248 : vector<2x64xf32>
    %260 = arith.addf %258, %259 : vector<2x64xf32>
    %261 = math.tanh %260 : vector<2x64xf32>
    %262 = arith.mulf %257, %261 : vector<2x64xf32>
    %cst_149 = arith.constant dense<0.000000e+00> : vector<2x32xf32>
    %263 = tpu.matmul %262, %76, %cst_149 {dimension_numbers = #tpu.dot_dimension_numbers<[1], [0], [0], [1], [0, 0, 1, 1], [], []>} : vector<2x64xf32>, vector<64x32xf32>, vector<2x32xf32> -> vector<2x32xf32>
    %264 = vector.broadcast %77 : vector<1x32xf32> to vector<2x32xf32>
    %265 = arith.addf %263, %264 : vector<2x32xf32>
    %cst_150 = arith.constant 0.000000e+00 : f32
    %266 = vector.broadcast %cst_150 : f32 to vector<2x32xf32>
    %267 = arith.maximumf %265, %266 : vector<2x32xf32>
    %cst_151 = arith.constant dense<0.000000e+00> : vector<2x16xf32>
    %268 = tpu.matmul %267, %78, %cst_151 {dimension_numbers = #tpu.dot_dimension_numbers<[1], [0], [0], [1], [0, 0, 1, 1], [], []>} : vector<2x32xf32>, vector<32x16xf32>, vector<2x16xf32> -> vector<2x16xf32>
    %269 = vector.broadcast %79 : vector<1x16xf32> to vector<2x16xf32>
    %270 = arith.addf %268, %269 : vector<2x16xf32>
    %c3_152 = arith.constant 3 : index
    %c0_153 = arith.constant 0 : index
    %c0_154 = arith.constant 0 : index
    %271 = vector.load %arg20[%c3_152, %c0_153, %c0_154] : memref<8x2x16xf32, #tpu.memory_space<vmem>>, vector<1x2x16xf32>
    %272 = vector.shape_cast %271 : vector<1x2x16xf32> to vector<2x16xf32>
    %273 = vector.shape_cast %270 : vector<2x16xf32> to vector<1x2x16xf32>
    tpu.vector_store %arg20[%c3_152, %c0_153, %c0_154], %273 {strides = array<i32>} : memref<8x2x16xf32, #tpu.memory_space<vmem>>, vector<1x2x16xf32>,
    %cst_155 = arith.constant dense<0.000000e+00> : vector<2x64xf32>
    %274 = tpu.matmul %270, %61, %cst_155 {dimension_numbers = #tpu.dot_dimension_numbers<[1], [0], [0], [1], [0, 0, 1, 1], [], []>} : vector<2x16xf32>, vector<16x64xf32>, vector<2x64xf32> -> vector<2x64xf32>
    %275 = arith.addf %38, %274 : vector<2x64xf32>
    %cst_156 = arith.constant dense<0.000000e+00> : vector<2x64xf32>
    %276 = tpu.matmul %262, %69, %cst_156 {dimension_numbers = #tpu.dot_dimension_numbers<[1], [0], [0], [1], [0, 0, 1, 1], [], []>} : vector<2x64xf32>, vector<64x64xf32>, vector<2x64xf32> -> vector<2x64xf32>
    %277 = arith.addf %275, %276 : vector<2x64xf32>
    %278 = arith.negf %277 : vector<2x64xf32>
    %279 = math.exp %278 : vector<2x64xf32>
    %cst_157 = arith.constant 1.000000e+00 : f32
    %280 = vector.broadcast %cst_157 : f32 to vector<2x64xf32>
    %281 = arith.addf %280, %279 : vector<2x64xf32>
    %282 = arith.divf %280, %281 : vector<2x64xf32>
    %cst_158 = arith.constant dense<0.000000e+00> : vector<2x64xf32>
    %283 = tpu.matmul %270, %63, %cst_158 {dimension_numbers = #tpu.dot_dimension_numbers<[1], [0], [0], [1], [0, 0, 1, 1], [], []>} : vector<2x16xf32>, vector<16x64xf32>, vector<2x64xf32> -> vector<2x64xf32>
    %284 = arith.addf %45, %283 : vector<2x64xf32>
    %cst_159 = arith.constant dense<0.000000e+00> : vector<2x64xf32>
    %285 = tpu.matmul %262, %71, %cst_159 {dimension_numbers = #tpu.dot_dimension_numbers<[1], [0], [0], [1], [0, 0, 1, 1], [], []>} : vector<2x64xf32>, vector<64x64xf32>, vector<2x64xf32> -> vector<2x64xf32>
    %286 = arith.addf %284, %285 : vector<2x64xf32>
    %287 = arith.negf %286 : vector<2x64xf32>
    %288 = math.exp %287 : vector<2x64xf32>
    %cst_160 = arith.constant 1.000000e+00 : f32
    %289 = vector.broadcast %cst_160 : f32 to vector<2x64xf32>
    %290 = arith.addf %289, %288 : vector<2x64xf32>
    %291 = arith.divf %289, %290 : vector<2x64xf32>
    %cst_161 = arith.constant dense<0.000000e+00> : vector<2x64xf32>
    %292 = tpu.matmul %270, %65, %cst_161 {dimension_numbers = #tpu.dot_dimension_numbers<[1], [0], [0], [1], [0, 0, 1, 1], [], []>} : vector<2x16xf32>, vector<16x64xf32>, vector<2x64xf32> -> vector<2x64xf32>
    %293 = arith.addf %52, %292 : vector<2x64xf32>
    %cst_162 = arith.constant dense<0.000000e+00> : vector<2x64xf32>
    %294 = tpu.matmul %262, %73, %cst_162 {dimension_numbers = #tpu.dot_dimension_numbers<[1], [0], [0], [1], [0, 0, 1, 1], [], []>} : vector<2x64xf32>, vector<64x64xf32>, vector<2x64xf32> -> vector<2x64xf32>
    %295 = arith.addf %293, %294 : vector<2x64xf32>
    %296 = math.tanh %295 : vector<2x64xf32>
    %cst_163 = arith.constant dense<0.000000e+00> : vector<2x64xf32>
    %297 = tpu.matmul %270, %67, %cst_163 {dimension_numbers = #tpu.dot_dimension_numbers<[1], [0], [0], [1], [0, 0, 1, 1], [], []>} : vector<2x16xf32>, vector<16x64xf32>, vector<2x64xf32> -> vector<2x64xf32>
    %298 = arith.addf %59, %297 : vector<2x64xf32>
    %cst_164 = arith.constant dense<0.000000e+00> : vector<2x64xf32>
    %299 = tpu.matmul %262, %75, %cst_164 {dimension_numbers = #tpu.dot_dimension_numbers<[1], [0], [0], [1], [0, 0, 1, 1], [], []>} : vector<2x64xf32>, vector<64x64xf32>, vector<2x64xf32> -> vector<2x64xf32>
    %300 = arith.addf %298, %299 : vector<2x64xf32>
    %301 = arith.negf %300 : vector<2x64xf32>
    %302 = math.exp %301 : vector<2x64xf32>
    %cst_165 = arith.constant 1.000000e+00 : f32
    %303 = vector.broadcast %cst_165 : f32 to vector<2x64xf32>
    %304 = arith.addf %303, %302 : vector<2x64xf32>
    %305 = arith.divf %303, %304 : vector<2x64xf32>
    %306 = arith.mulf %291, %260 : vector<2x64xf32>
    %307 = arith.mulf %282, %296 : vector<2x64xf32>
    %308 = arith.addf %306, %307 : vector<2x64xf32>
    %309 = math.tanh %308 : vector<2x64xf32>
    %310 = arith.mulf %305, %309 : vector<2x64xf32>
    %cst_166 = arith.constant dense<0.000000e+00> : vector<2x32xf32>
    %311 = tpu.matmul %310, %76, %cst_166 {dimension_numbers = #tpu.dot_dimension_numbers<[1], [0], [0], [1], [0, 0, 1, 1], [], []>} : vector<2x64xf32>, vector<64x32xf32>, vector<2x32xf32> -> vector<2x32xf32>
    %312 = vector.broadcast %77 : vector<1x32xf32> to vector<2x32xf32>
    %313 = arith.addf %311, %312 : vector<2x32xf32>
    %cst_167 = arith.constant 0.000000e+00 : f32
    %314 = vector.broadcast %cst_167 : f32 to vector<2x32xf32>
    %315 = arith.maximumf %313, %314 : vector<2x32xf32>
    %cst_168 = arith.constant dense<0.000000e+00> : vector<2x16xf32>
    %316 = tpu.matmul %315, %78, %cst_168 {dimension_numbers = #tpu.dot_dimension_numbers<[1], [0], [0], [1], [0, 0, 1, 1], [], []>} : vector<2x32xf32>, vector<32x16xf32>, vector<2x16xf32> -> vector<2x16xf32>
    %317 = vector.broadcast %79 : vector<1x16xf32> to vector<2x16xf32>
    %318 = arith.addf %316, %317 : vector<2x16xf32>
    %c4 = arith.constant 4 : index
    %c0_169 = arith.constant 0 : index
    %c0_170 = arith.constant 0 : index
    %319 = vector.load %arg20[%c4, %c0_169, %c0_170] : memref<8x2x16xf32, #tpu.memory_space<vmem>>, vector<1x2x16xf32>
    %320 = vector.shape_cast %319 : vector<1x2x16xf32> to vector<2x16xf32>
    %321 = vector.shape_cast %318 : vector<2x16xf32> to vector<1x2x16xf32>
    tpu.vector_store %arg20[%c4, %c0_169, %c0_170], %321 {strides = array<i32>} : memref<8x2x16xf32, #tpu.memory_space<vmem>>, vector<1x2x16xf32>,
    %cst_171 = arith.constant dense<0.000000e+00> : vector<2x64xf32>
    %322 = tpu.matmul %318, %61, %cst_171 {dimension_numbers = #tpu.dot_dimension_numbers<[1], [0], [0], [1], [0, 0, 1, 1], [], []>} : vector<2x16xf32>, vector<16x64xf32>, vector<2x64xf32> -> vector<2x64xf32>
    %323 = arith.addf %38, %322 : vector<2x64xf32>
    %cst_172 = arith.constant dense<0.000000e+00> : vector<2x64xf32>
    %324 = tpu.matmul %310, %69, %cst_172 {dimension_numbers = #tpu.dot_dimension_numbers<[1], [0], [0], [1], [0, 0, 1, 1], [], []>} : vector<2x64xf32>, vector<64x64xf32>, vector<2x64xf32> -> vector<2x64xf32>
    %325 = arith.addf %323, %324 : vector<2x64xf32>
    %326 = arith.negf %325 : vector<2x64xf32>
    %327 = math.exp %326 : vector<2x64xf32>
    %cst_173 = arith.constant 1.000000e+00 : f32
    %328 = vector.broadcast %cst_173 : f32 to vector<2x64xf32>
    %329 = arith.addf %328, %327 : vector<2x64xf32>
    %330 = arith.divf %328, %329 : vector<2x64xf32>
    %cst_174 = arith.constant dense<0.000000e+00> : vector<2x64xf32>
    %331 = tpu.matmul %318, %63, %cst_174 {dimension_numbers = #tpu.dot_dimension_numbers<[1], [0], [0], [1], [0, 0, 1, 1], [], []>} : vector<2x16xf32>, vector<16x64xf32>, vector<2x64xf32> -> vector<2x64xf32>
    %332 = arith.addf %45, %331 : vector<2x64xf32>
    %cst_175 = arith.constant dense<0.000000e+00> : vector<2x64xf32>
    %333 = tpu.matmul %310, %71, %cst_175 {dimension_numbers = #tpu.dot_dimension_numbers<[1], [0], [0], [1], [0, 0, 1, 1], [], []>} : vector<2x64xf32>, vector<64x64xf32>, vector<2x64xf32> -> vector<2x64xf32>
    %334 = arith.addf %332, %333 : vector<2x64xf32>
    %335 = arith.negf %334 : vector<2x64xf32>
    %336 = math.exp %335 : vector<2x64xf32>
    %cst_176 = arith.constant 1.000000e+00 : f32
    %337 = vector.broadcast %cst_176 : f32 to vector<2x64xf32>
    %338 = arith.addf %337, %336 : vector<2x64xf32>
    %339 = arith.divf %337, %338 : vector<2x64xf32>
    %cst_177 = arith.constant dense<0.000000e+00> : vector<2x64xf32>
    %340 = tpu.matmul %318, %65, %cst_177 {dimension_numbers = #tpu.dot_dimension_numbers<[1], [0], [0], [1], [0, 0, 1, 1], [], []>} : vector<2x16xf32>, vector<16x64xf32>, vector<2x64xf32> -> vector<2x64xf32>
    %341 = arith.addf %52, %340 : vector<2x64xf32>
    %cst_178 = arith.constant dense<0.000000e+00> : vector<2x64xf32>
    %342 = tpu.matmul %310, %73, %cst_178 {dimension_numbers = #tpu.dot_dimension_numbers<[1], [0], [0], [1], [0, 0, 1, 1], [], []>} : vector<2x64xf32>, vector<64x64xf32>, vector<2x64xf32> -> vector<2x64xf32>
    %343 = arith.addf %341, %342 : vector<2x64xf32>
    %344 = math.tanh %343 : vector<2x64xf32>
    %cst_179 = arith.constant dense<0.000000e+00> : vector<2x64xf32>
    %345 = tpu.matmul %318, %67, %cst_179 {dimension_numbers = #tpu.dot_dimension_numbers<[1], [0], [0], [1], [0, 0, 1, 1], [], []>} : vector<2x16xf32>, vector<16x64xf32>, vector<2x64xf32> -> vector<2x64xf32>
    %346 = arith.addf %59, %345 : vector<2x64xf32>
    %cst_180 = arith.constant dense<0.000000e+00> : vector<2x64xf32>
    %347 = tpu.matmul %310, %75, %cst_180 {dimension_numbers = #tpu.dot_dimension_numbers<[1], [0], [0], [1], [0, 0, 1, 1], [], []>} : vector<2x64xf32>, vector<64x64xf32>, vector<2x64xf32> -> vector<2x64xf32>
    %348 = arith.addf %346, %347 : vector<2x64xf32>
    %349 = arith.negf %348 : vector<2x64xf32>
    %350 = math.exp %349 : vector<2x64xf32>
    %cst_181 = arith.constant 1.000000e+00 : f32
    %351 = vector.broadcast %cst_181 : f32 to vector<2x64xf32>
    %352 = arith.addf %351, %350 : vector<2x64xf32>
    %353 = arith.divf %351, %352 : vector<2x64xf32>
    %354 = arith.mulf %339, %308 : vector<2x64xf32>
    %355 = arith.mulf %330, %344 : vector<2x64xf32>
    %356 = arith.addf %354, %355 : vector<2x64xf32>
    %357 = math.tanh %356 : vector<2x64xf32>
    %358 = arith.mulf %353, %357 : vector<2x64xf32>
    %cst_182 = arith.constant dense<0.000000e+00> : vector<2x32xf32>
    %359 = tpu.matmul %358, %76, %cst_182 {dimension_numbers = #tpu.dot_dimension_numbers<[1], [0], [0], [1], [0, 0, 1, 1], [], []>} : vector<2x64xf32>, vector<64x32xf32>, vector<2x32xf32> -> vector<2x32xf32>
    %360 = vector.broadcast %77 : vector<1x32xf32> to vector<2x32xf32>
    %361 = arith.addf %359, %360 : vector<2x32xf32>
    %cst_183 = arith.constant 0.000000e+00 : f32
    %362 = vector.broadcast %cst_183 : f32 to vector<2x32xf32>
    %363 = arith.maximumf %361, %362 : vector<2x32xf32>
    %cst_184 = arith.constant dense<0.000000e+00> : vector<2x16xf32>
    %364 = tpu.matmul %363, %78, %cst_184 {dimension_numbers = #tpu.dot_dimension_numbers<[1], [0], [0], [1], [0, 0, 1, 1], [], []>} : vector<2x32xf32>, vector<32x16xf32>, vector<2x16xf32> -> vector<2x16xf32>
    %365 = vector.broadcast %79 : vector<1x16xf32> to vector<2x16xf32>
    %366 = arith.addf %364, %365 : vector<2x16xf32>
    %c5 = arith.constant 5 : index
    %c0_185 = arith.constant 0 : index
    %c0_186 = arith.constant 0 : index
    %367 = vector.load %arg20[%c5, %c0_185, %c0_186] : memref<8x2x16xf32, #tpu.memory_space<vmem>>, vector<1x2x16xf32>
    %368 = vector.shape_cast %367 : vector<1x2x16xf32> to vector<2x16xf32>
    %369 = vector.shape_cast %366 : vector<2x16xf32> to vector<1x2x16xf32>
    tpu.vector_store %arg20[%c5, %c0_185, %c0_186], %369 {strides = array<i32>} : memref<8x2x16xf32, #tpu.memory_space<vmem>>, vector<1x2x16xf32>,
    %cst_187 = arith.constant dense<0.000000e+00> : vector<2x64xf32>
    %370 = tpu.matmul %366, %61, %cst_187 {dimension_numbers = #tpu.dot_dimension_numbers<[1], [0], [0], [1], [0, 0, 1, 1], [], []>} : vector<2x16xf32>, vector<16x64xf32>, vector<2x64xf32> -> vector<2x64xf32>
    %371 = arith.addf %38, %370 : vector<2x64xf32>
    %cst_188 = arith.constant dense<0.000000e+00> : vector<2x64xf32>
    %372 = tpu.matmul %358, %69, %cst_188 {dimension_numbers = #tpu.dot_dimension_numbers<[1], [0], [0], [1], [0, 0, 1, 1], [], []>} : vector<2x64xf32>, vector<64x64xf32>, vector<2x64xf32> -> vector<2x64xf32>
    %373 = arith.addf %371, %372 : vector<2x64xf32>
    %374 = arith.negf %373 : vector<2x64xf32>
    %375 = math.exp %374 : vector<2x64xf32>
    %cst_189 = arith.constant 1.000000e+00 : f32
    %376 = vector.broadcast %cst_189 : f32 to vector<2x64xf32>
    %377 = arith.addf %376, %375 : vector<2x64xf32>
    %378 = arith.divf %376, %377 : vector<2x64xf32>
    %cst_190 = arith.constant dense<0.000000e+00> : vector<2x64xf32>
    %379 = tpu.matmul %366, %63, %cst_190 {dimension_numbers = #tpu.dot_dimension_numbers<[1], [0], [0], [1], [0, 0, 1, 1], [], []>} : vector<2x16xf32>, vector<16x64xf32>, vector<2x64xf32> -> vector<2x64xf32>
    %380 = arith.addf %45, %379 : vector<2x64xf32>
    %cst_191 = arith.constant dense<0.000000e+00> : vector<2x64xf32>
    %381 = tpu.matmul %358, %71, %cst_191 {dimension_numbers = #tpu.dot_dimension_numbers<[1], [0], [0], [1], [0, 0, 1, 1], [], []>} : vector<2x64xf32>, vector<64x64xf32>, vector<2x64xf32> -> vector<2x64xf32>
    %382 = arith.addf %380, %381 : vector<2x64xf32>
    %383 = arith.negf %382 : vector<2x64xf32>
    %384 = math.exp %383 : vector<2x64xf32>
    %cst_192 = arith.constant 1.000000e+00 : f32
    %385 = vector.broadcast %cst_192 : f32 to vector<2x64xf32>
    %386 = arith.addf %385, %384 : vector<2x64xf32>
    %387 = arith.divf %385, %386 : vector<2x64xf32>
    %cst_193 = arith.constant dense<0.000000e+00> : vector<2x64xf32>
    %388 = tpu.matmul %366, %65, %cst_193 {dimension_numbers = #tpu.dot_dimension_numbers<[1], [0], [0], [1], [0, 0, 1, 1], [], []>} : vector<2x16xf32>, vector<16x64xf32>, vector<2x64xf32> -> vector<2x64xf32>
    %389 = arith.addf %52, %388 : vector<2x64xf32>
    %cst_194 = arith.constant dense<0.000000e+00> : vector<2x64xf32>
    %390 = tpu.matmul %358, %73, %cst_194 {dimension_numbers = #tpu.dot_dimension_numbers<[1], [0], [0], [1], [0, 0, 1, 1], [], []>} : vector<2x64xf32>, vector<64x64xf32>, vector<2x64xf32> -> vector<2x64xf32>
    %391 = arith.addf %389, %390 : vector<2x64xf32>
    %392 = math.tanh %391 : vector<2x64xf32>
    %cst_195 = arith.constant dense<0.000000e+00> : vector<2x64xf32>
    %393 = tpu.matmul %366, %67, %cst_195 {dimension_numbers = #tpu.dot_dimension_numbers<[1], [0], [0], [1], [0, 0, 1, 1], [], []>} : vector<2x16xf32>, vector<16x64xf32>, vector<2x64xf32> -> vector<2x64xf32>
    %394 = arith.addf %59, %393 : vector<2x64xf32>
    %cst_196 = arith.constant dense<0.000000e+00> : vector<2x64xf32>
    %395 = tpu.matmul %358, %75, %cst_196 {dimension_numbers = #tpu.dot_dimension_numbers<[1], [0], [0], [1], [0, 0, 1, 1], [], []>} : vector<2x64xf32>, vector<64x64xf32>, vector<2x64xf32> -> vector<2x64xf32>
    %396 = arith.addf %394, %395 : vector<2x64xf32>
    %397 = arith.negf %396 : vector<2x64xf32>
    %398 = math.exp %397 : vector<2x64xf32>
    %cst_197 = arith.constant 1.000000e+00 : f32
    %399 = vector.broadcast %cst_197 : f32 to vector<2x64xf32>
    %400 = arith.addf %399, %398 : vector<2x64xf32>
    %401 = arith.divf %399, %400 : vector<2x64xf32>
    %402 = arith.mulf %387, %356 : vector<2x64xf32>
    %403 = arith.mulf %378, %392 : vector<2x64xf32>
    %404 = arith.addf %402, %403 : vector<2x64xf32>
    %405 = math.tanh %404 : vector<2x64xf32>
    %406 = arith.mulf %401, %405 : vector<2x64xf32>
    %cst_198 = arith.constant dense<0.000000e+00> : vector<2x32xf32>
    %407 = tpu.matmul %406, %76, %cst_198 {dimension_numbers = #tpu.dot_dimension_numbers<[1], [0], [0], [1], [0, 0, 1, 1], [], []>} : vector<2x64xf32>, vector<64x32xf32>, vector<2x32xf32> -> vector<2x32xf32>
    %408 = vector.broadcast %77 : vector<1x32xf32> to vector<2x32xf32>
    %409 = arith.addf %407, %408 : vector<2x32xf32>
    %cst_199 = arith.constant 0.000000e+00 : f32
    %410 = vector.broadcast %cst_199 : f32 to vector<2x32xf32>
    %411 = arith.maximumf %409, %410 : vector<2x32xf32>
    %cst_200 = arith.constant dense<0.000000e+00> : vector<2x16xf32>
    %412 = tpu.matmul %411, %78, %cst_200 {dimension_numbers = #tpu.dot_dimension_numbers<[1], [0], [0], [1], [0, 0, 1, 1], [], []>} : vector<2x32xf32>, vector<32x16xf32>, vector<2x16xf32> -> vector<2x16xf32>
    %413 = vector.broadcast %79 : vector<1x16xf32> to vector<2x16xf32>
    %414 = arith.addf %412, %413 : vector<2x16xf32>
    %c6 = arith.constant 6 : index
    %c0_201 = arith.constant 0 : index
    %c0_202 = arith.constant 0 : index
    %415 = vector.load %arg20[%c6, %c0_201, %c0_202] : memref<8x2x16xf32, #tpu.memory_space<vmem>>, vector<1x2x16xf32>
    %416 = vector.shape_cast %415 : vector<1x2x16xf32> to vector<2x16xf32>
    %417 = vector.shape_cast %414 : vector<2x16xf32> to vector<1x2x16xf32>
    tpu.vector_store %arg20[%c6, %c0_201, %c0_202], %417 {strides = array<i32>} : memref<8x2x16xf32, #tpu.memory_space<vmem>>, vector<1x2x16xf32>,
    %cst_203 = arith.constant dense<0.000000e+00> : vector<2x64xf32>
    %418 = tpu.matmul %414, %61, %cst_203 {dimension_numbers = #tpu.dot_dimension_numbers<[1], [0], [0], [1], [0, 0, 1, 1], [], []>} : vector<2x16xf32>, vector<16x64xf32>, vector<2x64xf32> -> vector<2x64xf32>
    %419 = arith.addf %38, %418 : vector<2x64xf32>
    %cst_204 = arith.constant dense<0.000000e+00> : vector<2x64xf32>
    %420 = tpu.matmul %406, %69, %cst_204 {dimension_numbers = #tpu.dot_dimension_numbers<[1], [0], [0], [1], [0, 0, 1, 1], [], []>} : vector<2x64xf32>, vector<64x64xf32>, vector<2x64xf32> -> vector<2x64xf32>
    %421 = arith.addf %419, %420 : vector<2x64xf32>
    %422 = arith.negf %421 : vector<2x64xf32>
    %423 = math.exp %422 : vector<2x64xf32>
    %cst_205 = arith.constant 1.000000e+00 : f32
    %424 = vector.broadcast %cst_205 : f32 to vector<2x64xf32>
    %425 = arith.addf %424, %423 : vector<2x64xf32>
    %426 = arith.divf %424, %425 : vector<2x64xf32>
    %cst_206 = arith.constant dense<0.000000e+00> : vector<2x64xf32>
    %427 = tpu.matmul %414, %63, %cst_206 {dimension_numbers = #tpu.dot_dimension_numbers<[1], [0], [0], [1], [0, 0, 1, 1], [], []>} : vector<2x16xf32>, vector<16x64xf32>, vector<2x64xf32> -> vector<2x64xf32>
    %428 = arith.addf %45, %427 : vector<2x64xf32>
    %cst_207 = arith.constant dense<0.000000e+00> : vector<2x64xf32>
    %429 = tpu.matmul %406, %71, %cst_207 {dimension_numbers = #tpu.dot_dimension_numbers<[1], [0], [0], [1], [0, 0, 1, 1], [], []>} : vector<2x64xf32>, vector<64x64xf32>, vector<2x64xf32> -> vector<2x64xf32>
    %430 = arith.addf %428, %429 : vector<2x64xf32>
    %431 = arith.negf %430 : vector<2x64xf32>
    %432 = math.exp %431 : vector<2x64xf32>
    %cst_208 = arith.constant 1.000000e+00 : f32
    %433 = vector.broadcast %cst_208 : f32 to vector<2x64xf32>
    %434 = arith.addf %433, %432 : vector<2x64xf32>
    %435 = arith.divf %433, %434 : vector<2x64xf32>
    %cst_209 = arith.constant dense<0.000000e+00> : vector<2x64xf32>
    %436 = tpu.matmul %414, %65, %cst_209 {dimension_numbers = #tpu.dot_dimension_numbers<[1], [0], [0], [1], [0, 0, 1, 1], [], []>} : vector<2x16xf32>, vector<16x64xf32>, vector<2x64xf32> -> vector<2x64xf32>
    %437 = arith.addf %52, %436 : vector<2x64xf32>
    %cst_210 = arith.constant dense<0.000000e+00> : vector<2x64xf32>
    %438 = tpu.matmul %406, %73, %cst_210 {dimension_numbers = #tpu.dot_dimension_numbers<[1], [0], [0], [1], [0, 0, 1, 1], [], []>} : vector<2x64xf32>, vector<64x64xf32>, vector<2x64xf32> -> vector<2x64xf32>
    %439 = arith.addf %437, %438 : vector<2x64xf32>
    %440 = math.tanh %439 : vector<2x64xf32>
    %cst_211 = arith.constant dense<0.000000e+00> : vector<2x64xf32>
    %441 = tpu.matmul %414, %67, %cst_211 {dimension_numbers = #tpu.dot_dimension_numbers<[1], [0], [0], [1], [0, 0, 1, 1], [], []>} : vector<2x16xf32>, vector<16x64xf32>, vector<2x64xf32> -> vector<2x64xf32>
    %442 = arith.addf %59, %441 : vector<2x64xf32>
    %cst_212 = arith.constant dense<0.000000e+00> : vector<2x64xf32>
    %443 = tpu.matmul %406, %75, %cst_212 {dimension_numbers = #tpu.dot_dimension_numbers<[1], [0], [0], [1], [0, 0, 1, 1], [], []>} : vector<2x64xf32>, vector<64x64xf32>, vector<2x64xf32> -> vector<2x64xf32>
    %444 = arith.addf %442, %443 : vector<2x64xf32>
    %445 = arith.negf %444 : vector<2x64xf32>
    %446 = math.exp %445 : vector<2x64xf32>
    %cst_213 = arith.constant 1.000000e+00 : f32
    %447 = vector.broadcast %cst_213 : f32 to vector<2x64xf32>
    %448 = arith.addf %447, %446 : vector<2x64xf32>
    %449 = arith.divf %447, %448 : vector<2x64xf32>
    %450 = arith.mulf %435, %404 : vector<2x64xf32>
    %451 = arith.mulf %426, %440 : vector<2x64xf32>
    %452 = arith.addf %450, %451 : vector<2x64xf32>
    %453 = math.tanh %452 : vector<2x64xf32>
    %454 = arith.mulf %449, %453 : vector<2x64xf32>
    %cst_214 = arith.constant dense<0.000000e+00> : vector<2x32xf32>
    %455 = tpu.matmul %454, %76, %cst_214 {dimension_numbers = #tpu.dot_dimension_numbers<[1], [0], [0], [1], [0, 0, 1, 1], [], []>} : vector<2x64xf32>, vector<64x32xf32>, vector<2x32xf32> -> vector<2x32xf32>
    %456 = vector.broadcast %77 : vector<1x32xf32> to vector<2x32xf32>
    %457 = arith.addf %455, %456 : vector<2x32xf32>
    %cst_215 = arith.constant 0.000000e+00 : f32
    %458 = vector.broadcast %cst_215 : f32 to vector<2x32xf32>
    %459 = arith.maximumf %457, %458 : vector<2x32xf32>
    %cst_216 = arith.constant dense<0.000000e+00> : vector<2x16xf32>
    %460 = tpu.matmul %459, %78, %cst_216 {dimension_numbers = #tpu.dot_dimension_numbers<[1], [0], [0], [1], [0, 0, 1, 1], [], []>} : vector<2x32xf32>, vector<32x16xf32>, vector<2x16xf32> -> vector<2x16xf32>
    %461 = vector.broadcast %79 : vector<1x16xf32> to vector<2x16xf32>
    %462 = arith.addf %460, %461 : vector<2x16xf32>
    %c7 = arith.constant 7 : index
    %c0_217 = arith.constant 0 : index
    %c0_218 = arith.constant 0 : index
    %463 = vector.load %arg20[%c7, %c0_217, %c0_218] : memref<8x2x16xf32, #tpu.memory_space<vmem>>, vector<1x2x16xf32>
    %464 = vector.shape_cast %463 : vector<1x2x16xf32> to vector<2x16xf32>
    %465 = vector.shape_cast %462 : vector<2x16xf32> to vector<1x2x16xf32>
    tpu.vector_store %arg20[%c7, %c0_217, %c0_218], %465 {strides = array<i32>} : memref<8x2x16xf32, #tpu.memory_space<vmem>>, vector<1x2x16xf32>,
    return
  }
  func.func @transform_0(%arg0: i32) -> (i32, i32) {
    %c0_i32 = arith.constant 0 : i32
    %c0_i32_0 = arith.constant 0 : i32
    %c0_i32_1 = arith.constant 0 : i32
    return %c0_i32, %c0_i32_0 : i32, i32
  }
  func.func @transform_1(%arg0: i32) -> (i32, i32) {
    %c0_i32 = arith.constant 0 : i32
    %c0_i32_0 = arith.constant 0 : i32
    %c0_i32_1 = arith.constant 0 : i32
    return %c0_i32, %c0_i32_0 : i32, i32
  }
  func.func @transform_2(%arg0: i32) -> (i32, i32) {
    %c0_i32 = arith.constant 0 : i32
    %c0_i32_0 = arith.constant 0 : i32
    %c0_i32_1 = arith.constant 0 : i32
    return %c0_i32, %c0_i32_0 : i32, i32
  }
  func.func @transform_3(%arg0: i32) -> (i32, i32) {
    %c0_i32 = arith.constant 0 : i32
    %c0_i32_0 = arith.constant 0 : i32
    %c0_i32_1 = arith.constant 0 : i32
    return %c0_i32, %c0_i32_0 : i32, i32
  }
  func.func @transform_4(%arg0: i32) -> (i32, i32) {
    %c0_i32 = arith.constant 0 : i32
    %c0_i32_0 = arith.constant 0 : i32
    %c0_i32_1 = arith.constant 0 : i32
    return %c0_i32, %c0_i32_0 : i32, i32
  }
  func.func @transform_5(%arg0: i32) -> (i32, i32) {
    %c0_i32 = arith.constant 0 : i32
    %c0_i32_0 = arith.constant 0 : i32
    %c0_i32_1 = arith.constant 0 : i32
    return %c0_i32, %c0_i32_0 : i32, i32
  }
  func.func @transform_6(%arg0: i32) -> (i32, i32) {
    %c0_i32 = arith.constant 0 : i32
    %c0_i32_0 = arith.constant 0 : i32
    %c0_i32_1 = arith.constant 0 : i32
    return %c0_i32, %c0_i32_0 : i32, i32
  }
  func.func @transform_7(%arg0: i32) -> (i32, i32) {
    %c0_i32 = arith.constant 0 : i32
    %c0_i32_0 = arith.constant 0 : i32
    %c0_i32_1 = arith.constant 0 : i32
    return %c0_i32, %c0_i32_0 : i32, i32
  }
  func.func @transform_8(%arg0: i32) -> (i32, i32) {
    %c0_i32 = arith.constant 0 : i32
    %c0_i32_0 = arith.constant 0 : i32
    %c0_i32_1 = arith.constant 0 : i32
    return %c0_i32, %c0_i32_0 : i32, i32
  }
  func.func @transform_9(%arg0: i32) -> (i32, i32) {
    %c0_i32 = arith.constant 0 : i32
    %c0_i32_0 = arith.constant 0 : i32
    %c0_i32_1 = arith.constant 0 : i32
    return %c0_i32, %c0_i32_0 : i32, i32
  }
  func.func @transform_10(%arg0: i32) -> (i32, i32) {
    %c0_i32 = arith.constant 0 : i32
    %c0_i32_0 = arith.constant 0 : i32
    %c0_i32_1 = arith.constant 0 : i32
    return %c0_i32, %c0_i32_0 : i32, i32
  }
  func.func @transform_11(%arg0: i32) -> (i32, i32, i32) {
    %c0_i32 = arith.constant 0 : i32
    %c0_i32_0 = arith.constant 0 : i32
    %c0_i32_1 = arith.constant 0 : i32
    %c0_i32_2 = arith.constant 0 : i32
    return %c0_i32, %c0_i32_0, %c0_i32_1 : i32, i32, i32
  }
  func.func @transform_12(%arg0: i32) -> (i32, i32, i32) {
    %c0_i32 = arith.constant 0 : i32
    %c0_i32_0 = arith.constant 0 : i32
    %c0_i32_1 = arith.constant 0 : i32
    %c0_i32_2 = arith.constant 0 : i32
    return %c0_i32, %c0_i32_0, %c0_i32_1 : i32, i32, i32
  }
  func.func @transform_13(%arg0: i32) -> (i32, i32, i32) {
    %c0_i32 = arith.constant 0 : i32
    %c0_i32_0 = arith.constant 0 : i32
    %c0_i32_1 = arith.constant 0 : i32
    %c0_i32_2 = arith.constant 0 : i32
    return %c0_i32, %c0_i32_0, %c0_i32_1 : i32, i32, i32
  }
  func.func @transform_14(%arg0: i32) -> (i32, i32, i32) {
    %c0_i32 = arith.constant 0 : i32
    %c0_i32_0 = arith.constant 0 : i32
    %c0_i32_1 = arith.constant 0 : i32
    %c0_i32_2 = arith.constant 0 : i32
    return %c0_i32, %c0_i32_0, %c0_i32_1 : i32, i32, i32
  }
  func.func @transform_15(%arg0: i32) -> (i32, i32) {
    %c0_i32 = arith.constant 0 : i32
    %c0_i32_0 = arith.constant 0 : i32
    %c0_i32_1 = arith.constant 0 : i32
    return %c0_i32, %c0_i32_0 : i32, i32
  }
  func.func @transform_16(%arg0: i32) -> (i32, i32) {
    %c0_i32 = arith.constant 0 : i32
    %c0_i32_0 = arith.constant 0 : i32
    %c0_i32_1 = arith.constant 0 : i32
    return %c0_i32, %c0_i32_0 : i32, i32
  }
  func.func @transform_17(%arg0: i32) -> (i32, i32) {
    %c0_i32 = arith.constant 0 : i32
    %c0_i32_0 = arith.constant 0 : i32
    %c0_i32_1 = arith.constant 0 : i32
    return %c0_i32, %c0_i32_0 : i32, i32
  }
  func.func @transform_18(%arg0: i32) -> (i32, i32) {
    %c0_i32 = arith.constant 0 : i32
    %c0_i32_0 = arith.constant 0 : i32
    %c0_i32_1 = arith.constant 0 : i32
    return %c0_i32, %c0_i32_0 : i32, i32
  }
  func.func @transform_19(%arg0: i32) -> (i32, i32, i32) {
    %c0_i32 = arith.constant 0 : i32
    %c0_i32_0 = arith.constant 0 : i32
    %c0_i32_1 = arith.constant 0 : i32
    %c0_i32_2 = arith.constant 0 : i32
    return %c0_i32, %c0_i32_0, %c0_i32_1 : i32, i32, i32
  }
}

</mosaic_0001>

<bundles_post_ra>
// kernel: lstm_ae_feedback_forward.3
= control target key start
LH: loop header
LB: loop body
LE: loop exit
PB: predicated region body
PF: predicated region fallthrough
CT: control target
= control target key end

     0   :  { %s404_s18 = smov 0   ;;  %s446_s0 = inlined_call_operand.vmem [shape: f32[2,8,16], index: 0, kind: input, shape index: {}]   ;;  %s447_s1 = inlined_call_operand.vmem [shape: f32[8,16], index: 1, kind: input, shape index: {}]   ;;  %s448_s2 = inlined_call_operand.vmem [shape: f32[8,16], index: 2, kind: input, shape index: {}]   ;;  %s449_s3 = inlined_call_operand.vmem [shape: f32[16,32], index: 3, kind: input, shape index: {}]   ;;  %s450_s4 = inlined_call_operand.vmem [shape: f32[1,32], index: 4, kind: input, shape index: {}]   ;;  %s451_s5 = inlined_call_operand.vmem [shape: f32[2,8,32], index: 5, kind: output, shape index: {}]  }
   0x1 LB: > { %s345_s19 = sadd.s32 4294967295, %s372_s18   ;;  %p349_p0 = scmp.ge.s32.totalorder %s372_s18, 1  ;;  %s372_s18 = sphi %s404_s18, %s15_s18  }
   0x2   : > { %p186_p1 = scmp.lt.s32.totalorder %s372_s18, 3 }
   0x4   : > { %p187_p2 = pnand %p349_p0, %p186_p1 }
   0x5   : > { %p212_p3 = scmp.lt.s32.totalorder (!%p187_p2), %s345_s19, 1 }
   0x6   : > { %190 = sbr.rel (%p187_p2) target bundleno = 438 (0x1b6), region = 40 }
   0xb   : > { %s453_s19 = smov (!%p212_p3, %s345_s19), 1  ;;  %vm221_vm0 = vcmask 130048   ;;  %v261_v13 = vld [vmem:[%s449_s3 + $0x8] sm:$0xff]  ;;  %v260_v14 = vld [vmem:[%s449_s3] sm:$0xff]  ;;  %vm290_vm4 = vcmask 261120  }
   0xc   : > { %s350_s20 = sshll.u32 %s453_s19, 3  ;;  %283 = vmatpush.msra.mxu0 %v261_v13  ;;  %v256_v31 = vld [vmem:[%s447_s1] sm:$0xff] }
   0xd   : > { %s215_s23 = scalar_lea.vmem %s446_s0, %s350_s20  ;;  %v258_v33 = vld [vmem:[%s448_s2] sm:$0xff]  ;;  %s219_s11 = scalar_lea.vmem %s451_s5, %s350_s20 }
   0xe   : > { %v220_v0 = vld [vmem:[%s215_s23] sm:$0xff]  ;;  %284 = vmatpush.msra.mxu0 %v260_v14 }
   0xf   : > { %v222_v1 = vsel %vm221_vm0, %v220_v0, 0.0  ;;  %v363_v36 = vld [vmem:[%s450_s4] ss:$0 sm:$0xff] }
  0x10   : > { %223 = vadd.xlane.f32.xlu0 %v222_v1 }
  0x83   : > { %v224_v2 = vpop.xlane.xlu0 %223 }
  0x84   : > { %v225_v3 = vrot.slane %v224_v2, 4 }
  0x86   : > { %v226_v4 = vadd.f32 %v225_v3, %v224_v2 }
  0x88   : > { %v227_v5 = vrot.slane %v226_v4, 2 }
  0x8a   : > { %v228_v6 = vadd.f32 %v227_v5, %v226_v4 }
  0x8c   : > { %v229_v7 = vrot.slane %v228_v6, 1 }
  0x8e   : > { %v230_v8 = vadd.f32 %v229_v7, %v228_v6 }
  0x90   : > { %v231_v9 = vmul.f32 0.0078125, %v230_v8 }
  0x92   : > { %v232_v10 = vsub.f32 %v220_v0, %v231_v9 }
  0x94   : > { %v233_v11 = vmul.f32 %v232_v10, %v232_v10 }
  0x96   : > { %v234_v12 = vsel %vm221_vm0, %v233_v11, 0.0 }
  0x97   : > { %235 = vadd.xlane.f32.xlu0 %v234_v12 }
 0x10a   : > { %v236_v15 = vpop.xlane.xlu0 %235 }
 0x10b   : > { %v237_v16 = vrot.slane %v236_v15, 4 }
 0x10d   : > { %v238_v17 = vadd.f32 %v237_v16, %v236_v15 }
 0x10f   : > { %v239_v18 = vrot.slane %v238_v17, 2 }
 0x111   : > { %v240_v19 = vadd.f32 %v239_v18, %v238_v17 }
 0x113   : > { %v241_v20 = vrot.slane %v240_v19, 1 }
 0x115   : > { %v242_v21 = vadd.f32 %v241_v20, %v240_v19 }
 0x117   : > { %v243_v22 = vmul.f32 0.0078125, %v242_v21 }
 0x119   : > { %v244_v23 = vadd.f32 1e-05, %v243_v22 }
 0x11b   : > { %364 = vrsqrt.f32 %v244_v23  ;;  %vm251_vm2 = vweird.f32 %v244_v23 }
 0x121   : > { %v365_v24 = vpop.eup %364 }
 0x122   : > { %v246_v25 = vmul.f32 %v365_v24, %v244_v23  ;;  %vm252_vm1 = vweird.f32 %v365_v24 }
 0x123   : > { %vm253_vm3 = vmor %vm251_vm2, %vm252_vm1 }
 0x124   : > { %v247_v26 = vmul.f32 %v365_v24, %v246_v25 }
 0x126   : > { %v248_v27 = vmul.f32 0.5, %v247_v26 }
 0x128   : > { %v249_v28 = vsub.f32 1.5, %v248_v27 }
 0x12a   : > { %v250_v29 = vmul.f32 %v365_v24, %v249_v28 }
 0x12c   : > { %v254_v30 = vsel %vm253_vm3, %v365_v24, %v250_v29 }
 0x12d   : > { %v255_v32 = vmul.f32 %v254_v30, %v232_v10 }
 0x12f   : > { %v257_v34 = vmul.f32 %v256_v31, %v255_v32 }
 0x131   : > { %v259_v35 = vadd.f32 %v258_v33, %v257_v34 }
 0x133   : > { %352 = vmatmul.msk.f32.vlgmr.msra.gmra.mxu0 %vm221_vm0, %v259_v35 }
 0x1b0   : > { %v286_v37 = vpop.f32.mrf.mxu0 }
 0x1b1   : > { %v287_v38 = vadd.f32 %v363_v36, %v286_v37 }
 0x1b3   : > { %v289_v39 = vmax.f32 %v287_v38, 0.0 }
 0x1b5   : > { %291 = vst.msk [vmem:[%s219_s11] sm:$0xff] %vm290_vm4, %v289_v39 }
 0x1b6 PF: > { %s15_s18 = sadd.s32 1, %s372_s18  }
 0x1b7   : > { %p12_p4 = scmp.ge.s32.totalorder %s15_s18, 4  }
 0x1b9   :  { %14 = sbr.rel (!%p12_p4) target bundleno = 1 (0x1), region = 70 }

// kernel: lstm_ae_feedback_forward.5
= control target key start
LH: loop header
LB: loop body
LE: loop exit
PB: predicated region body
PF: predicated region fallthrough
CT: control target
= control target key end

     0   :  { %vm116_vm0 = vcmask 523264   ;;  %vm148_vm1 = vcmask 261120   ;;  %vm414_vm2 = vcmask 130048   ;;  %vm705_vm15 = vcmask 123904   ;;  %s4499_s1 = inlined_call_operand.vmem [shape: f32[128,64], index: 1, kind: input, shape index: {}]   ;;  %s4500_s3 = inlined_call_operand.vmem [shape: f32[64,32], index: 3, kind: input, shape index: {}]   ;;  %s4501_s2 = inlined_call_operand.vmem [shape: f32[1,64], index: 2, kind: input, shape index: {}]   ;;  %s4502_s0 = inlined_call_operand.vmem [shape: f32[2,128], index: 0, kind: input, shape index: {}]   ;;  %s4503_s4 = inlined_call_operand.vmem [shape: f32[1,32], index: 4, kind: input, shape index: {}]   ;;  %s4504_s5 = inlined_call_operand.vmem [shape: f32[32,32], index: 5, kind: input, shape index: {}]   ;;  %s4505_s6 = inlined_call_operand.vmem [shape: f32[1,32], index: 6, kind: input, shape index: {}]   ;;  %s4506_s7 = inlined_call_operand.vmem [shape: f32[32,32], index: 7, kind: input, shape index: {}]   ;;  %s4507_s11 = inlined_call_operand.vmem [shape: f32[4,32,64], index: 11, kind: input, shape index: {}]   ;;  %s4508_s14 = inlined_call_operand.vmem [shape: f32[4,1,64], index: 14, kind: input, shape index: {}]   ;;  %s4509_s8 = inlined_call_operand.vmem [shape: f32[1,32], index: 8, kind: input, shape index: {}]   ;;  %s4510_s10 = inlined_call_operand.vmem [shape: f32[1,16], index: 10, kind: input, shape index: {}]   ;;  %s4511_s9 = inlined_call_operand.vmem [shape: f32[32,16], index: 9, kind: input, shape index: {}]   ;;  %s4512_s12 = inlined_call_operand.vmem [shape: f32[4,16,64], index: 12, kind: input, shape index: {}]   ;;  %s4513_s13 = inlined_call_operand.vmem [shape: f32[4,64,64], index: 13, kind: input, shape index: {}]   ;;  %s4514_s16 = inlined_call_operand.vmem [shape: f32[1,32], index: 16, kind: input, shape index: {}]   ;;  %s4515_s15 = inlined_call_operand.vmem [shape: f32[64,32], index: 15, kind: input, shape index: {}]   ;;  %s4516_s17 = inlined_call_operand.vmem [shape: f32[32,16], index: 17, kind: input, shape index: {}]   ;;  %s4517_s18 = inlined_call_operand.vmem [shape: f32[1,16], index: 18, kind: input, shape index: {}]   ;;  %s4518_s19 = inlined_call_operand.vmem [shape: f32[8,2,16], index: 19, kind: output, shape index: {}]  }
   0x1   :  { %4589 = sst [smem:[#allocation22_spill]] %s4499_s1  ;;  %v143_v25 = vld [vmem:[%s4504_s5 + $0x18] sm:$0xff]  ;;  %v142_v26 = vld [vmem:[%s4504_s5 + $0x10] sm:$0xff]  ;;  %v141_v31 = vld [vmem:[%s4504_s5 + $0x8] sm:$0xff] }
   0x2   :  { %4590 = sst [smem:[#allocation23_spill]] %s4500_s3  ;;  %164 = vmatpush.msra.mxu2 %v143_v25  ;;  %v140_v32 = vld [vmem:[%s4504_s5] sm:$0xff]  ;;  %v176_v33 = vld [vmem:[%s4506_s7 + $0x18] sm:$0xff]  ;;  %v175_v38 = vld [vmem:[%s4506_s7 + $0x10] sm:$0xff] }
   0x3   :  { %4591 = sst [smem:[#allocation24_spill]] %s4501_s2  ;;  %v2700_v34 = vld [vmem:[%s4507_s11 + $0x38] sm:$0xff]  ;;  %196 = vmatpush.msra.mxu3 %v176_v33  ;;  %v2854_v35 = vld [vmem:[%s4503_s4] ss:$0 sm:$0xff]  ;;  %v2699_v39 = vld [vmem:[%s4507_s11 + $0x30] sm:$0xff] }
   0x4   :  { %4592 = sst [smem:[#allocation25_spill]] %s4502_s0  ;;  %165 = vmatpush.msra.mxu2 %v142_v26  ;;  %v174_v40 = vld [vmem:[%s4506_s7 + $0x8] sm:$0xff]  ;;  %v173_v42 = vld [vmem:[%s4506_s7] sm:$0xff]  ;;  %v239_v44 = vld [vmem:[%s4507_s11 + $0x18] sm:$0xff] }
   0x5   :  { %s4593_s20 = sld [smem:[#allocation22_spill]]  ;;  %197 = vmatpush.msra.mxu3 %v175_v38  ;;  %v2698_v41 = vld [vmem:[%s4507_s11 + $0x28] sm:$0xff]  ;;  %v2697_v43 = vld [vmem:[%s4507_s11 + $0x20] sm:$0xff]  ;;  %v238_v45 = vld [vmem:[%s4507_s11 + $0x10] sm:$0xff] }
   0x6   :  { %s4594_s26 = sld [smem:[#allocation23_spill]]  ;;  %166 = vmatpush.msra.mxu2 %v141_v31  ;;  %v237_v46 = vld [vmem:[%s4507_s11 + $0x8] sm:$0xff]  ;;  %v236_v47 = vld [vmem:[%s4507_s11] sm:$0xff]  ;;  %v2712_v52 = vld [vmem:[%s4507_s11 + $0x78] sm:$0xff] }
   0x7   :  { %s4595_s2 = sld [smem:[#allocation25_spill]]  ;;  %198 = vmatpush.msra.mxu3 %v174_v40  ;;  %v2855_v48 = vld [vmem:[%s4505_s6] ss:$0 sm:$0xff]  ;;  %v2711_v53 = vld [vmem:[%s4507_s11 + $0x70] sm:$0xff]  ;;  %v2710_v54 = vld [vmem:[%s4507_s11 + $0x68] sm:$0xff] }
   0x8   :  { %s4596_s22 = sld [smem:[#allocation24_spill]]  ;;  %167 = vmatpush.msra.mxu2 %v140_v32  ;;  %v2709_v55 = vld [vmem:[%s4507_s11 + $0x60] sm:$0xff]  ;;  %v208_v56 = vld [vmem:[%s4511_s9 + $0x18] sm:$0xff]  ;;  %v207_v57 = vld [vmem:[%s4511_s9 + $0x10] sm:$0xff] }
   0x9   :  { %199 = vmatpush.msra.mxu3 %v173_v42  ;;  %v206_v58 = vld [vmem:[%s4511_s9 + $0x8] sm:$0xff]  ;;  %v205_v59 = vld [vmem:[%s4511_s9] sm:$0xff]  ;;  %v2706_v60 = vld [vmem:[%s4507_s11 + $0x58] sm:$0xff] }
   0xa   :  { %228 = vmatpush.msrb.mxu2 %v208_v56  ;;  %v2705_v61 = vld [vmem:[%s4507_s11 + $0x50] sm:$0xff]  ;;  %v2704_v62 = vld [vmem:[%s4507_s11 + $0x48] sm:$0xff]  ;;  %v2703_v63 = vld [vmem:[%s4507_s11 + $0x40] sm:$0xff] }
   0xb   :  { %v78_v0 = vld [vmem:[%s4593_s20 + $0x78] sm:$0xff]  ;;  %v77_v1 = vld [vmem:[%s4593_s20 + $0x70] sm:$0xff]  ;;  %v76_v2 = vld [vmem:[%s4593_s20 + $0x68] sm:$0xff]  ;;  %256 = vmatpush.msrb.mxu3 %v239_v44 }
   0xc   :  { %83 = vmatpush.msra.mxu0 %v78_v0  ;;  %v75_v3 = vld [vmem:[%s4593_s20 + $0x60] sm:$0xff]  ;;  %v111_v4 = vld [vmem:[%s4594_s26 + $0x38] sm:$0xff]  ;;  %v110_v6 = vld [vmem:[%s4594_s26 + $0x30] sm:$0xff]  ;;  %229 = vmatpush.msrb.mxu2 %v207_v57 }
   0xd   :  { %v74_v5 = vld [vmem:[%s4593_s20 + $0x58] sm:$0xff]  ;;  %128 = vmatpush.msra.mxu1 %v111_v4  ;;  %v109_v7 = vld [vmem:[%s4594_s26 + $0x28] sm:$0xff]  ;;  %v73_v8 = vld [vmem:[%s4593_s20 + $0x50] sm:$0xff]  ;;  %257 = vmatpush.msrb.mxu3 %v238_v45 }
   0xe   :  { %84 = vmatpush.msra.mxu0 %v77_v1  ;;  %v108_v9 = vld [vmem:[%s4594_s26 + $0x20] sm:$0xff]  ;;  %v72_v10 = vld [vmem:[%s4593_s20 + $0x48] sm:$0xff]  ;;  %v107_v11 = vld [vmem:[%s4594_s26 + $0x18] sm:$0xff]  ;;  %230 = vmatpush.msrb.mxu2 %v206_v58 }
   0xf   :  { %129 = vmatpush.msra.mxu1 %v110_v6  ;;  %v71_v12 = vld [vmem:[%s4593_s20 + $0x40] sm:$0xff]  ;;  %v70_v13 = vld [vmem:[%s4593_s20 + $0x38] sm:$0xff]  ;;  %v69_v14 = vld [vmem:[%s4593_s20 + $0x30] sm:$0xff]  ;;  %258 = vmatpush.msrb.mxu3 %v237_v46 }
  0x10   :  { %85 = vmatpush.msra.mxu0 %v76_v2  ;;  %v68_v15 = vld [vmem:[%s4593_s20 + $0x28] sm:$0xff]  ;;  %v67_v16 = vld [vmem:[%s4593_s20 + $0x20] sm:$0xff]  ;;  %v66_v17 = vld [vmem:[%s4593_s20 + $0x18] sm:$0xff]  ;;  %231 = vmatpush.msrb.mxu2 %v205_v59 }
  0x11   :  { %130 = vmatpush.msra.mxu1 %v109_v7  ;;  %v65_v18 = vld [vmem:[%s4593_s20 + $0x10] sm:$0xff]  ;;  %v64_v19 = vld [vmem:[%s4593_s20 + $0x8] sm:$0xff]  ;;  %v63_v20 = vld [vmem:[%s4593_s20] sm:$0xff]  ;;  %259 = vmatpush.msrb.mxu3 %v236_v47 }
  0x12   :  { %86 = vmatpush.msra.mxu0 %v75_v3  ;;  %v62_v21 = vld [vmem:[%s4595_s2] sm:$0x3]  ;;  %v106_v22 = vld [vmem:[%s4594_s26 + $0x10] sm:$0xff]  ;;  %v105_v23 = vld [vmem:[%s4594_s26 + $0x8] sm:$0xff] }
  0x13   :  { %131 = vmatpush.msra.mxu1 %v108_v9  ;;  %v104_v24 = vld [vmem:[%s4594_s26] sm:$0xff]  ;;  %v3326_v0 = vld [vmem:[%s4512_s12 + $0x18] sm:$0xff]  ;;  %v3332_v1 = vld [vmem:[%s4512_s12 + $0x10] sm:$0xff] }
  0x14   :  { %87 = vmatpush.msra.mxu0 %v74_v5  ;;  %v2853_v27 = vld [vmem:[%s4596_s22] ss:$0 sm:$0xff]  ;;  %v3337_v2 = vld [vmem:[%s4512_s12 + $0x8] sm:$0xff]  ;;  %v3343_v3 = vld [vmem:[%s4513_s13 + $0x78] sm:$0xff] }
  0x15   :  { %132 = vmatpush.msra.mxu1 %v107_v11  ;;  %v3348_v4 = vld [vmem:[%s4513_s13 + $0xb8] sm:$0xff]  ;;  %v3355_v5 = vld [vmem:[%s4513_s13 + $0x70] sm:$0xff]  ;;  %v2857_v7 = vld [vmem:[%s4509_s8] ss:$0 sm:$0xff] }
  0x16   :  { %88 = vmatpush.msra.mxu0 %v73_v8  ;;  %v3360_v6 = vld [vmem:[%s4513_s13 + $0xb0] sm:$0xff]  ;;  %v3371_v11 = vld [vmem:[%s4513_s13 + $0x38] sm:$0xff]  ;;  %v3450_v25 = vld [vmem:[%s4513_s13 + $0xa0] sm:$0xff] }
  0x17   :  { %133 = vmatpush.msra.mxu1 %v106_v22  ;;  %v3432_v22 = vld [vmem:[%s4513_s13 + $0xf8] sm:$0xff]  ;;  %v3457_v26 = vld [vmem:[%s4513_s13 + $0xf0] sm:$0xff]  ;;  %v3498_v33 = vld [vmem:[%s4513_s13 + $0xe0] sm:$0xff] }
  0x18   :  { %89 = vmatpush.msra.mxu0 %v72_v10  ;;  %v3486_v31 = vld [vmem:[%s4513_s13 + $0x50] sm:$0xff]  ;;  %v3529_v38 = vld [vmem:[%s4513_s13 + $0x40] sm:$0xff]  ;;  %v3574_v46 = vld [vmem:[%s4512_s12 + $0x38] sm:$0xff] }
  0x19   :  { %134 = vmatpush.msra.mxu1 %v105_v23  ;;  %v3439_v23 = vld [vmem:[%s4512_s12] sm:$0xff]  ;;  %4608 = vst [vmem:[#allocation13_spill] sm:$0xff] %v3486_v31  ;;  %v3491_v32 = vld [vmem:[%s4513_s13 + $0x90] sm:$0xff]  ;;  %v3611_v59 = vld [vmem:[%s4515_s15 + $0x38] sm:$0xff] }
  0x1a   :  { %90 = vmatpush.msra.mxu0 %v71_v12  ;;  %v3377_v12 = vld [vmem:[%s4513_s13 + $0x30] sm:$0xff]  ;;  %4611 = vst [vmem:[#allocation16_spill] sm:$0xff] %v3529_v38  ;;  %v3554_v42 = vld [vmem:[%s4513_s13 + $0xc0] sm:$0xff] }
  0x1b   :  { %135 = vmatpush.msra.mxu1 %v104_v24  ;;  %4597 = vst [vmem:[#allocation2_spill] sm:$0xff] %v3377_v12  ;;  %v3445_v24 = vld [vmem:[%s4513_s13 + $0x60] sm:$0xff]  ;;  %v3541_v40 = vld [vmem:[%s4513_s13 + $0xd0] sm:$0xff] }
  0x1c   :  { %91 = vmatpush.msra.mxu0 %v70_v13  ;;  %v3383_v13 = vld [vmem:[%s4513_s13 + $0x28] sm:$0xff]  ;;  %4605 = vst [vmem:[#allocation10_spill] sm:$0xff] %v3445_v24  ;;  %v3582_v47 = vld [vmem:[%s4512_s12 + $0x30] sm:$0xff]  ;;  %v2856_v56 = vld [vmem:[%s4508_s14 + $0x1] ss:$0 sm:$0xff] }
  0x1d   :  { %286 = vmatpush.msrb.mxu1 %v2700_v34  ;;  %4598 = vst [vmem:[#allocation3_spill] sm:$0xff] %v3383_v13  ;;  %v3506_v34 = vld [vmem:[%s4513_s13 + $0x48] sm:$0xff] }
  0x1e   :  { %92 = vmatpush.msra.mxu0 %v69_v14  ;;  %v3389_v14 = vld [vmem:[%s4513_s13 + $0x20] sm:$0xff]  ;;  %4609 = vst [vmem:[#allocation14_spill] sm:$0xff] %v3506_v34 }
  0x1f   :  { %287 = vmatpush.msrb.mxu1 %v2699_v39  ;;  %4599 = vst [vmem:[#allocation4_spill] sm:$0xff] %v3389_v14  ;;  %v3534_v39 = vld [vmem:[%s4513_s13 + $0x80] sm:$0xff] }
  0x20   :  { %93 = vmatpush.msra.mxu0 %v68_v15  ;;  %v3395_v15 = vld [vmem:[%s4513_s13 + $0x18] sm:$0xff] }
  0x21   :  { %288 = vmatpush.msrb.mxu1 %v2698_v41  ;;  %4600 = vst [vmem:[#allocation5_spill] sm:$0xff] %v3395_v15  ;;  %v3548_v41 = vld [vmem:[%s4513_s13 + $0xc8] sm:$0xff] }
  0x22   :  { %94 = vmatpush.msra.mxu0 %v67_v16  ;;  %v3402_v16 = vld [vmem:[%s4513_s13 + $0x10] sm:$0xff] }
  0x23   :  { %289 = vmatpush.msrb.mxu1 %v2697_v43  ;;  %4601 = vst [vmem:[#allocation6_spill] sm:$0xff] %v3402_v16  ;;  %v2860_v43 = vld [vmem:[%s4510_s10] ss:$0 sm:$0xff] }
  0x24   :  { %95 = vmatpush.msra.mxu0 %v66_v17  ;;  %v3408_v17 = vld [vmem:[%s4513_s13 + $0x8] sm:$0xff] }
  0x25   :  { %4602 = vst [vmem:[#allocation7_spill] sm:$0xff] %v3408_v17 }
  0x26   :  { %96 = vmatpush.msra.mxu0 %v65_v18  ;;  %v3414_v18 = vld [vmem:[%s4513_s13] sm:$0xff] }
  0x27   :  { %4603 = vst [vmem:[#allocation8_spill] sm:$0xff] %v3414_v18 }
  0x28   :  { %97 = vmatpush.msra.mxu0 %v64_v19  ;;  %v3048_v19 = vmov 0.0  }
  0x2a   :  { %98 = vmatpush.msra.mxu0 %v63_v20  ;;  %v3422_v20 = vld [vmem:[%s4513_s13 + $0x68] sm:$0xff] }
  0x2b   :  { %99 = vmatmul.f32.vlgmr.msra.gmra.mxu0 %v62_v21  ;;  %4604 = vst [vmem:[#allocation9_spill] sm:$0xff] %v3422_v20  ;;  %v3427_v21 = vld [vmem:[%s4513_s13 + $0xa8] sm:$0xff] }
  0x2c   :  { %511 = vmatpush.msrb.mxu0 %v3343_v3 }
  0x2e   :  { %512 = vmatpush.msrb.mxu0 %v3355_v5 }
  0x30   :  { %513 = vmatpush.msrb.mxu0 %v3422_v20 }
  0x32   :  { %514 = vmatpush.msrb.mxu0 %v3445_v24 }
  0xa8   :  { %v100_v28 = vpop.f32.mrf.mxu0 }
  0xa9   :  { %v101_v29 = vadd.f32 %v2853_v27, %v100_v28  ;;  %v3464_v27 = vld [vmem:[%s4513_s13 + $0x58] sm:$0xff]  ;;  %v3469_v28 = vld [vmem:[%s4512_s12 + $0x28] sm:$0xff] }
  0xaa   :  { %4606 = vst [vmem:[#allocation11_spill] sm:$0xff] %v3464_v27  ;;  %515 = vmatpush.msrb.mxu0 %v3464_v27 }
  0xab   :  { %v103_v30 = vmax.f32 %v101_v29, 0.0  ;;  %4607 = vst [vmem:[#allocation12_spill] sm:$0xff] %v3469_v28  ;;  %v3474_v29 = vld [vmem:[%s4513_s13 + $0x98] sm:$0xff] }
  0xac   :  { %516 = vmatpush.msrb.mxu0 %v3486_v31 }
  0xad   :  { %2692 = vmatmul.msk.f32.vlgmr.msra.gmra.mxu1 %vm116_vm0, %v103_v30  ;;  %v3481_v30 = vld [vmem:[%s4513_s13 + $0xe8] sm:$0xff] }
  0xae   :  { %432 = vmatpush.msra.mxu1 %v3337_v2  ;;  %517 = vmatpush.msrb.mxu0 %v3506_v34 }
  0xb0   :  { %433 = vmatpush.msra.mxu1 %v3439_v23  ;;  %518 = vmatpush.msrb.mxu0 %v3529_v38 }
  0xb1   :  { %519 = vmatmul.f32.vlgmr.msrb.gmra.mxu0 %v3048_v19 }
  0xb2   :  { %666 = vmatpush.msra.mxu0 %v3611_v59 }
 0x12a   :  { %v137_v36 = vpop.f32.mrf.mxu1 }
 0x12b   :  { %v138_v37 = vadd.f32 %v2854_v35, %v137_v36  ;;  %v3511_v35 = vld [vmem:[%s4513_s13 + $0x88] sm:$0xff]  ;;  %v3516_v36 = vld [vmem:[%s4513_s13 + $0xd8] sm:$0xff] }
 0x12d   :  { %2693 = vmatmul.msk.f32.vlgmr.msra.gmra.mxu2 %vm148_vm1, %v138_v37  ;;  %v3522_v37 = vld [vmem:[%s4512_s12 + $0x20] sm:$0xff] }
 0x12e   :  { %316 = vmatpush.msra.mxu2 %v2706_v60  ;;  %4610 = vst [vmem:[#allocation15_spill] sm:$0xff] %v3522_v37 }
 0x130   :  { %317 = vmatpush.msra.mxu2 %v2705_v61 }
 0x132   :  { %318 = vmatpush.msra.mxu2 %v2704_v62 }
 0x134   :  { %319 = vmatpush.msra.mxu2 %v2703_v63  ;;  %v520_v63 = vpop.f32.mrf.mxu0 }
 0x1b0   :  { %v169_v49 = vpop.f32.mrf.mxu2 }
 0x1b1   :  { %v170_v50 = vadd.f32 %v2855_v48, %v169_v49 }
 0x1b3   :  { %v172_v51 = vmax.f32 %v170_v50, 0.0 }
 0x1b5   :  { %2694 = vmatmul.msk.f32.vlgmr.msra.gmra.mxu3 %vm148_vm1, %v172_v51  ;;  %2702 = vmatmul.msk.f32.vlgmr.msrb.gmra.mxu1 %vm148_vm1, %v172_v51 }
 0x1b6   :  { %346 = vmatpush.msra.mxu3 %v2712_v52  ;;  %557 = vmatpush.msrb.mxu1 %v3469_v28 }
 0x1b8   :  { %347 = vmatpush.msra.mxu3 %v2711_v53  ;;  %558 = vmatpush.msrb.mxu1 %v3522_v37 }
 0x1ba   :  { %348 = vmatpush.msra.mxu3 %v2710_v54 }
 0x1bc   :  { %349 = vmatpush.msra.mxu3 %v2709_v55 }
 0x1bd   :  { %2696 = vmatmul.msk.f32.vlgmr.msrb.gmra.mxu3 %vm148_vm1, %v172_v51 }
 0x1be   :  { %496 = vmatpush.msrb.mxu3 %v3326_v0 }
 0x1c0   :  { %497 = vmatpush.msrb.mxu3 %v3332_v1 }
 0x1c5   :  { %2714 = vmatmul.msk.f32.vlgmr.msra.gmra.mxu3 %vm148_vm1, %v172_v51 }
 0x1c6   :  { %572 = vmatpush.msra.mxu3 %v3348_v4 }
 0x1c8   :  { %573 = vmatpush.msra.mxu3 %v3360_v6 }
 0x1ca   :  { %574 = vmatpush.msra.mxu3 %v3427_v21 }
 0x1cc   :  { %575 = vmatpush.msra.mxu3 %v3450_v25 }
 0x1ce   :  { %576 = vmatpush.msra.mxu3 %v3474_v29 }
 0x1d0   :  { %577 = vmatpush.msra.mxu3 %v3491_v32 }
 0x1d2   :  { %578 = vmatpush.msra.mxu3 %v3511_v35 }
 0x1d4   :  { %579 = vmatpush.msra.mxu3 %v3534_v39 }
 0x232   :  { %v291_v49 = vpop.f32.mrf.mxu1 }
 0x233   :  { %v3613_v60 = vadd.f32 %v2856_v56, %v291_v49  ;;  %v3646_v49 = vld [vmem:[%s4515_s15 + $0x10] sm:$0xff] }
 0x235   :  { %4613 = vst [vmem:[#allocation18_spill] sm:$0xff] %v3613_v60 }
 0x238   :  { %v201_v8 = vpop.f32.mrf.mxu3 }
 0x239   :  { %v202_v9 = vadd.f32 %v2857_v7, %v201_v8  ;;  %v3619_v7 = vld [vmem:[%s4515_s15 + $0x30] sm:$0xff] }
 0x23a   :  { %667 = vmatpush.msra.mxu0 %v3619_v7 }
 0x23b   :  { %v204_v10 = vmax.f32 %v202_v9, 0.0 }
 0x23d   :  { %2695 = vmatmul.msk.f32.vlgmr.msrb.gmra.mxu2 %vm148_vm1, %v204_v10  ;;  %v3626_v10 = vld [vmem:[%s4515_s15 + $0x28] sm:$0xff] }
 0x23e   :  { %450 = vmatpush.msrb.mxu2 %v3371_v11  ;;  %668 = vmatpush.msra.mxu0 %v3626_v10 }
 0x240   :  { %451 = vmatpush.msrb.mxu2 %v3377_v12  ;;  %v261_v48 = vpop.f32.mrf.mxu3 }
 0x242   :  { %452 = vmatpush.msrb.mxu2 %v3383_v13 }
 0x244   :  { %453 = vmatpush.msrb.mxu2 %v3389_v14 }
 0x245   :  { %2708 = vmatmul.msk.f32.vlgmr.msra.gmra.mxu2 %vm148_vm1, %v172_v51  ;;  %v2858_v51 = vld [vmem:[%s4508_s14] ss:$0 sm:$0xff] }
 0x246   :  { %454 = vmatpush.msrb.mxu2 %v3395_v15  ;;  %v3602_v53 = vadd.f32 %v2858_v51, %v261_v48  ;;  %v3641_v48 = vld [vmem:[%s4515_s15 + $0x18] sm:$0xff] }
 0x248   :  { %455 = vmatpush.msrb.mxu2 %v3402_v16  ;;  %v351_v52 = vpop.f32.mrf.mxu3  ;;  %4612 = vst [vmem:[#allocation17_spill] sm:$0xff] %v3602_v53 }
 0x24a   :  { %456 = vmatpush.msrb.mxu2 %v3408_v17 }
 0x24c   :  { %457 = vmatpush.msrb.mxu2 %v3414_v18 }
 0x24d   :  { %458 = vmatmul.f32.vlgmr.msrb.gmra.mxu2 %v3048_v19 }
 0x24e   :  { %615 = vmatpush.msra.mxu2 %v3432_v22 }
 0x250   :  { %616 = vmatpush.msra.mxu2 %v3457_v26 }
 0x252   :  { %617 = vmatpush.msra.mxu2 %v3481_v30 }
 0x254   :  { %618 = vmatpush.msra.mxu2 %v3498_v33 }
 0x256   :  { %619 = vmatpush.msra.mxu2 %v3516_v36 }
 0x258   :  { %620 = vmatpush.msra.mxu2 %v3541_v40 }
 0x25a   :  { %621 = vmatpush.msra.mxu2 %v3548_v41 }
 0x25c   :  { %622 = vmatpush.msra.mxu2 %v3554_v42 }
 0x25d   :  { %623 = vmatmul.f32.vlgmr.msra.gmra.mxu2 %v3048_v19 }
 0x25e   :  { %785 = vmatpush.msrb.mxu2 %v3326_v0 }
 0x260   :  { %786 = vmatpush.msrb.mxu2 %v3332_v1 }
 0x262   :  { %861 = vmatpush.msra.mxu2 %v3348_v4 }
 0x264   :  { %862 = vmatpush.msra.mxu2 %v3360_v6 }
 0x266   :  { %863 = vmatpush.msra.mxu2 %v3427_v21 }
 0x268   :  { %864 = vmatpush.msra.mxu2 %v3450_v25 }
 0x26a   :  { %865 = vmatpush.msra.mxu2 %v3474_v29 }
 0x26c   :  { %866 = vmatpush.msra.mxu2 %v3491_v32 }
 0x26e   :  { %867 = vmatpush.msra.mxu2 %v3511_v35 }
 0x270   :  { %868 = vmatpush.msra.mxu2 %v3534_v39 }
 0x2c0   :  { %v233_v44 = vpop.f32.mrf.mxu2 }
 0x2c1   :  { %v234_v45 = vadd.f32 %v2860_v43, %v233_v44  ;;  %v3632_v43 = vld [vmem:[%s4515_s15 + $0x20] sm:$0xff] }
 0x2c2   :  { %v2859_v44 = vld [vmem:[%s4508_s14 + $0x3] ss:$0 sm:$0xff]  ;;  %669 = vmatpush.msra.mxu0 %v3632_v43 }
 0x2c3   :  { %2745 = vmatmul.msk.f32.vlgmr.msra.gmra.mxu1 %vm414_vm2, %v234_v45  ;;  %2747 = vmatmul.msk.f32.vlgmr.msrb.gmra.mxu3 %vm414_vm2, %v234_v45  ;;  %v3654_v56 = vadd.f32 %v2859_v44, %v351_v52  ;;  %v2861_v52 = vld [vmem:[%s4508_s14 + $0x2] ss:$0 sm:$0xff]  ;;  %v3671_v44 = vld [vmem:[%s4516_s17 + $0x18] sm:$0xff] }
 0x2c4   :  { %600 = vmatpush.msra.mxu1 %v3574_v46  ;;  %724 = vmatpush.msrb.mxu3 %v3337_v2 }
 0x2c5   :  { %670 = vmatpush.msra.mxu0 %v3641_v48  ;;  %4614 = vst [vmem:[#allocation19_spill] sm:$0xff] %v3654_v56 }
 0x2c6   :  { %601 = vmatpush.msra.mxu1 %v3582_v47  ;;  %725 = vmatpush.msrb.mxu3 %v3439_v23 }
 0x2c7   :  { %671 = vmatpush.msra.mxu0 %v3646_v49 }
 0x2c8   :  { %v321_v50 = vpop.f32.mrf.mxu2 }
 0x2cb   :  { %2749 = vmatmul.msk.f32.vlgmr.msrb.gmra.mxu1 %vm414_vm2, %v234_v45  ;;  %580 = vmatmul.f32.vlgmr.msra.gmra.mxu3 %v3048_v19 }
 0x2cc   :  { %800 = vmatpush.msra.mxu3 %v3343_v3  ;;  %697 = vmatpush.msrb.mxu1 %v3671_v44 }
 0x2ce   :  { %801 = vmatpush.msra.mxu3 %v3355_v5 }
 0x2d0   :  { %802 = vmatpush.msra.mxu3 %v3422_v20  ;;  %v459_v55 = vpop.f32.mrf.mxu2 }
 0x2d2   :  { %803 = vmatpush.msra.mxu3 %v3445_v24 }
 0x2d3   :  { %2750 = vmatmul.msk.f32.vlgmr.msra.gmra.mxu1 %vm414_vm2, %v234_v45 }
 0x2d4   :  { %804 = vmatpush.msra.mxu3 %v3464_v27 }
 0x2d6   :  { %805 = vmatpush.msra.mxu3 %v3486_v31 }
 0x2d8   :  { %806 = vmatpush.msra.mxu3 %v3506_v34 }
 0x2da   :  { %807 = vmatpush.msra.mxu3 %v3529_v38 }
 0x340   :  { %v435_v54 = vpop.f32.mrf.mxu1 }
 0x341   :  { %v438_v57 = vadd.f32 %v435_v54, %v3602_v53 }
 0x343   :  { %v462_v58 = vadd.f32 %v459_v55, %v438_v57  ;;  %v3652_v55 = vld [vmem:[%s4515_s15 + $0x8] sm:$0xff] }
 0x344   :  { %672 = vmatpush.msra.mxu0 %v3652_v55 }
 0x345   :  { %v2746_v61 = vmul.f32 -1.442695, %v462_v58  ;;  %v624_v58 = vpop.f32.mrf.mxu2 }
 0x346   :  { %v499_v62 = vpop.f32.mrf.mxu3 }
 0x347   :  { %2864 = vpow2.f32 %v2746_v61  ;;  %v502_v8 = vadd.f32 %v499_v62, %v3613_v60  ;;  %v3660_v61 = vld [vmem:[%s4515_s15] sm:$0xff] }
 0x348   :  { %v560_v9 = vpop.f32.mrf.mxu1  ;;  %4615 = vst [vmem:[#allocation20_spill] sm:$0xff] %v3660_v61  ;;  %673 = vmatpush.msra.mxu0 %v3660_v61 }
 0x349   :  { %v523_v19 = vadd.f32 %v520_v63, %v502_v8 }
 0x34a   :  { %846 = vmatpush.msrb.mxu0 %v3469_v28 }
 0x34b   :  { %v2748_v45 = vmul.f32 -1.442695, %v523_v19 }
 0x34c   :  { %847 = vmatpush.msrb.mxu0 %v3522_v37 }
 0x34d   :  { %v2865_v51 = vpop.eup %2864  ;;  %2866 = vpow2.f32 %v2748_v45  ;;  %v3676_v45 = vld [vmem:[%s4516_s17 + $0x10] sm:$0xff] }
 0x34e   :  { %v466_v54 = vadd.f32 1.0, %v2865_v51  ;;  %698 = vmatpush.msrb.mxu1 %v3676_v45  ;;  %v581_v60 = vpop.f32.mrf.mxu3 }
 0x350   :  { %2868 = vrcp.f32 %v466_v54  ;;  %v603_v57 = vpop.f32.mrf.mxu1  ;;  %v478_v27 = vand.u32 2147483648, %v466_v54  ;;  %vm472_vm4 = vweird.f32 %v466_v54 }
 0x351   :  { %v606_v62 = vadd.f32 %v603_v57, %v3654_v56 }
 0x352   :  { %v479_v24 = vor.u32 1.1754944e-38, %v478_v27 }
 0x353   :  { %v2867_v63 = vpop.eup %2866  ;;  %v627_v8 = vadd.f32 %v624_v58, %v606_v62  ;;  %v3683_v58 = vld [vmem:[%s4516_s17 + $0x8] sm:$0xff]  ;;  %v3686_v62 = vadd.f32 %v2861_v52, %v321_v50 }
 0x354   :  { %v527_v19 = vadd.f32 1.0, %v2867_v63  ;;  %699 = vmatpush.msrb.mxu1 %v3683_v58 }
 0x355   :  { %v2751_v51 = vmul.f32 -1.442695, %v627_v8  ;;  %4616 = vst [vmem:[#allocation21_spill] sm:$0xff] %v3686_v62  ;;  %v3692_v8 = vld [vmem:[%s4516_s17] sm:$0xff]  ;;  %v563_v53 = vadd.f32 %v560_v9, %v3686_v62  ;;  %v476_v9 = vand.u32 2147483647, %v466_v54 }
 0x356   :  { %v2869_v57 = vpop.eup %2868  ;;  %2870 = vrcp.f32 %v527_v19  ;;  %700 = vmatpush.msrb.mxu1 %v3692_v8  ;;  %v539_v62 = vand.u32 2147483648, %v527_v19  ;;  %vm533_vm7 = vweird.f32 %v527_v19 }
 0x357   :  { %v468_v63 = vmul.f32 %v2869_v57, %v466_v54  ;;  %2872 = vpow2.f32 %v2751_v51  ;;  %v584_v34 = vadd.f32 %v581_v60, %v563_v53  ;;  %vm473_vm3 = vweird.f32 %v2869_v57 }
 0x358   :  { %739 = vmatpush.msra.mxu1 %v3371_v11  ;;  %vm474_vm5 = vmor %vm472_vm4, %vm473_vm3  ;;  %vm477_vm8 = vcmp.eq.f32.partialorder %v476_v9, 8.507059e+37 }
 0x359   :  { %v469_v56 = vsub.f32 1.0, %v468_v63  ;;  %2874 = vtanh.f32 %v584_v34 }
 0x35a   :  { %740 = vmatpush.msra.mxu1 %v3377_v12 }
 0x35b   :  { %v470_v38 = vmul.f32 %v2869_v57, %v469_v56  ;;  %v537_v56 = vand.u32 2147483647, %v527_v19 }
 0x35c   :  { %v2871_v50 = vpop.eup %2870  ;;  %741 = vmatpush.msra.mxu1 %v3383_v13 }
 0x35d   :  { %v2873_v52 = vpop.eup %2872  ;;  %v529_v51 = vmul.f32 %v2871_v50, %v527_v19  ;;  %v471_v31 = vadd.f32 %v2869_v57, %v470_v38  ;;  %vm534_vm6 = vweird.f32 %v2871_v50  ;;  %vm538_vm10 = vcmp.eq.f32.partialorder %v537_v56, 8.507059e+37 }
 0x35e   :  { %v631_v37 = vadd.f32 1.0, %v2873_v52  ;;  %742 = vmatpush.msra.mxu1 %v3389_v14  ;;  %v540_v52 = vor.u32 1.1754944e-38, %v539_v62  ;;  %vm535_vm9 = vmor %vm533_vm7, %vm534_vm6 }
 0x35f   :  { %v530_v63 = vsub.f32 1.0, %v529_v51  ;;  %v475_v60 = vsel %vm474_vm5, %v2869_v57, %v471_v31  ;;  %v2875_v34 = vpop.eup %2874 }
 0x360   :  { %2876 = vrcp.f32 %v631_v37  ;;  %v480_v51 = vsel %vm477_vm8, %v479_v24, %v475_v60  ;;  %743 = vmatpush.msra.mxu1 %v3395_v15  ;;  %v643_v62 = vand.u32 2147483648, %v631_v37  ;;  %vm637_vm12 = vweird.f32 %v631_v37 }
 0x361   :  { %v531_v53 = vmul.f32 %v2871_v50, %v530_v63  ;;  %v648_v57 = vmul.f32 %v2875_v34, %v480_v51 }
 0x362   :  { %744 = vmatpush.msra.mxu1 %v3402_v16 }
 0x363   :  { %v532_v38 = vadd.f32 %v2871_v50, %v531_v53  ;;  %v644_v53 = vor.u32 1.1754944e-38, %v643_v62  ;;  %v4620_v62 = vld [vmem:[#allocation15_spill] sm:$0xff] }
 0x364   :  { %745 = vmatpush.msra.mxu1 %v3408_v17 }
 0x365   :  { %v536_v54 = vsel %vm535_vm9, %v2871_v50, %v532_v38  ;;  %v641_v50 = vand.u32 2147483647, %v631_v37 }
 0x366   :  { %v2877_v28 = vpop.eup %2876  ;;  %v541_v13 = vsel %vm538_vm10, %v540_v52, %v536_v54  ;;  %746 = vmatpush.msra.mxu1 %v3414_v18  ;;  %v3714_v52 = vld [vmem:[%s4514_s16] ss:$0 sm:$0xff] }
 0x367   :  { %v647_v31 = vmul.f32 0.0, %v541_v13  ;;  %v633_v27 = vmul.f32 %v2877_v28, %v631_v37  ;;  %vm638_vm11 = vweird.f32 %v2877_v28  ;;  %vm642_vm14 = vcmp.eq.f32.partialorder %v641_v50, 8.507059e+37  ;;  %v4622_v50 = vld [vmem:[#allocation13_spill] sm:$0xff] }
 0x368   :  { %vm639_vm13 = vmor %vm637_vm12, %vm638_vm11 }
 0x369   :  { %v3704_v19 = vadd.f32 %v648_v57, %v647_v31  ;;  %v634_v63 = vsub.f32 1.0, %v633_v27  ;;  %v4617_v57 = vld [vmem:[#allocation3_spill] sm:$0xff]  ;;  %v4618_v27 = vld [vmem:[#allocation12_spill] sm:$0xff] }
 0x36b   :  { %2878 = vtanh.f32 %v3704_v19  ;;  %v635_v24 = vmul.f32 %v2877_v28, %v634_v63  ;;  %v4619_v63 = vld [vmem:[#allocation10_spill] sm:$0xff] }
 0x36d   :  { %v636_v9 = vadd.f32 %v2877_v28, %v635_v24  ;;  %v4621_v24 = vld [vmem:[#allocation11_spill] sm:$0xff] }
 0x36f   :  { %v640_v13 = vsel %vm639_vm13, %v2877_v28, %v636_v9  ;;  %v3741_v28 = vld [vmem:[%s4517_s18] ss:$0 sm:$0xff] }
 0x370   :  { %v645_v60 = vsel %vm642_vm14, %v644_v53, %v640_v13  ;;  %v4623_v9 = vld [vmem:[#allocation14_spill] sm:$0xff]  ;;  %v4624_v53 = vld [vmem:[#allocation16_spill] sm:$0xff] }
 0x371   :  { %v2879_v56 = vpop.eup %2878 }
 0x372   :  { %v651_v38 = vmul.f32 %v2879_v56, %v645_v60 }
 0x374   :  { %2752 = vmatmul.msk.f32.vlgmr.msra.gmra.mxu0 %vm116_vm0, %v651_v38 }
 0x375   :  { %889 = vmatpush.msra.mxu0 %v3574_v46 }
 0x377   :  { %890 = vmatpush.msra.mxu0 %v3582_v47 }
 0x3f1   :  { %v675_v37 = vpop.f32.mrf.mxu0 }
 0x3f2   :  { %v676_v51 = vadd.f32 %v3714_v52, %v675_v37 }
 0x3f4   :  { %v678_v34 = vmax.f32 %v676_v51, 0.0 }
 0x3f6   :  { %2753 = vmatmul.msk.f32.vlgmr.msrb.gmra.mxu1 %vm148_vm1, %v678_v34 }
 0x3f7   :  { %904 = vmatpush.msrb.mxu1 %v3432_v22 }
 0x3f9   :  { %905 = vmatpush.msrb.mxu1 %v3457_v26 }
 0x3fb   :  { %906 = vmatpush.msrb.mxu1 %v3481_v30 }
 0x3fd   :  { %907 = vmatpush.msrb.mxu1 %v3498_v33 }
 0x3fe   :  { %2755 = vmatmul.msk.f32.vlgmr.msra.gmra.mxu1 %vm116_vm0, %v651_v38 }
 0x3ff   :  { %908 = vmatpush.msrb.mxu1 %v3516_v36 }
 0x401   :  { %909 = vmatpush.msrb.mxu1 %v3541_v40 }
 0x403   :  { %910 = vmatpush.msrb.mxu1 %v3548_v41 }
 0x405   :  { %911 = vmatpush.msrb.mxu1 %v3554_v42 }
 0x406   :  { %2763 = vmatmul.msk.f32.vlgmr.msrb.gmra.mxu1 %vm116_vm0, %v651_v38 }
 0x407   :  { %1068 = vmatpush.msra.mxu1 %v3326_v0 }
 0x409   :  { %1069 = vmatpush.msra.mxu1 %v3332_v1 }
 0x40b   :  { %1144 = vmatpush.msrb.mxu1 %v3348_v4 }
 0x40d   :  { %1145 = vmatpush.msrb.mxu1 %v3360_v6 }
 0x40f   :  { %1146 = vmatpush.msrb.mxu1 %v3427_v21 }
 0x411   :  { %1147 = vmatpush.msrb.mxu1 %v3450_v25 }
 0x413   :  { %1148 = vmatpush.msrb.mxu1 %v3474_v29 }
 0x415   :  { %1149 = vmatpush.msrb.mxu1 %v3491_v32 }
 0x417   :  { %1150 = vmatpush.msrb.mxu1 %v3511_v35 }
 0x419   :  { %1151 = vmatpush.msrb.mxu1 %v3534_v39 }
 0x473   :  { %v702_v54 = vpop.f32.mrf.mxu1 }
 0x474   :  { %v703_v31 = vadd.f32 %v3741_v28, %v702_v54 }
 0x476   :  { %706 = vst.msk [vmem:[%s4518_s19] sm:$0x3] %vm705_vm15, %v703_v31  ;;  %2754 = vmatmul.msk.f32.vlgmr.msrb.gmra.mxu3 %vm414_vm2, %v703_v31  ;;  %2757 = vmatmul.msk.f32.vlgmr.msrb.gmra.mxu2 %vm414_vm2, %v703_v31 }
 0x477   :  { %2760 = vmatmul.msk.f32.vlgmr.msrb.gmra.mxu0 %vm414_vm2, %v703_v31  ;;  %952 = vmatpush.msrb.mxu3 %v3611_v59 }
 0x478   :  { %980 = vmatpush.msrb.mxu0 %v3671_v44  ;;  %1007 = vmatpush.msrb.mxu2 %v3337_v2 }
 0x479   :  { %953 = vmatpush.msrb.mxu3 %v3619_v7 }
 0x47a   :  { %981 = vmatpush.msrb.mxu0 %v3676_v45  ;;  %1008 = vmatpush.msrb.mxu2 %v3439_v23 }
 0x47b   :  { %954 = vmatpush.msrb.mxu3 %v3626_v10  ;;  %v748_v13 = vpop.f32.mrf.mxu1 }
 0x47c   :  { %982 = vmatpush.msrb.mxu0 %v3683_v58 }
 0x47d   :  { %955 = vmatpush.msrb.mxu3 %v3632_v43 }
 0x47e   :  { %2758 = vmatmul.msk.f32.vlgmr.msra.gmra.mxu3 %vm116_vm0, %v651_v38  ;;  %2761 = vmatmul.msk.f32.vlgmr.msra.gmra.mxu2 %vm116_vm0, %v651_v38  ;;  %v4625_v38 = vld [vmem:[#allocation17_spill] sm:$0xff] }
 0x47f   :  { %2762 = vmatmul.msk.f32.vlgmr.msra.gmra.mxu0 %vm414_vm2, %v703_v31  ;;  %956 = vmatpush.msrb.mxu3 %v3641_v48  ;;  %v4626_v31 = vld [vmem:[#allocation19_spill] sm:$0xff] }
 0x480   :  { %983 = vmatpush.msrb.mxu0 %v3692_v8  ;;  %1083 = vmatpush.msra.mxu2 %v3343_v3 }
 0x481   :  { %957 = vmatpush.msrb.mxu3 %v3646_v49 }
 0x482   :  { %1022 = vmatpush.msra.mxu0 %v3371_v11  ;;  %1084 = vmatpush.msra.mxu2 %v3355_v5 }
 0x483   :  { %958 = vmatpush.msrb.mxu3 %v3652_v55 }
 0x484   :  { %1023 = vmatpush.msra.mxu0 %v3377_v12  ;;  %1085 = vmatpush.msra.mxu2 %v3422_v20 }
 0x485   :  { %959 = vmatpush.msrb.mxu3 %v3660_v61 }
 0x486   :  { %1024 = vmatpush.msra.mxu0 %v4617_v57  ;;  %1086 = vmatpush.msra.mxu2 %v4619_v63 }
 0x487   :  { %1129 = vmatpush.msra.mxu3 %v4618_v27 }
 0x488   :  { %1025 = vmatpush.msra.mxu0 %v3389_v14  ;;  %1087 = vmatpush.msra.mxu2 %v4621_v24 }
 0x489   :  { %1130 = vmatpush.msra.mxu3 %v4620_v62 }
 0x48a   :  { %1026 = vmatpush.msra.mxu0 %v3395_v15  ;;  %1088 = vmatpush.msra.mxu2 %v4622_v50  ;;  %v913_v15 = vpop.f32.mrf.mxu1 }
 0x48c   :  { %1027 = vmatpush.msra.mxu0 %v3402_v16  ;;  %1089 = vmatpush.msra.mxu2 %v4623_v9  ;;  %v4627_v9 = vld [vmem:[#allocation18_spill] sm:$0xff] }
 0x48e   :  { %1028 = vmatpush.msra.mxu0 %v3408_v17  ;;  %1090 = vmatpush.msra.mxu2 %v4624_v53 }
 0x490   :  { %1029 = vmatpush.msra.mxu0 %v3414_v18 }
 0x4f4   :  { %v849_v60 = vpop.f32.mrf.mxu0 }
 0x4f9   :  { %v727_v56 = vpop.f32.mrf.mxu3  ;;  %v788_v54 = vpop.f32.mrf.mxu2 }
 0x4fa   :  { %v730_v37 = vadd.f32 %v727_v56, %v4625_v38  ;;  %v791_v17 = vadd.f32 %v788_v54, %v4627_v9 }
 0x4fc   :  { %v751_v51 = vadd.f32 %v748_v13, %v730_v37  ;;  %v892_v34 = vpop.f32.mrf.mxu0 }
 0x4fd   :  { %v895_v50 = vadd.f32 %v892_v34, %v4626_v31 }
 0x4fe   :  { %v2756_v16 = vmul.f32 -1.442695, %v751_v51  ;;  %v4628_v51 = vld [vmem:[#allocation21_spill] sm:$0xff] }
 0x4ff   :  { %v916_v24 = vadd.f32 %v913_v15, %v895_v50 }
 0x500   :  { %2880 = vpow2.f32 %v2756_v16 }
 0x501   :  { %v2764_v62 = vmul.f32 -1.442695, %v916_v24  ;;  %v809_v53 = vpop.f32.mrf.mxu3  ;;  %v870_v50 = vpop.f32.mrf.mxu2  ;;  %v852_v24 = vadd.f32 %v849_v60, %v4628_v51 }
 0x502   :  { %v812_v14 = vadd.f32 %v809_v53, %v791_v17 }
 0x503   :  { %2882 = vpow2.f32 %v2764_v62 }
 0x504   :  { %v2759_v18 = vmul.f32 -1.442695, %v812_v14  ;;  %v873_v14 = vadd.f32 %v870_v50, %v852_v24 }
 0x506   :  { %v2881_v63 = vpop.eup %2880  ;;  %2884 = vpow2.f32 %v2759_v18 }
 0x507   :  { %v755_v27 = vadd.f32 1.0, %v2881_v63 }
 0x509   :  { %v2883_v56 = vpop.eup %2882  ;;  %2886 = vrcp.f32 %v755_v27  ;;  %v767_v31 = vand.u32 2147483648, %v755_v27  ;;  %vm761_vm4 = vweird.f32 %v755_v27 }
 0x50a   :  { %v920_v13 = vadd.f32 1.0, %v2883_v56 }
 0x50b   :  { %v768_v51 = vor.u32 1.1754944e-38, %v767_v31 }
 0x50c   :  { %v2885_v37 = vpop.eup %2884  ;;  %2888 = vrcp.f32 %v920_v13  ;;  %vm926_vm12 = vweird.f32 %v920_v13 }
 0x50d   :  { %v816_v38 = vadd.f32 1.0, %v2885_v37  ;;  %v765_v37 = vand.u32 2147483647, %v755_v27 }
 0x50f   :  { %v2887_v34 = vpop.eup %2886  ;;  %2890 = vrcp.f32 %v816_v38  ;;  %v828_v9 = vand.u32 2147483648, %v816_v38  ;;  %v826_v61 = vand.u32 2147483647, %v816_v38  ;;  %vm822_vm7 = vweird.f32 %v816_v38 }
 0x510   :  { %v757_v15 = vmul.f32 %v2887_v34, %v755_v27  ;;  %vm762_vm3 = vweird.f32 %v2887_v34  ;;  %2892 = vtanh.f32 %v873_v14  ;;  %vm766_vm8 = vcmp.eq.f32.partialorder %v765_v37, 8.507059e+37  ;;  %v4645_v37 = vld [vmem:[#allocation17_spill] sm:$0xff] }
 0x511   :  { %vm763_vm5 = vmor %vm761_vm4, %vm762_vm3  ;;  %v829_v50 = vor.u32 1.1754944e-38, %v828_v9  ;;  %vm827_vm10 = vcmp.eq.f32.partialorder %v826_v61, 8.507059e+37 }
 0x512   :  { %v758_v16 = vsub.f32 1.0, %v757_v15  ;;  %v2889_v54 = vpop.eup %2888 }
 0x513   :  { %v922_v63 = vmul.f32 %v2889_v54, %v920_v13  ;;  %vm927_vm11 = vweird.f32 %v2889_v54 }
 0x514   :  { %v759_v17 = vmul.f32 %v2887_v34, %v758_v16  ;;  %vm928_vm13 = vmor %vm926_vm12, %vm927_vm11 }
 0x515   :  { %v2891_v62 = vpop.eup %2890  ;;  %v923_v60 = vsub.f32 1.0, %v922_v63 }
 0x516   :  { %v818_v53 = vmul.f32 %v2891_v62, %v816_v38  ;;  %v760_v18 = vadd.f32 %v2887_v34, %v759_v17  ;;  %vm823_vm6 = vweird.f32 %v2891_v62 }
 0x517   :  { %vm824_vm9 = vmor %vm822_vm7, %vm823_vm6  ;;  %v924_v20 = vmul.f32 %v2889_v54, %v923_v60 }
 0x518   :  { %v819_v56 = vsub.f32 1.0, %v818_v53  ;;  %v764_v15 = vsel %vm763_vm5, %v2887_v34, %v760_v18  ;;  %v2893_v53 = vpop.eup %2892  ;;  %v932_v18 = vand.u32 2147483648, %v920_v13 }
 0x519   :  { %v769_v24 = vsel %vm766_vm8, %v768_v51, %v764_v15  ;;  %v925_v34 = vadd.f32 %v2889_v54, %v924_v20 }
 0x51a   :  { %v820_v57 = vmul.f32 %v2891_v62, %v819_v56  ;;  %v937_v14 = vmul.f32 %v2893_v53, %v769_v24  ;;  %v933_v38 = vor.u32 1.1754944e-38, %v932_v18  ;;  %v4647_v18 = vld [vmem:[#allocation19_spill] sm:$0xff] }
 0x51b   :  { %v929_v9 = vsel %vm928_vm13, %v2889_v54, %v925_v34  ;;  %v4644_v54 = vld [vmem:[#allocation8_spill] sm:$0xff] }
 0x51c   :  { %v821_v16 = vadd.f32 %v2891_v62, %v820_v57  ;;  %v930_v57 = vand.u32 2147483647, %v920_v13  ;;  %v4643_v13 = vld [vmem:[#allocation16_spill] sm:$0xff] }
 0x51e   :  { %v825_v17 = vsel %vm824_vm9, %v2891_v62, %v821_v16  ;;  %vm931_vm14 = vcmp.eq.f32.partialorder %v930_v57, 8.507059e+37 }
 0x51f   :  { %v830_v27 = vsel %vm827_vm10, %v829_v50, %v825_v17  ;;  %v934_v31 = vsel %vm931_vm14, %v933_v38, %v929_v9  ;;  %v4646_v17 = vld [vmem:[#allocation18_spill] sm:$0xff] }
 0x520   :  { %v936_v12 = vmul.f32 %v830_v27, %v3704_v19 }
 0x522   :  { %v3791_v56 = vadd.f32 %v937_v14, %v936_v12 }
 0x524   :  { %2894 = vtanh.f32 %v3791_v56 }
 0x52a   :  { %v2895_v61 = vpop.eup %2894 }
 0x52b   :  { %v940_v51 = vmul.f32 %v2895_v61, %v934_v31 }
 0x52d   :  { %2765 = vmatmul.msk.f32.vlgmr.msrb.gmra.mxu3 %vm116_vm0, %v940_v51 }
 0x52e   :  { %1172 = vmatpush.msrb.mxu3 %v3574_v46 }
 0x530   :  { %1173 = vmatpush.msrb.mxu3 %v3582_v47 }
 0x5b0   :  { %v961_v12 = vpop.f32.mrf.mxu3 }
 0x5b1   :  { %v962_v20 = vadd.f32 %v3714_v52, %v961_v12 }
 0x5b3   :  { %v964_v19 = vmax.f32 %v962_v20, 0.0 }
 0x5b5   :  { %2766 = vmatmul.msk.f32.vlgmr.msrb.gmra.mxu0 %vm148_vm1, %v964_v19 }
 0x5b6   :  { %1187 = vmatpush.msrb.mxu0 %v3432_v22 }
 0x5b8   :  { %1188 = vmatpush.msrb.mxu0 %v3457_v26  ;;  %v4639_v26 = vld [vmem:[#allocation13_spill] sm:$0xff] }
 0x5ba   :  { %1189 = vmatpush.msrb.mxu0 %v3481_v30 }
 0x5bc   :  { %1190 = vmatpush.msrb.mxu0 %v3498_v33 }
 0x5bd   :  { %2769 = vmatmul.msk.f32.vlgmr.msra.gmra.mxu0 %vm116_vm0, %v940_v51 }
 0x5be   :  { %1191 = vmatpush.msrb.mxu0 %v3516_v36 }
 0x5c0   :  { %1192 = vmatpush.msrb.mxu0 %v3541_v40 }
 0x5c2   :  { %1193 = vmatpush.msrb.mxu0 %v3548_v41 }
 0x5c4   :  { %1194 = vmatpush.msrb.mxu0 %v3554_v42 }
 0x5c5   :  { %2777 = vmatmul.msk.f32.vlgmr.msrb.gmra.mxu0 %vm116_vm0, %v940_v51 }
 0x5c6   :  { %1351 = vmatpush.msra.mxu0 %v3326_v0 }
 0x5c8   :  { %1352 = vmatpush.msra.mxu0 %v3332_v1  ;;  %v4629_v1 = vld [vmem:[#allocation2_spill] sm:$0xff] }
 0x5ca   :  { %1427 = vmatpush.msrb.mxu0 %v3348_v4  ;;  %v4631_v4 = vld [vmem:[#allocation20_spill] sm:$0xff] }
 0x5cc   :  { %1428 = vmatpush.msrb.mxu0 %v3360_v6  ;;  %v4632_v6 = vld [vmem:[#allocation3_spill] sm:$0xff] }
 0x5ce   :  { %1429 = vmatpush.msrb.mxu0 %v3427_v21  ;;  %v4633_v21 = vld [vmem:[#allocation12_spill] sm:$0xff] }
 0x5d0   :  { %1430 = vmatpush.msrb.mxu0 %v3450_v25  ;;  %v4636_v25 = vld [vmem:[#allocation15_spill] sm:$0xff] }
 0x5d2   :  { %1431 = vmatpush.msrb.mxu0 %v3474_v29  ;;  %v4640_v29 = vld [vmem:[#allocation6_spill] sm:$0xff] }
 0x5d4   :  { %1432 = vmatpush.msrb.mxu0 %v3491_v32  ;;  %v4641_v32 = vld [vmem:[#allocation14_spill] sm:$0xff] }
 0x5d6   :  { %1433 = vmatpush.msrb.mxu0 %v3511_v35  ;;  %v4642_v35 = vld [vmem:[#allocation7_spill] sm:$0xff] }
 0x5d8   :  { %1434 = vmatpush.msrb.mxu0 %v3534_v39 }
 0x632   :  { %v985_v22 = vpop.f32.mrf.mxu0 }
 0x633   :  { %v986_v0 = vadd.f32 %v3741_v28, %v985_v22 }
 0x635   :  { %2767 = vst.msk [vmem:[%s4518_s19 + $0x2] sm:$0x3] %vm705_vm15, %v986_v0  ;;  %2768 = vmatmul.msk.f32.vlgmr.msrb.gmra.mxu2 %vm414_vm2, %v986_v0  ;;  %2771 = vmatmul.msk.f32.vlgmr.msra.gmra.mxu1 %vm414_vm2, %v986_v0 }
 0x636   :  { %2774 = vmatmul.msk.f32.vlgmr.msra.gmra.mxu3 %vm414_vm2, %v986_v0  ;;  %1235 = vmatpush.msrb.mxu2 %v3611_v59 }
 0x637   :  { %1263 = vmatpush.msra.mxu3 %v3671_v44  ;;  %1290 = vmatpush.msra.mxu1 %v3337_v2  ;;  %v4630_v2 = vld [vmem:[#allocation9_spill] sm:$0xff] }
 0x638   :  { %1236 = vmatpush.msrb.mxu2 %v3619_v7 }
 0x639   :  { %1264 = vmatpush.msra.mxu3 %v3676_v45  ;;  %1291 = vmatpush.msra.mxu1 %v3439_v23  ;;  %v4634_v23 = vld [vmem:[#allocation10_spill] sm:$0xff] }
 0x63a   :  { %1237 = vmatpush.msrb.mxu2 %v3626_v10  ;;  %v1031_v63 = vpop.f32.mrf.mxu0 }
 0x63b   :  { %1265 = vmatpush.msra.mxu3 %v3683_v58 }
 0x63c   :  { %1238 = vmatpush.msrb.mxu2 %v3632_v43 }
 0x63d   :  { %2772 = vmatmul.msk.f32.vlgmr.msra.gmra.mxu2 %vm116_vm0, %v940_v51  ;;  %2775 = vmatmul.msk.f32.vlgmr.msrb.gmra.mxu1 %vm116_vm0, %v940_v51 }
 0x63e   :  { %2776 = vmatmul.msk.f32.vlgmr.msrb.gmra.mxu3 %vm414_vm2, %v986_v0  ;;  %1239 = vmatpush.msrb.mxu2 %v3641_v48 }
 0x63f   :  { %1266 = vmatpush.msra.mxu3 %v3692_v8  ;;  %1366 = vmatpush.msrb.mxu1 %v3343_v3  ;;  %v4635_v3 = vld [vmem:[#allocation4_spill] sm:$0xff] }
 0x640   :  { %1240 = vmatpush.msrb.mxu2 %v3646_v49 }
 0x641   :  { %1305 = vmatpush.msrb.mxu3 %v3371_v11  ;;  %1367 = vmatpush.msrb.mxu1 %v3355_v5  ;;  %v4637_v11 = vld [vmem:[#allocation11_spill] sm:$0xff]  ;;  %v4638_v5 = vld [vmem:[#allocation5_spill] sm:$0xff] }
 0x642   :  { %1241 = vmatpush.msrb.mxu2 %v3652_v55  ;;  %v1196_v9 = vpop.f32.mrf.mxu0 }
 0x643   :  { %1306 = vmatpush.msrb.mxu3 %v4629_v1  ;;  %1368 = vmatpush.msrb.mxu1 %v4630_v2  ;;  %v4648_v2 = vld [vmem:[#allocation21_spill] sm:$0xff] }
 0x644   :  { %1242 = vmatpush.msrb.mxu2 %v4631_v4 }
 0x645   :  { %1307 = vmatpush.msrb.mxu3 %v4632_v6  ;;  %1369 = vmatpush.msrb.mxu1 %v4634_v23 }
 0x646   :  { %1412 = vmatpush.msra.mxu2 %v4633_v21 }
 0x647   :  { %1308 = vmatpush.msrb.mxu3 %v4635_v3  ;;  %1370 = vmatpush.msrb.mxu1 %v4637_v11 }
 0x648   :  { %1413 = vmatpush.msra.mxu2 %v4636_v25 }
 0x649   :  { %1309 = vmatpush.msrb.mxu3 %v4638_v5  ;;  %1371 = vmatpush.msrb.mxu1 %v4639_v26 }
 0x64b   :  { %1310 = vmatpush.msrb.mxu3 %v4640_v29  ;;  %1372 = vmatpush.msrb.mxu1 %v4641_v32 }
 0x64d   :  { %1311 = vmatpush.msrb.mxu3 %v4642_v35  ;;  %1373 = vmatpush.msrb.mxu1 %v4643_v13 }
 0x64f   :  { %1312 = vmatpush.msrb.mxu3 %v4644_v54 }
 0x6b2   :  { %v1071_v50 = vpop.f32.mrf.mxu1 }
 0x6b3   :  { %v1074_v53 = vadd.f32 %v1071_v50, %v4646_v17 }
 0x6b8   :  { %v1010_v62 = vpop.f32.mrf.mxu2 }
 0x6b9   :  { %v1013_v15 = vadd.f32 %v1010_v62, %v4645_v37  ;;  %v1132_v60 = vpop.f32.mrf.mxu3 }
 0x6ba   :  { %v1135_v6 = vadd.f32 %v1132_v60, %v4648_v2  ;;  %v1153_v3 = vpop.f32.mrf.mxu1 }
 0x6bb   :  { %v1034_v16 = vadd.f32 %v1031_v63, %v1013_v15 }
 0x6bc   :  { %v1156_v5 = vadd.f32 %v1153_v3, %v1135_v6 }
 0x6bd   :  { %v2770_v24 = vmul.f32 -1.442695, %v1034_v16 }
 0x6bf   :  { %2896 = vpow2.f32 %v2770_v24 }
 0x6c0   :  { %v1092_v27 = vpop.f32.mrf.mxu2 }
 0x6c1   :  { %v1095_v14 = vadd.f32 %v1092_v27, %v1074_v53  ;;  %v1175_v34 = vpop.f32.mrf.mxu3 }
 0x6c2   :  { %v1178_v57 = vadd.f32 %v1175_v34, %v4647_v18 }
 0x6c3   :  { %v2773_v38 = vmul.f32 -1.442695, %v1095_v14 }
 0x6c4   :  { %v1199_v61 = vadd.f32 %v1196_v9, %v1178_v57 }
 0x6c5   :  { %v2897_v31 = vpop.eup %2896  ;;  %2898 = vpow2.f32 %v2773_v38 }
 0x6c6   :  { %v1038_v51 = vadd.f32 1.0, %v2897_v31  ;;  %v2778_v12 = vmul.f32 -1.442695, %v1199_v61 }
 0x6c8   :  { %2900 = vrcp.f32 %v1038_v51  ;;  %v1050_v32 = vand.u32 2147483648, %v1038_v51  ;;  %vm1044_vm4 = vweird.f32 %v1038_v51  ;;  %v1048_v35 = vand.u32 2147483647, %v1038_v51 }
 0x6c9   :  { %2902 = vpow2.f32 %v2778_v12 }
 0x6ca   :  { %v1051_v50 = vor.u32 1.1754944e-38, %v1050_v32  ;;  %vm1049_vm7 = vcmp.eq.f32.partialorder %v1048_v35, 8.507059e+37  ;;  %v3971_v32 = vld [vmem:[%s4512_s12] sm:$0xff]  ;;  %v4060_v35 = vld [vmem:[%s4513_s13 + $0x50] sm:$0xff] }
 0x6cb   :  { %v2899_v20 = vpop.eup %2898  ;;  %4658 = vst [vmem:[#allocation5_spill] sm:$0xff] %v4060_v35 }
 0x6cc   :  { %v1099_v19 = vadd.f32 1.0, %v2899_v20 }
 0x6ce   :  { %v2901_v22 = vpop.eup %2900  ;;  %2904 = vrcp.f32 %v1099_v19  ;;  %v1109_v62 = vand.u32 2147483647, %v1099_v19  ;;  %v1111_v63 = vand.u32 2147483648, %v1099_v19  ;;  %vm1105_vm8 = vweird.f32 %v1099_v19 }
 0x6cf   :  { %v2903_v0 = vpop.eup %2902  ;;  %v1040_v1 = vmul.f32 %v2901_v22, %v1038_v51  ;;  %vm1045_vm3 = vweird.f32 %v2901_v22 }
 0x6d0   :  { %v1203_v21 = vadd.f32 1.0, %v2903_v0  ;;  %vm1046_vm5 = vmor %vm1044_vm4, %vm1045_vm3  ;;  %v1112_v14 = vor.u32 1.1754944e-38, %v1111_v63  ;;  %vm1110_vm10 = vcmp.eq.f32.partialorder %v1109_v62, 8.507059e+37  ;;  %v4078_v62 = vld [vmem:[%s4513_s13 + $0x8] sm:$0xff]  ;;  %v4084_v63 = vld [vmem:[%s4513_s13 + $0x40] sm:$0xff] }
 0x6d1   :  { %v1041_v23 = vsub.f32 1.0, %v1040_v1  ;;  %4661 = vst [vmem:[#allocation14_spill] sm:$0xff] %v4078_v62 }
 0x6d2   :  { %2906 = vrcp.f32 %v1203_v21  ;;  %v1215_v20 = vand.u32 2147483648, %v1203_v21  ;;  %vm1209_vm12 = vweird.f32 %v1203_v21  ;;  %4662 = vst [vmem:[#allocation7_spill] sm:$0xff] %v4084_v63 }
 0x6d3   :  { %v1042_v25 = vmul.f32 %v2901_v22, %v1041_v23  ;;  %2908 = vtanh.f32 %v1156_v5  ;;  %v3946_v5 = vld [vmem:[%s4513_s13 + $0x88] sm:$0xff] }
 0x6d4   :  { %v2905_v11 = vpop.eup %2904  ;;  %v1216_v0 = vor.u32 1.1754944e-38, %v1215_v20 }
 0x6d5   :  { %v1043_v26 = vadd.f32 %v2901_v22, %v1042_v25  ;;  %v1101_v29 = vmul.f32 %v2905_v11, %v1099_v19  ;;  %vm1106_vm6 = vweird.f32 %v2905_v11  ;;  %v1213_v19 = vand.u32 2147483647, %v1203_v21 }
 0x6d6   :  { %vm1107_vm9 = vmor %vm1105_vm8, %vm1106_vm6 }
 0x6d7   :  { %v1102_v13 = vsub.f32 1.0, %v1101_v29  ;;  %v1047_v15 = vsel %vm1046_vm5, %v2901_v22, %v1043_v26  ;;  %vm1214_vm14 = vcmp.eq.f32.partialorder %v1213_v19, 8.507059e+37 }
 0x6d8   :  { %v2907_v54 = vpop.eup %2906  ;;  %v1052_v27 = vsel %vm1049_vm7, %v1051_v50, %v1047_v15  ;;  %v4090_v15 = vld [vmem:[%s4513_s13] sm:$0xff] }
 0x6d9   :  { %v1103_v60 = vmul.f32 %v2905_v11, %v1102_v13  ;;  %v1205_v16 = vmul.f32 %v2907_v54, %v1203_v21  ;;  %v2909_v57 = vpop.eup %2908  ;;  %vm1210_vm11 = vweird.f32 %v2907_v54  ;;  %v3878_v21 = vld [vmem:[%s4513_s13 + $0xf8] sm:$0xff]  ;;  %v4066_v13 = vld [vmem:[%s4513_s13 + $0x10] sm:$0xff]  ;;  %4663 = vst [vmem:[#allocation16_spill] sm:$0xff] %v4090_v15 }
 0x6da   :  { %v1220_v61 = vmul.f32 %v2909_v57, %v1052_v27  ;;  %vm1211_vm13 = vmor %vm1209_vm12, %vm1210_vm11  ;;  %4659 = vst [vmem:[#allocation13_spill] sm:$0xff] %v4066_v13 }
 0x6db   :  { %v1104_v24 = vadd.f32 %v2905_v11, %v1103_v60  ;;  %v1206_v53 = vsub.f32 1.0, %v1205_v16 }
 0x6dd   :  { %v1108_v34 = vsel %vm1107_vm9, %v2905_v11, %v1104_v24  ;;  %v1207_v38 = vmul.f32 %v2907_v54, %v1206_v53  ;;  %v3884_v11 = vld [vmem:[%s4513_s13 + $0xf0] sm:$0xff] }
 0x6de   :  { %v1113_v9 = vsel %vm1110_vm10, %v1112_v14, %v1108_v34 }
 0x6df   :  { %v1219_v31 = vmul.f32 %v1113_v9, %v3791_v56  ;;  %v1208_v12 = vadd.f32 %v2907_v54, %v1207_v38 }
 0x6e1   :  { %v3867_v51 = vadd.f32 %v1220_v61, %v1219_v31  ;;  %v1212_v22 = vsel %vm1211_vm13, %v2907_v54, %v1208_v12  ;;  %v4072_v54 = vld [vmem:[%s4513_s13 + $0x48] sm:$0xff] }
 0x6e2   :  { %v1217_v6 = vsel %vm1214_vm14, %v1216_v0, %v1212_v22  ;;  %4660 = vst [vmem:[#allocation6_spill] sm:$0xff] %v4072_v54 }
 0x6e3   :  { %2910 = vtanh.f32 %v3867_v51 }
 0x6e9   :  { %v2911_v1 = vpop.eup %2910 }
 0x6ea   :  { %v1223_v23 = vmul.f32 %v2911_v1, %v1217_v6 }
 0x6ec   :  { %2779 = vmatmul.msk.f32.vlgmr.msrb.gmra.mxu2 %vm116_vm0, %v1223_v23 }
 0x6ed   :  { %1455 = vmatpush.msrb.mxu2 %v3574_v46  ;;  %v3898_v46 = vld [vmem:[%s4512_s12 + $0x18] sm:$0xff] }
 0x6ef   :  { %1456 = vmatpush.msrb.mxu2 %v3582_v47  ;;  %v3940_v47 = vld [vmem:[%s4513_s13 + $0x90] sm:$0xff] }
 0x76f   :  { %v1244_v56 = vpop.f32.mrf.mxu2 }
 0x770   :  { %v1245_v3 = vadd.f32 %v3714_v52, %v1244_v56 }
 0x772   :  { %v1247_v25 = vmax.f32 %v1245_v3, 0.0 }
 0x774   :  { %2780 = vmatmul.msk.f32.vlgmr.msra.gmra.mxu3 %vm148_vm1, %v1247_v25 }
 0x775   :  { %1470 = vmatpush.msra.mxu3 %v3878_v21 }
 0x777   :  { %1471 = vmatpush.msra.mxu3 %v3884_v11 }
 0x779   :  { %1472 = vmatpush.msra.mxu3 %v3481_v30  ;;  %v3904_v30 = vld [vmem:[%s4512_s12 + $0x10] sm:$0xff] }
 0x77b   :  { %1473 = vmatpush.msra.mxu3 %v3498_v33  ;;  %v3910_v33 = vld [vmem:[%s4513_s13 + $0xb8] sm:$0xff] }
 0x77c   :  { %2783 = vmatmul.msk.f32.vlgmr.msrb.gmra.mxu3 %vm116_vm0, %v1223_v23 }
 0x77d   :  { %1474 = vmatpush.msra.mxu3 %v3516_v36  ;;  %v3916_v36 = vld [vmem:[%s4513_s13 + $0xb0] sm:$0xff] }
 0x77f   :  { %1475 = vmatpush.msra.mxu3 %v3541_v40  ;;  %v3922_v40 = vld [vmem:[%s4513_s13 + $0xa8] sm:$0xff] }
 0x781   :  { %1476 = vmatpush.msra.mxu3 %v3548_v41  ;;  %v3928_v41 = vld [vmem:[%s4513_s13 + $0xa0] sm:$0xff] }
 0x783   :  { %1477 = vmatpush.msra.mxu3 %v3554_v42  ;;  %v3934_v42 = vld [vmem:[%s4513_s13 + $0x98] sm:$0xff] }
 0x784   :  { %2791 = vmatmul.msk.f32.vlgmr.msra.gmra.mxu3 %vm116_vm0, %v1223_v23 }
 0x785   :  { %1634 = vmatpush.msrb.mxu3 %v3898_v46 }
 0x787   :  { %1635 = vmatpush.msrb.mxu3 %v3904_v30 }
 0x789   :  { %1710 = vmatpush.msra.mxu3 %v3910_v33 }
 0x78b   :  { %1711 = vmatpush.msra.mxu3 %v3916_v36 }
 0x78d   :  { %1712 = vmatpush.msra.mxu3 %v3922_v40 }
 0x78f   :  { %1713 = vmatpush.msra.mxu3 %v3928_v41 }
 0x791   :  { %1714 = vmatpush.msra.mxu3 %v3934_v42 }
 0x793   :  { %1715 = vmatpush.msra.mxu3 %v3940_v47 }
 0x795   :  { %1716 = vmatpush.msra.mxu3 %v3946_v5 }
 0x797   :  { %1717 = vmatpush.msra.mxu3 %v3534_v39  ;;  %v3963_v39 = vld [vmem:[%s4512_s12 + $0x8] sm:$0xff] }
 0x7f7   :  { %v1268_v26 = vpop.f32.mrf.mxu3 }
 0x7f8   :  { %v1269_v29 = vadd.f32 %v3741_v28, %v1268_v26 }
 0x7fa   :  { %2781 = vst.msk [vmem:[%s4518_s19 + $0x4] sm:$0x3] %vm705_vm15, %v1269_v29  ;;  %2782 = vmatmul.msk.f32.vlgmr.msra.gmra.mxu1 %vm414_vm2, %v1269_v29  ;;  %2785 = vmatmul.msk.f32.vlgmr.msra.gmra.mxu0 %vm414_vm2, %v1269_v29 }
 0x7fb   :  { %2788 = vmatmul.msk.f32.vlgmr.msra.gmra.mxu2 %vm414_vm2, %v1269_v29  ;;  %1518 = vmatpush.msra.mxu1 %v3611_v59  ;;  %v3985_v59 = vld [vmem:[%s4513_s13 + $0x78] sm:$0xff] }
 0x7fc   :  { %1546 = vmatpush.msra.mxu2 %v3671_v44  ;;  %1573 = vmatpush.msra.mxu0 %v3963_v39  ;;  %v4030_v44 = vld [vmem:[%s4513_s13 + $0x60] sm:$0xff] }
 0x7fd   :  { %1519 = vmatpush.msra.mxu1 %v3619_v7  ;;  %v3992_v7 = vld [vmem:[%s4513_s13 + $0x38] sm:$0xff]  ;;  %4653 = vst [vmem:[#allocation12_spill] sm:$0xff] %v4030_v44 }
 0x7fe   :  { %1547 = vmatpush.msra.mxu2 %v3676_v45  ;;  %1574 = vmatpush.msra.mxu0 %v3971_v32  ;;  %v4036_v45 = vld [vmem:[%s4513_s13 + $0x20] sm:$0xff] }
 0x7ff   :  { %1520 = vmatpush.msra.mxu1 %v3626_v10  ;;  %v3998_v10 = vld [vmem:[%s4513_s13 + $0x70] sm:$0xff]  ;;  %4654 = vst [vmem:[#allocation10_spill] sm:$0xff] %v4036_v45  ;;  %v1314_v50 = vpop.f32.mrf.mxu3 }
 0x800   :  { %1548 = vmatpush.msra.mxu2 %v3683_v58  ;;  %v4042_v58 = vld [vmem:[%s4512_s12 + $0x20] sm:$0xff] }
 0x801   :  { %1521 = vmatpush.msra.mxu1 %v3632_v43  ;;  %v4005_v43 = vld [vmem:[%s4513_s13 + $0x30] sm:$0xff]  ;;  %4655 = vst [vmem:[#allocation4_spill] sm:$0xff] %v4042_v58 }
 0x802   :  { %2786 = vmatmul.msk.f32.vlgmr.msrb.gmra.mxu1 %vm116_vm0, %v1223_v23  ;;  %2789 = vmatmul.msk.f32.vlgmr.msrb.gmra.mxu0 %vm116_vm0, %v1223_v23  ;;  %4649 = vst [vmem:[#allocation2_spill] sm:$0xff] %v4005_v43 }
 0x803   :  { %2790 = vmatmul.msk.f32.vlgmr.msrb.gmra.mxu2 %vm414_vm2, %v1269_v29  ;;  %1522 = vmatpush.msra.mxu1 %v3641_v48  ;;  %v4011_v48 = vld [vmem:[%s4513_s13 + $0x68] sm:$0xff] }
 0x804   :  { %1549 = vmatpush.msra.mxu2 %v3692_v8  ;;  %1649 = vmatpush.msrb.mxu0 %v3985_v59  ;;  %4650 = vst [vmem:[#allocation9_spill] sm:$0xff] %v4011_v48  ;;  %v4048_v8 = vld [vmem:[%s4513_s13 + $0x58] sm:$0xff] }
 0x805   :  { %1523 = vmatpush.msra.mxu1 %v3646_v49  ;;  %v4018_v49 = vld [vmem:[%s4513_s13 + $0x28] sm:$0xff]  ;;  %4656 = vst [vmem:[#allocation15_spill] sm:$0xff] %v4048_v8 }
 0x806   :  { %1588 = vmatpush.msrb.mxu2 %v3992_v7  ;;  %1650 = vmatpush.msrb.mxu0 %v3998_v10  ;;  %4651 = vst [vmem:[#allocation20_spill] sm:$0xff] %v4018_v49 }
 0x807   :  { %1524 = vmatpush.msra.mxu1 %v3652_v55  ;;  %v4024_v55 = vld [vmem:[%s4512_s12 + $0x28] sm:$0xff]  ;;  %v1479_v19 = vpop.f32.mrf.mxu3 }
 0x808   :  { %1589 = vmatpush.msrb.mxu2 %v4005_v43  ;;  %1651 = vmatpush.msrb.mxu0 %v4011_v48  ;;  %4652 = vst [vmem:[#allocation3_spill] sm:$0xff] %v4024_v55 }
 0x809   :  { %1525 = vmatpush.msra.mxu1 %v4631_v4  ;;  %v4054_v4 = vld [vmem:[%s4513_s13 + $0x18] sm:$0xff] }
 0x80a   :  { %1590 = vmatpush.msrb.mxu2 %v4018_v49  ;;  %1652 = vmatpush.msrb.mxu0 %v4030_v44  ;;  %4657 = vst [vmem:[#allocation11_spill] sm:$0xff] %v4054_v4 }
 0x80b   :  { %1695 = vmatpush.msrb.mxu1 %v4024_v55 }
 0x80c   :  { %1591 = vmatpush.msrb.mxu2 %v4036_v45  ;;  %1653 = vmatpush.msrb.mxu0 %v4048_v8 }
 0x80d   :  { %1696 = vmatpush.msrb.mxu1 %v4042_v58 }
 0x80e   :  { %1592 = vmatpush.msrb.mxu2 %v4054_v4  ;;  %1654 = vmatpush.msrb.mxu0 %v4060_v35 }
 0x810   :  { %1593 = vmatpush.msrb.mxu2 %v4066_v13  ;;  %1655 = vmatpush.msrb.mxu0 %v4072_v54 }
 0x812   :  { %1594 = vmatpush.msrb.mxu2 %v4078_v62  ;;  %1656 = vmatpush.msrb.mxu0 %v4084_v63 }
 0x814   :  { %1595 = vmatpush.msrb.mxu2 %v4090_v15 }
 0x877   :  { %v1293_v60 = vpop.f32.mrf.mxu1  ;;  %v1354_v53 = vpop.f32.mrf.mxu0 }
 0x878   :  { %v1296_v16 = vadd.f32 %v1293_v60, %v4645_v37  ;;  %v1357_v14 = vadd.f32 %v1354_v53, %v4646_v17 }
 0x87a   :  { %v1317_v24 = vadd.f32 %v1314_v50, %v1296_v16 }
 0x87c   :  { %v2784_v27 = vmul.f32 -1.442695, %v1317_v24 }
 0x87e   :  { %2912 = vpow2.f32 %v2784_v27  ;;  %v1415_v34 = vpop.f32.mrf.mxu2 }
 0x87f   :  { %v1375_v57 = vpop.f32.mrf.mxu1  ;;  %v1418_v3 = vadd.f32 %v1415_v34, %v4648_v2  ;;  %v1436_v25 = vpop.f32.mrf.mxu0 }
 0x880   :  { %v1378_v9 = vadd.f32 %v1375_v57, %v1357_v14 }
 0x881   :  { %v1439_v60 = vadd.f32 %v1436_v25, %v1418_v3 }
 0x882   :  { %v2787_v38 = vmul.f32 -1.442695, %v1378_v9 }
 0x884   :  { %v2913_v61 = vpop.eup %2912  ;;  %2914 = vpow2.f32 %v2787_v38 }
 0x885   :  { %v1321_v31 = vadd.f32 1.0, %v2913_v61 }
 0x886   :  { %v1458_v12 = vpop.f32.mrf.mxu2 }
 0x887   :  { %2916 = vrcp.f32 %v1321_v31  ;;  %v1461_v20 = vadd.f32 %v1458_v12, %v4647_v18  ;;  %v1333_v27 = vand.u32 2147483648, %v1321_v31  ;;  %vm1327_vm4 = vweird.f32 %v1321_v31 }
 0x888   :  { %v1331_v9 = vand.u32 2147483647, %v1321_v31 }
 0x889   :  { %v1482_v0 = vadd.f32 %v1479_v19, %v1461_v20  ;;  %v1334_v20 = vor.u32 1.1754944e-38, %v1333_v27 }
 0x88a   :  { %v2915_v22 = vpop.eup %2914  ;;  %vm1332_vm8 = vcmp.eq.f32.partialorder %v1331_v9, 8.507059e+37 }
 0x88b   :  { %v1382_v1 = vadd.f32 1.0, %v2915_v22  ;;  %v2792_v6 = vmul.f32 -1.442695, %v1482_v0 }
 0x88d   :  { %v2917_v23 = vpop.eup %2916  ;;  %2918 = vrcp.f32 %v1382_v1  ;;  %v1394_v38 = vand.u32 2147483648, %v1382_v1  ;;  %v1392_v12 = vand.u32 2147483647, %v1382_v1  ;;  %vm1388_vm7 = vweird.f32 %v1382_v1 }
 0x88e   :  { %v1323_v56 = vmul.f32 %v2917_v23, %v1321_v31  ;;  %2920 = vpow2.f32 %v2792_v6  ;;  %vm1328_vm3 = vweird.f32 %v2917_v23 }
 0x88f   :  { %2922 = vtanh.f32 %v1439_v60  ;;  %vm1329_vm5 = vmor %vm1327_vm4, %vm1328_vm3  ;;  %v1395_v22 = vor.u32 1.1754944e-38, %v1394_v38  ;;  %vm1393_vm10 = vcmp.eq.f32.partialorder %v1392_v12, 8.507059e+37  ;;  %v4105_v38 = vld [vmem:[%s4512_s12 + $0x38] sm:$0xff] }
 0x890   :  { %v1324_v26 = vsub.f32 1.0, %v1323_v56 }
 0x892   :  { %v1325_v29 = vmul.f32 %v2917_v23, %v1324_v26 }
 0x893   :  { %v2919_v16 = vpop.eup %2918 }
 0x894   :  { %v2921_v50 = vpop.eup %2920  ;;  %v1384_v24 = vmul.f32 %v2919_v16, %v1382_v1  ;;  %v1326_v53 = vadd.f32 %v2917_v23, %v1325_v29  ;;  %vm1389_vm6 = vweird.f32 %v2919_v16 }
 0x895   :  { %v1486_v14 = vadd.f32 1.0, %v2921_v50  ;;  %vm1390_vm9 = vmor %vm1388_vm7, %vm1389_vm6  ;;  %v2923_v6 = vpop.eup %2922 }
 0x896   :  { %v1385_v57 = vsub.f32 1.0, %v1384_v24  ;;  %v1330_v61 = vsel %vm1329_vm5, %v2917_v23, %v1326_v53 }
 0x897   :  { %2924 = vrcp.f32 %v1486_v14  ;;  %v1335_v0 = vsel %vm1332_vm8, %v1334_v20, %v1330_v61  ;;  %v1498_v50 = vand.u32 2147483648, %v1486_v14  ;;  %v1496_v24 = vand.u32 2147483647, %v1486_v14  ;;  %v4121_v20 = vld [vmem:[%s4513_s13 + $0xe8] sm:$0xff] }
 0x898   :  { %v1386_v34 = vmul.f32 %v2919_v16, %v1385_v57  ;;  %v1503_v26 = vmul.f32 %v2923_v6, %v1335_v0  ;;  %vm1492_vm12 = vweird.f32 %v1486_v14  ;;  %v4146_v0 = vld [vmem:[%s4513_s13 + $0xc8] sm:$0xff]  ;;  %v4152_v6 = vld [vmem:[%s4513_s13 + $0xc0] sm:$0xff] }
 0x899   :  { %v1499_v27 = vor.u32 1.1754944e-38, %v1498_v50  ;;  %vm1497_vm14 = vcmp.eq.f32.partialorder %v1496_v24, 8.507059e+37  ;;  %v4220_v50 = vld [vmem:[%s4515_s15 + $0x20] sm:$0xff]  ;;  %v4229_v24 = vld [vmem:[%s4515_s15 + $0x18] sm:$0xff] }
 0x89a   :  { %v1387_v19 = vadd.f32 %v2919_v16, %v1386_v34 }
 0x89c   :  { %v1391_v56 = vsel %vm1390_vm9, %v2919_v16, %v1387_v19  ;;  %v4127_v19 = vld [vmem:[%s4513_s13 + $0xe0] sm:$0xff] }
 0x89d   :  { %v2925_v3 = vpop.eup %2924  ;;  %v1396_v31 = vsel %vm1393_vm10, %v1395_v22, %v1391_v56  ;;  %v4140_v22 = vld [vmem:[%s4513_s13 + $0xd0] sm:$0xff]  ;;  %v4168_v56 = vld [vmem:[%s4513_s13 + $0x80] sm:$0xff] }
 0x89e   :  { %v1502_v25 = vmul.f32 %v1396_v31, %v3867_v51  ;;  %v1488_v29 = vmul.f32 %v2925_v3, %v1486_v14  ;;  %vm1493_vm11 = vweird.f32 %v2925_v3  ;;  %v4111_v14 = vld [vmem:[%s4512_s12 + $0x30] sm:$0xff] }
 0x89f   :  { %vm1494_vm13 = vmor %vm1492_vm12, %vm1493_vm11 }
 0x8a0   :  { %v4098_v60 = vadd.f32 %v1503_v26, %v1502_v25  ;;  %v1489_v23 = vsub.f32 1.0, %v1488_v29  ;;  %v4182_v25 = vld [vmem:[%s4515_s15 + $0x38] sm:$0xff]  ;;  %v4195_v26 = vld [vmem:[%s4515_s15 + $0x30] sm:$0xff] }
 0x8a1   :  { %v4201_v29 = vld [vmem:[%s4516_s17 + $0x10] sm:$0xff] }
 0x8a2   :  { %2926 = vtanh.f32 %v4098_v60  ;;  %v1490_v1 = vmul.f32 %v2925_v3, %v1489_v23  ;;  %v4208_v23 = vld [vmem:[%s4515_s15 + $0x28] sm:$0xff] }
 0x8a4   :  { %v1491_v53 = vadd.f32 %v2925_v3, %v1490_v1  ;;  %v4214_v1 = vld [vmem:[%s4516_s17 + $0x8] sm:$0xff] }
 0x8a6   :  { %v1495_v16 = vsel %vm1494_vm13, %v2925_v3, %v1491_v53  ;;  %v4235_v53 = vld [vmem:[%s4516_s17] sm:$0xff] }
 0x8a7   :  { %v1500_v9 = vsel %vm1497_vm14, %v1499_v27, %v1495_v16  ;;  %v4242_v16 = vld [vmem:[%s4515_s15 + $0x10] sm:$0xff]  ;;  %v4250_v27 = vld [vmem:[%s4515_s15 + $0x8] sm:$0xff] }
 0x8a8   :  { %v2927_v57 = vpop.eup %2926 }
 0x8a9   :  { %v1506_v51 = vmul.f32 %v2927_v57, %v1500_v9  ;;  %v4258_v57 = vld [vmem:[%s4515_s15] sm:$0xff] }
 0x8aa   :  { %4664 = vst [vmem:[#allocation8_spill] sm:$0xff] %v4258_v57 }
 0x8ab   :  { %2793 = vmatmul.msk.f32.vlgmr.msra.gmra.mxu1 %vm116_vm0, %v1506_v51 }
 0x8ac   :  { %1738 = vmatpush.msra.mxu1 %v4105_v38 }
 0x8ae   :  { %1739 = vmatpush.msra.mxu1 %v4111_v14 }
 0x928   :  { %v1527_v34 = vpop.f32.mrf.mxu1 }
 0x929   :  { %v1528_v61 = vadd.f32 %v3714_v52, %v1527_v34  ;;  %v4134_v52 = vld [vmem:[%s4513_s13 + $0xd8] sm:$0xff] }
 0x92b   :  { %v1530_v12 = vmax.f32 %v1528_v61, 0.0 }
 0x92d   :  { %2794 = vmatmul.msk.f32.vlgmr.msra.gmra.mxu2 %vm148_vm1, %v1530_v12 }
 0x92e   :  { %1753 = vmatpush.msra.mxu2 %v3878_v21 }
 0x930   :  { %1754 = vmatpush.msra.mxu2 %v3884_v11 }
 0x932   :  { %1755 = vmatpush.msra.mxu2 %v4121_v20 }
 0x934   :  { %1756 = vmatpush.msra.mxu2 %v4127_v19 }
 0x935   :  { %2797 = vmatmul.msk.f32.vlgmr.msrb.gmra.mxu2 %vm116_vm0, %v1506_v51 }
 0x936   :  { %1757 = vmatpush.msra.mxu2 %v4134_v52 }
 0x938   :  { %1758 = vmatpush.msra.mxu2 %v4140_v22 }
 0x93a   :  { %1759 = vmatpush.msra.mxu2 %v4146_v0 }
 0x93c   :  { %1760 = vmatpush.msra.mxu2 %v4152_v6 }
 0x93d   :  { %2805 = vmatmul.msk.f32.vlgmr.msra.gmra.mxu2 %vm116_vm0, %v1506_v51 }
 0x93e   :  { %1917 = vmatpush.msrb.mxu2 %v3898_v46 }
 0x940   :  { %1918 = vmatpush.msrb.mxu2 %v3904_v30 }
 0x942   :  { %1993 = vmatpush.msra.mxu2 %v3910_v33 }
 0x944   :  { %1994 = vmatpush.msra.mxu2 %v3916_v36 }
 0x946   :  { %1995 = vmatpush.msra.mxu2 %v3922_v40 }
 0x948   :  { %1996 = vmatpush.msra.mxu2 %v3928_v41 }
 0x94a   :  { %1997 = vmatpush.msra.mxu2 %v3934_v42 }
 0x94c   :  { %1998 = vmatpush.msra.mxu2 %v3940_v47 }
 0x94e   :  { %1999 = vmatpush.msra.mxu2 %v3946_v5 }
 0x950   :  { %2000 = vmatpush.msra.mxu2 %v4168_v56 }
 0x9b0   :  { %v1551_v3 = vpop.f32.mrf.mxu2 }
 0x9b1   :  { %v1552_v31 = vadd.f32 %v3741_v28, %v1551_v3  ;;  %v4188_v28 = vld [vmem:[%s4516_s17 + $0x18] sm:$0xff] }
 0x9b3   :  { %2795 = vst.msk [vmem:[%s4518_s19 + $0x6] sm:$0x3] %vm705_vm15, %v1552_v31  ;;  %2796 = vmatmul.msk.f32.vlgmr.msra.gmra.mxu0 %vm414_vm2, %v1552_v31  ;;  %2799 = vmatmul.msk.f32.vlgmr.msrb.gmra.mxu3 %vm414_vm2, %v1552_v31 }
 0x9b4   :  { %2802 = vmatmul.msk.f32.vlgmr.msrb.gmra.mxu1 %vm414_vm2, %v1552_v31  ;;  %1801 = vmatpush.msra.mxu0 %v4182_v25 }
 0x9b5   :  { %1829 = vmatpush.msrb.mxu1 %v4188_v28  ;;  %1856 = vmatpush.msrb.mxu3 %v3963_v39 }
 0x9b6   :  { %1802 = vmatpush.msra.mxu0 %v4195_v26 }
 0x9b7   :  { %1830 = vmatpush.msrb.mxu1 %v4201_v29  ;;  %1857 = vmatpush.msrb.mxu3 %v3971_v32 }
 0x9b8   :  { %1803 = vmatpush.msra.mxu0 %v4208_v23 }
 0x9b9   :  { %1831 = vmatpush.msrb.mxu1 %v4214_v1 }
 0x9ba   :  { %1804 = vmatpush.msra.mxu0 %v4220_v50 }
 0x9bb   :  { %2800 = vmatmul.msk.f32.vlgmr.msrb.gmra.mxu0 %vm116_vm0, %v1506_v51  ;;  %2803 = vmatmul.msk.f32.vlgmr.msra.gmra.mxu3 %vm116_vm0, %v1506_v51  ;;  %v1597_v51 = vpop.f32.mrf.mxu2 }
 0x9bc   :  { %2804 = vmatmul.msk.f32.vlgmr.msra.gmra.mxu1 %vm414_vm2, %v1552_v31  ;;  %1805 = vmatpush.msra.mxu0 %v4229_v24 }
 0x9bd   :  { %1832 = vmatpush.msrb.mxu1 %v4235_v53  ;;  %1932 = vmatpush.msra.mxu3 %v3985_v59 }
 0x9be   :  { %1806 = vmatpush.msra.mxu0 %v4242_v16 }
 0x9bf   :  { %1871 = vmatpush.msra.mxu1 %v3992_v7  ;;  %1933 = vmatpush.msra.mxu3 %v3998_v10 }
 0x9c0   :  { %1807 = vmatpush.msra.mxu0 %v4250_v27 }
 0x9c1   :  { %1872 = vmatpush.msra.mxu1 %v4005_v43  ;;  %1934 = vmatpush.msra.mxu3 %v4011_v48 }
 0x9c2   :  { %1808 = vmatpush.msra.mxu0 %v4258_v57 }
 0x9c3   :  { %1873 = vmatpush.msra.mxu1 %v4018_v49  ;;  %1935 = vmatpush.msra.mxu3 %v4030_v44 }
 0x9c4   :  { %1978 = vmatpush.msrb.mxu0 %v4024_v55 }
 0x9c5   :  { %1874 = vmatpush.msra.mxu1 %v4036_v45  ;;  %1936 = vmatpush.msra.mxu3 %v4048_v8  ;;  %v1762_v8 = vpop.f32.mrf.mxu2 }
 0x9c6   :  { %1979 = vmatpush.msrb.mxu0 %v4042_v58 }
 0x9c7   :  { %1875 = vmatpush.msra.mxu1 %v4054_v4  ;;  %1937 = vmatpush.msra.mxu3 %v4060_v35 }
 0x9c9   :  { %1876 = vmatpush.msra.mxu1 %v4066_v13  ;;  %1938 = vmatpush.msra.mxu3 %v4072_v54 }
 0x9cb   :  { %1877 = vmatpush.msra.mxu1 %v4078_v62  ;;  %1939 = vmatpush.msra.mxu3 %v4084_v63 }
 0x9cd   :  { %1878 = vmatpush.msra.mxu1 %v4090_v15 }
 0xa30   :  { %v1576_v9 = vpop.f32.mrf.mxu0 }
 0xa31   :  { %v1579_v34 = vadd.f32 %v1576_v9, %v4645_v37  ;;  %v1698_v61 = vpop.f32.mrf.mxu1 }
 0xa33   :  { %v1600_v12 = vadd.f32 %v1597_v51, %v1579_v34 }
 0xa35   :  { %v2798_v3 = vmul.f32 -1.442695, %v1600_v12 }
 0xa36   :  { %v1637_v31 = vpop.f32.mrf.mxu3 }
 0xa37   :  { %2928 = vpow2.f32 %v2798_v3  ;;  %v1640_v35 = vadd.f32 %v1637_v31, %v4646_v17 }
 0xa38   :  { %v1658_v13 = vpop.f32.mrf.mxu0 }
 0xa39   :  { %v1661_v4 = vadd.f32 %v1658_v13, %v1640_v35  ;;  %v1741_v54 = vpop.f32.mrf.mxu1 }
 0xa3a   :  { %v1744_v62 = vadd.f32 %v1741_v54, %v4647_v18  ;;  %v1701_v54 = vadd.f32 %v1698_v61, %v4648_v2 }
 0xa3b   :  { %v2801_v63 = vmul.f32 -1.442695, %v1661_v4 }
 0xa3c   :  { %v1765_v58 = vadd.f32 %v1762_v8, %v1744_v62 }
 0xa3d   :  { %v2929_v15 = vpop.eup %2928  ;;  %2930 = vpow2.f32 %v2801_v63 }
 0xa3e   :  { %v1604_v45 = vadd.f32 1.0, %v2929_v15  ;;  %v2806_v44 = vmul.f32 -1.442695, %v1765_v58  ;;  %v1719_v13 = vpop.f32.mrf.mxu3 }
 0xa3f   :  { %v1722_v62 = vadd.f32 %v1719_v13, %v1701_v54 }
 0xa40   :  { %2932 = vrcp.f32 %v1604_v45  ;;  %v1616_v58 = vand.u32 2147483648, %v1604_v45  ;;  %vm1610_vm4 = vweird.f32 %v1604_v45 }
 0xa41   :  { %2934 = vpow2.f32 %v2806_v44 }
 0xa42   :  { %v1617_v2 = vor.u32 1.1754944e-38, %v1616_v58  ;;  %v4665_v58 = vld [vmem:[#allocation9_spill] sm:$0xff] }
 0xa43   :  { %v2931_v9 = vpop.eup %2930 }
 0xa44   :  { %v1665_v51 = vadd.f32 1.0, %v2931_v9  ;;  %v1614_v9 = vand.u32 2147483647, %v1604_v45 }
 0xa46   :  { %v2933_v34 = vpop.eup %2932  ;;  %2936 = vrcp.f32 %v1665_v51  ;;  %v1677_v18 = vand.u32 2147483648, %v1665_v51  ;;  %v1675_v37 = vand.u32 2147483647, %v1665_v51  ;;  %vm1671_vm7 = vweird.f32 %v1665_v51 }
 0xa47   :  { %v2935_v12 = vpop.eup %2934  ;;  %v1606_v3 = vmul.f32 %v2933_v34, %v1604_v45  ;;  %vm1611_vm3 = vweird.f32 %v2933_v34  ;;  %vm1615_vm8 = vcmp.eq.f32.partialorder %v1614_v9, 8.507059e+37  ;;  %v4666_v9 = vld [vmem:[#allocation8_spill] sm:$0xff] }
 0xa48   :  { %v1769_v31 = vadd.f32 1.0, %v2935_v12  ;;  %vm1612_vm5 = vmor %vm1610_vm4, %vm1611_vm3  ;;  %v1678_v54 = vor.u32 1.1754944e-38, %v1677_v18  ;;  %vm1676_vm10 = vcmp.eq.f32.partialorder %v1675_v37, 8.507059e+37 }
 0xa49   :  { %v1607_v35 = vsub.f32 1.0, %v1606_v3 }
 0xa4a   :  { %2938 = vrcp.f32 %v1769_v31  ;;  %vm1775_vm12 = vweird.f32 %v1769_v31 }
 0xa4b   :  { %v1608_v4 = vmul.f32 %v2933_v34, %v1607_v35  ;;  %2940 = vtanh.f32 %v1722_v62 }
 0xa4c   :  { %v2937_v8 = vpop.eup %2936 }
 0xa4d   :  { %v1667_v63 = vmul.f32 %v2937_v8, %v1665_v51  ;;  %v1609_v15 = vadd.f32 %v2933_v34, %v1608_v4  ;;  %vm1672_vm6 = vweird.f32 %v2937_v8  ;;  %v1779_v51 = vand.u32 2147483647, %v1769_v31 }
 0xa4e   :  { %vm1673_vm9 = vmor %vm1671_vm7, %vm1672_vm6 }
 0xa4f   :  { %v1668_v44 = vsub.f32 1.0, %v1667_v63  ;;  %v1613_v61 = vsel %vm1612_vm5, %v2933_v34, %v1609_v15  ;;  %v1781_v34 = vand.u32 2147483648, %v1769_v31  ;;  %vm1780_vm14 = vcmp.eq.f32.partialorder %v1779_v51, 8.507059e+37  ;;  %v4678_v51 = vld [vmem:[#allocation7_spill] sm:$0xff] }
 0xa50   :  { %v2939_v17 = vpop.eup %2938  ;;  %v1618_v4 = vsel %vm1615_vm8, %v1617_v2, %v1613_v61  ;;  %v4669_v61 = vld [vmem:[#allocation12_spill] sm:$0xff] }
 0xa51   :  { %v1669_v12 = vmul.f32 %v2937_v8, %v1668_v44  ;;  %v1771_v3 = vmul.f32 %v2939_v17, %v1769_v31  ;;  %v2941_v45 = vpop.eup %2940  ;;  %vm1776_vm11 = vweird.f32 %v2939_v17  ;;  %v1782_v2 = vor.u32 1.1754944e-38, %v1781_v34  ;;  %v4677_v34 = vld [vmem:[#allocation14_spill] sm:$0xff] }
 0xa52   :  { %v1786_v62 = vmul.f32 %v2941_v45, %v1618_v4  ;;  %vm1777_vm13 = vmor %vm1775_vm12, %vm1776_vm11  ;;  %v4673_v4 = vld [vmem:[#allocation11_spill] sm:$0xff]  ;;  %v4675_v45 = vld [vmem:[#allocation13_spill] sm:$0xff] }
 0xa53   :  { %v1772_v35 = vsub.f32 1.0, %v1771_v3  ;;  %v1670_v13 = vadd.f32 %v2937_v8, %v1669_v12  ;;  %v4667_v12 = vld [vmem:[#allocation20_spill] sm:$0xff]  ;;  %v4668_v3 = vld [vmem:[#allocation3_spill] sm:$0xff] }
 0xa55   :  { %v1674_v63 = vsel %vm1673_vm9, %v2937_v8, %v1670_v13  ;;  %v1773_v55 = vmul.f32 %v2939_v17, %v1772_v35  ;;  %v4670_v35 = vld [vmem:[#allocation10_spill] sm:$0xff]  ;;  %v4671_v13 = vld [vmem:[#allocation4_spill] sm:$0xff] }
 0xa56   :  { %v1679_v49 = vsel %vm1676_vm10, %v1678_v54, %v1674_v63  ;;  %v4672_v54 = vld [vmem:[#allocation15_spill] sm:$0xff]  ;;  %v4674_v63 = vld [vmem:[#allocation5_spill] sm:$0xff] }
 0xa57   :  { %v1785_v57 = vmul.f32 %v1679_v49, %v4098_v60  ;;  %v1774_v48 = vadd.f32 %v2939_v17, %v1773_v55  ;;  %v4288_v55 = vld [vmem:[%s4514_s16] ss:$0 sm:$0xff] }
 0xa59   :  { %v4279_v44 = vadd.f32 %v1786_v62, %v1785_v57  ;;  %v1778_v18 = vsel %vm1777_vm13, %v2939_v17, %v1774_v48  ;;  %v4315_v57 = vld [vmem:[%s4517_s18] ss:$0 sm:$0xff] }
 0xa5a   :  { %v1783_v8 = vsel %vm1780_vm14, %v1782_v2, %v1778_v18  ;;  %v4676_v62 = vld [vmem:[#allocation6_spill] sm:$0xff]  ;;  %v4679_v18 = vld [vmem:[#allocation16_spill] sm:$0xff] }
 0xa5b   :  { %2942 = vtanh.f32 %v4279_v44 }
 0xa61   :  { %v2943_v37 = vpop.eup %2942 }
 0xa62   :  { %v1789_v15 = vmul.f32 %v2943_v37, %v1783_v8 }
 0xa64   :  { %2807 = vmatmul.msk.f32.vlgmr.msra.gmra.mxu0 %vm116_vm0, %v1789_v15 }
 0xa65   :  { %2021 = vmatpush.msra.mxu0 %v4105_v38 }
 0xa67   :  { %2022 = vmatpush.msra.mxu0 %v4111_v14 }
 0xae1   :  { %v1810_v49 = vpop.f32.mrf.mxu0 }
 0xae2   :  { %v1811_v60 = vadd.f32 %v4288_v55, %v1810_v49 }
 0xae4   :  { %v1813_v17 = vmax.f32 %v1811_v60, 0.0 }
 0xae6   :  { %2808 = vmatmul.msk.f32.vlgmr.msrb.gmra.mxu1 %vm148_vm1, %v1813_v17 }
 0xae7   :  { %2036 = vmatpush.msrb.mxu1 %v3878_v21 }
 0xae9   :  { %2037 = vmatpush.msrb.mxu1 %v3884_v11 }
 0xaeb   :  { %2038 = vmatpush.msrb.mxu1 %v4121_v20 }
 0xaed   :  { %2039 = vmatpush.msrb.mxu1 %v4127_v19 }
 0xaee   :  { %2811 = vmatmul.msk.f32.vlgmr.msra.gmra.mxu1 %vm116_vm0, %v1789_v15 }
 0xaef   :  { %2040 = vmatpush.msrb.mxu1 %v4134_v52 }
 0xaf1   :  { %2041 = vmatpush.msrb.mxu1 %v4140_v22 }
 0xaf3   :  { %2042 = vmatpush.msrb.mxu1 %v4146_v0 }
 0xaf5   :  { %2043 = vmatpush.msrb.mxu1 %v4152_v6 }
 0xaf6   :  { %2819 = vmatmul.msk.f32.vlgmr.msrb.gmra.mxu1 %vm116_vm0, %v1789_v15 }
 0xaf7   :  { %2200 = vmatpush.msra.mxu1 %v3898_v46 }
 0xaf9   :  { %2201 = vmatpush.msra.mxu1 %v3904_v30 }
 0xafb   :  { %2276 = vmatpush.msrb.mxu1 %v3910_v33 }
 0xafd   :  { %2277 = vmatpush.msrb.mxu1 %v3916_v36 }
 0xaff   :  { %2278 = vmatpush.msrb.mxu1 %v3922_v40 }
 0xb01   :  { %2279 = vmatpush.msrb.mxu1 %v3928_v41 }
 0xb03   :  { %2280 = vmatpush.msrb.mxu1 %v3934_v42 }
 0xb05   :  { %2281 = vmatpush.msrb.mxu1 %v3940_v47 }
 0xb07   :  { %2282 = vmatpush.msrb.mxu1 %v3946_v5 }
 0xb09   :  { %2283 = vmatpush.msrb.mxu1 %v4168_v56 }
 0xb63   :  { %v1834_v48 = vpop.f32.mrf.mxu1 }
 0xb64   :  { %v1835_v31 = vadd.f32 %v4315_v57, %v1834_v48 }
 0xb66   :  { %2809 = vst.msk [vmem:[%s4518_s19 + $0x8] sm:$0x3] %vm705_vm15, %v1835_v31  ;;  %2810 = vmatmul.msk.f32.vlgmr.msrb.gmra.mxu3 %vm414_vm2, %v1835_v31  ;;  %2813 = vmatmul.msk.f32.vlgmr.msrb.gmra.mxu2 %vm414_vm2, %v1835_v31 }
 0xb67   :  { %2816 = vmatmul.msk.f32.vlgmr.msrb.gmra.mxu0 %vm414_vm2, %v1835_v31  ;;  %2084 = vmatpush.msrb.mxu3 %v4182_v25 }
 0xb68   :  { %2112 = vmatpush.msrb.mxu0 %v4188_v28  ;;  %2139 = vmatpush.msrb.mxu2 %v3963_v39 }
 0xb69   :  { %2085 = vmatpush.msrb.mxu3 %v4195_v26 }
 0xb6a   :  { %2113 = vmatpush.msrb.mxu0 %v4201_v29  ;;  %2140 = vmatpush.msrb.mxu2 %v3971_v32 }
 0xb6b   :  { %2086 = vmatpush.msrb.mxu3 %v4208_v23  ;;  %v1880_v2 = vpop.f32.mrf.mxu1 }
 0xb6c   :  { %2114 = vmatpush.msrb.mxu0 %v4214_v1 }
 0xb6d   :  { %2087 = vmatpush.msrb.mxu3 %v4220_v50 }
 0xb6e   :  { %2814 = vmatmul.msk.f32.vlgmr.msra.gmra.mxu3 %vm116_vm0, %v1789_v15  ;;  %2817 = vmatmul.msk.f32.vlgmr.msra.gmra.mxu2 %vm116_vm0, %v1789_v15  ;;  %v4680_v15 = vld [vmem:[#allocation17_spill] sm:$0xff] }
 0xb6f   :  { %2818 = vmatmul.msk.f32.vlgmr.msra.gmra.mxu0 %vm414_vm2, %v1835_v31  ;;  %2088 = vmatpush.msrb.mxu3 %v4229_v24  ;;  %v4681_v31 = vld [vmem:[#allocation19_spill] sm:$0xff] }
 0xb70   :  { %2115 = vmatpush.msrb.mxu0 %v4235_v53  ;;  %2215 = vmatpush.msra.mxu2 %v3985_v59 }
 0xb71   :  { %2089 = vmatpush.msrb.mxu3 %v4242_v16 }
 0xb72   :  { %2154 = vmatpush.msra.mxu0 %v3992_v7  ;;  %2216 = vmatpush.msra.mxu2 %v3998_v10 }
 0xb73   :  { %2090 = vmatpush.msrb.mxu3 %v4250_v27 }
 0xb74   :  { %2155 = vmatpush.msra.mxu0 %v4005_v43  ;;  %2217 = vmatpush.msra.mxu2 %v4665_v58 }
 0xb75   :  { %2091 = vmatpush.msrb.mxu3 %v4666_v9 }
 0xb76   :  { %2156 = vmatpush.msra.mxu0 %v4667_v12  ;;  %2218 = vmatpush.msra.mxu2 %v4669_v61 }
 0xb77   :  { %2261 = vmatpush.msra.mxu3 %v4668_v3 }
 0xb78   :  { %2157 = vmatpush.msra.mxu0 %v4670_v35  ;;  %2219 = vmatpush.msra.mxu2 %v4672_v54 }
 0xb79   :  { %2262 = vmatpush.msra.mxu3 %v4671_v13 }
 0xb7a   :  { %2158 = vmatpush.msra.mxu0 %v4673_v4  ;;  %2220 = vmatpush.msra.mxu2 %v4674_v63  ;;  %v2045_v4 = vpop.f32.mrf.mxu1 }
 0xb7c   :  { %2159 = vmatpush.msra.mxu0 %v4675_v45  ;;  %2221 = vmatpush.msra.mxu2 %v4676_v62  ;;  %v4682_v62 = vld [vmem:[#allocation18_spill] sm:$0xff] }
 0xb7e   :  { %2160 = vmatpush.msra.mxu0 %v4677_v34  ;;  %2222 = vmatpush.msra.mxu2 %v4678_v51 }
 0xb80   :  { %2161 = vmatpush.msra.mxu0 %v4679_v18 }
 0xbe4   :  { %v1981_v37 = vpop.f32.mrf.mxu0 }
 0xbe9   :  { %v1859_v8 = vpop.f32.mrf.mxu3  ;;  %v1920_v48 = vpop.f32.mrf.mxu2 }
 0xbea   :  { %v1862_v49 = vadd.f32 %v1859_v8, %v4680_v15  ;;  %v1923_v34 = vadd.f32 %v1920_v48, %v4682_v62 }
 0xbec   :  { %v1883_v60 = vadd.f32 %v1880_v2, %v1862_v49  ;;  %v2024_v17 = vpop.f32.mrf.mxu0 }
 0xbed   :  { %v2027_v63 = vadd.f32 %v2024_v17, %v4681_v31 }
 0xbee   :  { %v2812_v45 = vmul.f32 -1.442695, %v1883_v60  ;;  %v4683_v60 = vld [vmem:[#allocation21_spill] sm:$0xff] }
 0xbef   :  { %v2048_v54 = vadd.f32 %v2045_v4, %v2027_v63 }
 0xbf0   :  { %2944 = vpow2.f32 %v2812_v45 }
 0xbf1   :  { %v2820_v13 = vmul.f32 -1.442695, %v2048_v54  ;;  %v1941_v51 = vpop.f32.mrf.mxu3  ;;  %v2002_v45 = vpop.f32.mrf.mxu2  ;;  %v1984_v54 = vadd.f32 %v1981_v37, %v4683_v60 }
 0xbf2   :  { %v1944_v35 = vadd.f32 %v1941_v51, %v1923_v34 }
 0xbf3   :  { %2946 = vpow2.f32 %v2820_v13 }
 0xbf4   :  { %v2815_v18 = vmul.f32 -1.442695, %v1944_v35  ;;  %v2005_v35 = vadd.f32 %v2002_v45, %v1984_v54 }
 0xbf6   :  { %v2945_v61 = vpop.eup %2944  ;;  %2948 = vpow2.f32 %v2815_v18 }
 0xbf7   :  { %v1887_v3 = vadd.f32 1.0, %v2945_v61 }
 0xbf9   :  { %v2947_v8 = vpop.eup %2946  ;;  %2950 = vrcp.f32 %v1887_v3  ;;  %v1899_v31 = vand.u32 2147483648, %v1887_v3  ;;  %vm1893_vm4 = vweird.f32 %v1887_v3 }
 0xbfa   :  { %v2052_v2 = vadd.f32 1.0, %v2947_v8 }
 0xbfb   :  { %v1900_v60 = vor.u32 1.1754944e-38, %v1899_v31 }
 0xbfc   :  { %v2949_v49 = vpop.eup %2948  ;;  %2952 = vrcp.f32 %v2052_v2  ;;  %vm2058_vm12 = vweird.f32 %v2052_v2 }
 0xbfd   :  { %v1948_v15 = vadd.f32 1.0, %v2949_v49  ;;  %v1897_v49 = vand.u32 2147483647, %v1887_v3 }
 0xbff   :  { %v2951_v17 = vpop.eup %2950  ;;  %2954 = vrcp.f32 %v1948_v15  ;;  %v1960_v62 = vand.u32 2147483648, %v1948_v15  ;;  %v1958_v9 = vand.u32 2147483647, %v1948_v15  ;;  %vm1954_vm7 = vweird.f32 %v1948_v15 }
 0xc00   :  { %v1889_v4 = vmul.f32 %v2951_v17, %v1887_v3  ;;  %vm1894_vm3 = vweird.f32 %v2951_v17  ;;  %2956 = vtanh.f32 %v2005_v35  ;;  %vm1898_vm8 = vcmp.eq.f32.partialorder %v1897_v49, 8.507059e+37 }
 0xc01   :  { %vm1895_vm5 = vmor %vm1893_vm4, %vm1894_vm3  ;;  %v1961_v45 = vor.u32 1.1754944e-38, %v1960_v62  ;;  %vm1959_vm10 = vcmp.eq.f32.partialorder %v1958_v9, 8.507059e+37 }
 0xc02   :  { %v1890_v63 = vsub.f32 1.0, %v1889_v4  ;;  %v2953_v48 = vpop.eup %2952 }
 0xc03   :  { %v2054_v61 = vmul.f32 %v2953_v48, %v2052_v2  ;;  %vm2059_vm11 = vweird.f32 %v2953_v48 }
 0xc04   :  { %v1891_v34 = vmul.f32 %v2951_v17, %v1890_v63  ;;  %vm2060_vm13 = vmor %vm2058_vm12, %vm2059_vm11 }
 0xc05   :  { %v2955_v13 = vpop.eup %2954  ;;  %v2055_v37 = vsub.f32 1.0, %v2054_v61  ;;  %v4700_v61 = vld [vmem:[#allocation17_spill] sm:$0xff] }
 0xc06   :  { %v1950_v51 = vmul.f32 %v2955_v13, %v1948_v15  ;;  %v1892_v18 = vadd.f32 %v2951_v17, %v1891_v34  ;;  %vm1955_vm6 = vweird.f32 %v2955_v13 }
 0xc07   :  { %vm1956_vm9 = vmor %vm1954_vm7, %vm1955_vm6  ;;  %v2056_v58 = vmul.f32 %v2953_v48, %v2055_v37 }
 0xc08   :  { %v1951_v8 = vsub.f32 1.0, %v1950_v51  ;;  %v1896_v4 = vsel %vm1895_vm5, %v2951_v17, %v1892_v18  ;;  %v2957_v51 = vpop.eup %2956  ;;  %v2064_v18 = vand.u32 2147483648, %v2052_v2 }
 0xc09   :  { %v1901_v54 = vsel %vm1898_vm8, %v1900_v60, %v1896_v4  ;;  %v2057_v17 = vadd.f32 %v2953_v48, %v2056_v58 }
 0xc0a   :  { %v1952_v12 = vmul.f32 %v2955_v13, %v1951_v8  ;;  %v2069_v35 = vmul.f32 %v2957_v51, %v1901_v54  ;;  %v2065_v15 = vor.u32 1.1754944e-38, %v2064_v18  ;;  %v4701_v54 = vld [vmem:[#allocation18_spill] sm:$0xff] }
 0xc0b   :  { %v2061_v62 = vsel %vm2060_vm13, %v2953_v48, %v2057_v17  ;;  %v4702_v17 = vld [vmem:[#allocation19_spill] sm:$0xff] }
 0xc0c   :  { %v1953_v63 = vadd.f32 %v2955_v13, %v1952_v12  ;;  %v2062_v12 = vand.u32 2147483647, %v2052_v2  ;;  %v4699_v2 = vld [vmem:[#allocation16_spill] sm:$0xff] }
 0xc0e   :  { %v1957_v34 = vsel %vm1956_vm9, %v2955_v13, %v1953_v63  ;;  %vm2063_vm14 = vcmp.eq.f32.partialorder %v2062_v12, 8.507059e+37 }
 0xc0f   :  { %v1962_v3 = vsel %vm1959_vm10, %v1961_v45, %v1957_v34  ;;  %v2066_v31 = vsel %vm2063_vm14, %v2065_v15, %v2061_v62 }
 0xc10   :  { %v2068_v43 = vmul.f32 %v1962_v3, %v4279_v44 }
 0xc12   :  { %v4365_v8 = vadd.f32 %v2069_v35, %v2068_v43 }
 0xc14   :  { %2958 = vtanh.f32 %v4365_v8 }
 0xc1a   :  { %v2959_v9 = vpop.eup %2958 }
 0xc1b   :  { %v2072_v60 = vmul.f32 %v2959_v9, %v2066_v31 }
 0xc1d   :  { %2821 = vmatmul.msk.f32.vlgmr.msrb.gmra.mxu3 %vm116_vm0, %v2072_v60 }
 0xc1e   :  { %2304 = vmatpush.msrb.mxu3 %v4105_v38 }
 0xc20   :  { %2305 = vmatpush.msrb.mxu3 %v4111_v14 }
 0xca0   :  { %v2093_v43 = vpop.f32.mrf.mxu3 }
 0xca1   :  { %v2094_v44 = vadd.f32 %v4288_v55, %v2093_v43 }
 0xca3   :  { %v2096_v58 = vmax.f32 %v2094_v44, 0.0 }
 0xca5   :  { %2822 = vmatmul.msk.f32.vlgmr.msrb.gmra.mxu0 %vm148_vm1, %v2096_v58 }
 0xca6   :  { %2319 = vmatpush.msrb.mxu0 %v3878_v21 }
 0xca8   :  { %2320 = vmatpush.msrb.mxu0 %v3884_v11 }
 0xcaa   :  { %2321 = vmatpush.msrb.mxu0 %v4121_v20 }
 0xcac   :  { %2322 = vmatpush.msrb.mxu0 %v4127_v19 }
 0xcad   :  { %2825 = vmatmul.msk.f32.vlgmr.msra.gmra.mxu0 %vm116_vm0, %v2072_v60 }
 0xcae   :  { %2323 = vmatpush.msrb.mxu0 %v4134_v52 }
 0xcb0   :  { %2324 = vmatpush.msrb.mxu0 %v4140_v22 }
 0xcb2   :  { %2325 = vmatpush.msrb.mxu0 %v4146_v0 }
 0xcb4   :  { %2326 = vmatpush.msrb.mxu0 %v4152_v6 }
 0xcb5   :  { %2833 = vmatmul.msk.f32.vlgmr.msrb.gmra.mxu0 %vm116_vm0, %v2072_v60 }
 0xcb6   :  { %2483 = vmatpush.msra.mxu0 %v3898_v46  ;;  %v4684_v46 = vld [vmem:[#allocation2_spill] sm:$0xff] }
 0xcb8   :  { %2484 = vmatpush.msra.mxu0 %v3904_v30  ;;  %v4685_v30 = vld [vmem:[#allocation9_spill] sm:$0xff] }
 0xcba   :  { %2559 = vmatpush.msrb.mxu0 %v3910_v33  ;;  %v4686_v33 = vld [vmem:[#allocation8_spill] sm:$0xff] }
 0xcbc   :  { %2560 = vmatpush.msrb.mxu0 %v3916_v36  ;;  %v4687_v36 = vld [vmem:[#allocation20_spill] sm:$0xff] }
 0xcbe   :  { %2561 = vmatpush.msrb.mxu0 %v3922_v40  ;;  %v4688_v40 = vld [vmem:[#allocation3_spill] sm:$0xff] }
 0xcc0   :  { %2562 = vmatpush.msrb.mxu0 %v3928_v41  ;;  %v4689_v41 = vld [vmem:[#allocation12_spill] sm:$0xff] }
 0xcc2   :  { %2563 = vmatpush.msrb.mxu0 %v3934_v42  ;;  %v4690_v42 = vld [vmem:[#allocation10_spill] sm:$0xff] }
 0xcc4   :  { %2564 = vmatpush.msrb.mxu0 %v3940_v47  ;;  %v4691_v47 = vld [vmem:[#allocation4_spill] sm:$0xff] }
 0xcc6   :  { %2565 = vmatpush.msrb.mxu0 %v3946_v5  ;;  %v4692_v5 = vld [vmem:[#allocation15_spill] sm:$0xff] }
 0xcc8   :  { %2566 = vmatpush.msrb.mxu0 %v4168_v56  ;;  %v4698_v56 = vld [vmem:[#allocation7_spill] sm:$0xff] }
 0xd22   :  { %v2117_v21 = vpop.f32.mrf.mxu0 }
 0xd23   :  { %v2118_v11 = vadd.f32 %v4315_v57, %v2117_v21 }
 0xd25   :  { %2823 = vst.msk [vmem:[%s4518_s19 + $0xa] sm:$0x3] %vm705_vm15, %v2118_v11  ;;  %2824 = vmatmul.msk.f32.vlgmr.msrb.gmra.mxu2 %vm414_vm2, %v2118_v11  ;;  %2827 = vmatmul.msk.f32.vlgmr.msra.gmra.mxu1 %vm414_vm2, %v2118_v11 }
 0xd26   :  { %2830 = vmatmul.msk.f32.vlgmr.msra.gmra.mxu3 %vm414_vm2, %v2118_v11  ;;  %2367 = vmatpush.msrb.mxu2 %v4182_v25 }
 0xd27   :  { %2395 = vmatpush.msra.mxu3 %v4188_v28  ;;  %2422 = vmatpush.msra.mxu1 %v3963_v39  ;;  %v4693_v39 = vld [vmem:[#allocation11_spill] sm:$0xff] }
 0xd28   :  { %2368 = vmatpush.msrb.mxu2 %v4195_v26 }
 0xd29   :  { %2396 = vmatpush.msra.mxu3 %v4201_v29  ;;  %2423 = vmatpush.msra.mxu1 %v3971_v32  ;;  %v4694_v32 = vld [vmem:[#allocation5_spill] sm:$0xff] }
 0xd2a   :  { %2369 = vmatpush.msrb.mxu2 %v4208_v23  ;;  %v2163_v13 = vpop.f32.mrf.mxu0 }
 0xd2b   :  { %2397 = vmatpush.msra.mxu3 %v4214_v1 }
 0xd2c   :  { %2370 = vmatpush.msrb.mxu2 %v4220_v50 }
 0xd2d   :  { %2828 = vmatmul.msk.f32.vlgmr.msra.gmra.mxu2 %vm116_vm0, %v2072_v60  ;;  %2831 = vmatmul.msk.f32.vlgmr.msrb.gmra.mxu1 %vm116_vm0, %v2072_v60 }
 0xd2e   :  { %2832 = vmatmul.msk.f32.vlgmr.msrb.gmra.mxu3 %vm414_vm2, %v2118_v11  ;;  %2371 = vmatpush.msrb.mxu2 %v4229_v24 }
 0xd2f   :  { %2398 = vmatpush.msra.mxu3 %v4235_v53  ;;  %2498 = vmatpush.msrb.mxu1 %v3985_v59  ;;  %v4695_v59 = vld [vmem:[#allocation13_spill] sm:$0xff] }
 0xd30   :  { %2372 = vmatpush.msrb.mxu2 %v4242_v16 }
 0xd31   :  { %2437 = vmatpush.msrb.mxu3 %v3992_v7  ;;  %2499 = vmatpush.msrb.mxu1 %v3998_v10  ;;  %v4696_v7 = vld [vmem:[#allocation6_spill] sm:$0xff] }
 0xd32   :  { %2373 = vmatpush.msrb.mxu2 %v4250_v27  ;;  %v4697_v10 = vld [vmem:[#allocation14_spill] sm:$0xff]  ;;  %v2328_v12 = vpop.f32.mrf.mxu0 }
 0xd33   :  { %2438 = vmatpush.msrb.mxu3 %v4684_v46  ;;  %2500 = vmatpush.msrb.mxu1 %v4685_v30  ;;  %v4703_v46 = vld [vmem:[#allocation21_spill] sm:$0xff] }
 0xd34   :  { %2374 = vmatpush.msrb.mxu2 %v4686_v33 }
 0xd35   :  { %2439 = vmatpush.msrb.mxu3 %v4687_v36  ;;  %2501 = vmatpush.msrb.mxu1 %v4689_v41 }
 0xd36   :  { %2544 = vmatpush.msra.mxu2 %v4688_v40 }
 0xd37   :  { %2440 = vmatpush.msrb.mxu3 %v4690_v42  ;;  %2502 = vmatpush.msrb.mxu1 %v4692_v5 }
 0xd38   :  { %2545 = vmatpush.msra.mxu2 %v4691_v47 }
 0xd39   :  { %2441 = vmatpush.msrb.mxu3 %v4693_v39  ;;  %2503 = vmatpush.msrb.mxu1 %v4694_v32 }
 0xd3b   :  { %2442 = vmatpush.msrb.mxu3 %v4695_v59  ;;  %2504 = vmatpush.msrb.mxu1 %v4696_v7 }
 0xd3d   :  { %2443 = vmatpush.msrb.mxu3 %v4697_v10  ;;  %2505 = vmatpush.msrb.mxu1 %v4698_v56 }
 0xd3f   :  { %2444 = vmatpush.msrb.mxu3 %v4699_v2 }
 0xda2   :  { %v2203_v63 = vpop.f32.mrf.mxu1 }
 0xda3   :  { %v2206_v34 = vadd.f32 %v2203_v63, %v4701_v54 }
 0xda8   :  { %v2142_v48 = vpop.f32.mrf.mxu2 }
 0xda9   :  { %v2145_v49 = vadd.f32 %v2142_v48, %v4700_v61  ;;  %v2264_v4 = vpop.f32.mrf.mxu3 }
 0xdaa   :  { %v2267_v30 = vadd.f32 %v2264_v4, %v4703_v46  ;;  %v2285_v41 = vpop.f32.mrf.mxu1 }
 0xdab   :  { %v2166_v37 = vadd.f32 %v2163_v13, %v2145_v49 }
 0xdac   :  { %v2288_v5 = vadd.f32 %v2285_v41, %v2267_v30 }
 0xdad   :  { %v2826_v45 = vmul.f32 -1.442695, %v2166_v37 }
 0xdaf   :  { %2960 = vpow2.f32 %v2826_v45 }
 0xdb0   :  { %v2224_v51 = vpop.f32.mrf.mxu2 }
 0xdb1   :  { %v2227_v3 = vadd.f32 %v2224_v51, %v2206_v34  ;;  %v2307_v35 = vpop.f32.mrf.mxu3 }
 0xdb2   :  { %v2310_v18 = vadd.f32 %v2307_v35, %v4702_v17 }
 0xdb3   :  { %v2829_v62 = vmul.f32 -1.442695, %v2227_v3 }
 0xdb4   :  { %v2331_v15 = vadd.f32 %v2328_v12, %v2310_v18 }
 0xdb5   :  { %v2961_v9 = vpop.eup %2960  ;;  %2962 = vpow2.f32 %v2829_v62 }
 0xdb6   :  { %v2170_v31 = vadd.f32 1.0, %v2961_v9  ;;  %v2834_v60 = vmul.f32 -1.442695, %v2331_v15 }
 0xdb8   :  { %2964 = vrcp.f32 %v2170_v31  ;;  %v2182_v59 = vand.u32 2147483648, %v2170_v31  ;;  %vm2176_vm4 = vweird.f32 %v2170_v31  ;;  %v2180_v7 = vand.u32 2147483647, %v2170_v31 }
 0xdb9   :  { %2966 = vpow2.f32 %v2834_v60 }
 0xdba   :  { %v2183_v37 = vor.u32 1.1754944e-38, %v2182_v59  ;;  %vm2181_vm7 = vcmp.eq.f32.partialorder %v2180_v7, 8.507059e+37 }
 0xdbb   :  { %v2963_v43 = vpop.eup %2962 }
 0xdbc   :  { %v2231_v44 = vadd.f32 1.0, %v2963_v43 }
 0xdbe   :  { %v2965_v58 = vpop.eup %2964  ;;  %2968 = vrcp.f32 %v2231_v44  ;;  %v2241_v2 = vand.u32 2147483647, %v2231_v44  ;;  %v2243_v48 = vand.u32 2147483648, %v2231_v44  ;;  %vm2237_vm8 = vweird.f32 %v2231_v44 }
 0xdbf   :  { %v2967_v21 = vpop.eup %2966  ;;  %v2172_v11 = vmul.f32 %v2965_v58, %v2170_v31  ;;  %vm2177_vm3 = vweird.f32 %v2965_v58 }
 0xdc0   :  { %v2335_v36 = vadd.f32 1.0, %v2967_v21  ;;  %vm2178_vm5 = vmor %vm2176_vm4, %vm2177_vm3  ;;  %v2244_v51 = vor.u32 1.1754944e-38, %v2243_v48  ;;  %vm2242_vm10 = vcmp.eq.f32.partialorder %v2241_v2, 8.507059e+37 }
 0xdc1   :  { %v2173_v40 = vsub.f32 1.0, %v2172_v11 }
 0xdc2   :  { %2970 = vrcp.f32 %v2335_v36  ;;  %v2347_v60 = vand.u32 2147483648, %v2335_v36  ;;  %vm2341_vm12 = vweird.f32 %v2335_v36  ;;  %v2345_v43 = vand.u32 2147483647, %v2335_v36 }
 0xdc3   :  { %v2174_v42 = vmul.f32 %v2965_v58, %v2173_v40  ;;  %2972 = vtanh.f32 %v2288_v5 }
 0xdc4   :  { %v2969_v47 = vpop.eup %2968  ;;  %vm2346_vm14 = vcmp.eq.f32.partialorder %v2345_v43, 8.507059e+37 }
 0xdc5   :  { %v2175_v39 = vadd.f32 %v2965_v58, %v2174_v42  ;;  %v2233_v32 = vmul.f32 %v2969_v47, %v2231_v44  ;;  %vm2238_vm6 = vweird.f32 %v2969_v47  ;;  %v3047_v42 = vld [vmem:[%s4513_s13 + $0xf0] sm:$0xff] }
 0xdc6   :  { %vm2239_vm9 = vmor %vm2237_vm8, %vm2238_vm6 }
 0xdc7   :  { %v2234_v10 = vsub.f32 1.0, %v2233_v32  ;;  %v2179_v13 = vsel %vm2178_vm5, %v2965_v58, %v2175_v39  ;;  %v2348_v58 = vor.u32 1.1754944e-38, %v2347_v60 }
 0xdc8   :  { %v2971_v56 = vpop.eup %2970  ;;  %v2184_v34 = vsel %vm2181_vm7, %v2183_v37, %v2179_v13 }
 0xdc9   :  { %v2235_v49 = vmul.f32 %v2969_v47, %v2234_v10  ;;  %v2337_v4 = vmul.f32 %v2971_v56, %v2335_v36  ;;  %v2973_v35 = vpop.eup %2972  ;;  %vm2342_vm11 = vweird.f32 %v2971_v56  ;;  %v3046_v36 = vld [vmem:[%s4513_s13 + $0xf8] sm:$0xff] }
 0xdca   :  { %v2352_v62 = vmul.f32 %v2973_v35, %v2184_v34  ;;  %vm2343_vm13 = vmor %vm2341_vm12, %vm2342_vm11 }
 0xdcb   :  { %v2236_v63 = vadd.f32 %v2969_v47, %v2235_v49  ;;  %v2338_v45 = vsub.f32 1.0, %v2337_v4 }
 0xdcd   :  { %v2240_v3 = vsel %vm2239_vm9, %v2969_v47, %v2236_v63  ;;  %v2339_v12 = vmul.f32 %v2971_v56, %v2338_v45 }
 0xdce   :  { %v2245_v18 = vsel %vm2242_vm10, %v2244_v51, %v2240_v3 }
 0xdcf   :  { %v2351_v15 = vmul.f32 %v2245_v18, %v4365_v8  ;;  %v2340_v31 = vadd.f32 %v2971_v56, %v2339_v12 }
 0xdd1   :  { %v4441_v9 = vadd.f32 %v2352_v62, %v2351_v15  ;;  %v2344_v44 = vsel %vm2343_vm13, %v2971_v56, %v2340_v31 }
 0xdd2   :  { %v2349_v11 = vsel %vm2346_vm14, %v2348_v58, %v2344_v44 }
 0xdd3   :  { %2974 = vtanh.f32 %v4441_v9 }
 0xdd9   :  { %v2975_v21 = vpop.eup %2974 }
 0xdda   :  { %v2355_v30 = vmul.f32 %v2975_v21, %v2349_v11 }
 0xddc   :  { %2835 = vmatmul.msk.f32.vlgmr.msrb.gmra.mxu2 %vm116_vm0, %v2355_v30 }
 0xddd   :  { %2587 = vmatpush.msrb.mxu2 %v4105_v38 }
 0xddf   :  { %2588 = vmatpush.msrb.mxu2 %v4111_v14 }
 0xe5f   :  { %v2376_v8 = vpop.f32.mrf.mxu2 }
 0xe60   :  { %v2377_v40 = vadd.f32 %v4288_v55, %v2376_v8 }
 0xe62   :  { %v2379_v41 = vmax.f32 %v2377_v40, 0.0 }
 0xe64   :  { %2836 = vmatmul.msk.f32.vlgmr.msra.gmra.mxu3 %vm148_vm1, %v2379_v41 }
 0xe65   :  { %2602 = vmatpush.msra.mxu3 %v3046_v36 }
 0xe67   :  { %2603 = vmatpush.msra.mxu3 %v3047_v42 }
 0xe69   :  { %2604 = vmatpush.msra.mxu3 %v4121_v20 }
 0xe6b   :  { %2605 = vmatpush.msra.mxu3 %v4127_v19 }
 0xe6c   :  { %2839 = vmatmul.msk.f32.vlgmr.msrb.gmra.mxu3 %vm116_vm0, %v2355_v30 }
 0xe6d   :  { %2606 = vmatpush.msra.mxu3 %v4134_v52 }
 0xe6f   :  { %2607 = vmatpush.msra.mxu3 %v4140_v22 }
 0xe71   :  { %2608 = vmatpush.msra.mxu3 %v4146_v0 }
 0xe73   :  { %2609 = vmatpush.msra.mxu3 %v4152_v6 }
 0xe74   :  { %2847 = vmatmul.msk.f32.vlgmr.msra.gmra.mxu3 %vm116_vm0, %v2355_v30 }
 0xee7   :  { %v2400_v38 = vpop.f32.mrf.mxu3 }
 0xee8   :  { %v2401_v14 = vadd.f32 %v4315_v57, %v2400_v38 }
 0xeea   :  { %2837 = vst.msk [vmem:[%s4518_s19 + $0xc] sm:$0x3] %vm705_vm15, %v2401_v14  ;;  %2838 = vmatmul.msk.f32.vlgmr.msra.gmra.mxu1 %vm414_vm2, %v2401_v14  ;;  %2841 = vmatmul.msk.f32.vlgmr.msra.gmra.mxu0 %vm414_vm2, %v2401_v14 }
 0xeeb   :  { %2844 = vmatmul.msk.f32.vlgmr.msra.gmra.mxu2 %vm414_vm2, %v2401_v14  ;;  %2650 = vmatpush.msra.mxu1 %v4182_v25 }
 0xeec   :  { %2678 = vmatpush.msra.mxu2 %v4188_v28 }
 0xeed   :  { %2651 = vmatpush.msra.mxu1 %v4195_v26 }
 0xeee   :  { %2679 = vmatpush.msra.mxu2 %v4201_v29 }
 0xeef   :  { %2652 = vmatpush.msra.mxu1 %v4208_v23  ;;  %v2446_v52 = vpop.f32.mrf.mxu3 }
 0xef0   :  { %2680 = vmatpush.msra.mxu2 %v4214_v1 }
 0xef1   :  { %2653 = vmatpush.msra.mxu1 %v4220_v50 }
 0xef2   :  { %2842 = vmatmul.msk.f32.vlgmr.msrb.gmra.mxu1 %vm116_vm0, %v2355_v30  ;;  %2845 = vmatmul.msk.f32.vlgmr.msrb.gmra.mxu0 %vm116_vm0, %v2355_v30 }
 0xef3   :  { %2846 = vmatmul.msk.f32.vlgmr.msrb.gmra.mxu2 %vm414_vm2, %v2401_v14  ;;  %2654 = vmatpush.msra.mxu1 %v4229_v24 }
 0xef4   :  { %2681 = vmatpush.msra.mxu2 %v4235_v53 }
 0xef5   :  { %2655 = vmatpush.msra.mxu1 %v4242_v16 }
 0xef7   :  { %2656 = vmatpush.msra.mxu1 %v4250_v27  ;;  %v2611_v16 = vpop.f32.mrf.mxu3 }
 0xef9   :  { %2657 = vmatpush.msra.mxu1 %v4686_v33 }
 0xf67   :  { %v2425_v20 = vpop.f32.mrf.mxu1  ;;  %v2486_v0 = vpop.f32.mrf.mxu0 }
 0xf68   :  { %v2428_v19 = vadd.f32 %v2425_v20, %v4700_v61  ;;  %v2489_v25 = vadd.f32 %v2486_v0, %v4701_v54 }
 0xf6a   :  { %v2449_v22 = vadd.f32 %v2446_v52, %v2428_v19 }
 0xf6c   :  { %v2840_v6 = vmul.f32 -1.442695, %v2449_v22 }
 0xf6e   :  { %2976 = vpow2.f32 %v2840_v6  ;;  %v2547_v28 = vpop.f32.mrf.mxu2 }
 0xf6f   :  { %v2507_v26 = vpop.f32.mrf.mxu1  ;;  %v2550_v54 = vadd.f32 %v2547_v28, %v4703_v46  ;;  %v2568_v32 = vpop.f32.mrf.mxu0 }
 0xf70   :  { %v2510_v29 = vadd.f32 %v2507_v26, %v2489_v25 }
 0xf71   :  { %v2571_v10 = vadd.f32 %v2568_v32, %v2550_v54 }
 0xf72   :  { %v2843_v23 = vmul.f32 -1.442695, %v2510_v29 }
 0xf74   :  { %v2977_v1 = vpop.eup %2976  ;;  %2978 = vpow2.f32 %v2843_v23 }
 0xf75   :  { %v2453_v50 = vadd.f32 1.0, %v2977_v1 }
 0xf76   :  { %v2590_v24 = vpop.f32.mrf.mxu2 }
 0xf77   :  { %2980 = vrcp.f32 %v2453_v50  ;;  %v2593_v53 = vadd.f32 %v2590_v24, %v4702_v17  ;;  %v2465_v17 = vand.u32 2147483648, %v2453_v50  ;;  %vm2459_vm3 = vweird.f32 %v2453_v50 }
 0xf78   :  { %v2463_v37 = vand.u32 2147483647, %v2453_v50 }
 0xf79   :  { %v2614_v33 = vadd.f32 %v2611_v16, %v2593_v53  ;;  %v2466_v51 = vor.u32 1.1754944e-38, %v2465_v17 }
 0xf7a   :  { %v2979_v27 = vpop.eup %2978  ;;  %vm2464_vm7 = vcmp.eq.f32.partialorder %v2463_v37, 8.507059e+37 }
 0xf7b   :  { %v2514_v61 = vadd.f32 1.0, %v2979_v27  ;;  %v2848_v47 = vmul.f32 -1.442695, %v2614_v33 }
 0xf7d   :  { %v2981_v5 = vpop.eup %2980  ;;  %2982 = vrcp.f32 %v2514_v61  ;;  %v2526_v63 = vand.u32 2147483648, %v2514_v61  ;;  %v2524_v34 = vand.u32 2147483647, %v2514_v61  ;;  %vm2520_vm6 = vweird.f32 %v2514_v61 }
 0xf7e   :  { %v2455_v39 = vmul.f32 %v2981_v5, %v2453_v50  ;;  %2984 = vpow2.f32 %v2848_v47  ;;  %vm2460_vm2 = vweird.f32 %v2981_v5 }
 0xf7f   :  { %2986 = vtanh.f32 %v2571_v10  ;;  %vm2461_vm4 = vmor %vm2459_vm3, %vm2460_vm2  ;;  %v2527_v35 = vor.u32 1.1754944e-38, %v2526_v63  ;;  %vm2525_vm9 = vcmp.eq.f32.partialorder %v2524_v34, 8.507059e+37 }
 0xf80   :  { %v2456_v59 = vsub.f32 1.0, %v2455_v39 }
 0xf82   :  { %v2457_v7 = vmul.f32 %v2981_v5, %v2456_v59 }
 0xf83   :  { %v2983_v56 = vpop.eup %2982 }
 0xf84   :  { %v2985_v2 = vpop.eup %2984  ;;  %v2516_v48 = vmul.f32 %v2983_v56, %v2514_v61  ;;  %v2458_v13 = vadd.f32 %v2981_v5, %v2457_v7  ;;  %vm2521_vm5 = vweird.f32 %v2983_v56 }
 0xf85   :  { %v2618_v49 = vadd.f32 1.0, %v2985_v2  ;;  %vm2522_vm8 = vmor %vm2520_vm6, %vm2521_vm5  ;;  %v2987_v12 = vpop.eup %2986 }
 0xf86   :  { %v2517_v4 = vsub.f32 1.0, %v2516_v48  ;;  %v2462_v45 = vsel %vm2461_vm4, %v2981_v5, %v2458_v13 }
 0xf87   :  { %2988 = vrcp.f32 %v2618_v49  ;;  %v2467_v18 = vsel %vm2464_vm7, %v2466_v51, %v2462_v45  ;;  %v2630_v30 = vand.u32 2147483648, %v2618_v49  ;;  %v2628_v8 = vand.u32 2147483647, %v2618_v49 }
 0xf88   :  { %v2518_v46 = vmul.f32 %v2983_v56, %v2517_v4  ;;  %v2635_v43 = vmul.f32 %v2987_v12, %v2467_v18  ;;  %vm2624_vm11 = vweird.f32 %v2618_v49 }
 0xf89   :  { %v2631_v36 = vor.u32 1.1754944e-38, %v2630_v30  ;;  %vm2629_vm13 = vcmp.eq.f32.partialorder %v2628_v8, 8.507059e+37 }
 0xf8a   :  { %v2519_v3 = vadd.f32 %v2983_v56, %v2518_v46 }
 0xf8c   :  { %v2523_v62 = vsel %vm2522_vm8, %v2983_v56, %v2519_v3 }
 0xf8d   :  { %v2989_v15 = vpop.eup %2988  ;;  %v2528_v31 = vsel %vm2525_vm9, %v2527_v35, %v2523_v62 }
 0xf8e   :  { %v2634_v60 = vmul.f32 %v2528_v31, %v4441_v9  ;;  %v2620_v44 = vmul.f32 %v2989_v15, %v2618_v49  ;;  %vm2625_vm10 = vweird.f32 %v2989_v15 }
 0xf8f   :  { %vm2626_vm12 = vmor %vm2624_vm11, %vm2625_vm10 }
 0xf90   :  { %v2636_v58 = vadd.f32 %v2635_v43, %v2634_v60  ;;  %v2621_v21 = vsub.f32 1.0, %v2620_v44 }
 0xf92   :  { %2990 = vtanh.f32 %v2636_v58  ;;  %v2622_v11 = vmul.f32 %v2989_v15, %v2621_v21 }
 0xf94   :  { %v2623_v40 = vadd.f32 %v2989_v15, %v2622_v11 }
 0xf96   :  { %v2627_v41 = vsel %vm2626_vm12, %v2989_v15, %v2623_v40 }
 0xf97   :  { %v2632_v38 = vsel %vm2629_vm13, %v2631_v36, %v2627_v41 }
 0xf98   :  { %v2991_v42 = vpop.eup %2990 }
 0xf99   :  { %v2638_v14 = vmul.f32 %v2991_v42, %v2632_v38 }
 0xf9b   :  { %2849 = vmatmul.msk.f32.vlgmr.msra.gmra.mxu1 %vm116_vm0, %v2638_v14 }
0x1018   :  { %v2659_v9 = vpop.f32.mrf.mxu1 }
0x1019   :  { %v2660_v20 = vadd.f32 %v4288_v55, %v2659_v9 }
0x101b   :  { %v2662_v19 = vmax.f32 %v2660_v20, 0.0 }
0x101d   :  { %2850 = vmatmul.msk.f32.vlgmr.msra.gmra.mxu2 %vm148_vm1, %v2662_v19 }
0x10a0   :  { %v2683_v52 = vpop.f32.mrf.mxu2 }
0x10a1   :  { %v2684_v22 = vadd.f32 %v4315_v57, %v2683_v52 }
0x10a3   :  { %2851 = vst.msk [vmem:[%s4518_s19 + $0xe] sm:$0x3] %vm705_vm15, %v2684_v22 }

// kernel: lstm_ae_feedback_forward.4
= control target key start
LH: loop header
LB: loop body
LE: loop exit
PB: predicated region body
PF: predicated region fallthrough
CT: control target
= control target key end

     0   :  { %v4785_v3 = vmov 0   ;;  %vm132_vm0 = vcmask 261120   ;;  %v7382_v33 = vmov 0.0   ;;  %s7373_s3 = inlined_call_operand.vmem [shape: f32[4,64,64], index: 3, kind: input, shape index: {}]   ;;  %s7374_s2 = inlined_call_operand.vmem [shape: f32[4,32,64], index: 2, kind: input, shape index: {}]   ;;  %s7375_s1 = inlined_call_operand.vmem [shape: f32[8,2,32], index: 1, kind: input, shape index: {}]   ;;  %s7376_s0 = inlined_call_operand.vmem [shape: s32[2,1], index: 0, kind: input, shape index: {}]   ;;  %s7377_s4 = inlined_call_operand.vmem [shape: f32[4,1,64], index: 4, kind: input, shape index: {}]   ;;  %s7378_s5 = inlined_call_operand.vmem [shape: f32[4,32,64], index: 5, kind: input, shape index: {}]   ;;  %s7379_s6 = inlined_call_operand.vmem [shape: f32[4,64,64], index: 6, kind: input, shape index: {}]   ;;  %s7380_s7 = inlined_call_operand.vmem [shape: f32[4,1,64], index: 7, kind: input, shape index: {}]   ;;  %s7381_s8 = inlined_call_operand.vmem [shape: f32[2,2,64], index: 8, kind: output, shape index: {}]  }
   0x1   :  { %v4835_v0 = vld [vmem:[%s7373_s3 + $0x38] sm:$0xff]  ;;  %v4845_v2 = vld [vmem:[%s7373_s3 + $0x30] sm:$0xff]  ;;  %4401 = vset.pattern.permute.xlu0 %v4785_v3  ;;  %4402 = vset.pattern.permute.xlu1 %v4785_v3  ;;  %v4857_v5 = vld [vmem:[%s7373_s3 + $0x28] sm:$0xff] }
   0x2   :  { %v4840_v1 = vld [vmem:[%s7373_s3 + $0x78] sm:$0xff]  ;;  %120 = vmatpush.msra.mxu0 %v4835_v0  ;;  %v4852_v4 = vld [vmem:[%s7373_s3 + $0x70] sm:$0xff]  ;;  %v4862_v6 = vld [vmem:[%s7373_s3 + $0x68] sm:$0xff]  ;;  %4403 = vset.pattern.permute.xlu2 %v4785_v3 }
   0x3   :  { %187 = vmatpush.msra.mxu2 %v4840_v1  ;;  %v4869_v7 = vld [vmem:[%s7374_s2 + $0x18] sm:$0xff]  ;;  %v4879_v9 = vld [vmem:[%s7373_s3 + $0x20] sm:$0xff]  ;;  %v4891_v11 = vld [vmem:[%s7374_s2 + $0x10] sm:$0xff] }
   0x4   :  { %121 = vmatpush.msra.mxu0 %v4845_v2  ;;  %7540 = vst [vmem:[#allocation2_spill] sm:$0xff] %v4869_v7  ;;  %v4874_v8 = vld [vmem:[%s7374_s2 + $0x38] sm:$0xff]  ;;  %v4884_v10 = vld [vmem:[%s7373_s3 + $0x60] sm:$0xff]  ;;  %148 = vmatpush.msra.mxu1 %v4869_v7  ;;  %v4898_v12 = vld [vmem:[%s7374_s2 + $0x30] sm:$0xff] }
   0x5   :  { %188 = vmatpush.msra.mxu2 %v4852_v4  ;;  %7541 = vst [vmem:[#allocation3_spill] sm:$0xff] %v4874_v8  ;;  %211 = vmatpush.msra.mxu3 %v4874_v8  ;;  %v4903_v13 = vld [vmem:[%s7374_s2 + $0x8] sm:$0xff]  ;;  %v4908_v14 = vld [vmem:[%s7373_s3 + $0x18] sm:$0xff]  ;;  %v4927_v17 = vld [vmem:[%s7374_s2] sm:$0xff] }
   0x6   :  { %7542 = vst [vmem:[#allocation4_spill] sm:$0xff] %v4891_v11  ;;  %122 = vmatpush.msra.mxu0 %v4857_v5  ;;  %v4913_v15 = vld [vmem:[%s7373_s3 + $0x58] sm:$0xff]  ;;  %149 = vmatpush.msra.mxu1 %v4891_v11  ;;  %v4920_v16 = vld [vmem:[%s7374_s2 + $0x28] sm:$0xff]  ;;  %v4932_v18 = vld [vmem:[%s7374_s2 + $0x20] sm:$0xff] }
   0x7   :  { %189 = vmatpush.msra.mxu2 %v4862_v6  ;;  %7543 = vst [vmem:[#allocation5_spill] sm:$0xff] %v4898_v12  ;;  %212 = vmatpush.msra.mxu3 %v4898_v12  ;;  %v4937_v19 = vld [vmem:[%s7373_s3 + $0x10] sm:$0xff]  ;;  %v4951_v21 = vld [vmem:[%s7375_s1] sm:$0x3]  ;;  %v4956_v22 = vld [vmem:[%s7373_s3 + $0x8] sm:$0xff] }
   0x8   :  { %7544 = vst [vmem:[#allocation6_spill] sm:$0xff] %v4903_v13  ;;  %123 = vmatpush.msra.mxu0 %v4879_v9  ;;  %v4942_v20 = vld [vmem:[%s7373_s3 + $0x50] sm:$0xff]  ;;  %150 = vmatpush.msra.mxu1 %v4903_v13  ;;  %v4961_v23 = vld [vmem:[%s7373_s3 + $0x48] sm:$0xff]  ;;  %v4970_v24 = vld [vmem:[%s7373_s3 + $0xb8] sm:$0xff] }
   0x9   :  { %7545 = vst [vmem:[#allocation7_spill] sm:$0xff] %v4920_v16  ;;  %190 = vmatpush.msra.mxu2 %v4884_v10  ;;  %213 = vmatpush.msra.mxu3 %v4920_v16  ;;  %v4975_v25 = vld [vmem:[%s7374_s2 + $0x58] sm:$0xff]  ;;  %v4980_v26 = vld [vmem:[%s7373_s3] sm:$0xff]  ;;  %v5010_v30 = vld [vmem:[%s7373_s3 + $0xf0] sm:$0xff] }
   0xa   :  { %7546 = vst [vmem:[#allocation8_spill] sm:$0xff] %v4927_v17  ;;  %124 = vmatpush.msra.mxu0 %v4908_v14  ;;  %151 = vmatpush.msra.mxu1 %v4927_v17  ;;  %v4985_v27 = vld [vmem:[%s7373_s3 + $0x40] sm:$0xff]  ;;  %v4996_v28 = vld [vmem:[%s7373_s3 + $0xf8] sm:$0xff]  ;;  %v5015_v31 = vld [vmem:[%s7373_s3 + $0xb0] sm:$0xff] }
   0xb   :  { %7547 = vst [vmem:[#allocation9_spill] sm:$0xff] %v4932_v18  ;;  %191 = vmatpush.msra.mxu2 %v4913_v15  ;;  %214 = vmatpush.msra.mxu3 %v4932_v18  ;;  %v5001_v29 = vld [vmem:[%s7374_s2 + $0x78] sm:$0xff]  ;;  %v5020_v32 = vld [vmem:[%s7374_s2 + $0x50] sm:$0xff]  ;;  %v5027_v34 = vld [vmem:[%s7373_s3 + $0xe8] sm:$0xff] }
   0xc   :  { %7548 = vst [vmem:[#allocation10_spill] sm:$0xff] %v4956_v22  ;;  %125 = vmatpush.msra.mxu0 %v4937_v19  ;;  %4176 = vmatmul.msk.f32.vlgmr.msra.gmra.mxu1 %vm132_vm0, %v4951_v21  ;;  %v5032_v35 = vld [vmem:[%s7374_s2 + $0x70] sm:$0xff]  ;;  %v5037_v36 = vld [vmem:[%s7376_s0] sm:$0x3]  ;;  %v5044_v37 = vld [vmem:[%s7373_s3 + $0xa8] sm:$0xff] }
   0xd   :  { %192 = vmatpush.msra.mxu2 %v4942_v20  ;;  %7549 = vst [vmem:[#allocation11_spill] sm:$0xff] %v4980_v26  ;;  %4178 = vmatmul.msk.f32.vlgmr.msra.gmra.mxu3 %vm132_vm0, %v4951_v21  ;;  %v5049_v38 = vld [vmem:[%s7374_s2 + $0x48] sm:$0xff]  ;;  %v5061_v40 = vld [vmem:[%s7373_s3 + $0xa0] sm:$0xff]  ;;  %vm355_vm1 = vcmp.gt.s32.totalorder %v5037_v36, 0  ;;  %v5088_v44 = vld [vmem:[%s7373_s3 + $0x98] sm:$0xff]  ;;  %vm610_vm2 = vcmp.gt.s32.totalorder %v5037_v36, 1 }
   0xe   :  { %126 = vmatpush.msra.mxu0 %v4956_v22  ;;  %250 = vmatpush.msrb.mxu1 %v4970_v24  ;;  %7550 = vst [vmem:[#allocation12_spill] sm:$0xff] %v5032_v35  ;;  %v5054_v39 = vld [vmem:[%s7374_s2 + $0x68] sm:$0xff]  ;;  %v5068_v41 = vld [vmem:[%s7374_s2 + $0x40] sm:$0xff]  ;;  %v5093_v45 = vld [vmem:[%s7373_s3 + $0xd8] sm:$0xff]  ;;  %v4183_v46 = vsel %vm355_vm1, 1.0, %v7382_v33  ;;  %v4196_v51 = vsel %vm610_vm2, 1.0, %v7382_v33 }
   0xf   :  { %193 = vmatpush.msra.mxu2 %v4961_v23  ;;  %274 = vmatpush.msrb.mxu3 %v4975_v25  ;;  %7551 = vst [vmem:[#allocation13_spill] sm:$0xff] %v5049_v38  ;;  %v5074_v42 = vld [vmem:[%s7373_s3 + $0xe0] sm:$0xff]  ;;  %v5103_v47 = vld [vmem:[%s7373_s3 + $0x90] sm:$0xff]  ;;  %v5117_v49 = vld [vmem:[%s7373_s3 + $0x88] sm:$0xff]  ;;  %v364_v54 = vsub.f32 1.0, %v4183_v46  ;;  %v619_v55 = vsub.f32 1.0, %v4196_v51 }
  0x10   :  { %127 = vmatpush.msra.mxu0 %v4980_v26  ;;  %7552 = vst [vmem:[#allocation14_spill] sm:$0xff] %v5054_v39  ;;  %251 = vmatpush.msrb.mxu1 %v5015_v31  ;;  %v5079_v43 = vld [vmem:[%s7374_s2 + $0x60] sm:$0xff]  ;;  %v5110_v48 = vld [vmem:[%s7373_s3 + $0xd0] sm:$0xff]  ;;  %v5123_v50 = vld [vmem:[%s7373_s3 + $0xc8] sm:$0xff]  ;;  %vm1122_vm3 = vcmp.gt.s32.totalorder %v5037_v36, 3  ;;  %vm1378_vm4 = vcmp.gt.s32.totalorder %v5037_v36, 4 }
  0x11   :  { %194 = vmatpush.msra.mxu2 %v4985_v27  ;;  %128 = vmatmul.f32.vlgmr.msra.gmra.mxu0 %v7382_v33  ;;  %7553 = vst [vmem:[#allocation15_spill] sm:$0xff] %v5068_v41  ;;  %v5133_v52 = vld [vmem:[%s7373_s3 + $0x80] sm:$0xff]  ;;  %v4222_v56 = vsel %vm1122_vm3, 1.0, %v7382_v33  ;;  %v5169_v57 = vsel %vm1378_vm4, 1.0, %v7382_v33  ;;  %vm1890_vm5 = vcmp.gt.s32.totalorder %v5037_v36, 6  ;;  %vm2146_vm6 = vcmp.gt.s32.totalorder %v5037_v36, 7 }
  0x12   :  { %195 = vmatmul.f32.vlgmr.msra.gmra.mxu2 %v7382_v33  ;;  %295 = vmatpush.msrb.mxu0 %v4996_v28  ;;  %7554 = vst [vmem:[#allocation16_spill] sm:$0xff] %v5079_v43  ;;  %v5138_v53 = vld [vmem:[%s7373_s3 + $0xc0] sm:$0xff]  ;;  %v1387_v58 = vsub.f32 1.0, %v5169_v57  ;;  %v1131_v59 = vsub.f32 1.0, %v4222_v56  ;;  %v5196_v60 = vsel %vm1890_vm5, 1.0, %v7382_v33  ;;  %v5207_v61 = vsel %vm2146_vm6, 1.0, %v7382_v33 }
  0x13   :  { %319 = vmatpush.msrb.mxu2 %v5001_v29  ;;  %275 = vmatpush.msrb.mxu3 %v5020_v32  ;;  %7555 = vst [vmem:[#allocation17_spill] sm:$0xff] %v5207_v61  ;;  %v2457_v62 = vsub.f32 1.0, %v5207_v61  ;;  %v5214_v3 = vld [vmem:[%s7377_s4] ss:$0 sm:$0xff]  ;;  %vm1634_vm15 = vcmp.gt.s32.totalorder %v5037_v36, 5  ;;  %vm866_vm1 = vcmp.gt.s32.totalorder %v5037_v36, 2 }
  0x14   :  { %296 = vmatpush.msrb.mxu0 %v5010_v30  ;;  %252 = vmatpush.msrb.mxu1 %v5044_v37  ;;  %7556 = vst [vmem:[#allocation18_spill] sm:$0xff] %v5214_v3 }
  0x15   :  { %320 = vmatpush.msrb.mxu2 %v5032_v35  ;;  %276 = vmatpush.msrb.mxu3 %v5049_v38 }
  0x16   :  { %297 = vmatpush.msrb.mxu0 %v5027_v34  ;;  %253 = vmatpush.msrb.mxu1 %v5061_v40 }
  0x17   :  { %321 = vmatpush.msrb.mxu2 %v5054_v39  ;;  %277 = vmatpush.msrb.mxu3 %v5068_v41 }
  0x18   :  { %298 = vmatpush.msrb.mxu0 %v5074_v42  ;;  %254 = vmatpush.msrb.mxu1 %v5088_v44 }
  0x19   :  { %322 = vmatpush.msrb.mxu2 %v5079_v43  ;;  %360 = vperm.xlu0 %4401, %v4183_v46  }
  0x1a   :  { %4181 = vmatmul.msk.f32.vlgmr.msrb.gmra.mxu2 %vm132_vm0, %v4951_v21  ;;  %299 = vmatpush.msrb.mxu0 %v5093_v45 }
  0x1b   :  { %4180 = vmatmul.msk.f32.vlgmr.msrb.gmra.mxu3 %vm132_vm0, %v4951_v21  ;;  %255 = vmatpush.msrb.mxu1 %v5103_v47 }
  0x1c   :  { %300 = vmatpush.msrb.mxu0 %v5110_v48  ;;  %615 = vperm.xlu1 %4402, %v4196_v51  }
  0x1d   :  { %256 = vmatpush.msrb.mxu1 %v5117_v49  ;;  %388 = vmatpush.msra.mxu3 %v4835_v0 }
  0x1e   :  { %301 = vmatpush.msrb.mxu0 %v5123_v50  ;;  %451 = vmatpush.msra.mxu2 %v4840_v1 }
  0x1f   :  { %257 = vmatpush.msrb.mxu1 %v5133_v52  ;;  %389 = vmatpush.msra.mxu3 %v4845_v2 }
  0x20   :  { %302 = vmatpush.msrb.mxu0 %v5138_v53  ;;  %258 = vmatmul.f32.vlgmr.msrb.gmra.mxu1 %v7382_v33 }
  0x21   :  { %303 = vmatmul.f32.vlgmr.msrb.gmra.mxu0 %v7382_v33  ;;  %415 = vmatpush.msra.mxu1 %v4869_v7 }
  0x22   :  { %367 = vperm.xlu0 %4401, %v364_v54   ;;  %553 = vmatpush.msra.mxu0 %v4996_v28 }
  0x23   :  { %416 = vmatpush.msra.mxu1 %v4891_v11  ;;  %452 = vmatpush.msra.mxu2 %v4852_v4 }
  0x24   :  { %622 = vperm.xlu1 %4402, %v619_v55   ;;  %554 = vmatpush.msra.mxu0 %v5010_v30 }
  0x25   :  { %417 = vmatpush.msra.mxu1 %v4903_v13  ;;  %390 = vmatpush.msra.mxu3 %v4857_v5 }
  0x26   :  { %453 = vmatpush.msra.mxu2 %v4862_v6  ;;  %555 = vmatpush.msra.mxu0 %v5027_v34 }
  0x27   :  { %418 = vmatpush.msra.mxu1 %v4927_v17  ;;  %391 = vmatpush.msra.mxu3 %v4879_v9 }
  0x28   :  { %454 = vmatpush.msra.mxu2 %v4884_v10  ;;  %556 = vmatpush.msra.mxu0 %v5074_v42 }
  0x29   :  { %511 = vmatpush.msrb.mxu1 %v4970_v24  ;;  %392 = vmatpush.msra.mxu3 %v4908_v14 }
  0x2a   :  { %1127 = vperm.xlu0 %4401, %v4222_v56   ;;  %455 = vmatpush.msra.mxu2 %v4913_v15  ;;  %v5220_v56 = vld [vmem:[%s7377_s4 + $0x1] ss:$0 sm:$0xff] }
  0x2b   :  { %512 = vmatpush.msrb.mxu1 %v5015_v31  ;;  %557 = vmatpush.msra.mxu0 %v5093_v45  ;;  %7557 = vst [vmem:[#allocation19_spill] sm:$0xff] %v5220_v56 }
  0x2c   :  { %393 = vmatpush.msra.mxu3 %v4937_v19  ;;  %456 = vmatpush.msra.mxu2 %v4942_v20 }
  0x2d   :  { %513 = vmatpush.msrb.mxu1 %v5044_v37  ;;  %558 = vmatpush.msra.mxu0 %v5110_v48 }
  0x2e   :  { %394 = vmatpush.msra.mxu3 %v4956_v22  ;;  %457 = vmatpush.msra.mxu2 %v4961_v23 }
  0x2f   :  { %514 = vmatpush.msrb.mxu1 %v5061_v40  ;;  %559 = vmatpush.msra.mxu0 %v5123_v50 }
  0x30   :  { %395 = vmatpush.msra.mxu3 %v4980_v26  ;;  %458 = vmatpush.msra.mxu2 %v4985_v27 }
  0x31   :  { %515 = vmatpush.msrb.mxu1 %v5088_v44  ;;  %560 = vmatpush.msra.mxu0 %v5138_v53 }
  0x32   :  { %1390 = vperm.xlu0 %4401, %v1387_v58   ;;  %475 = vmatpush.msrb.mxu3 %v4874_v8 }
  0x33   :  { %516 = vmatpush.msrb.mxu1 %v5103_v47  ;;  %577 = vmatpush.msrb.mxu2 %v5001_v29 }
  0x34   :  { %1134 = vperm.xlu1 %4402, %v1131_v59   ;;  %476 = vmatpush.msrb.mxu3 %v4898_v12 }
  0x35   :  { %517 = vmatpush.msrb.mxu1 %v5117_v49  ;;  %578 = vmatpush.msrb.mxu2 %v5032_v35 }
  0x36   :  { %731 = vmatpush.msrb.mxu0 %v4874_v8  ;;  %477 = vmatpush.msrb.mxu3 %v4920_v16 }
  0x37   :  { %518 = vmatpush.msrb.mxu1 %v5133_v52  ;;  %579 = vmatpush.msrb.mxu2 %v5054_v39 }
  0x38   :  { %732 = vmatpush.msrb.mxu0 %v4898_v12  ;;  %478 = vmatpush.msrb.mxu3 %v4932_v18 }
  0x39   :  { %580 = vmatpush.msrb.mxu2 %v5079_v43 }
  0x3a   :  { %1895 = vperm.xlu0 %4401, %v5196_v60   ;;  %733 = vmatpush.msrb.mxu0 %v4920_v16 }
  0x3c   :  { %734 = vmatpush.msrb.mxu0 %v4932_v18 }
  0x42   :  { %2460 = vperm.xlu0 %4401, %v2457_v62  }
  0x89   :  { %v153_v63 = vpop.f32.mrf.mxu1 }
  0x8e   :  { %v129_v21 = vpop.f32.mrf.mxu0 }
  0x8f   :  { %v154_v46 = vadd.f32 %v153_v63, %v129_v21  ;;  %v5226_v63 = vld [vmem:[%s7377_s4 + $0x3] ss:$0 sm:$0xff] }
  0x90   :  { %v216_v54 = vpop.f32.mrf.mxu3  ;;  %7558 = vst [vmem:[#allocation20_spill] sm:$0xff] %v5226_v63 }
  0x91   :  { %v159_v51 = vadd.f32 %v5214_v3, %v154_v46  ;;  %v5231_v46 = vld [vmem:[%s7375_s1 + $0x2] sm:$0x3] }
  0x92   :  { %4186 = vmatmul.msk.f32.vlgmr.msra.gmra.mxu1 %vm132_vm0, %v5231_v46 }
  0x93   :  { %v4177_v55 = vmul.f32 -1.442695, %v159_v51  ;;  %671 = vmatpush.msra.mxu1 %v4869_v7 }
  0x95   :  { %v196_v58 = vpop.f32.mrf.mxu2  ;;  %4412 = vpow2.f32 %v4177_v55  ;;  %672 = vmatpush.msra.mxu1 %v4891_v11 }
  0x96   :  { %v217_v59 = vadd.f32 %v216_v54, %v196_v58 }
  0x97   :  { %673 = vmatpush.msra.mxu1 %v4903_v13 }
  0x98   :  { %v222_v62 = vadd.f32 %v5220_v56, %v217_v59 }
  0x99   :  { %674 = vmatpush.msra.mxu1 %v4927_v17 }
  0x9a   :  { %v4179_v33 = vmul.f32 -1.442695, %v222_v62 }
  0x9b   :  { %v4413_v18 = vpop.eup %4412 }
  0x9c   :  { %4414 = vpow2.f32 %v4179_v33  ;;  %v163_v16 = vadd.f32 1.0, %v4413_v18 }
  0x9d   :  { %v324_v12 = vpop.f32.mrf.mxu2  ;;  %v259_v54 = vpop.f32.mrf.mxu1 }
  0x9e   :  { %4416 = vrcp.f32 %v163_v16  ;;  %v304_v21 = vpop.f32.mrf.mxu0  ;;  %v279_v55 = vpop.f32.mrf.mxu3  ;;  %vm169_vm7 = vweird.f32 %v163_v16  ;;  %v175_v3 = vand.u32 2147483648, %v163_v16  ;;  %v173_v61 = vand.u32 2147483647, %v163_v16 }
  0x9f   :  { %v325_v51 = vadd.f32 %v324_v12, %v304_v21  ;;  %v280_v8 = vadd.f32 %v279_v55, %v259_v54  ;;  %v5241_v12 = vld [vmem:[%s7377_s4 + $0x2] ss:$0 sm:$0xff] }
  0xa0   :  { %7559 = vst [vmem:[#allocation21_spill] sm:$0xff] %v5241_v12  ;;  %vm174_vm12 = vcmp.eq.f32.partialorder %v173_v61, 8.507059e+37 }
  0xa1   :  { %v330_v33 = vadd.f32 %v5226_v63, %v325_v51  ;;  %v5246_v63 = vpop.permute.xlu0 %360 }
  0xa2   :  { %v4415_v18 = vpop.eup %4414  ;;  %7560 = vst [vmem:[#allocation22_spill] sm:$0xff] %v5246_v63 }
  0xa3   :  { %v226_v58 = vadd.f32 1.0, %v4415_v18  ;;  %v4182_v59 = vmul.f32 -1.442695, %v330_v33  ;;  %v285_v18 = vadd.f32 %v5241_v12, %v280_v8 }
  0xa4   :  { %v4417_v62 = vpop.eup %4416 }
  0xa5   :  { %4418 = vrcp.f32 %v226_v58  ;;  %v165_v21 = vmul.f32 %v4417_v62, %v163_v16  ;;  %vm170_vm8 = vweird.f32 %v4417_v62  ;;  %v236_v8 = vand.u32 2147483647, %v226_v58 }
  0xa6   :  { %4420 = vpow2.f32 %v4182_v59  ;;  %vm171_vm9 = vmor %vm169_vm7, %vm170_vm8  ;;  %v238_v59 = vand.u32 2147483648, %v226_v58  ;;  %vm232_vm11 = vweird.f32 %v226_v58  ;;  %vm108_vm8 = vcmask 523264  }
  0xa7   :  { %v166_v51 = vsub.f32 1.0, %v165_v21  ;;  %4422 = vtanh.f32 %v285_v18  ;;  %vm237_vm14 = vcmp.eq.f32.partialorder %v236_v8, 8.507059e+37 }
  0xa8   :  { %v239_v26 = vor.u32 1.1754944e-38, %v238_v59 }
  0xa9   :  { %v167_v7 = vmul.f32 %v4417_v62, %v166_v51  ;;  %v176_v51 = vor.u32 1.1754944e-38, %v175_v3  ;;  %v368_v16 = vpop.permute.xlu0 %367  ;;  %v30_v3 = vcvt.s32.f32 %v5037_v36 }
  0xab   :  { %v4419_v11 = vpop.eup %4418  ;;  %v168_v55 = vadd.f32 %v4417_v62, %v167_v7  ;;  %vm36_vm6 = vweird.f32 %v30_v3 }
  0xac   :  { %v4421_v33 = vpop.eup %4420  ;;  %v228_v54 = vmul.f32 %v4419_v11, %v226_v58  ;;  %vm233_vm10 = vweird.f32 %v4419_v11 }
  0xad   :  { %v334_v56 = vadd.f32 1.0, %v4421_v33  ;;  %v172_v17 = vsel %vm171_vm9, %v4417_v62, %v168_v55  ;;  %v4423_v43 = vpop.eup %4422  ;;  %vm234_vm13 = vmor %vm232_vm11, %vm233_vm10 }
  0xae   :  { %v229_v13 = vsub.f32 1.0, %v228_v54  ;;  %v177_v7 = vsel %vm174_vm12, %v176_v51, %v172_v17  ;;  %v7561_v17 = vmov 0.0  }
  0xaf   :  { %4424 = vrcp.f32 %v334_v56  ;;  %v351_v22 = vmul.f32 %v4423_v43, %v177_v7  ;;  %v5252_v62 = vsel %vm1634_vm15, 1.0, %v7561_v17  ;;  %v344_v55 = vand.u32 2147483647, %v334_v56 }
  0xb0   :  { %v230_v21 = vmul.f32 %v4419_v11, %v229_v13  ;;  %v370_v13 = vmul.f32 0.0, %v368_v16  ;;  %1639 = vperm.xlu1 %4402, %v5252_v62   ;;  %4426 = vrcp.f32 %v30_v3  ;;  %vm340_vm3 = vweird.f32 %v334_v56 }
  0xb1   :  { %vm345_vm5 = vcmp.eq.f32.partialorder %v344_v55, 8.507059e+37  ;;  %v42_v16 = vand.u32 2147483648, %v30_v3  ;;  %v1643_v55 = vsub.f32 1.0, %v5252_v62  ;;  %v7569_v62 = vld [vmem:[#allocation18_spill] sm:$0xff] }
  0xb2   :  { %v231_v12 = vadd.f32 %v4419_v11, %v230_v21 }
  0xb4   :  { %v235_v33 = vsel %vm234_vm13, %v4419_v11, %v231_v12  ;;  %v4209_v11 = vsel %vm866_vm1, 1.0, %v7561_v17  ;;  %v346_v12 = vand.u32 2147483648, %v334_v56  ;;  %v7578_v17 = vld [vmem:[#allocation8_spill] sm:$0xff] }
  0xb5   :  { %v4425_v18 = vpop.eup %4424  ;;  %v240_v54 = vsel %vm237_vm14, %v239_v26, %v235_v33  ;;  %871 = vperm.xlu2 %4403, %v4209_v11  }
  0xb6   :  { %v336_v39 = vmul.f32 %v4425_v18, %v334_v56  ;;  %v350_v35 = vmul.f32 0.0, %v240_v54  ;;  %vm341_vm2 = vweird.f32 %v4425_v18  ;;  %v347_v21 = vor.u32 1.1754944e-38, %v346_v12  ;;  %v4427_v8 = vpop.eup %4426 }
  0xb7   :  { %vm342_vm4 = vmor %vm340_vm3, %vm341_vm2  ;;  %v32_v33 = vmul.f32 %v4427_v8, %v30_v3  ;;  %vm37_vm7 = vweird.f32 %v4427_v8  ;;  %v40_v56 = vand.u32 2147483647, %v30_v3 }
  0xb8   :  { %v337_v61 = vsub.f32 1.0, %v336_v39  ;;  %v352_v58 = vadd.f32 %v351_v22, %v350_v35  ;;  %v1899_v22 = vsub.f32 1.0, %v5196_v60  ;;  %v875_v35 = vsub.f32 1.0, %v4209_v11  ;;  %vm38_vm9 = vmor %vm36_vm6, %vm37_vm7 }
  0xb9   :  { %v43_v11 = vor.u32 1.1754944e-38, %v42_v16  ;;  %vm41_vm10 = vcmp.eq.f32.partialorder %v40_v56, 8.507059e+37 }
  0xba   :  { %v338_v26 = vmul.f32 %v4425_v18, %v337_v61  ;;  %4428 = vtanh.f32 %v352_v58  ;;  %v372_v43 = vmul.f32 %v5246_v63, %v352_v58  ;;  %1902 = vperm.xlu1 %4402, %v1899_v22   ;;  %v33_v61 = vsub.f32 1.0, %v32_v33  ;;  %v7567_v22 = vld [vmem:[#allocation16_spill] sm:$0xff] }
  0xbc   :  { %v339_v59 = vadd.f32 %v4425_v18, %v338_v26  ;;  %v5257_v36 = vadd.f32 %v372_v43, %v370_v13  ;;  %v34_v60 = vmul.f32 %v4427_v8, %v33_v61  ;;  %v7564_v26 = vld [vmem:[#allocation10_spill] sm:$0xff] }
  0xbd   :  { %878 = vperm.xlu2 %4403, %v875_v35   ;;  %v7565_v43 = vld [vmem:[#allocation14_spill] sm:$0xff] }
  0xbe   :  { %v343_v39 = vsel %vm342_vm4, %v4425_v18, %v339_v59  ;;  %v35_v12 = vadd.f32 %v4427_v8, %v34_v60  ;;  %v7566_v59 = vld [vmem:[#allocation11_spill] sm:$0xff] }
  0xbf   :  { %v348_v7 = vsel %vm345_vm5, %v347_v21, %v343_v39  ;;  %v7570_v60 = vld [vmem:[#allocation19_spill] sm:$0xff] }
  0xc0   :  { %v4429_v51 = vpop.eup %4428  ;;  %v39_v3 = vsel %vm38_vm9, %v4427_v8, %v35_v12  ;;  %v7571_v12 = vld [vmem:[#allocation20_spill] sm:$0xff] }
  0xc1   :  { %v354_v54 = vmul.f32 %v4429_v51, %v348_v7 }
  0xc3   :  { %v5261_v58 = vmul.f32 %v5246_v63, %v354_v54 }
  0xc5   :  { %7562 = vst [vmem:[#allocation23_spill] sm:$0xff] %v5261_v58  ;;  %v5264_v18 = vadd.f32 %v370_v13, %v5261_v58  ;;  %v44_v13 = vsel %vm41_vm10, %v43_v11, %v39_v3  ;;  %1383 = vperm.xlu2 %4403, %v5169_v57   ;;  %v7568_v57 = vld [vmem:[#allocation17_spill] sm:$0xff] }
  0xc6   :  { %4124 = vperm.xlu1 %4402, %v44_v13  }
  0xc7   :  { %4185 = vmatmul.msk.f32.vlgmr.msra.gmra.mxu3 %vm108_vm8, %v5264_v18  ;;  %4188 = vmatmul.msk.f32.vlgmr.msra.gmra.mxu2 %vm108_vm8, %v5264_v18 }
  0xc8   :  { %4191 = vmatmul.msk.f32.vlgmr.msrb.gmra.mxu1 %vm108_vm8, %v5264_v18  ;;  %4193 = vmatmul.msk.f32.vlgmr.msra.gmra.mxu0 %vm108_vm8, %v5264_v18 }
  0xc9   :  { %535 = vmatpush.msra.mxu3 %v4975_v25  ;;  %707 = vmatpush.msra.mxu2 %v4840_v1 }
  0xca   :  { %767 = vmatpush.msrb.mxu1 %v4970_v24  ;;  %809 = vmatpush.msra.mxu0 %v4996_v28 }
  0xcb   :  { %536 = vmatpush.msra.mxu3 %v5020_v32  ;;  %708 = vmatpush.msra.mxu2 %v4852_v4 }
  0xcc   :  { %768 = vmatpush.msrb.mxu1 %v5015_v31  ;;  %810 = vmatpush.msra.mxu0 %v5010_v30 }
  0xcd   :  { %537 = vmatpush.msra.mxu3 %v5049_v38  ;;  %709 = vmatpush.msra.mxu2 %v4862_v6 }
  0xce   :  { %769 = vmatpush.msrb.mxu1 %v5044_v37  ;;  %811 = vmatpush.msra.mxu0 %v5027_v34 }
  0xcf   :  { %4189 = vmatmul.msk.f32.vlgmr.msrb.gmra.mxu3 %vm132_vm0, %v5231_v46  ;;  %4194 = vmatmul.msk.f32.vlgmr.msrb.gmra.mxu2 %vm132_vm0, %v5231_v46 }
  0xd0   :  { %538 = vmatpush.msra.mxu3 %v5068_v41  ;;  %710 = vmatpush.msra.mxu2 %v4884_v10 }
  0xd1   :  { %770 = vmatpush.msrb.mxu1 %v5061_v40  ;;  %812 = vmatpush.msra.mxu0 %v5074_v42 }
  0xd2   :  { %644 = vmatpush.msrb.mxu3 %v4835_v0  ;;  %711 = vmatpush.msra.mxu2 %v4913_v15 }
  0xd3   :  { %771 = vmatpush.msrb.mxu1 %v5088_v44  ;;  %813 = vmatpush.msra.mxu0 %v5093_v45 }
  0xd4   :  { %645 = vmatpush.msrb.mxu3 %v4845_v2  ;;  %712 = vmatpush.msra.mxu2 %v4942_v20 }
  0xd5   :  { %772 = vmatpush.msrb.mxu1 %v5103_v47  ;;  %814 = vmatpush.msra.mxu0 %v5110_v48 }
  0xd6   :  { %646 = vmatpush.msrb.mxu3 %v4857_v5  ;;  %713 = vmatpush.msra.mxu2 %v4961_v23 }
  0xd7   :  { %4192 = vmatmul.msk.f32.vlgmr.msra.gmra.mxu3 %vm132_vm0, %v5231_v46  ;;  %773 = vmatpush.msrb.mxu1 %v5117_v49  ;;  %v7563_v46 = vld [vmem:[#allocation12_spill] sm:$0xff] }
  0xd8   :  { %647 = vmatpush.msrb.mxu3 %v4879_v9  ;;  %815 = vmatpush.msra.mxu0 %v5123_v50 }
  0xd9   :  { %714 = vmatpush.msra.mxu2 %v4985_v27  ;;  %774 = vmatpush.msrb.mxu1 %v5133_v52 }
  0xda   :  { %648 = vmatpush.msrb.mxu3 %v4908_v14  ;;  %816 = vmatpush.msra.mxu0 %v5138_v53 }
  0xdb   :  { %833 = vmatpush.msrb.mxu2 %v5001_v29  ;;  %1646 = vperm.xlu2 %4403, %v1643_v55  }
  0xdc   :  { %649 = vmatpush.msrb.mxu3 %v4937_v19 }
  0xdd   :  { %834 = vmatpush.msrb.mxu2 %v7563_v46 }
  0xde   :  { %650 = vmatpush.msrb.mxu3 %v7564_v26 }
  0xdf   :  { %835 = vmatpush.msrb.mxu2 %v7565_v43 }
  0xe0   :  { %651 = vmatpush.msrb.mxu3 %v7566_v59 }
  0xe1   :  { %836 = vmatpush.msrb.mxu2 %v7567_v22 }
  0xe2   :  { %791 = vmatpush.msra.mxu3 %v4975_v25 }
  0xe3   :  { %2151 = vperm.xlu2 %4403, %v7568_v57  }
  0xe4   :  { %792 = vmatpush.msra.mxu3 %v5020_v32 }
  0xe6   :  { %793 = vmatpush.msra.mxu3 %v5049_v38 }
  0xe8   :  { %794 = vmatpush.msra.mxu3 %v5068_v41 }
 0x10f   :  { %v420_v35 = vpop.f32.mrf.mxu1 }
 0x145   :  { %v562_v33 = vpop.f32.mrf.mxu0 }
 0x14a   :  { %v397_v39 = vpop.f32.mrf.mxu3  ;;  %v460_v21 = vpop.f32.mrf.mxu2 }
 0x14b   :  { %v421_v8 = vadd.f32 %v420_v35, %v397_v39  ;;  %v5333_v35 = vld [vmem:[%s7375_s1 + $0x4] sm:$0x3] }
 0x14c   :  { %4199 = vmatmul.msk.f32.vlgmr.msra.gmra.mxu1 %vm132_vm0, %v5333_v35  ;;  %4202 = vmatmul.msk.f32.vlgmr.msrb.gmra.mxu0 %vm132_vm0, %v5333_v35 }
 0x14d   :  { %v423_v51 = vadd.f32 %v7569_v62, %v421_v8  ;;  %v7573_v8 = vld [vmem:[#allocation3_spill] sm:$0xff] }
 0x14e   :  { %987 = vmatpush.msrb.mxu0 %v7573_v8 }
 0x14f   :  { %v4187_v7 = vmul.f32 -1.442695, %v423_v51 }
 0x151   :  { %4430 = vpow2.f32 %v4187_v7 }
 0x152   :  { %v480_v54 = vpop.f32.mrf.mxu3  ;;  %v582_v16 = vpop.f32.mrf.mxu2 }
 0x153   :  { %v481_v61 = vadd.f32 %v480_v54, %v460_v21  ;;  %v583_v56 = vadd.f32 %v582_v16, %v562_v33  ;;  %v7572_v21 = vld [vmem:[#allocation2_spill] sm:$0xff] }
 0x154   :  { %927 = vmatpush.msra.mxu1 %v7572_v21 }
 0x155   :  { %v483_v11 = vadd.f32 %v7570_v60, %v481_v61  ;;  %v585_v3 = vadd.f32 %v7571_v12, %v583_v56  ;;  %v7574_v61 = vld [vmem:[#allocation4_spill] sm:$0xff]  ;;  %v7575_v56 = vld [vmem:[#allocation5_spill] sm:$0xff] }
 0x156   :  { %928 = vmatpush.msra.mxu1 %v7574_v61  ;;  %988 = vmatpush.msrb.mxu0 %v7575_v56  ;;  %v7580_v12 = vld [vmem:[#allocation21_spill] sm:$0xff] }
 0x157   :  { %v4431_v13 = vpop.eup %4430  ;;  %v4190_v55 = vmul.f32 -1.442695, %v483_v11  ;;  %v4195_v57 = vmul.f32 -1.442695, %v585_v3  ;;  %v520_v3 = vpop.f32.mrf.mxu1 }
 0x158   :  { %v427_v63 = vadd.f32 1.0, %v4431_v13 }
 0x159   :  { %4432 = vpow2.f32 %v4190_v55  ;;  %v7576_v55 = vld [vmem:[#allocation6_spill] sm:$0xff] }
 0x15a   :  { %4434 = vrcp.f32 %v427_v63  ;;  %v540_v16 = vpop.f32.mrf.mxu3  ;;  %929 = vmatpush.msra.mxu1 %v7576_v55  ;;  %v439_v62 = vand.u32 2147483648, %v427_v63  ;;  %vm433_vm12 = vweird.f32 %v427_v63  ;;  %v437_v55 = vand.u32 2147483647, %v427_v63 }
 0x15b   :  { %4436 = vpow2.f32 %v4195_v57  ;;  %v7577_v57 = vld [vmem:[#allocation7_spill] sm:$0xff]  ;;  %v541_v21 = vadd.f32 %v540_v16, %v520_v3 }
 0x15c   :  { %989 = vmatpush.msrb.mxu0 %v7577_v57  ;;  %930 = vmatpush.msra.mxu1 %v7578_v17  ;;  %vm438_vm1 = vcmp.eq.f32.partialorder %v437_v55, 8.507059e+37 }
 0x15d   :  { %v543_v61 = vadd.f32 %v7580_v12, %v541_v21 }
 0x15f   :  { %v4433_v39 = vpop.eup %4432 }
 0x160   :  { %v4435_v51 = vpop.eup %4434  ;;  %v487_v7 = vadd.f32 1.0, %v4433_v39  ;;  %v7579_v39 = vld [vmem:[#allocation9_spill] sm:$0xff] }
 0x161   :  { %v4437_v33 = vpop.eup %4436  ;;  %v429_v54 = vmul.f32 %v4435_v51, %v427_v63  ;;  %990 = vmatpush.msrb.mxu0 %v7579_v39  ;;  %vm434_vm11 = vweird.f32 %v4435_v51  ;;  %v440_v39 = vor.u32 1.1754944e-38, %v439_v62 }
 0x162   :  { %4438 = vrcp.f32 %v487_v7  ;;  %v589_v11 = vadd.f32 1.0, %v4437_v33  ;;  %v499_v57 = vand.u32 2147483648, %v487_v7  ;;  %vm435_vm13 = vmor %vm433_vm12, %vm434_vm11  ;;  %v497_v17 = vand.u32 2147483647, %v487_v7 }
 0x163   :  { %v430_v13 = vsub.f32 1.0, %v429_v54  ;;  %vm493_vm15 = vweird.f32 %v487_v7 }
 0x164   :  { %4440 = vrcp.f32 %v589_v11  ;;  %v500_v12 = vor.u32 1.1754944e-38, %v499_v57  ;;  %vm498_vm3 = vcmp.eq.f32.partialorder %v497_v17, 8.507059e+37  ;;  %v601_v62 = vand.u32 2147483648, %v589_v11 }
 0x165   :  { %v431_v8 = vmul.f32 %v4435_v51, %v430_v13  ;;  %4442 = vtanh.f32 %v543_v61  ;;  %vm595_vm5 = vweird.f32 %v589_v11 }
 0x167   :  { %v432_v56 = vadd.f32 %v4435_v51, %v431_v8 }
 0x168   :  { %v4439_v58 = vpop.eup %4438 }
 0x169   :  { %v489_v60 = vmul.f32 %v4439_v58, %v487_v7  ;;  %v436_v3 = vsel %vm435_vm13, %v4435_v51, %v432_v56  ;;  %vm494_vm14 = vweird.f32 %v4439_v58  ;;  %v599_v7 = vand.u32 2147483647, %v589_v11 }
 0x16a   :  { %v4441_v33 = vpop.eup %4440  ;;  %v441_v8 = vsel %vm438_vm1, %v440_v39, %v436_v3  ;;  %vm495_vm2 = vmor %vm493_vm15, %vm494_vm14  ;;  %v602_v56 = vor.u32 1.1754944e-38, %v601_v62  ;;  %v7598_v3 = vld [vmem:[#allocation21_spill] sm:$0xff] }
 0x16b   :  { %v490_v54 = vsub.f32 1.0, %v489_v60  ;;  %v591_v22 = vmul.f32 %v4441_v33, %v589_v11  ;;  %v4443_v60 = vpop.eup %4442  ;;  %vm596_vm4 = vweird.f32 %v4441_v33  ;;  %vm600_vm7 = vcmp.eq.f32.partialorder %v599_v7, 8.507059e+37 }
 0x16c   :  { %v606_v38 = vmul.f32 %v4443_v60, %v441_v8  ;;  %vm597_vm6 = vmor %vm595_vm5, %vm596_vm4 }
 0x16d   :  { %v491_v16 = vmul.f32 %v4439_v58, %v490_v54  ;;  %v592_v13 = vsub.f32 1.0, %v591_v22  ;;  %v5349_v54 = vpop.permute.xlu1 %615 }
 0x16e   :  { %7581 = vst [vmem:[#allocation12_spill] sm:$0xff] %v5349_v54 }
 0x16f   :  { %v492_v21 = vadd.f32 %v4439_v58, %v491_v16  ;;  %v593_v43 = vmul.f32 %v4441_v33, %v592_v13 }
 0x171   :  { %v496_v41 = vsel %vm495_vm2, %v4439_v58, %v492_v21  ;;  %v594_v22 = vadd.f32 %v4441_v33, %v593_v43 }
 0x172   :  { %v501_v63 = vsel %vm498_vm3, %v500_v12, %v496_v41 }
 0x173   :  { %v605_v61 = vmul.f32 %v501_v63, %v5257_v36  ;;  %v598_v58 = vsel %vm597_vm6, %v4441_v33, %v594_v22 }
 0x174   :  { %v603_v41 = vsel %vm600_vm7, %v602_v56, %v598_v58 }
 0x175   :  { %v5351_v51 = vadd.f32 %v606_v38, %v605_v61  ;;  %v5354_v57 = vpop.permute.xlu1 %622 }
 0x176   :  { %7582 = vst [vmem:[#allocation10_spill] sm:$0xff] %v5354_v57  ;;  %v625_v38 = vmul.f32 %v5354_v57, %v5264_v18  ;;  %v5473_v18 = vld [vmem:[%s7374_s2 + $0x20] sm:$0xff] }
 0x177   :  { %4444 = vtanh.f32 %v5351_v51  ;;  %7597 = vst [vmem:[#allocation7_spill] sm:$0xff] %v5473_v18  ;;  %v627_v58 = vmul.f32 %v5349_v54, %v5351_v51 }
 0x17d   :  { %v4445_v55 = vpop.eup %4444 }
 0x17e   :  { %v609_v12 = vmul.f32 %v4445_v55, %v603_v41 }
 0x180   :  { %v5359_v43 = vmul.f32 %v5349_v54, %v609_v12 }
 0x182   :  { %v5362_v16 = vadd.f32 %v625_v38, %v5359_v43  ;;  %v628_v38 = vmul.f32 %v5354_v57, %v5257_v36 }
 0x184   :  { %4198 = vmatmul.msk.f32.vlgmr.msrb.gmra.mxu3 %vm108_vm8, %v5362_v16  ;;  %4201 = vmatmul.msk.f32.vlgmr.msra.gmra.mxu2 %vm108_vm8, %v5362_v16  ;;  %v5481_v51 = vadd.f32 %v628_v38, %v627_v58  ;;  %v5587_v58 = vld [vmem:[%s7373_s3 + $0x20] sm:$0xff]  ;;  %v5623_v38 = vld [vmem:[%s7373_s3 + $0x98] sm:$0xff] }
 0x185   :  { %4204 = vmatmul.msk.f32.vlgmr.msrb.gmra.mxu1 %vm108_vm8, %v5362_v16  ;;  %4206 = vmatmul.msk.f32.vlgmr.msra.gmra.mxu0 %vm108_vm8, %v5362_v16 }
 0x186   :  { %900 = vmatpush.msrb.mxu3 %v4835_v0  ;;  %963 = vmatpush.msra.mxu2 %v4840_v1  ;;  %v7583_v0 = vld [vmem:[#allocation13_spill] sm:$0xff]  ;;  %v7584_v1 = vld [vmem:[#allocation14_spill] sm:$0xff] }
 0x187   :  { %1023 = vmatpush.msrb.mxu1 %v4970_v24  ;;  %1065 = vmatpush.msra.mxu0 %v4996_v28  ;;  %v5421_v28 = vld [vmem:[%s7375_s1 + $0x6] sm:$0x3] }
 0x188   :  { %901 = vmatpush.msrb.mxu3 %v4845_v2  ;;  %964 = vmatpush.msra.mxu2 %v4852_v4  ;;  %v7585_v2 = vld [vmem:[#allocation15_spill] sm:$0xff]  ;;  %v7586_v4 = vld [vmem:[#allocation16_spill] sm:$0xff] }
 0x189   :  { %1024 = vmatpush.msrb.mxu1 %v5015_v31  ;;  %1066 = vmatpush.msra.mxu0 %v5010_v30  ;;  %v5430_v31 = vld [vmem:[%s7374_s2 + $0x18] sm:$0xff] }
 0x18a   :  { %902 = vmatpush.msrb.mxu3 %v4857_v5  ;;  %965 = vmatpush.msra.mxu2 %v4862_v6  ;;  %7589 = vst [vmem:[#allocation11_spill] sm:$0xff] %v5430_v31 }
 0x18b   :  { %1025 = vmatpush.msrb.mxu1 %v5044_v37  ;;  %1067 = vmatpush.msra.mxu0 %v5027_v34  ;;  %v5442_v37 = vld [vmem:[%s7374_s2 + $0x10] sm:$0xff] }
 0x18c   :  { %4205 = vmatmul.msk.f32.vlgmr.msra.gmra.mxu3 %vm132_vm0, %v5333_v35  ;;  %4207 = vmatmul.msk.f32.vlgmr.msrb.gmra.mxu2 %vm132_vm0, %v5333_v35  ;;  %7591 = vst [vmem:[#allocation2_spill] sm:$0xff] %v5442_v37 }
 0x18d   :  { %903 = vmatpush.msrb.mxu3 %v4879_v9  ;;  %966 = vmatpush.msra.mxu2 %v4884_v10 }
 0x18e   :  { %1026 = vmatpush.msrb.mxu1 %v5061_v40  ;;  %1068 = vmatpush.msra.mxu0 %v5074_v42  ;;  %v5448_v40 = vld [vmem:[%s7374_s2 + $0x30] sm:$0xff] }
 0x18f   :  { %904 = vmatpush.msrb.mxu3 %v4908_v14  ;;  %967 = vmatpush.msra.mxu2 %v4913_v15  ;;  %7592 = vst [vmem:[#allocation3_spill] sm:$0xff] %v5448_v40  ;;  %v7593_v42 = vld [vmem:[#allocation20_spill] sm:$0xff] }
 0x190   :  { %1027 = vmatpush.msrb.mxu1 %v5088_v44  ;;  %1069 = vmatpush.msra.mxu0 %v5093_v45  ;;  %v5455_v45 = vld [vmem:[%s7374_s2 + $0x8] sm:$0xff] }
 0x191   :  { %905 = vmatpush.msrb.mxu3 %v4937_v19  ;;  %968 = vmatpush.msra.mxu2 %v4942_v20  ;;  %v7587_v19 = vld [vmem:[#allocation18_spill] sm:$0xff]  ;;  %7594 = vst [vmem:[#allocation4_spill] sm:$0xff] %v5455_v45 }
 0x192   :  { %1028 = vmatpush.msrb.mxu1 %v5103_v47  ;;  %1070 = vmatpush.msra.mxu0 %v5110_v48  ;;  %v5461_v47 = vld [vmem:[%s7374_s2 + $0x28] sm:$0xff] }
 0x193   :  { %906 = vmatpush.msrb.mxu3 %v7564_v26  ;;  %969 = vmatpush.msra.mxu2 %v4961_v23  ;;  %v7588_v23 = vld [vmem:[#allocation19_spill] sm:$0xff]  ;;  %7595 = vst [vmem:[#allocation5_spill] sm:$0xff] %v5461_v47 }
 0x194   :  { %1029 = vmatpush.msrb.mxu1 %v5117_v49  ;;  %1071 = vmatpush.msra.mxu0 %v5123_v50 }
 0x195   :  { %907 = vmatpush.msrb.mxu3 %v7566_v59  ;;  %970 = vmatpush.msra.mxu2 %v4985_v27 }
 0x196   :  { %1030 = vmatpush.msrb.mxu1 %v5133_v52  ;;  %1072 = vmatpush.msra.mxu0 %v5138_v53  ;;  %v5467_v53 = vld [vmem:[%s7374_s2] sm:$0xff] }
 0x197   :  { %1047 = vmatpush.msra.mxu3 %v4975_v25  ;;  %1089 = vmatpush.msrb.mxu2 %v5001_v29  ;;  %7596 = vst [vmem:[#allocation6_spill] sm:$0xff] %v5467_v53 }
 0x198   :  { %4212 = vmatmul.msk.f32.vlgmr.msra.gmra.mxu1 %vm132_vm0, %v5421_v28  ;;  %4215 = vmatmul.msk.f32.vlgmr.msrb.gmra.mxu0 %vm132_vm0, %v5421_v28 }
 0x199   :  { %1048 = vmatpush.msra.mxu3 %v5020_v32  ;;  %1090 = vmatpush.msrb.mxu2 %v7563_v46  ;;  %v5436_v32 = vld [vmem:[%s7374_s2 + $0x38] sm:$0xff] }
 0x19a   :  { %1183 = vmatpush.msra.mxu1 %v5430_v31  ;;  %7590 = vst [vmem:[#allocation17_spill] sm:$0xff] %v5436_v32  ;;  %1243 = vmatpush.msrb.mxu0 %v5436_v32 }
 0x19b   :  { %1049 = vmatpush.msra.mxu3 %v7583_v0  ;;  %1091 = vmatpush.msrb.mxu2 %v7584_v1 }
 0x19c   :  { %1184 = vmatpush.msra.mxu1 %v5442_v37  ;;  %1244 = vmatpush.msrb.mxu0 %v5448_v40 }
 0x19d   :  { %1050 = vmatpush.msra.mxu3 %v7585_v2  ;;  %1092 = vmatpush.msrb.mxu2 %v7586_v4 }
 0x19e   :  { %1185 = vmatpush.msra.mxu1 %v5455_v45  ;;  %1245 = vmatpush.msrb.mxu0 %v5461_v47 }
 0x1a0   :  { %1186 = vmatpush.msra.mxu1 %v5467_v53  ;;  %1246 = vmatpush.msrb.mxu0 %v5473_v18 }
 0x1c9   :  { %v736_v5 = vpop.f32.mrf.mxu0  ;;  %v676_v6 = vpop.f32.mrf.mxu1 }
 0x202   :  { %v818_v29 = vpop.f32.mrf.mxu0  ;;  %v776_v59 = vpop.f32.mrf.mxu1 }
 0x207   :  { %v653_v9 = vpop.f32.mrf.mxu3  ;;  %v716_v10 = vpop.f32.mrf.mxu2 }
 0x208   :  { %v677_v14 = vadd.f32 %v676_v6, %v653_v9  ;;  %v737_v15 = vadd.f32 %v736_v5, %v716_v10 }
 0x20a   :  { %v679_v20 = vadd.f32 %v7587_v19, %v677_v14  ;;  %v739_v24 = vadd.f32 %v7588_v23, %v737_v15 }
 0x20c   :  { %v4200_v25 = vmul.f32 -1.442695, %v679_v20  ;;  %v4203_v27 = vmul.f32 -1.442695, %v739_v24 }
 0x20e   :  { %4446 = vpow2.f32 %v4200_v25  ;;  %v5484_v25 = vpop.permute.xlu2 %871 }
 0x20f   :  { %4448 = vpow2.f32 %v4203_v27  ;;  %v838_v30 = vpop.f32.mrf.mxu2  ;;  %v796_v26 = vpop.f32.mrf.mxu3  ;;  %7599 = vst [vmem:[#allocation8_spill] sm:$0xff] %v5484_v25 }
 0x210   :  { %v839_v34 = vadd.f32 %v838_v30, %v818_v29  ;;  %v797_v35 = vadd.f32 %v796_v26, %v776_v59  ;;  %v7601_v59 = vld [vmem:[#allocation23_spill] sm:$0xff] }
 0x212   :  { %v841_v44 = vadd.f32 %v7593_v42, %v839_v34  ;;  %v799_v17 = vadd.f32 %v7598_v3, %v797_v35  ;;  %v630_v35 = vadd.f32 %v5359_v43, %v7601_v59  ;;  %v5511_v43 = vld [vmem:[%s7373_s3 + $0x38] sm:$0xff] }
 0x214   :  { %v4447_v48 = vpop.eup %4446  ;;  %v4208_v49 = vmul.f32 -1.442695, %v841_v44 }
 0x215   :  { %v4449_v50 = vpop.eup %4448  ;;  %v683_v52 = vadd.f32 1.0, %v4447_v48  ;;  %v932_v59 = vpop.f32.mrf.mxu1 }
 0x216   :  { %v743_v46 = vadd.f32 1.0, %v4449_v50  ;;  %4450 = vpow2.f32 %v4208_v49 }
 0x217   :  { %4452 = vrcp.f32 %v683_v52  ;;  %v695_v61 = vand.u32 2147483648, %v683_v52  ;;  %v693_v7 = vand.u32 2147483647, %v683_v52  ;;  %vm689_vm11 = vweird.f32 %v683_v52 }
 0x218   :  { %4454 = vrcp.f32 %v743_v46  ;;  %v755_v22 = vand.u32 2147483648, %v743_v46  ;;  %v753_v55 = vand.u32 2147483647, %v743_v46  ;;  %vm749_vm12 = vweird.f32 %v743_v46 }
 0x219   :  { %v696_v0 = vor.u32 1.1754944e-38, %v695_v61  ;;  %vm694_vm15 = vcmp.eq.f32.partialorder %v693_v7, 8.507059e+37  ;;  %v5559_v61 = vld [vmem:[%s7373_s3 + $0x28] sm:$0xff] }
 0x21a   :  { %v756_v2 = vor.u32 1.1754944e-38, %v755_v22  ;;  %vm754_vm1 = vcmp.eq.f32.partialorder %v753_v55, 8.507059e+37  ;;  %v5565_v22 = vld [vmem:[%s7373_s3 + $0x68] sm:$0xff]  ;;  %v5599_v55 = vld [vmem:[%s7373_s3 + $0xa0] sm:$0xff] }
 0x21b   :  { %v5577_v7 = vld [vmem:[%s7373_s3 + $0xe8] sm:$0xff] }
 0x21c   :  { %v4451_v11 = vpop.eup %4450 }
 0x21d   :  { %v4453_v33 = vpop.eup %4452  ;;  %v845_v13 = vadd.f32 1.0, %v4451_v11 }
 0x21e   :  { %v4455_v39 = vpop.eup %4454  ;;  %v685_v21 = vmul.f32 %v4453_v33, %v683_v52  ;;  %vm690_vm9 = vweird.f32 %v4453_v33 }
 0x21f   :  { %v745_v8 = vmul.f32 %v4455_v39, %v743_v46  ;;  %4456 = vrcp.f32 %v845_v13  ;;  %vm750_vm10 = vweird.f32 %v4455_v39  ;;  %vm691_vm13 = vmor %vm689_vm11, %vm690_vm9  ;;  %v857_v30 = vand.u32 2147483648, %v845_v13  ;;  %v5489_v46 = vpop.permute.xlu2 %878 }
 0x220   :  { %v686_v60 = vsub.f32 1.0, %v685_v21  ;;  %4458 = vtanh.f32 %v799_v17  ;;  %vm751_vm14 = vmor %vm749_vm12, %vm750_vm10  ;;  %vm851_vm3 = vweird.f32 %v845_v13  ;;  %v855_v34 = vand.u32 2147483647, %v845_v13  ;;  %7600 = vst [vmem:[#allocation9_spill] sm:$0xff] %v5489_v46  ;;  %v5535_v21 = vld [vmem:[%s7373_s3 + $0x30] sm:$0xff] }
 0x221   :  { %v746_v63 = vsub.f32 1.0, %v745_v8  ;;  %v858_v48 = vor.u32 1.1754944e-38, %v857_v30  ;;  %v881_v26 = vmul.f32 %v5489_v46, %v5362_v16  ;;  %v5517_v16 = vld [vmem:[%s7373_s3 + $0x78] sm:$0xff]  ;;  %v5541_v8 = vld [vmem:[%s7373_s3 + $0x70] sm:$0xff] }
 0x222   :  { %v687_v62 = vmul.f32 %v4453_v33, %v686_v60  ;;  %vm856_vm5 = vcmp.eq.f32.partialorder %v855_v34, 8.507059e+37  ;;  %v5547_v60 = vld [vmem:[%s7373_s3 + $0xb0] sm:$0xff]  ;;  %v5713_v30 = vld [vmem:[%s7374_s2 + $0x78] sm:$0xff] }
 0x223   :  { %v747_v56 = vmul.f32 %v4455_v39, %v746_v63  ;;  %v5553_v63 = vld [vmem:[%s7373_s3 + $0xf0] sm:$0xff] }
 0x224   :  { %v688_v41 = vadd.f32 %v4453_v33, %v687_v62  ;;  %v5571_v62 = vld [vmem:[%s7373_s3 + $0xa8] sm:$0xff]  ;;  %v5719_v34 = vld [vmem:[%s7374_s2 + $0x50] sm:$0xff] }
 0x225   :  { %v4457_v12 = vpop.eup %4456  ;;  %v748_v1 = vadd.f32 %v4455_v39, %v747_v56  ;;  %v5593_v56 = vld [vmem:[%s7373_s3 + $0x60] sm:$0xff]  ;;  %7602 = vst [vmem:[#allocation13_spill] sm:$0xff] %v5719_v34 }
 0x226   :  { %v692_v4 = vsel %vm691_vm13, %v4453_v33, %v688_v41  ;;  %v847_v5 = vmul.f32 %v4457_v12, %v845_v13  ;;  %v4459_v6 = vpop.eup %4458  ;;  %vm852_vm2 = vweird.f32 %v4457_v12  ;;  %v5523_v13 = vld [vmem:[%s7373_s3 + $0xb8] sm:$0xff] }
 0x227   :  { %v697_v9 = vsel %vm694_vm15, %v696_v0, %v692_v4  ;;  %v752_v10 = vsel %vm751_vm14, %v4455_v39, %v748_v1  ;;  %vm853_vm4 = vmor %vm851_vm3, %vm852_vm2  ;;  %v5529_v39 = vld [vmem:[%s7373_s3 + $0xf8] sm:$0xff]  ;;  %v5635_v1 = vld [vmem:[%s7373_s3 + $0x10] sm:$0xff] }
 0x228   :  { %v757_v14 = vsel %vm754_vm1, %v756_v2, %v752_v10  ;;  %v862_v15 = vmul.f32 %v4459_v6, %v697_v9  ;;  %v848_v20 = vsub.f32 1.0, %v847_v5  ;;  %v5611_v41 = vld [vmem:[%s7373_s3 + $0x18] sm:$0xff]  ;;  %v5641_v2 = vld [vmem:[%s7373_s3 + $0x50] sm:$0xff]  ;;  %v5659_v6 = vld [vmem:[%s7373_s3 + $0x8] sm:$0xff] }
 0x229   :  { %v861_v36 = vmul.f32 %v757_v14, %v5481_v51  ;;  %v5629_v0 = vld [vmem:[%s7373_s3 + $0xd8] sm:$0xff]  ;;  %v5647_v4 = vld [vmem:[%s7373_s3 + $0x90] sm:$0xff]  ;;  %v5665_v9 = vld [vmem:[%s7373_s3 + $0x48] sm:$0xff] }
 0x22a   :  { %v849_v24 = vmul.f32 %v4457_v12, %v848_v20  ;;  %v5653_v5 = vld [vmem:[%s7373_s3 + $0xd0] sm:$0xff]  ;;  %v5671_v10 = vld [vmem:[%s7373_s3 + $0x88] sm:$0xff]  ;;  %v5689_v20 = vld [vmem:[%s7373_s3 + $0x40] sm:$0xff] }
 0x22b   :  { %v5486_v27 = vadd.f32 %v862_v15, %v861_v36  ;;  %v5677_v14 = vld [vmem:[%s7373_s3 + $0xc8] sm:$0xff]  ;;  %v5683_v15 = vld [vmem:[%s7373_s3] sm:$0xff] }
 0x22c   :  { %v850_v29 = vadd.f32 %v4457_v12, %v849_v24  ;;  %v5695_v36 = vld [vmem:[%s7373_s3 + $0x80] sm:$0xff] }
 0x22d   :  { %4460 = vtanh.f32 %v5486_v27  ;;  %v5701_v24 = vld [vmem:[%s7373_s3 + $0xc0] sm:$0xff] }
 0x22e   :  { %v854_v44 = vsel %vm853_vm4, %v4457_v12, %v850_v29  ;;  %v5617_v12 = vld [vmem:[%s7373_s3 + $0x58] sm:$0xff] }
 0x22f   :  { %v859_v50 = vsel %vm856_vm5, %v858_v48, %v854_v44  ;;  %v5707_v29 = vld [vmem:[%s7374_s2 + $0x58] sm:$0xff]  ;;  %v5725_v44 = vld [vmem:[%s7374_s2 + $0x70] sm:$0xff]  ;;  %v5731_v48 = vld [vmem:[%s7374_s2 + $0x48] sm:$0xff] }
 0x230   :  { %7603 = vst [vmem:[#allocation14_spill] sm:$0xff] %v5725_v44 }
 0x231   :  { %7604 = vst [vmem:[#allocation15_spill] sm:$0xff] %v5731_v48 }
 0x233   :  { %v4461_v49 = vpop.eup %4460 }
 0x234   :  { %v865_v52 = vmul.f32 %v4461_v49, %v859_v50  ;;  %v5737_v49 = vld [vmem:[%s7374_s2 + $0x68] sm:$0xff]  ;;  %v5743_v50 = vld [vmem:[%s7374_s2 + $0x40] sm:$0xff] }
 0x235   :  { %7605 = vst [vmem:[#allocation16_spill] sm:$0xff] %v5737_v49 }
 0x236   :  { %v874_v11 = vmul.f32 %v5484_v25, %v865_v52  ;;  %7606 = vst [vmem:[#allocation18_spill] sm:$0xff] %v5743_v50  ;;  %v5749_v52 = vld [vmem:[%s7374_s2 + $0x60] sm:$0xff] }
 0x237   :  { %7607 = vst [vmem:[#allocation19_spill] sm:$0xff] %v5749_v52 }
 0x238   :  { %v5496_v33 = vadd.f32 %v881_v26, %v874_v11  ;;  %v5498_v17 = vadd.f32 %v874_v11, %v630_v35  ;;  %v992_v26 = vpop.f32.mrf.mxu0 }
 0x23a   :  { %4211 = vmatmul.msk.f32.vlgmr.msrb.gmra.mxu3 %vm108_vm8, %v5496_v33  ;;  %4214 = vmatmul.msk.f32.vlgmr.msra.gmra.mxu2 %vm108_vm8, %v5496_v33 }
 0x23b   :  { %4217 = vmatmul.msk.f32.vlgmr.msrb.gmra.mxu1 %vm108_vm8, %v5496_v33  ;;  %4219 = vmatmul.msk.f32.vlgmr.msra.gmra.mxu0 %vm108_vm8, %v5496_v33 }
 0x23c   :  { %1156 = vmatpush.msrb.mxu3 %v5511_v43  ;;  %1219 = vmatpush.msra.mxu2 %v5517_v16 }
 0x23d   :  { %1279 = vmatpush.msrb.mxu1 %v5523_v13  ;;  %1321 = vmatpush.msra.mxu0 %v5529_v39 }
 0x23e   :  { %1157 = vmatpush.msrb.mxu3 %v5535_v21  ;;  %1220 = vmatpush.msra.mxu2 %v5541_v8 }
 0x23f   :  { %1280 = vmatpush.msrb.mxu1 %v5547_v60  ;;  %1322 = vmatpush.msra.mxu0 %v5553_v63 }
 0x240   :  { %1158 = vmatpush.msrb.mxu3 %v5559_v61  ;;  %1221 = vmatpush.msra.mxu2 %v5565_v22 }
 0x241   :  { %1281 = vmatpush.msrb.mxu1 %v5571_v62  ;;  %1323 = vmatpush.msra.mxu0 %v5577_v7 }
 0x242   :  { %4218 = vmatmul.msk.f32.vlgmr.msra.gmra.mxu3 %vm132_vm0, %v5421_v28  ;;  %4220 = vmatmul.msk.f32.vlgmr.msrb.gmra.mxu2 %vm132_vm0, %v5421_v28  ;;  %v5605_v28 = vld [vmem:[%s7373_s3 + $0xe0] sm:$0xff] }
 0x243   :  { %1159 = vmatpush.msrb.mxu3 %v5587_v58  ;;  %1222 = vmatpush.msra.mxu2 %v5593_v56 }
 0x244   :  { %1282 = vmatpush.msrb.mxu1 %v5599_v55  ;;  %1324 = vmatpush.msra.mxu0 %v5605_v28 }
 0x245   :  { %1160 = vmatpush.msrb.mxu3 %v5611_v41  ;;  %1223 = vmatpush.msra.mxu2 %v5617_v12 }
 0x246   :  { %1283 = vmatpush.msrb.mxu1 %v5623_v38  ;;  %1325 = vmatpush.msra.mxu0 %v5629_v0 }
 0x247   :  { %1161 = vmatpush.msrb.mxu3 %v5635_v1  ;;  %1224 = vmatpush.msra.mxu2 %v5641_v2 }
 0x248   :  { %1284 = vmatpush.msrb.mxu1 %v5647_v4  ;;  %1326 = vmatpush.msra.mxu0 %v5653_v5 }
 0x249   :  { %1162 = vmatpush.msrb.mxu3 %v5659_v6  ;;  %1225 = vmatpush.msra.mxu2 %v5665_v9 }
 0x24a   :  { %1285 = vmatpush.msrb.mxu1 %v5671_v10  ;;  %1327 = vmatpush.msra.mxu0 %v5677_v14 }
 0x24b   :  { %1163 = vmatpush.msrb.mxu3 %v5683_v15  ;;  %1226 = vmatpush.msra.mxu2 %v5689_v20 }
 0x24c   :  { %1286 = vmatpush.msrb.mxu1 %v5695_v36  ;;  %1328 = vmatpush.msra.mxu0 %v5701_v24 }
 0x24d   :  { %1303 = vmatpush.msra.mxu3 %v5707_v29  ;;  %1345 = vmatpush.msrb.mxu2 %v5713_v30 }
 0x24f   :  { %1304 = vmatpush.msra.mxu3 %v5719_v34  ;;  %1346 = vmatpush.msrb.mxu2 %v5725_v44 }
 0x251   :  { %1305 = vmatpush.msra.mxu3 %v5731_v48  ;;  %1347 = vmatpush.msrb.mxu2 %v5737_v49 }
 0x253   :  { %1306 = vmatpush.msra.mxu3 %v5743_v50  ;;  %1348 = vmatpush.msrb.mxu2 %v5749_v52  ;;  %v5757_v50 = vld [vmem:[%s7375_s1 + $0x8] sm:$0x3] }
 0x254   :  { %4225 = vmatmul.msk.f32.vlgmr.msra.gmra.mxu1 %vm132_vm0, %v5757_v50  ;;  %4228 = vmatmul.msk.f32.vlgmr.msrb.gmra.mxu0 %vm132_vm0, %v5757_v50 }
 0x255   :  { %1439 = vmatpush.msra.mxu1 %v5430_v31  ;;  %1499 = vmatpush.msrb.mxu0 %v5436_v32 }
 0x257   :  { %1440 = vmatpush.msra.mxu1 %v5442_v37  ;;  %1500 = vmatpush.msrb.mxu0 %v5448_v40 }
 0x259   :  { %1441 = vmatpush.msra.mxu1 %v5455_v45  ;;  %1501 = vmatpush.msrb.mxu0 %v5461_v47 }
 0x25b   :  { %1442 = vmatpush.msra.mxu1 %v5467_v53  ;;  %1502 = vmatpush.msrb.mxu0 %v5473_v18 }
 0x2bd   :  { %v909_v35 = vpop.f32.mrf.mxu3  ;;  %v972_v11 = vpop.f32.mrf.mxu2 }
 0x2be   :  { %v933_v57 = vadd.f32 %v932_v59, %v909_v35  ;;  %v993_v54 = vadd.f32 %v992_v26, %v972_v11  ;;  %v1074_v59 = vpop.f32.mrf.mxu0  ;;  %v1032_v35 = vpop.f32.mrf.mxu1 }
 0x2c0   :  { %v935_v49 = vadd.f32 %v7587_v19, %v933_v57  ;;  %v995_v48 = vadd.f32 %v7588_v23, %v993_v54 }
 0x2c2   :  { %v4213_v44 = vmul.f32 -1.442695, %v935_v49  ;;  %v4216_v34 = vmul.f32 -1.442695, %v995_v48 }
 0x2c4   :  { %4462 = vpow2.f32 %v4213_v44 }
 0x2c5   :  { %4464 = vpow2.f32 %v4216_v34  ;;  %v1094_v26 = vpop.f32.mrf.mxu2  ;;  %v1052_v49 = vpop.f32.mrf.mxu3 }
 0x2c6   :  { %v1095_v54 = vadd.f32 %v1094_v26, %v1074_v59  ;;  %v1053_v11 = vadd.f32 %v1052_v49, %v1032_v35  ;;  %v883_v49 = vmul.f32 %v5484_v25, %v5486_v27 }
 0x2c8   :  { %v1097_v57 = vadd.f32 %v7593_v42, %v1095_v54  ;;  %v1055_v26 = vadd.f32 %v7598_v3, %v1053_v11 }
 0x2ca   :  { %v4463_v19 = vpop.eup %4462  ;;  %v4221_v23 = vmul.f32 -1.442695, %v1097_v57 }
 0x2cb   :  { %v4465_v44 = vpop.eup %4464  ;;  %v939_v34 = vadd.f32 1.0, %v4463_v19 }
 0x2cc   :  { %v999_v48 = vadd.f32 1.0, %v4465_v44  ;;  %4466 = vpow2.f32 %v4221_v23 }
 0x2cd   :  { %4468 = vrcp.f32 %v939_v34  ;;  %v951_v40 = vand.u32 2147483648, %v939_v34  ;;  %v949_v23 = vand.u32 2147483647, %v939_v34  ;;  %vm945_vm9 = vweird.f32 %v939_v34 }
 0x2ce   :  { %4470 = vrcp.f32 %v999_v48  ;;  %v1011_v44 = vand.u32 2147483648, %v999_v48  ;;  %v1009_v37 = vand.u32 2147483647, %v999_v48  ;;  %vm1005_vm10 = vweird.f32 %v999_v48 }
 0x2cf   :  { %vm950_vm13 = vcmp.eq.f32.partialorder %v949_v23, 8.507059e+37 }
 0x2d0   :  { %vm1010_vm14 = vcmp.eq.f32.partialorder %v1009_v37, 8.507059e+37 }
 0x2d2   :  { %v4467_v42 = vpop.eup %4466 }
 0x2d3   :  { %v4469_v59 = vpop.eup %4468  ;;  %v1101_v54 = vadd.f32 1.0, %v4467_v42  ;;  %v884_v42 = vmul.f32 %v5489_v46, %v5481_v51 }
 0x2d4   :  { %v4471_v47 = vpop.eup %4470  ;;  %v941_v57 = vmul.f32 %v4469_v59, %v939_v34  ;;  %vm946_vm6 = vweird.f32 %v4469_v59 }
 0x2d5   :  { %v1001_v45 = vmul.f32 %v4471_v47, %v999_v48  ;;  %4472 = vrcp.f32 %v1101_v54  ;;  %vm1006_vm7 = vweird.f32 %v4471_v47  ;;  %vm947_vm11 = vmor %vm945_vm9, %vm946_vm6  ;;  %v5777_v27 = vadd.f32 %v884_v42, %v883_v49  ;;  %v7614_v42 = vld [vmem:[#allocation18_spill] sm:$0xff] }
 0x2d6   :  { %v942_v19 = vsub.f32 1.0, %v941_v57  ;;  %4474 = vtanh.f32 %v1055_v26  ;;  %vm1007_vm12 = vmor %vm1005_vm10, %vm1006_vm7  ;;  %v1012_v57 = vor.u32 1.1754944e-38, %v1011_v44  ;;  %vm1107_vm1 = vweird.f32 %v1101_v54 }
 0x2d7   :  { %v1002_v53 = vsub.f32 1.0, %v1001_v45  ;;  %v952_v45 = vor.u32 1.1754944e-38, %v951_v40  ;;  %v1111_v44 = vand.u32 2147483647, %v1101_v54 }
 0x2d8   :  { %v943_v18 = vmul.f32 %v4469_v59, %v942_v19 }
 0x2d9   :  { %v1003_v35 = vmul.f32 %v4471_v47, %v1002_v53  ;;  %vm1112_vm3 = vcmp.eq.f32.partialorder %v1111_v44, 8.507059e+37 }
 0x2da   :  { %v944_v3 = vadd.f32 %v4469_v59, %v943_v18 }
 0x2db   :  { %v4473_v11 = vpop.eup %4472  ;;  %v1004_v26 = vadd.f32 %v4471_v47, %v1003_v35 }
 0x2dc   :  { %v948_v19 = vsel %vm947_vm11, %v4469_v59, %v944_v3  ;;  %v1103_v32 = vmul.f32 %v4473_v11, %v1101_v54  ;;  %v4475_v31 = vpop.eup %4474  ;;  %vm1108_vm15 = vweird.f32 %v4473_v11  ;;  %v1113_v59 = vand.u32 2147483648, %v1101_v54 }
 0x2dd   :  { %v953_v53 = vsel %vm950_vm13, %v952_v45, %v948_v19  ;;  %v1008_v25 = vsel %vm1007_vm12, %v4471_v47, %v1004_v26  ;;  %vm1109_vm2 = vmor %vm1107_vm1, %vm1108_vm15  ;;  %v7615_v45 = vld [vmem:[#allocation19_spill] sm:$0xff]  ;;  %v1248_v26 = vpop.f32.mrf.mxu0 }
 0x2de   :  { %v1013_v18 = vsel %vm1010_vm14, %v1012_v57, %v1008_v25  ;;  %v1118_v34 = vmul.f32 %v4475_v31, %v953_v53  ;;  %v1104_v52 = vsub.f32 1.0, %v1103_v32  ;;  %v1114_v49 = vor.u32 1.1754944e-38, %v1113_v59  ;;  %v5783_v32 = vpop.permute.xlu0 %1127  ;;  %v5785_v25 = vpop.permute.xlu1 %1134 }
 0x2df   :  { %v1117_v51 = vmul.f32 %v1013_v18, %v5777_v27  ;;  %7608 = vst [vmem:[#allocation20_spill] sm:$0xff] %v5783_v32  ;;  %v1137_v35 = vmul.f32 %v5785_v25, %v5496_v33  ;;  %v7610_v33 = vld [vmem:[#allocation13_spill] sm:$0xff]  ;;  %v1188_v57 = vpop.f32.mrf.mxu1 }
 0x2e0   :  { %v1105_v48 = vmul.f32 %v4473_v11, %v1104_v52  ;;  %7609 = vst [vmem:[#allocation21_spill] sm:$0xff] %v5785_v25 }
 0x2e1   :  { %v5780_v46 = vadd.f32 %v1118_v34, %v1117_v51  ;;  %v5850_v51 = vld [vmem:[%s7377_s4] ss:$0 sm:$0xff] }
 0x2e2   :  { %v1106_v40 = vadd.f32 %v4473_v11, %v1105_v48  ;;  %7616 = vst [vmem:[#allocation23_spill] sm:$0xff] %v5850_v51 }
 0x2e3   :  { %4476 = vtanh.f32 %v5780_v46 }
 0x2e4   :  { %v1110_v23 = vsel %vm1109_vm2, %v4473_v11, %v1106_v40  ;;  %v7613_v11 = vld [vmem:[#allocation16_spill] sm:$0xff]  ;;  %v5856_v40 = vld [vmem:[%s7377_s4 + $0x1] ss:$0 sm:$0xff] }
 0x2e5   :  { %v1115_v47 = vsel %vm1112_vm3, %v1114_v49, %v1110_v23  ;;  %7617 = vst [vmem:[#allocation24_spill] sm:$0xff] %v5856_v40  ;;  %v5862_v49 = vld [vmem:[%s7375_s1 + $0xa] sm:$0x3] }
 0x2e9   :  { %v4477_v37 = vpop.eup %4476 }
 0x2ea   :  { %v1121_v31 = vmul.f32 %v4477_v37, %v1115_v47 }
 0x2ec   :  { %v1130_v52 = vmul.f32 %v5783_v32, %v1121_v31  ;;  %v7618_v31 = vld [vmem:[#allocation11_spill] sm:$0xff] }
 0x2ee   :  { %v5790_v3 = vadd.f32 %v1137_v35, %v1130_v52  ;;  %v5793_v54 = vadd.f32 %v1130_v52, %v5498_v17  ;;  %v7611_v17 = vld [vmem:[#allocation14_spill] sm:$0xff]  ;;  %v7619_v52 = vld [vmem:[#allocation17_spill] sm:$0xff] }
 0x2f0   :  { %4224 = vmatmul.msk.f32.vlgmr.msrb.gmra.mxu3 %vm108_vm8, %v5790_v3  ;;  %4227 = vmatmul.msk.f32.vlgmr.msra.gmra.mxu2 %vm108_vm8, %v5790_v3 }
 0x2f1   :  { %4230 = vmatmul.msk.f32.vlgmr.msrb.gmra.mxu1 %vm108_vm8, %v5790_v3  ;;  %4232 = vmatmul.msk.f32.vlgmr.msra.gmra.mxu0 %vm108_vm8, %v5790_v3 }
 0x2f2   :  { %1412 = vmatpush.msrb.mxu3 %v5511_v43  ;;  %1475 = vmatpush.msra.mxu2 %v5517_v16 }
 0x2f3   :  { %1535 = vmatpush.msrb.mxu1 %v5523_v13  ;;  %1577 = vmatpush.msra.mxu0 %v5529_v39 }
 0x2f4   :  { %1413 = vmatpush.msrb.mxu3 %v5535_v21  ;;  %1476 = vmatpush.msra.mxu2 %v5541_v8 }
 0x2f5   :  { %1536 = vmatpush.msrb.mxu1 %v5547_v60  ;;  %1578 = vmatpush.msra.mxu0 %v5553_v63 }
 0x2f6   :  { %1414 = vmatpush.msrb.mxu3 %v5559_v61  ;;  %1477 = vmatpush.msra.mxu2 %v5565_v22 }
 0x2f7   :  { %1537 = vmatpush.msrb.mxu1 %v5571_v62  ;;  %1579 = vmatpush.msra.mxu0 %v5577_v7 }
 0x2f8   :  { %4231 = vmatmul.msk.f32.vlgmr.msra.gmra.mxu3 %vm132_vm0, %v5757_v50  ;;  %4233 = vmatmul.msk.f32.vlgmr.msrb.gmra.mxu2 %vm132_vm0, %v5757_v50  ;;  %v7612_v50 = vld [vmem:[#allocation15_spill] sm:$0xff] }
 0x2f9   :  { %1415 = vmatpush.msrb.mxu3 %v5587_v58  ;;  %1478 = vmatpush.msra.mxu2 %v5593_v56 }
 0x2fa   :  { %1538 = vmatpush.msrb.mxu1 %v5599_v55  ;;  %1580 = vmatpush.msra.mxu0 %v5605_v28 }
 0x2fb   :  { %1416 = vmatpush.msrb.mxu3 %v5611_v41  ;;  %1479 = vmatpush.msra.mxu2 %v5617_v12 }
 0x2fc   :  { %1539 = vmatpush.msrb.mxu1 %v5623_v38  ;;  %1581 = vmatpush.msra.mxu0 %v5629_v0 }
 0x2fd   :  { %1417 = vmatpush.msrb.mxu3 %v5635_v1  ;;  %1480 = vmatpush.msra.mxu2 %v5641_v2 }
 0x2fe   :  { %1540 = vmatpush.msrb.mxu1 %v5647_v4  ;;  %1582 = vmatpush.msra.mxu0 %v5653_v5 }
 0x2ff   :  { %1418 = vmatpush.msrb.mxu3 %v5659_v6  ;;  %1481 = vmatpush.msra.mxu2 %v5665_v9 }
 0x300   :  { %1541 = vmatpush.msrb.mxu1 %v5671_v10  ;;  %1583 = vmatpush.msra.mxu0 %v5677_v14 }
 0x301   :  { %1419 = vmatpush.msrb.mxu3 %v5683_v15  ;;  %1482 = vmatpush.msra.mxu2 %v5689_v20 }
 0x302   :  { %1542 = vmatpush.msrb.mxu1 %v5695_v36  ;;  %1584 = vmatpush.msra.mxu0 %v5701_v24 }
 0x303   :  { %1559 = vmatpush.msra.mxu3 %v5707_v29  ;;  %1601 = vmatpush.msrb.mxu2 %v5713_v30 }
 0x304   :  { %4238 = vmatmul.msk.f32.vlgmr.msra.gmra.mxu1 %vm132_vm0, %v5862_v49  ;;  %4241 = vmatmul.msk.f32.vlgmr.msrb.gmra.mxu0 %vm132_vm0, %v5862_v49 }
 0x305   :  { %1560 = vmatpush.msra.mxu3 %v7610_v33  ;;  %1602 = vmatpush.msrb.mxu2 %v7611_v17 }
 0x306   :  { %1695 = vmatpush.msra.mxu1 %v7618_v31  ;;  %1755 = vmatpush.msrb.mxu0 %v7619_v52 }
 0x307   :  { %1561 = vmatpush.msra.mxu3 %v7612_v50  ;;  %1603 = vmatpush.msrb.mxu2 %v7613_v11 }
 0x309   :  { %1562 = vmatpush.msra.mxu3 %v7614_v42  ;;  %1604 = vmatpush.msrb.mxu2 %v7615_v45  ;;  %v1139_v45 = vmul.f32 %v5783_v32, %v5780_v46 }
 0x36e   :  { %v1330_v37 = vpop.f32.mrf.mxu0  ;;  %v1288_v52 = vpop.f32.mrf.mxu1 }
 0x373   :  { %v1165_v19 = vpop.f32.mrf.mxu3  ;;  %v1228_v53 = vpop.f32.mrf.mxu2 }
 0x374   :  { %v1189_v18 = vadd.f32 %v1188_v57, %v1165_v19  ;;  %v1249_v34 = vadd.f32 %v1248_v26, %v1228_v53  ;;  %v7620_v26 = vld [vmem:[#allocation2_spill] sm:$0xff]  ;;  %v7621_v57 = vld [vmem:[#allocation3_spill] sm:$0xff] }
 0x375   :  { %1696 = vmatpush.msra.mxu1 %v7620_v26  ;;  %1756 = vmatpush.msrb.mxu0 %v7621_v57  ;;  %v5875_v19 = vld [vmem:[%s7377_s4 + $0x3] ss:$0 sm:$0xff] }
 0x376   :  { %v1191_v48 = vadd.f32 %v5850_v51, %v1189_v18  ;;  %v1251_v59 = vadd.f32 %v5856_v40, %v1249_v34  ;;  %7622 = vst [vmem:[#allocation25_spill] sm:$0xff] %v5875_v19  ;;  %v7623_v18 = vld [vmem:[#allocation4_spill] sm:$0xff]  ;;  %v7624_v34 = vld [vmem:[#allocation5_spill] sm:$0xff] }
 0x377   :  { %1697 = vmatpush.msra.mxu1 %v7623_v18  ;;  %1757 = vmatpush.msrb.mxu0 %v7624_v34  ;;  %v5885_v34 = vld [vmem:[%s7377_s4 + $0x2] ss:$0 sm:$0xff] }
 0x378   :  { %v4226_v44 = vmul.f32 -1.442695, %v1191_v48  ;;  %v4229_v23 = vmul.f32 -1.442695, %v1251_v59  ;;  %7627 = vst [vmem:[#allocation26_spill] sm:$0xff] %v5885_v34 }
 0x37a   :  { %4478 = vpow2.f32 %v4226_v44 }
 0x37b   :  { %4480 = vpow2.f32 %v4229_v23  ;;  %v1350_v47 = vpop.f32.mrf.mxu2  ;;  %v1308_v26 = vpop.f32.mrf.mxu3 }
 0x37c   :  { %v1351_v35 = vadd.f32 %v1350_v47, %v1330_v37  ;;  %v7625_v37 = vld [vmem:[#allocation6_spill] sm:$0xff]  ;;  %v7626_v47 = vld [vmem:[#allocation7_spill] sm:$0xff]  ;;  %v1309_v31 = vadd.f32 %v1308_v26, %v1288_v52 }
 0x37d   :  { %1698 = vmatpush.msra.mxu1 %v7625_v37  ;;  %1758 = vmatpush.msrb.mxu0 %v7626_v47 }
 0x37e   :  { %v1353_v53 = vadd.f32 %v5875_v19, %v1351_v35 }
 0x380   :  { %v4479_v48 = vpop.eup %4478  ;;  %v4234_v59 = vmul.f32 -1.442695, %v1353_v53  ;;  %v1311_v53 = vadd.f32 %v5885_v34, %v1309_v31 }
 0x381   :  { %v4481_v44 = vpop.eup %4480  ;;  %v1195_v23 = vadd.f32 1.0, %v4479_v48 }
 0x382   :  { %v1255_v57 = vadd.f32 1.0, %v4481_v44  ;;  %4482 = vpow2.f32 %v4234_v59 }
 0x383   :  { %4484 = vrcp.f32 %v1195_v23  ;;  %v1207_v40 = vand.u32 2147483648, %v1195_v23  ;;  %v1205_v26 = vand.u32 2147483647, %v1195_v23  ;;  %vm1201_vm6 = vweird.f32 %v1195_v23 }
 0x384   :  { %4486 = vrcp.f32 %v1255_v57  ;;  %v1267_v51 = vand.u32 2147483648, %v1255_v57  ;;  %v1265_v11 = vand.u32 2147483647, %v1255_v57  ;;  %vm1261_vm7 = vweird.f32 %v1255_v57 }
 0x385   :  { %vm1206_vm11 = vcmp.eq.f32.partialorder %v1205_v26, 8.507059e+37 }
 0x386   :  { %vm1266_vm12 = vcmp.eq.f32.partialorder %v1265_v11, 8.507059e+37 }
 0x388   :  { %v4483_v35 = vpop.eup %4482 }
 0x389   :  { %v4485_v19 = vpop.eup %4484  ;;  %v1357_v48 = vadd.f32 1.0, %v4483_v35 }
 0x38a   :  { %v4487_v37 = vpop.eup %4486  ;;  %v1197_v18 = vmul.f32 %v4485_v19, %v1195_v23  ;;  %vm1202_vm4 = vweird.f32 %v4485_v19 }
 0x38b   :  { %v1257_v47 = vmul.f32 %v4487_v37, %v1255_v57  ;;  %4488 = vrcp.f32 %v1357_v48  ;;  %vm1262_vm5 = vweird.f32 %v4487_v37  ;;  %vm1203_vm9 = vmor %vm1201_vm6, %vm1202_vm4  ;;  %vm1363_vm14 = vweird.f32 %v1357_v48 }
 0x38c   :  { %v1198_v44 = vsub.f32 1.0, %v1197_v18  ;;  %4490 = vtanh.f32 %v1311_v53  ;;  %v1140_v18 = vmul.f32 %v5785_v25, %v5777_v27  ;;  %vm1263_vm10 = vmor %vm1261_vm7, %vm1262_vm5 }
 0x38d   :  { %v1258_v59 = vsub.f32 1.0, %v1257_v47  ;;  %v1208_v47 = vor.u32 1.1754944e-38, %v1207_v40  ;;  %v1367_v40 = vand.u32 2147483647, %v1357_v48 }
 0x38e   :  { %v1199_v52 = vmul.f32 %v4485_v19, %v1198_v44  ;;  %v1268_v44 = vor.u32 1.1754944e-38, %v1267_v51  ;;  %v5892_v46 = vadd.f32 %v1140_v18, %v1139_v45  ;;  %v1369_v51 = vand.u32 2147483648, %v1357_v48  ;;  %v7635_v18 = vld [vmem:[#allocation19_spill] sm:$0xff] }
 0x38f   :  { %v1259_v42 = vmul.f32 %v4487_v37, %v1258_v59  ;;  %vm1368_vm1 = vcmp.eq.f32.partialorder %v1367_v40, 8.507059e+37 }
 0x390   :  { %v1200_v31 = vadd.f32 %v4485_v19, %v1199_v52 }
 0x391   :  { %v4489_v35 = vpop.eup %4488  ;;  %v1260_v53 = vadd.f32 %v4487_v37, %v1259_v42 }
 0x392   :  { %v1204_v34 = vsel %vm1203_vm9, %v4485_v19, %v1200_v31  ;;  %v1359_v50 = vmul.f32 %v4489_v35, %v1357_v48  ;;  %v4491_v17 = vpop.eup %4490  ;;  %vm1364_vm13 = vweird.f32 %v4489_v35  ;;  %v1370_v19 = vor.u32 1.1754944e-38, %v1369_v51  ;;  %v7633_v31 = vld [vmem:[#allocation16_spill] sm:$0xff] }
 0x393   :  { %v1209_v59 = vsel %vm1206_vm11, %v1208_v47, %v1204_v34  ;;  %v1264_v32 = vsel %vm1263_vm10, %v4487_v37, %v1260_v53  ;;  %vm1365_vm15 = vmor %vm1363_vm14, %vm1364_vm13  ;;  %v5900_v34 = vpop.permute.xlu2 %1383  ;;  %v1504_v47 = vpop.f32.mrf.mxu0 }
 0x394   :  { %v1269_v23 = vsel %vm1266_vm12, %v1268_v44, %v1264_v32  ;;  %v1374_v52 = vmul.f32 %v4491_v17, %v1209_v59  ;;  %v1360_v57 = vsub.f32 1.0, %v1359_v50  ;;  %v5898_v50 = vpop.permute.xlu0 %1390  ;;  %7629 = vst [vmem:[#allocation28_spill] sm:$0xff] %v5900_v34  ;;  %v1444_v53 = vpop.f32.mrf.mxu1 }
 0x395   :  { %v1373_v33 = vmul.f32 %v1269_v23, %v5892_v46  ;;  %7628 = vst [vmem:[#allocation27_spill] sm:$0xff] %v5898_v50  ;;  %v1393_v37 = vmul.f32 %v5898_v50, %v5790_v3  ;;  %v7630_v3 = vld [vmem:[#allocation13_spill] sm:$0xff] }
 0x396   :  { %v1361_v27 = vmul.f32 %v4489_v35, %v1360_v57  ;;  %v7636_v57 = vld [vmem:[#allocation23_spill] sm:$0xff] }
 0x397   :  { %v5895_v25 = vadd.f32 %v1374_v52, %v1373_v33 }
 0x398   :  { %v1362_v42 = vadd.f32 %v4489_v35, %v1361_v27 }
 0x399   :  { %4492 = vtanh.f32 %v5895_v25 }
 0x39a   :  { %v1366_v45 = vsel %vm1365_vm15, %v4489_v35, %v1362_v42  ;;  %v7634_v35 = vld [vmem:[#allocation18_spill] sm:$0xff]  ;;  %v7637_v42 = vld [vmem:[#allocation24_spill] sm:$0xff] }
 0x39b   :  { %v1371_v32 = vsel %vm1368_vm1, %v1370_v19, %v1366_v45  ;;  %v5967_v19 = vld [vmem:[%s7375_s1 + $0xc] sm:$0x3] }
 0x39f   :  { %v4493_v11 = vpop.eup %4492 }
 0x3a0   :  { %v1377_v17 = vmul.f32 %v4493_v11, %v1371_v32 }
 0x3a2   :  { %v1386_v33 = vmul.f32 %v5900_v34, %v1377_v17  ;;  %v7638_v17 = vld [vmem:[#allocation11_spill] sm:$0xff] }
 0x3a4   :  { %v5905_v26 = vadd.f32 %v1393_v37, %v1386_v33  ;;  %v5908_v48 = vadd.f32 %v1386_v33, %v5793_v54  ;;  %v7631_v54 = vld [vmem:[#allocation14_spill] sm:$0xff]  ;;  %v7639_v33 = vld [vmem:[#allocation17_spill] sm:$0xff] }
 0x3a6   :  { %4237 = vmatmul.msk.f32.vlgmr.msrb.gmra.mxu3 %vm108_vm8, %v5905_v26  ;;  %4240 = vmatmul.msk.f32.vlgmr.msra.gmra.mxu2 %vm108_vm8, %v5905_v26 }
 0x3a7   :  { %4243 = vmatmul.msk.f32.vlgmr.msrb.gmra.mxu1 %vm108_vm8, %v5905_v26  ;;  %4245 = vmatmul.msk.f32.vlgmr.msra.gmra.mxu0 %vm108_vm8, %v5905_v26 }
 0x3a8   :  { %1668 = vmatpush.msrb.mxu3 %v5511_v43  ;;  %1731 = vmatpush.msra.mxu2 %v5517_v16 }
 0x3a9   :  { %1791 = vmatpush.msrb.mxu1 %v5523_v13  ;;  %1833 = vmatpush.msra.mxu0 %v5529_v39 }
 0x3aa   :  { %1669 = vmatpush.msrb.mxu3 %v5535_v21  ;;  %1732 = vmatpush.msra.mxu2 %v5541_v8 }
 0x3ab   :  { %1792 = vmatpush.msrb.mxu1 %v5547_v60  ;;  %1834 = vmatpush.msra.mxu0 %v5553_v63 }
 0x3ac   :  { %1670 = vmatpush.msrb.mxu3 %v5559_v61  ;;  %1733 = vmatpush.msra.mxu2 %v5565_v22 }
 0x3ad   :  { %1793 = vmatpush.msrb.mxu1 %v5571_v62  ;;  %1835 = vmatpush.msra.mxu0 %v5577_v7 }
 0x3ae   :  { %4244 = vmatmul.msk.f32.vlgmr.msra.gmra.mxu3 %vm132_vm0, %v5862_v49  ;;  %4246 = vmatmul.msk.f32.vlgmr.msrb.gmra.mxu2 %vm132_vm0, %v5862_v49  ;;  %v7632_v49 = vld [vmem:[#allocation15_spill] sm:$0xff] }
 0x3af   :  { %1671 = vmatpush.msrb.mxu3 %v5587_v58  ;;  %1734 = vmatpush.msra.mxu2 %v5593_v56 }
 0x3b0   :  { %1794 = vmatpush.msrb.mxu1 %v5599_v55  ;;  %1836 = vmatpush.msra.mxu0 %v5605_v28 }
 0x3b1   :  { %1672 = vmatpush.msrb.mxu3 %v5611_v41  ;;  %1735 = vmatpush.msra.mxu2 %v5617_v12 }
 0x3b2   :  { %1795 = vmatpush.msrb.mxu1 %v5623_v38  ;;  %1837 = vmatpush.msra.mxu0 %v5629_v0 }
 0x3b3   :  { %1673 = vmatpush.msrb.mxu3 %v5635_v1  ;;  %1736 = vmatpush.msra.mxu2 %v5641_v2 }
 0x3b4   :  { %1796 = vmatpush.msrb.mxu1 %v5647_v4  ;;  %1838 = vmatpush.msra.mxu0 %v5653_v5 }
 0x3b5   :  { %1674 = vmatpush.msrb.mxu3 %v5659_v6  ;;  %1737 = vmatpush.msra.mxu2 %v5665_v9 }
 0x3b6   :  { %1797 = vmatpush.msrb.mxu1 %v5671_v10  ;;  %1839 = vmatpush.msra.mxu0 %v5677_v14 }
 0x3b7   :  { %1675 = vmatpush.msrb.mxu3 %v5683_v15  ;;  %1738 = vmatpush.msra.mxu2 %v5689_v20 }
 0x3b8   :  { %1798 = vmatpush.msrb.mxu1 %v5695_v36  ;;  %1840 = vmatpush.msra.mxu0 %v5701_v24 }
 0x3b9   :  { %1815 = vmatpush.msra.mxu3 %v5707_v29  ;;  %1857 = vmatpush.msrb.mxu2 %v5713_v30 }
 0x3ba   :  { %4251 = vmatmul.msk.f32.vlgmr.msra.gmra.mxu1 %vm132_vm0, %v5967_v19  ;;  %4254 = vmatmul.msk.f32.vlgmr.msrb.gmra.mxu0 %vm132_vm0, %v5967_v19 }
 0x3bb   :  { %1816 = vmatpush.msra.mxu3 %v7630_v3  ;;  %1858 = vmatpush.msrb.mxu2 %v7631_v54 }
 0x3bc   :  { %1951 = vmatpush.msra.mxu1 %v7638_v17  ;;  %2011 = vmatpush.msrb.mxu0 %v7639_v33  ;;  %v7646_v17 = vld [vmem:[#allocation7_spill] sm:$0xff] }
 0x3bd   :  { %1817 = vmatpush.msra.mxu3 %v7632_v49  ;;  %1859 = vmatpush.msrb.mxu2 %v7633_v31 }
 0x3bf   :  { %1818 = vmatpush.msra.mxu3 %v7634_v35  ;;  %1860 = vmatpush.msrb.mxu2 %v7635_v18 }
 0x424   :  { %v1586_v11 = vpop.f32.mrf.mxu0 }
 0x429   :  { %v1421_v44 = vpop.f32.mrf.mxu3  ;;  %v1484_v59 = vpop.f32.mrf.mxu2 }
 0x42a   :  { %v1445_v23 = vadd.f32 %v1444_v53, %v1421_v44  ;;  %v1505_v52 = vadd.f32 %v1504_v47, %v1484_v59  ;;  %v7640_v47 = vld [vmem:[#allocation2_spill] sm:$0xff]  ;;  %v7641_v53 = vld [vmem:[#allocation3_spill] sm:$0xff]  ;;  %v7642_v44 = vld [vmem:[#allocation25_spill] sm:$0xff] }
 0x42b   :  { %1952 = vmatpush.msra.mxu1 %v7640_v47  ;;  %2012 = vmatpush.msrb.mxu0 %v7641_v53 }
 0x42c   :  { %v1447_v27 = vadd.f32 %v7636_v57, %v1445_v23  ;;  %v1507_v51 = vadd.f32 %v7637_v42, %v1505_v52  ;;  %v7643_v23 = vld [vmem:[#allocation4_spill] sm:$0xff]  ;;  %v7644_v52 = vld [vmem:[#allocation5_spill] sm:$0xff]  ;;  %v7645_v42 = vld [vmem:[#allocation6_spill] sm:$0xff] }
 0x42d   :  { %1953 = vmatpush.msra.mxu1 %v7643_v23  ;;  %2013 = vmatpush.msrb.mxu0 %v7644_v52  ;;  %v7647_v23 = vld [vmem:[#allocation26_spill] sm:$0xff] }
 0x42e   :  { %v4239_v40 = vmul.f32 -1.442695, %v1447_v27  ;;  %v4242_v45 = vmul.f32 -1.442695, %v1507_v51 }
 0x42f   :  { %1954 = vmatpush.msra.mxu1 %v7645_v42  ;;  %2014 = vmatpush.msrb.mxu0 %v7646_v17 }
 0x430   :  { %4494 = vpow2.f32 %v4239_v40 }
 0x431   :  { %4496 = vpow2.f32 %v4242_v45  ;;  %v1606_v32 = vpop.f32.mrf.mxu2 }
 0x432   :  { %v1607_v37 = vadd.f32 %v1606_v32, %v1586_v11  ;;  %v1564_v11 = vpop.f32.mrf.mxu3  ;;  %v1544_v32 = vpop.f32.mrf.mxu1 }
 0x433   :  { %v1565_v47 = vadd.f32 %v1564_v11, %v1544_v32  ;;  %v1395_v11 = vmul.f32 %v5900_v34, %v5895_v25 }
 0x434   :  { %v1609_v59 = vadd.f32 %v7642_v44, %v1607_v37 }
 0x435   :  { %v1567_v44 = vadd.f32 %v7647_v23, %v1565_v47 }
 0x436   :  { %v4495_v27 = vpop.eup %4494  ;;  %v4247_v51 = vmul.f32 -1.442695, %v1609_v59 }
 0x437   :  { %v4497_v40 = vpop.eup %4496  ;;  %v1451_v45 = vadd.f32 1.0, %v4495_v27 }
 0x438   :  { %v1511_v33 = vadd.f32 1.0, %v4497_v40  ;;  %4498 = vpow2.f32 %v4247_v51 }
 0x439   :  { %4500 = vrcp.f32 %v1451_v45  ;;  %v1463_v35 = vand.u32 2147483648, %v1451_v45  ;;  %v1461_v51 = vand.u32 2147483647, %v1451_v45  ;;  %vm1457_vm4 = vweird.f32 %v1451_v45 }
 0x43a   :  { %4502 = vrcp.f32 %v1511_v33  ;;  %v1523_v40 = vand.u32 2147483648, %v1511_v33  ;;  %v1521_v31 = vand.u32 2147483647, %v1511_v33  ;;  %vm1517_vm5 = vweird.f32 %v1511_v33 }
 0x43b   :  { %vm1462_vm9 = vcmp.eq.f32.partialorder %v1461_v51, 8.507059e+37 }
 0x43c   :  { %vm1522_vm10 = vcmp.eq.f32.partialorder %v1521_v31, 8.507059e+37 }
 0x43e   :  { %v4499_v37 = vpop.eup %4498 }
 0x43f   :  { %v4501_v53 = vpop.eup %4500  ;;  %v1613_v52 = vadd.f32 1.0, %v4499_v37 }
 0x440   :  { %v4503_v57 = vpop.eup %4502  ;;  %v1453_v59 = vmul.f32 %v4501_v53, %v1451_v45  ;;  %vm1458_vm2 = vweird.f32 %v4501_v53 }
 0x441   :  { %v1513_v18 = vmul.f32 %v4503_v57, %v1511_v33  ;;  %4504 = vrcp.f32 %v1613_v52  ;;  %vm1518_vm3 = vweird.f32 %v4503_v57  ;;  %vm1459_vm6 = vmor %vm1457_vm4, %vm1458_vm2  ;;  %vm1619_vm12 = vweird.f32 %v1613_v52 }
 0x442   :  { %v1454_v27 = vsub.f32 1.0, %v1453_v59  ;;  %4506 = vtanh.f32 %v1567_v44  ;;  %v1396_v59 = vmul.f32 %v5898_v50, %v5892_v46  ;;  %vm1519_vm7 = vmor %vm1517_vm5, %vm1518_vm3 }
 0x443   :  { %v1514_v42 = vsub.f32 1.0, %v1513_v18  ;;  %v1464_v18 = vor.u32 1.1754944e-38, %v1463_v35 }
 0x444   :  { %v1455_v17 = vmul.f32 %v4501_v53, %v1454_v27  ;;  %v1524_v27 = vor.u32 1.1754944e-38, %v1523_v40  ;;  %v5987_v25 = vadd.f32 %v1396_v59, %v1395_v11  ;;  %v1623_v40 = vand.u32 2147483647, %v1613_v52 }
 0x445   :  { %v1515_v32 = vmul.f32 %v4503_v57, %v1514_v42 }
 0x446   :  { %v1456_v47 = vadd.f32 %v4501_v53, %v1455_v17  ;;  %vm1624_vm14 = vcmp.eq.f32.partialorder %v1623_v40, 8.507059e+37 }
 0x447   :  { %v4505_v37 = vpop.eup %4504  ;;  %v1516_v44 = vadd.f32 %v4503_v57, %v1515_v32 }
 0x448   :  { %v1460_v23 = vsel %vm1459_vm6, %v4501_v53, %v1456_v47  ;;  %v1615_v49 = vmul.f32 %v4505_v37, %v1613_v52  ;;  %v4507_v54 = vpop.eup %4506  ;;  %vm1620_vm11 = vweird.f32 %v4505_v37  ;;  %v1625_v53 = vand.u32 2147483648, %v1613_v52 }
 0x449   :  { %v1465_v42 = vsel %vm1462_vm9, %v1464_v18, %v1460_v23  ;;  %v1520_v34 = vsel %vm1519_vm7, %v4503_v57, %v1516_v44  ;;  %vm1621_vm13 = vmor %vm1619_vm12, %vm1620_vm11  ;;  %v5995_v57 = vpop.permute.xlu2 %1646 }
 0x44a   :  { %v1525_v45 = vsel %vm1522_vm10, %v1524_v27, %v1520_v34  ;;  %v1630_v17 = vmul.f32 %v4507_v54, %v1465_v42  ;;  %v1616_v33 = vsub.f32 1.0, %v1615_v49  ;;  %v1626_v23 = vor.u32 1.1754944e-38, %v1625_v53  ;;  %v5993_v49 = vpop.permute.xlu1 %1639  ;;  %7649 = vst [vmem:[#allocation17_spill] sm:$0xff] %v5995_v57 }
 0x44b   :  { %v1629_v3 = vmul.f32 %v1525_v45, %v5987_v25  ;;  %7648 = vst [vmem:[#allocation11_spill] sm:$0xff] %v5993_v49  ;;  %v1649_v11 = vmul.f32 %v5995_v57, %v5905_v26  ;;  %v7659_v26 = vld [vmem:[#allocation26_spill] sm:$0xff] }
 0x44c   :  { %v1617_v46 = vmul.f32 %v4505_v37, %v1616_v33 }
 0x44d   :  { %v5990_v50 = vadd.f32 %v1630_v17, %v1629_v3 }
 0x44e   :  { %v1618_v35 = vadd.f32 %v4505_v37, %v1617_v46  ;;  %v6076_v46 = vld [vmem:[%s7378_s5 + $0x38] sm:$0xff] }
 0x44f   :  { %4508 = vtanh.f32 %v5990_v50 }
 0x450   :  { %v1622_v51 = vsel %vm1621_vm13, %v4505_v37, %v1618_v35  ;;  %v1651_v35 = vmul.f32 %v5993_v49, %v5990_v50 }
 0x451   :  { %v1627_v34 = vsel %vm1624_vm14, %v1626_v23, %v1622_v51  ;;  %v6084_v23 = vld [vmem:[%s7378_s5 + $0x30] sm:$0xff] }
 0x452   :  { %7660 = vst [vmem:[#allocation2_spill] sm:$0xff] %v6084_v23 }
 0x455   :  { %v4509_v31 = vpop.eup %4508 }
 0x456   :  { %v1633_v54 = vmul.f32 %v4509_v31, %v1627_v34  ;;  %v1652_v34 = vmul.f32 %v5995_v57, %v5987_v25 }
 0x458   :  { %v1642_v3 = vmul.f32 %v5993_v49, %v1633_v54 }
 0x45a   :  { %v6000_v32 = vadd.f32 %v1649_v11, %v1642_v3  ;;  %v6003_v52 = vadd.f32 %v1642_v3, %v5908_v48 }
 0x45c   :  { %4250 = vmatmul.msk.f32.vlgmr.msrb.gmra.mxu3 %vm108_vm8, %v6000_v32  ;;  %4253 = vmatmul.msk.f32.vlgmr.msra.gmra.mxu2 %vm108_vm8, %v6000_v32 }
 0x45d   :  { %4256 = vmatmul.msk.f32.vlgmr.msrb.gmra.mxu1 %vm108_vm8, %v6000_v32  ;;  %4258 = vmatmul.msk.f32.vlgmr.msra.gmra.mxu0 %vm108_vm8, %v6000_v32 }
 0x45e   :  { %1924 = vmatpush.msrb.mxu3 %v5511_v43  ;;  %1987 = vmatpush.msra.mxu2 %v5517_v16  ;;  %v7650_v43 = vld [vmem:[#allocation13_spill] sm:$0xff]  ;;  %v7651_v16 = vld [vmem:[#allocation14_spill] sm:$0xff] }
 0x45f   :  { %2047 = vmatpush.msrb.mxu1 %v5523_v13  ;;  %2089 = vmatpush.msra.mxu0 %v5529_v39  ;;  %v7652_v13 = vld [vmem:[#allocation15_spill] sm:$0xff]  ;;  %v7653_v39 = vld [vmem:[#allocation16_spill] sm:$0xff] }
 0x460   :  { %1925 = vmatpush.msrb.mxu3 %v5535_v21  ;;  %1988 = vmatpush.msra.mxu2 %v5541_v8  ;;  %v7654_v21 = vld [vmem:[#allocation18_spill] sm:$0xff]  ;;  %v7655_v8 = vld [vmem:[#allocation19_spill] sm:$0xff] }
 0x461   :  { %2048 = vmatpush.msrb.mxu1 %v5547_v60  ;;  %2090 = vmatpush.msra.mxu0 %v5553_v63  ;;  %v1760_v60 = vpop.f32.mrf.mxu0  ;;  %v1700_v63 = vpop.f32.mrf.mxu1 }
 0x462   :  { %1926 = vmatpush.msrb.mxu3 %v5559_v61  ;;  %1989 = vmatpush.msra.mxu2 %v5565_v22 }
 0x463   :  { %2049 = vmatpush.msrb.mxu1 %v5571_v62  ;;  %2091 = vmatpush.msra.mxu0 %v5577_v7 }
 0x464   :  { %4257 = vmatmul.msk.f32.vlgmr.msra.gmra.mxu3 %vm132_vm0, %v5967_v19  ;;  %4259 = vmatmul.msk.f32.vlgmr.msrb.gmra.mxu2 %vm132_vm0, %v5967_v19 }
 0x465   :  { %1927 = vmatpush.msrb.mxu3 %v5587_v58  ;;  %1990 = vmatpush.msra.mxu2 %v5593_v56  ;;  %v7656_v58 = vld [vmem:[#allocation23_spill] sm:$0xff] }
 0x466   :  { %2050 = vmatpush.msrb.mxu1 %v5599_v55  ;;  %2092 = vmatpush.msra.mxu0 %v5605_v28  ;;  %v7657_v55 = vld [vmem:[#allocation24_spill] sm:$0xff] }
 0x467   :  { %1928 = vmatpush.msrb.mxu3 %v5611_v41  ;;  %1991 = vmatpush.msra.mxu2 %v5617_v12 }
 0x468   :  { %2051 = vmatpush.msrb.mxu1 %v5623_v38  ;;  %2093 = vmatpush.msra.mxu0 %v5629_v0  ;;  %v6062_v38 = vld [vmem:[%s7375_s1 + $0xe] sm:$0x3] }
 0x469   :  { %1929 = vmatpush.msrb.mxu3 %v5635_v1  ;;  %1992 = vmatpush.msra.mxu2 %v5641_v2 }
 0x46a   :  { %2052 = vmatpush.msrb.mxu1 %v5647_v4  ;;  %2094 = vmatpush.msra.mxu0 %v5653_v5  ;;  %v7658_v4 = vld [vmem:[#allocation25_spill] sm:$0xff] }
 0x46b   :  { %1930 = vmatpush.msrb.mxu3 %v5659_v6  ;;  %1993 = vmatpush.msra.mxu2 %v5665_v9 }
 0x46c   :  { %2053 = vmatpush.msrb.mxu1 %v5671_v10  ;;  %2095 = vmatpush.msra.mxu0 %v5677_v14 }
 0x46d   :  { %1931 = vmatpush.msrb.mxu3 %v5683_v15  ;;  %1994 = vmatpush.msra.mxu2 %v5689_v20 }
 0x46e   :  { %2054 = vmatpush.msrb.mxu1 %v5695_v36  ;;  %2096 = vmatpush.msra.mxu0 %v5701_v24 }
 0x46f   :  { %2071 = vmatpush.msra.mxu3 %v5707_v29  ;;  %2113 = vmatpush.msrb.mxu2 %v5713_v30 }
 0x470   :  { %4264 = vmatmul.msk.f32.vlgmr.msra.gmra.mxu1 %vm132_vm0, %v6062_v38  ;;  %4267 = vmatmul.msk.f32.vlgmr.msrb.gmra.mxu0 %vm132_vm0, %v6062_v38 }
 0x471   :  { %2072 = vmatpush.msra.mxu3 %v7650_v43  ;;  %2114 = vmatpush.msrb.mxu2 %v7651_v16  ;;  %v6093_v16 = vld [vmem:[%s7378_s5 + $0x28] sm:$0xff] }
 0x472   :  { %2312 = vmatpush.msrb.mxu0 %v6076_v46  ;;  %7661 = vst [vmem:[#allocation3_spill] sm:$0xff] %v6093_v16 }
 0x473   :  { %2073 = vmatpush.msra.mxu3 %v7652_v13  ;;  %2115 = vmatpush.msrb.mxu2 %v7653_v39  ;;  %v6095_v39 = vadd.f32 %v1652_v34, %v1651_v35  ;;  %v6255_v35 = vld [vmem:[%s7379_s6 + $0x10] sm:$0xff]  ;;  %v6287_v34 = vld [vmem:[%s7379_s6 + $0xd8] sm:$0xff] }
 0x474   :  { %2313 = vmatpush.msrb.mxu0 %v6084_v23 }
 0x475   :  { %2074 = vmatpush.msra.mxu3 %v7654_v21  ;;  %2116 = vmatpush.msrb.mxu2 %v7655_v8 }
 0x476   :  { %2314 = vmatpush.msrb.mxu0 %v6093_v16 }
 0x4da   :  { %v1842_v0 = vpop.f32.mrf.mxu0  ;;  %v1800_v36 = vpop.f32.mrf.mxu1 }
 0x4df   :  { %v1677_v61 = vpop.f32.mrf.mxu3  ;;  %v1740_v22 = vpop.f32.mrf.mxu2 }
 0x4e0   :  { %v1701_v62 = vadd.f32 %v1700_v63, %v1677_v61  ;;  %v1761_v7 = vadd.f32 %v1760_v60, %v1740_v22  ;;  %v6101_v61 = vld [vmem:[%s7378_s5 + $0x18] sm:$0xff]  ;;  %v6106_v22 = vld [vmem:[%s7378_s5 + $0x20] sm:$0xff] }
 0x4e1   :  { %7662 = vst [vmem:[#allocation4_spill] sm:$0xff] %v6106_v22  ;;  %2249 = vmatpush.msra.mxu1 %v6101_v61  ;;  %2315 = vmatpush.msrb.mxu0 %v6106_v22 }
 0x4e2   :  { %v1703_v56 = vadd.f32 %v7656_v58, %v1701_v62  ;;  %v1763_v28 = vadd.f32 %v7657_v55, %v1761_v7 }
 0x4e4   :  { %v4252_v41 = vmul.f32 -1.442695, %v1703_v56  ;;  %v4255_v12 = vmul.f32 -1.442695, %v1763_v28  ;;  %v6116_v56 = vld [vmem:[%s7378_s5 + $0x10] sm:$0xff]  ;;  %v6122_v28 = vld [vmem:[%s7378_s5 + $0x8] sm:$0xff] }
 0x4e5   :  { %7663 = vst [vmem:[#allocation5_spill] sm:$0xff] %v6116_v56  ;;  %2250 = vmatpush.msra.mxu1 %v6116_v56 }
 0x4e6   :  { %4510 = vpow2.f32 %v4252_v41  ;;  %7664 = vst [vmem:[#allocation6_spill] sm:$0xff] %v6122_v28 }
 0x4e7   :  { %4512 = vpow2.f32 %v4255_v12  ;;  %v1862_v1 = vpop.f32.mrf.mxu2  ;;  %v1820_v20 = vpop.f32.mrf.mxu3  ;;  %2251 = vmatpush.msra.mxu1 %v6122_v28 }
 0x4e8   :  { %v1863_v2 = vadd.f32 %v1862_v1, %v1842_v0  ;;  %v1821_v24 = vadd.f32 %v1820_v20, %v1800_v36  ;;  %v6132_v0 = vld [vmem:[%s7378_s5] sm:$0xff] }
 0x4e9   :  { %7665 = vst [vmem:[#allocation7_spill] sm:$0xff] %v6132_v0  ;;  %2252 = vmatpush.msra.mxu1 %v6132_v0 }
 0x4ea   :  { %v1865_v5 = vadd.f32 %v7658_v4, %v1863_v2  ;;  %v1823_v48 = vadd.f32 %v7659_v26, %v1821_v24  ;;  %v6148_v24 = vld [vmem:[%s7379_s6 + $0x38] sm:$0xff]  ;;  %v6177_v26 = vld [vmem:[%s7379_s6 + $0x70] sm:$0xff] }
 0x4ec   :  { %v4511_v6 = vpop.eup %4510  ;;  %v4260_v9 = vmul.f32 -1.442695, %v1865_v5 }
 0x4ed   :  { %v4513_v10 = vpop.eup %4512  ;;  %v1707_v14 = vadd.f32 1.0, %v4511_v6 }
 0x4ee   :  { %v1767_v15 = vadd.f32 1.0, %v4513_v10  ;;  %4514 = vpow2.f32 %v4260_v9  ;;  %v6135_v9 = vpop.permute.xlu0 %1895  ;;  %v6137_v10 = vpop.permute.xlu1 %1902 }
 0x4ef   :  { %4516 = vrcp.f32 %v1707_v14  ;;  %v1719_v42 = vand.u32 2147483648, %v1707_v14  ;;  %v1717_v33 = vand.u32 2147483647, %v1707_v14  ;;  %vm1713_vm2 = vweird.f32 %v1707_v14  ;;  %7666 = vst [vmem:[#allocation13_spill] sm:$0xff] %v6135_v9 }
 0x4f0   :  { %4518 = vrcp.f32 %v1767_v15  ;;  %v1779_v45 = vand.u32 2147483648, %v1767_v15  ;;  %v1777_v40 = vand.u32 2147483647, %v1767_v15  ;;  %vm1773_vm3 = vweird.f32 %v1767_v15  ;;  %7667 = vst [vmem:[#allocation14_spill] sm:$0xff] %v6137_v10 }
 0x4f1   :  { %v1720_v54 = vor.u32 1.1754944e-38, %v1719_v42  ;;  %vm1718_vm6 = vcmp.eq.f32.partialorder %v1717_v33, 8.507059e+37  ;;  %v6223_v42 = vld [vmem:[%s7379_s6 + $0x60] sm:$0xff] }
 0x4f2   :  { %v1780_v3 = vor.u32 1.1754944e-38, %v1779_v45  ;;  %vm1778_vm7 = vcmp.eq.f32.partialorder %v1777_v40, 8.507059e+37  ;;  %v6232_v45 = vld [vmem:[%s7379_s6 + $0x18] sm:$0xff]  ;;  %v6246_v33 = vld [vmem:[%s7379_s6 + $0xe0] sm:$0xff] }
 0x4f3   :  { %v6267_v40 = vld [vmem:[%s7379_s6 + $0xa0] sm:$0xff] }
 0x4f4   :  { %v4515_v29 = vpop.eup %4514 }
 0x4f5   :  { %v4517_v30 = vpop.eup %4516  ;;  %v6070_v47 = vadd.f32 1.0, %v4515_v29  ;;  %v6153_v29 = vld [vmem:[%s7379_s6 + $0x78] sm:$0xff] }
 0x4f6   :  { %v4519_v37 = vpop.eup %4518  ;;  %v1709_v59 = vmul.f32 %v4517_v30, %v1707_v14  ;;  %vm1714_vm15 = vweird.f32 %v4517_v30 }
 0x4f7   :  { %v1769_v18 = vmul.f32 %v4519_v37, %v1767_v15  ;;  %4520 = vrcp.f32 %v6070_v47  ;;  %vm1774_vm1 = vweird.f32 %v4519_v37  ;;  %vm1715_vm4 = vmor %vm1713_vm2, %vm1714_vm15  ;;  %v1881_v41 = vand.u32 2147483648, %v6070_v47 }
 0x4f8   :  { %v1710_v44 = vsub.f32 1.0, %v1709_v59  ;;  %4522 = vtanh.f32 %v1823_v48  ;;  %vm1775_vm5 = vmor %vm1773_vm3, %vm1774_vm1  ;;  %vm1875_vm10 = vweird.f32 %v6070_v47  ;;  %v1879_v12 = vand.u32 2147483647, %v6070_v47  ;;  %v6184_v48 = vld [vmem:[%s7379_s6 + $0xf0] sm:$0xff]  ;;  %v6199_v59 = vld [vmem:[%s7379_s6 + $0x68] sm:$0xff] }
 0x4f9   :  { %v1770_v27 = vsub.f32 1.0, %v1769_v18  ;;  %v1882_v2 = vor.u32 1.1754944e-38, %v1881_v41  ;;  %v1905_v15 = vmul.f32 %v6137_v10, %v6000_v32  ;;  %v6160_v32 = vld [vmem:[%s7379_s6 + $0xf8] sm:$0xff]  ;;  %v6208_v18 = vld [vmem:[%s7379_s6 + $0xe8] sm:$0xff] }
 0x4fa   :  { %v1711_v17 = vmul.f32 %v4517_v30, %v1710_v44  ;;  %vm1880_vm12 = vcmp.eq.f32.partialorder %v1879_v12, 8.507059e+37  ;;  %v6213_v44 = vld [vmem:[%s7379_s6 + $0xa8] sm:$0xff]  ;;  %v6379_v12 = vld [vmem:[%s7378_s5 + $0x60] sm:$0xff] }
 0x4fb   :  { %v1771_v53 = vmul.f32 %v4519_v37, %v1770_v27  ;;  %v6218_v27 = vld [vmem:[%s7379_s6 + $0x20] sm:$0xff]  ;;  %v6374_v41 = vld [vmem:[%s7378_s5 + $0x48] sm:$0xff]  ;;  %7673 = vst [vmem:[#allocation23_spill] sm:$0xff] %v6379_v12 }
 0x4fc   :  { %v1712_v51 = vadd.f32 %v4517_v30, %v1711_v17  ;;  %v6237_v17 = vld [vmem:[%s7379_s6 + $0x58] sm:$0xff]  ;;  %7672 = vst [vmem:[#allocation19_spill] sm:$0xff] %v6374_v41 }
 0x4fd   :  { %v4521_v31 = vpop.eup %4520  ;;  %v1772_v50 = vadd.f32 %v4519_v37, %v1771_v53  ;;  %v6260_v53 = vld [vmem:[%s7379_s6 + $0x50] sm:$0xff] }
 0x4fe   :  { %v1716_v11 = vsel %vm1715_vm4, %v4517_v30, %v1712_v51  ;;  %v1871_v43 = vmul.f32 %v4521_v31, %v6070_v47  ;;  %v4523_v13 = vpop.eup %4522  ;;  %vm1876_vm9 = vweird.f32 %v4521_v31  ;;  %v6172_v30 = vld [vmem:[%s7379_s6 + $0x30] sm:$0xff]  ;;  %v6272_v51 = vld [vmem:[%s7379_s6 + $0x8] sm:$0xff] }
 0x4ff   :  { %v1721_v25 = vsel %vm1718_vm6, %v1720_v54, %v1716_v11  ;;  %v1776_v21 = vsel %vm1775_vm5, %v4519_v37, %v1772_v50  ;;  %vm1877_vm11 = vmor %vm1875_vm10, %vm1876_vm9  ;;  %v6189_v47 = vld [vmem:[%s7379_s6 + $0xb0] sm:$0xff]  ;;  %v6194_v37 = vld [vmem:[%s7379_s6 + $0x28] sm:$0xff] }
 0x500   :  { %v1781_v8 = vsel %vm1778_vm7, %v1780_v3, %v1776_v21  ;;  %v1886_v60 = vmul.f32 %v4523_v13, %v1721_v25  ;;  %v1872_v63 = vsub.f32 1.0, %v1871_v43  ;;  %v6292_v54 = vld [vmem:[%s7379_s6 + $0x98] sm:$0xff]  ;;  %v6297_v50 = vld [vmem:[%s7379_s6] sm:$0xff]  ;;  %v6318_v43 = vld [vmem:[%s7379_s6 + $0xd0] sm:$0xff]  ;;  %v7668_v21 = vmov 0.0  }
 0x501   :  { %v1885_v62 = vmul.f32 %v1781_v8, %v6095_v39  ;;  %v6302_v3 = vld [vmem:[%s7379_s6 + $0x40] sm:$0xff]  ;;  %v6312_v11 = vld [vmem:[%s7378_s5 + $0x78] sm:$0xff]  ;;  %v6331_v25 = vld [vmem:[%s7379_s6 + $0x90] sm:$0xff] }
 0x502   :  { %v1873_v7 = vmul.f32 %v4521_v31, %v1872_v63  ;;  %v6326_v13 = vld [vmem:[%s7378_s5 + $0x58] sm:$0xff]  ;;  %v6338_v8 = vld [vmem:[%s7378_s5 + $0x70] sm:$0xff] }
 0x503   :  { %v6111_v58 = vadd.f32 %v1886_v60, %v1885_v62  ;;  %7669 = vst [vmem:[#allocation15_spill] sm:$0xff] %v6338_v8  ;;  %v6343_v60 = vld [vmem:[%s7379_s6 + $0xc8] sm:$0xff]  ;;  %v6350_v63 = vld [vmem:[%s7378_s5 + $0x50] sm:$0xff] }
 0x504   :  { %v1874_v55 = vadd.f32 %v4521_v31, %v1873_v7  ;;  %7670 = vst [vmem:[#allocation16_spill] sm:$0xff] %v6350_v63  ;;  %v6355_v62 = vld [vmem:[%s7379_s6 + $0x88] sm:$0xff] }
 0x505   :  { %4524 = vtanh.f32 %v6111_v58  ;;  %v6360_v7 = vld [vmem:[%s7378_s5 + $0x68] sm:$0xff] }
 0x506   :  { %v1878_v1 = vsel %vm1877_vm11, %v4521_v31, %v1874_v55  ;;  %v6277_v31 = vld [vmem:[%s7379_s6 + $0x48] sm:$0xff]  ;;  %7671 = vst [vmem:[#allocation18_spill] sm:$0xff] %v6360_v7  ;;  %v6366_v55 = vld [vmem:[%s7379_s6 + $0xc0] sm:$0xff] }
 0x507   :  { %v1883_v5 = vsel %vm1880_vm12, %v1882_v2, %v1878_v1  ;;  %v6386_v1 = vld [vmem:[%s7379_s6 + $0x80] sm:$0xff] }
 0x508   :  { %v6393_v2 = vld [vmem:[%s7378_s5 + $0x40] sm:$0xff] }
 0x509   :  { %7674 = vst [vmem:[#allocation24_spill] sm:$0xff] %v6393_v2 }
 0x50b   :  { %v4525_v4 = vpop.eup %4524 }
 0x50c   :  { %v1889_v6 = vmul.f32 %v4525_v4, %v1883_v5 }
 0x50e   :  { %v1898_v14 = vmul.f32 %v6135_v9, %v1889_v6 }
 0x510   :  { %v1906_v20 = vadd.f32 %v1905_v15, %v1898_v14  ;;  %v6143_v36 = vadd.f32 %v1898_v14, %v6003_v52  ;;  %v6165_v52 = vld [vmem:[%s7379_s6 + $0xb8] sm:$0xff]  ;;  %v4722_v15 = vld [vmem:[%s7377_s4] ss:$0 sm:$0xff] }
 0x512   :  { %4263 = vmatmul.msk.f32.vlgmr.msrb.gmra.mxu3 %vm108_vm8, %v1906_v20  ;;  %4266 = vmatmul.msk.f32.vlgmr.msra.gmra.mxu2 %vm108_vm8, %v1906_v20 }
 0x513   :  { %4269 = vmatmul.msk.f32.vlgmr.msrb.gmra.mxu1 %vm108_vm8, %v1906_v20  ;;  %4271 = vmatmul.msk.f32.vlgmr.msra.gmra.mxu0 %vm108_vm8, %v1906_v20 }
 0x514   :  { %2225 = vmatpush.msrb.mxu3 %v6148_v24  ;;  %2288 = vmatpush.msra.mxu2 %v6153_v29 }
 0x515   :  { %2396 = vmatpush.msra.mxu0 %v6160_v32  ;;  %2351 = vmatpush.msrb.mxu1 %v6165_v52 }
 0x516   :  { %2226 = vmatpush.msrb.mxu3 %v6172_v30  ;;  %2289 = vmatpush.msra.mxu2 %v6177_v26 }
 0x517   :  { %2397 = vmatpush.msra.mxu0 %v6184_v48  ;;  %2352 = vmatpush.msrb.mxu1 %v6189_v47 }
 0x518   :  { %2227 = vmatpush.msrb.mxu3 %v6194_v37  ;;  %2290 = vmatpush.msra.mxu2 %v6199_v59 }
 0x519   :  { %2398 = vmatpush.msra.mxu0 %v6208_v18  ;;  %2353 = vmatpush.msrb.mxu1 %v6213_v44 }
 0x51a   :  { %2228 = vmatpush.msrb.mxu3 %v6218_v27  ;;  %2291 = vmatpush.msra.mxu2 %v6223_v42 }
 0x51b   :  { %4270 = vmatmul.msk.f32.vlgmr.msra.gmra.mxu3 %vm132_vm0, %v6062_v38  ;;  %4272 = vmatmul.msk.f32.vlgmr.msrb.gmra.mxu2 %vm132_vm0, %v6062_v38 }
 0x51c   :  { %2229 = vmatpush.msrb.mxu3 %v6232_v45  ;;  %2292 = vmatpush.msra.mxu2 %v6237_v17 }
 0x51d   :  { %2399 = vmatpush.msra.mxu0 %v6246_v33  ;;  %4314 = vmatmul.msk.f32.vlgmr.msra.gmra.mxu1 %vm132_vm0, %v6062_v38 }
 0x51e   :  { %2230 = vmatpush.msrb.mxu3 %v6255_v35  ;;  %2293 = vmatpush.msra.mxu2 %v6260_v53 }
 0x51f   :  { %4316 = vmatmul.msk.f32.vlgmr.msrb.gmra.mxu0 %vm132_vm0, %v6062_v38  ;;  %2354 = vmatpush.msrb.mxu1 %v6267_v40 }
 0x520   :  { %2231 = vmatpush.msrb.mxu3 %v6272_v51  ;;  %2294 = vmatpush.msra.mxu2 %v6277_v31 }
 0x521   :  { %2400 = vmatpush.msra.mxu0 %v6287_v34  ;;  %2355 = vmatpush.msrb.mxu1 %v6292_v54 }
 0x522   :  { %2232 = vmatpush.msrb.mxu3 %v6297_v50  ;;  %2295 = vmatpush.msra.mxu2 %v6302_v3 }
 0x523   :  { %2233 = vmatmul.f32.vlgmr.msrb.gmra.mxu3 %v7668_v21  ;;  %2296 = vmatmul.f32.vlgmr.msra.gmra.mxu2 %v7668_v21 }
 0x524   :  { %2420 = vmatpush.msrb.mxu2 %v6312_v11  ;;  %2401 = vmatpush.msra.mxu0 %v6318_v43 }
 0x525   :  { %2375 = vmatpush.msra.mxu3 %v6326_v13  ;;  %2356 = vmatpush.msrb.mxu1 %v6331_v25 }
 0x526   :  { %2421 = vmatpush.msrb.mxu2 %v6338_v8  ;;  %2402 = vmatpush.msra.mxu0 %v6343_v60 }
 0x527   :  { %2376 = vmatpush.msra.mxu3 %v6350_v63  ;;  %2357 = vmatpush.msrb.mxu1 %v6355_v62 }
 0x528   :  { %2422 = vmatpush.msrb.mxu2 %v6360_v7  ;;  %2403 = vmatpush.msra.mxu0 %v6366_v55 }
 0x529   :  { %2404 = vmatmul.f32.vlgmr.msra.gmra.mxu0 %v7668_v21  ;;  %2377 = vmatpush.msra.mxu3 %v6374_v41 }
 0x52a   :  { %2423 = vmatpush.msrb.mxu2 %v6379_v12  ;;  %2358 = vmatpush.msrb.mxu1 %v6386_v1 }
 0x52b   :  { %4319 = vmatmul.msk.f32.vlgmr.msrb.gmra.mxu2 %vm132_vm0, %v6062_v38  ;;  %2378 = vmatpush.msra.mxu3 %v6393_v2 }
 0x52c   :  { %4318 = vmatmul.msk.f32.vlgmr.msra.gmra.mxu3 %vm132_vm0, %v6062_v38  ;;  %2359 = vmatmul.f32.vlgmr.msrb.gmra.mxu1 %v7668_v21  ;;  %v1956_v38 = vpop.f32.mrf.mxu1  ;;  %v4723_v21 = vld [vmem:[%s7377_s4 + $0x1] ss:$0 sm:$0xff] }
 0x52d   :  { %2503 = vmatpush.msra.mxu1 %v6101_v61  ;;  %2563 = vmatpush.msrb.mxu0 %v6076_v46 }
 0x52e   :  { %2479 = vmatpush.msrb.mxu3 %v6148_v24  ;;  %2539 = vmatpush.msra.mxu2 %v6153_v29 }
 0x52f   :  { %2504 = vmatpush.msra.mxu1 %v6116_v56  ;;  %2564 = vmatpush.msrb.mxu0 %v6084_v23 }
 0x530   :  { %2480 = vmatpush.msrb.mxu3 %v6172_v30  ;;  %2540 = vmatpush.msra.mxu2 %v6177_v26 }
 0x531   :  { %2505 = vmatpush.msra.mxu1 %v6122_v28  ;;  %2565 = vmatpush.msrb.mxu0 %v6093_v16 }
 0x532   :  { %2481 = vmatpush.msrb.mxu3 %v6194_v37  ;;  %2541 = vmatpush.msra.mxu2 %v6199_v59 }
 0x533   :  { %2506 = vmatpush.msra.mxu1 %v6132_v0  ;;  %2566 = vmatpush.msrb.mxu0 %v6106_v22 }
 0x534   :  { %2482 = vmatpush.msrb.mxu3 %v6218_v27  ;;  %2542 = vmatpush.msra.mxu2 %v6223_v42 }
 0x535   :  { %2599 = vmatpush.msrb.mxu1 %v6165_v52  ;;  %2641 = vmatpush.msra.mxu0 %v6160_v32 }
 0x536   :  { %4322 = vmatmul.msk.f32.vlgmr.msra.gmra.mxu1 %vm132_vm0, %v5967_v19  ;;  %4325 = vmatmul.msk.f32.vlgmr.msrb.gmra.mxu0 %vm132_vm0, %v5967_v19  ;;  %v2016_v19 = vpop.f32.mrf.mxu0 }
 0x537   :  { %2600 = vmatpush.msrb.mxu1 %v6189_v47  ;;  %2642 = vmatpush.msra.mxu0 %v6184_v48 }
 0x538   :  { %2483 = vmatpush.msrb.mxu3 %v6232_v45  ;;  %2543 = vmatpush.msra.mxu2 %v6237_v17 }
 0x539   :  { %2601 = vmatpush.msrb.mxu1 %v6213_v44  ;;  %2643 = vmatpush.msra.mxu0 %v6208_v18 }
 0x53a   :  { %2484 = vmatpush.msrb.mxu3 %v6255_v35  ;;  %2544 = vmatpush.msra.mxu2 %v6260_v53 }
 0x53b   :  { %2602 = vmatpush.msrb.mxu1 %v6267_v40  ;;  %2644 = vmatpush.msra.mxu0 %v6246_v33 }
 0x53c   :  { %2485 = vmatpush.msrb.mxu3 %v6272_v51  ;;  %2545 = vmatpush.msra.mxu2 %v6277_v31 }
 0x53d   :  { %2603 = vmatpush.msrb.mxu1 %v6292_v54  ;;  %2645 = vmatpush.msra.mxu0 %v6287_v34 }
 0x53e   :  { %2486 = vmatpush.msrb.mxu3 %v6297_v50  ;;  %2546 = vmatpush.msra.mxu2 %v6302_v3 }
 0x53f   :  { %2604 = vmatpush.msrb.mxu1 %v6331_v25  ;;  %2646 = vmatpush.msra.mxu0 %v6318_v43 }
 0x540   :  { %2623 = vmatpush.msra.mxu3 %v6326_v13  ;;  %2665 = vmatpush.msrb.mxu2 %v6312_v11 }
 0x541   :  { %2605 = vmatpush.msrb.mxu1 %v6355_v62  ;;  %2647 = vmatpush.msra.mxu0 %v6343_v60 }
 0x542   :  { %2624 = vmatpush.msra.mxu3 %v6350_v63  ;;  %2666 = vmatpush.msrb.mxu2 %v6338_v8 }
 0x543   :  { %2606 = vmatpush.msrb.mxu1 %v6386_v1  ;;  %2648 = vmatpush.msra.mxu0 %v6366_v55 }
 0x544   :  { %2625 = vmatpush.msra.mxu3 %v6374_v41  ;;  %2667 = vmatpush.msrb.mxu2 %v6360_v7 }
 0x545   :  { %2740 = vmatpush.msra.mxu1 %v6101_v61  ;;  %2800 = vmatpush.msrb.mxu0 %v6076_v46 }
 0x546   :  { %2626 = vmatpush.msra.mxu3 %v6393_v2  ;;  %2668 = vmatpush.msrb.mxu2 %v6379_v12 }
 0x547   :  { %2741 = vmatpush.msra.mxu1 %v6116_v56  ;;  %2801 = vmatpush.msrb.mxu0 %v6084_v23 }
 0x549   :  { %2742 = vmatpush.msra.mxu1 %v6122_v28  ;;  %2802 = vmatpush.msrb.mxu0 %v6093_v16 }
 0x54b   :  { %2743 = vmatpush.msra.mxu1 %v6132_v0  ;;  %2803 = vmatpush.msrb.mxu0 %v6106_v22 }
 0x590   :  { %v2098_v49 = vpop.f32.mrf.mxu0  ;;  %v2056_v22 = vpop.f32.mrf.mxu1 }
 0x595   :  { %v1933_v4 = vpop.f32.mrf.mxu3  ;;  %v1996_v5 = vpop.f32.mrf.mxu2 }
 0x596   :  { %v1957_v6 = vadd.f32 %v1956_v38, %v1933_v4  ;;  %v2017_v14 = vadd.f32 %v2016_v19, %v1996_v5  ;;  %v4724_v19 = vld [vmem:[%s7377_s4 + $0x3] ss:$0 sm:$0xff] }
 0x598   :  { %v1959_v20 = vadd.f32 %v4722_v15, %v1957_v6  ;;  %v2019_v57 = vadd.f32 %v4723_v21, %v2017_v14 }
 0x59a   :  { %v4265_v0 = vmul.f32 -1.442695, %v1959_v20  ;;  %v4268_v12 = vmul.f32 -1.442695, %v2019_v57  ;;  %v2254_v57 = vpop.f32.mrf.mxu1 }
 0x59c   :  { %4526 = vpow2.f32 %v4265_v0  ;;  %v2317_v6 = vpop.f32.mrf.mxu0  ;;  %v6479_v0 = vld [vmem:[%s7380_s7] ss:$0 sm:$0xff] }
 0x59d   :  { %4528 = vpow2.f32 %v4268_v12  ;;  %7675 = vst [vmem:[#allocation25_spill] sm:$0xff] %v6479_v0  ;;  %v6485_v12 = vld [vmem:[%s7380_s7 + $0x1] ss:$0 sm:$0xff] }
 0x59e   :  { %v2076_v2 = vpop.f32.mrf.mxu3  ;;  %v2118_v16 = vpop.f32.mrf.mxu2  ;;  %7676 = vst [vmem:[#allocation26_spill] sm:$0xff] %v6485_v12 }
 0x59f   :  { %v2119_v38 = vadd.f32 %v2118_v16, %v2098_v49  ;;  %v2077_v20 = vadd.f32 %v2076_v2, %v2056_v22  ;;  %v4725_v22 = vld [vmem:[%s7377_s4 + $0x2] ss:$0 sm:$0xff] }
 0x5a1   :  { %v2121_v4 = vadd.f32 %v4724_v19, %v2119_v38  ;;  %v2079_v2 = vadd.f32 %v4725_v22, %v2077_v20  ;;  %v6500_v20 = vld [vmem:[%s7380_s7 + $0x3] ss:$0 sm:$0xff] }
 0x5a2   :  { %v4527_v5 = vpop.eup %4526  ;;  %7677 = vst [vmem:[#allocation29_spill] sm:$0xff] %v6500_v20 }
 0x5a3   :  { %v4529_v15 = vpop.eup %4528  ;;  %v1963_v28 = vadd.f32 1.0, %v4527_v5  ;;  %v4273_v7 = vmul.f32 -1.442695, %v2121_v4 }
 0x5a4   :  { %v6474_v14 = vadd.f32 1.0, %v4529_v15 }
 0x5a5   :  { %4530 = vrcp.f32 %v1963_v28  ;;  %vm1969_vm1 = vweird.f32 %v1963_v28 }
 0x5a6   :  { %4532 = vrcp.f32 %v6474_v14  ;;  %v2234_v49 = vpop.f32.mrf.mxu3  ;;  %v2297_v16 = vpop.f32.mrf.mxu2  ;;  %vm2029_vm15 = vweird.f32 %v6474_v14 }
 0x5a7   :  { %4534 = vpow2.f32 %v4273_v7  ;;  %v2255_v21 = vadd.f32 %v2254_v57, %v2234_v49  ;;  %v2318_v38 = vadd.f32 %v2317_v6, %v2297_v16  ;;  %v2405_v8 = vpop.f32.mrf.mxu0  ;;  %v1907_v7 = vmul.f32 %v6135_v9, %v6111_v58 }
 0x5a8   :  { %4536 = vtanh.f32 %v2079_v2  ;;  %v1908_v6 = vmul.f32 %v6137_v10, %v6095_v39  ;;  %v1973_v16 = vand.u32 2147483647, %v1963_v28  ;;  %v2035_v58 = vand.u32 2147483648, %v6474_v14 }
 0x5a9   :  { %v2260_v19 = vadd.f32 %v6479_v0, %v2255_v21  ;;  %v2323_v4 = vadd.f32 %v6485_v12, %v2318_v38  ;;  %v1975_v38 = vand.u32 2147483648, %v1963_v28  ;;  %v2033_v39 = vand.u32 2147483647, %v6474_v14 }
 0x5aa   :  { %v1909_v10 = vadd.f32 %v1908_v6, %v1907_v7  ;;  %vm1974_vm2 = vcmp.eq.f32.partialorder %v1973_v16, 8.507059e+37 }
 0x5ab   :  { %v4531_v5 = vpop.eup %4530  ;;  %v4315_v15 = vmul.f32 -1.442695, %v2260_v19  ;;  %v4317_v56 = vmul.f32 -1.442695, %v2323_v4  ;;  %vm2034_vm5 = vcmp.eq.f32.partialorder %v2033_v39, 8.507059e+37 }
 0x5ac   :  { %v4533_v41 = vpop.eup %4532  ;;  %v1965_v23 = vmul.f32 %v4531_v5, %v1963_v28  ;;  %vm1970_vm13 = vweird.f32 %v4531_v5  ;;  %v6518_v28 = vld [vmem:[%s7380_s7 + $0x2] ss:$0 sm:$0xff] }
 0x5ad   :  { %v4535_v63 = vpop.eup %4534  ;;  %v2025_v57 = vmul.f32 %v4533_v41, %v6474_v14  ;;  %4538 = vpow2.f32 %v4315_v15  ;;  %vm2030_vm14 = vweird.f32 %v4533_v41  ;;  %vm1971_vm3 = vmor %vm1969_vm1, %vm1970_vm13  ;;  %7678 = vst [vmem:[#allocation30_spill] sm:$0xff] %v6518_v28 }
 0x5ae   :  { %v1966_v49 = vsub.f32 1.0, %v1965_v23  ;;  %v6502_v21 = vadd.f32 1.0, %v4535_v63  ;;  %4540 = vpow2.f32 %v4317_v56  ;;  %v2425_v22 = vpop.f32.mrf.mxu2  ;;  %v2360_v63 = vpop.f32.mrf.mxu1  ;;  %vm2031_vm4 = vmor %vm2029_vm15, %vm2030_vm14 }
 0x5af   :  { %v2026_v2 = vsub.f32 1.0, %v2025_v57  ;;  %v2426_v19 = vadd.f32 %v2425_v22, %v2405_v8  ;;  %v2380_v9 = vpop.f32.mrf.mxu3  ;;  %v4537_v56 = vpop.eup %4536  ;;  %v1976_v22 = vor.u32 1.1754944e-38, %v1975_v38 }
 0x5b0   :  { %v1967_v4 = vmul.f32 %v4531_v5, %v1966_v49  ;;  %4542 = vrcp.f32 %v6502_v21  ;;  %v2036_v49 = vor.u32 1.1754944e-38, %v2035_v58  ;;  %vm2131_vm7 = vweird.f32 %v6502_v21 }
 0x5b1   :  { %v2027_v15 = vmul.f32 %v4533_v41, %v2026_v2  ;;  %v2431_v23 = vadd.f32 %v6500_v20, %v2426_v19  ;;  %v2381_v19 = vadd.f32 %v2380_v9, %v2360_v63 }
 0x5b2   :  { %v1968_v57 = vadd.f32 %v4531_v5, %v1967_v4 }
 0x5b3   :  { %v4539_v8 = vpop.eup %4538  ;;  %v2028_v12 = vadd.f32 %v4533_v41, %v2027_v15  ;;  %v4320_v0 = vmul.f32 -1.442695, %v2431_v23  ;;  %v2137_v23 = vand.u32 2147483648, %v6502_v21 }
 0x5b4   :  { %v4541_v2 = vpop.eup %4540  ;;  %v1972_v7 = vsel %vm1971_vm3, %v4531_v5, %v1968_v57  ;;  %v6511_v6 = vadd.f32 1.0, %v4539_v8 }
 0x5b5   :  { %v1977_v20 = vsel %vm1974_vm2, %v1976_v22, %v1972_v7  ;;  %v2032_v14 = vsel %vm2031_vm4, %v4533_v41, %v2028_v12  ;;  %v6513_v4 = vadd.f32 1.0, %v4541_v2  ;;  %4544 = vpow2.f32 %v4320_v0 }
 0x5b6   :  { %v4543_v16 = vpop.eup %4542  ;;  %v2037_v58 = vsel %vm2034_vm5, %v2036_v49, %v2032_v14  ;;  %v2142_v38 = vmul.f32 %v4537_v56, %v1977_v20  ;;  %4546 = vrcp.f32 %v6511_v6  ;;  %v2386_v12 = vadd.f32 %v6518_v28, %v2381_v19 }
 0x5b7   :  { %v2141_v5 = vmul.f32 %v2037_v58, %v1909_v10  ;;  %v2127_v39 = vmul.f32 %v4543_v16, %v6502_v21  ;;  %4548 = vrcp.f32 %v6513_v4  ;;  %vm2132_vm6 = vweird.f32 %v4543_v16 }
 0x5b8   :  { %v2135_v20 = vand.u32 2147483647, %v6502_v21  ;;  %vm2133_vm9 = vmor %vm2131_vm7, %vm2132_vm6  ;;  %v2138_v2 = vor.u32 1.1754944e-38, %v2137_v23  ;;  %v2339_v14 = vand.u32 2147483648, %v6513_v4  ;;  %v2276_v58 = vand.u32 2147483648, %v6511_v6 }
 0x5b9   :  { %v2143_v9 = vadd.f32 %v2142_v38, %v2141_v5  ;;  %v2128_v41 = vsub.f32 1.0, %v2127_v39  ;;  %v2274_v39 = vand.u32 2147483647, %v6511_v6  ;;  %vm2270_vm13 = vweird.f32 %v6511_v6 }
 0x5ba   :  { %vm2136_vm10 = vcmp.eq.f32.partialorder %v2135_v20, 8.507059e+37  ;;  %vm2333_vm14 = vweird.f32 %v6513_v4  ;;  %vm4128_vm4 = vcmask 517120  }
 0x5bb   :  { %v4545_v0 = vpop.eup %4544  ;;  %4550 = vtanh.f32 %v2143_v9  ;;  %v2129_v15 = vmul.f32 %v4543_v16, %v2128_v41  ;;  %vm2275_vm1 = vcmp.eq.f32.partialorder %v2274_v39, 8.507059e+37 }
 0x5bc   :  { %v4547_v63 = vpop.eup %4546  ;;  %v6526_v56 = vadd.f32 1.0, %v4545_v0  ;;  %4552 = vtanh.f32 %v2386_v12  ;;  %v2337_v12 = vand.u32 2147483647, %v6513_v4  ;;  %v2152_v0 = vpop.permute.xlu2 %2151 }
 0x5bd   :  { %v4549_v10 = vpop.eup %4548  ;;  %v2130_v57 = vadd.f32 %v4543_v16, %v2129_v15  ;;  %v2266_v8 = vmul.f32 %v4547_v63, %v6511_v6  ;;  %vm2271_vm11 = vweird.f32 %v4547_v63  ;;  %v6541_v6 = vpop.permute.xlu1 %4124 }
 0x5be   :  { %v2329_v49 = vmul.f32 %v4549_v10, %v6513_v4  ;;  %4554 = vrcp.f32 %v6526_v56  ;;  %vm2334_vm12 = vweird.f32 %v4549_v10  ;;  %vm2272_vm15 = vmor %vm2270_vm13, %vm2271_vm11  ;;  %vm2338_vm3 = vcmp.eq.f32.partialorder %v2337_v12, 8.507059e+37  ;;  %7679 = vst [vmem:[#allocation31_spill] sm:$0xff] %v6541_v6 }
 0x5bf   :  { %v2134_v22 = vsel %vm2133_vm9, %v4543_v16, %v2130_v57  ;;  %v2267_v7 = vsub.f32 1.0, %v2266_v8  ;;  %v2277_v57 = vor.u32 1.1754944e-38, %v2276_v58  ;;  %vm2335_vm2 = vmor %vm2333_vm14, %vm2334_vm12  ;;  %v2447_v39 = vand.u32 2147483648, %v6526_v56 }
 0x5c0   :  { %v2330_v19 = vsub.f32 1.0, %v2329_v49  ;;  %v2139_v5 = vsel %vm2136_vm10, %v2138_v2, %v2134_v22  ;;  %v2340_v49 = vor.u32 1.1754944e-38, %v2339_v14  ;;  %vm2441_vm6 = vweird.f32 %v6526_v56 }
 0x5c1   :  { %v4551_v38 = vpop.eup %4550  ;;  %v2268_v21 = vmul.f32 %v4547_v63, %v2267_v7 }
 0x5c2   :  { %v2145_v9 = vmul.f32 %v4551_v38, %v2139_v5  ;;  %v2331_v41 = vmul.f32 %v4549_v10, %v2330_v19  ;;  %v4553_v16 = vpop.eup %4552 }
 0x5c3   :  { %v2269_v15 = vadd.f32 %v4547_v63, %v2268_v21 }
 0x5c4   :  { %v4555_v23 = vpop.eup %4554  ;;  %v2154_v20 = vmul.f32 %v2152_v0, %v2145_v9  ;;  %v2332_v8 = vadd.f32 %v4549_v10, %v2331_v41  ;;  %v2461_v9 = vpop.permute.xlu0 %2460 }
 0x5c5   :  { %v2437_v22 = vmul.f32 %v4555_v23, %v6526_v56  ;;  %v2273_v2 = vsel %vm2272_vm15, %v4547_v63, %v2269_v15  ;;  %vm2442_vm5 = vweird.f32 %v4555_v23 }
 0x5c6   :  { %v2155_v7 = vadd.f32 %v2154_v20, %v6143_v36  ;;  %v2278_v19 = vsel %vm2275_vm1, %v2277_v57, %v2273_v2  ;;  %v2336_v38 = vsel %vm2335_vm2, %v4549_v10, %v2332_v8  ;;  %v2463_v10 = vmul.f32 0.0, %v2461_v9  ;;  %vm2443_vm7 = vmor %vm2441_vm6, %vm2442_vm5  ;;  %v7689_v9 = vld [vmem:[#allocation24_spill] sm:$0xff] }
 0x5c7   :  { %v2438_v5 = vsub.f32 1.0, %v2437_v22  ;;  %v2341_v4 = vsel %vm2338_vm3, %v2340_v49, %v2336_v38  ;;  %v2452_v21 = vmul.f32 %v4553_v16, %v2278_v19  ;;  %v2445_v16 = vand.u32 2147483647, %v6526_v56  ;;  %v4726_v56 = vld [vmem:[%s7375_s1 + $0xc] sm:$0x3]  ;;  %v7683_v38 = vld [vmem:[#allocation5_spill] sm:$0xff] }
 0x5c8   :  { %v4127_v58 = vmul.f32 %v6541_v6, %v2155_v7  ;;  %v2451_v14 = vmul.f32 0.0, %v2341_v4  ;;  %v2448_v57 = vor.u32 1.1754944e-38, %v2447_v39  ;;  %v7682_v19 = vld [vmem:[#allocation15_spill] sm:$0xff] }
 0x5c9   :  { %v2439_v41 = vmul.f32 %v4555_v23, %v2438_v5  ;;  %vm2446_vm9 = vcmp.eq.f32.partialorder %v2445_v16, 8.507059e+37  ;;  %v7684_v5 = vld [vmem:[#allocation2_spill] sm:$0xff]  ;;  %v7685_v4 = vld [vmem:[#allocation19_spill] sm:$0xff] }
 0x5ca   :  { %4129 = vst.msk [vmem:[%s7381_s8] sm:$0x3] %vm4128_vm4, %v4127_v58  ;;  %v2453_v36 = vadd.f32 %v2452_v21, %v2451_v14  ;;  %v7686_v21 = vld [vmem:[#allocation18_spill] sm:$0xff]  ;;  %v7688_v14 = vld [vmem:[#allocation3_spill] sm:$0xff] }
 0x5cb   :  { %v2440_v63 = vadd.f32 %v4555_v23, %v2439_v41  ;;  %v7687_v58 = vld [vmem:[#allocation6_spill] sm:$0xff]  ;;  %v7692_v41 = vld [vmem:[#allocation4_spill] sm:$0xff] }
 0x5cc   :  { %4556 = vtanh.f32 %v2453_v36  ;;  %v2465_v12 = vmul.f32 %v2453_v36, %v2152_v0  ;;  %v2568_v36 = vpop.f32.mrf.mxu0 }
 0x5cd   :  { %v2444_v20 = vsel %vm2443_vm7, %v4555_v23, %v2440_v63  ;;  %v7681_v23 = vld [vmem:[#allocation16_spill] sm:$0xff]  ;;  %v2508_v63 = vpop.f32.mrf.mxu1 }
 0x5ce   :  { %v6551_v15 = vadd.f32 %v2465_v12, %v2463_v10  ;;  %v2449_v49 = vsel %vm2446_vm9, %v2448_v57, %v2444_v20  ;;  %v7693_v20 = vld [vmem:[#allocation25_spill] sm:$0xff] }
 0x5d2   :  { %v4557_v8 = vpop.eup %4556 }
 0x5d3   :  { %v2455_v22 = vmul.f32 %v4557_v8, %v2449_v49  ;;  %v7694_v8 = vld [vmem:[#allocation26_spill] sm:$0xff] }
 0x5d5   :  { %v6553_v2 = vmul.f32 %v2455_v22, %v2152_v0  ;;  %v6590_v0 = vld [vmem:[%s7375_s1 + $0xa] sm:$0x3] }
 0x5d7   :  { %7680 = vst [vmem:[#allocation32_spill] sm:$0xff] %v6553_v2  ;;  %v6556_v7 = vadd.f32 %v2463_v10, %v6553_v2 }
 0x5d9   :  { %4321 = vmatmul.msk.f32.vlgmr.msrb.gmra.mxu3 %vm108_vm8, %v6556_v7  ;;  %4324 = vmatmul.msk.f32.vlgmr.msra.gmra.mxu2 %vm108_vm8, %v6556_v7 }
 0x5da   :  { %4327 = vmatmul.msk.f32.vlgmr.msrb.gmra.mxu1 %vm108_vm8, %v6556_v7  ;;  %4329 = vmatmul.msk.f32.vlgmr.msra.gmra.mxu0 %vm108_vm8, %v6556_v7 }
 0x5db   :  { %2716 = vmatpush.msrb.mxu3 %v6148_v24  ;;  %2776 = vmatpush.msra.mxu2 %v6153_v29 }
 0x5dc   :  { %2836 = vmatpush.msrb.mxu1 %v6165_v52  ;;  %2878 = vmatpush.msra.mxu0 %v6160_v32 }
 0x5dd   :  { %2717 = vmatpush.msrb.mxu3 %v6172_v30  ;;  %2777 = vmatpush.msra.mxu2 %v6177_v26 }
 0x5de   :  { %2837 = vmatpush.msrb.mxu1 %v6189_v47  ;;  %2879 = vmatpush.msra.mxu0 %v6184_v48 }
 0x5df   :  { %2718 = vmatpush.msrb.mxu3 %v6194_v37  ;;  %2778 = vmatpush.msra.mxu2 %v6199_v59 }
 0x5e0   :  { %2838 = vmatpush.msrb.mxu1 %v6213_v44  ;;  %2880 = vmatpush.msra.mxu0 %v6208_v18 }
 0x5e1   :  { %4328 = vmatmul.msk.f32.vlgmr.msra.gmra.mxu3 %vm132_vm0, %v4726_v56  ;;  %4330 = vmatmul.msk.f32.vlgmr.msrb.gmra.mxu2 %vm132_vm0, %v4726_v56 }
 0x5e2   :  { %2719 = vmatpush.msrb.mxu3 %v6218_v27  ;;  %2779 = vmatpush.msra.mxu2 %v6223_v42 }
 0x5e3   :  { %2839 = vmatpush.msrb.mxu1 %v6267_v40  ;;  %2881 = vmatpush.msra.mxu0 %v6246_v33 }
 0x5e4   :  { %4333 = vmatmul.msk.f32.vlgmr.msra.gmra.mxu1 %vm132_vm0, %v6590_v0  ;;  %4336 = vmatmul.msk.f32.vlgmr.msrb.gmra.mxu0 %vm132_vm0, %v6590_v0 }
 0x5e5   :  { %2720 = vmatpush.msrb.mxu3 %v6232_v45  ;;  %2780 = vmatpush.msra.mxu2 %v6237_v17 }
 0x5e6   :  { %2840 = vmatpush.msrb.mxu1 %v6292_v54  ;;  %2882 = vmatpush.msra.mxu0 %v6287_v34 }
 0x5e7   :  { %2721 = vmatpush.msrb.mxu3 %v6255_v35  ;;  %2781 = vmatpush.msra.mxu2 %v6260_v53 }
 0x5e8   :  { %2841 = vmatpush.msrb.mxu1 %v6331_v25  ;;  %2883 = vmatpush.msra.mxu0 %v6318_v43 }
 0x5e9   :  { %2722 = vmatpush.msrb.mxu3 %v6272_v51  ;;  %2782 = vmatpush.msra.mxu2 %v6277_v31 }
 0x5ea   :  { %2842 = vmatpush.msrb.mxu1 %v6355_v62  ;;  %2884 = vmatpush.msra.mxu0 %v6343_v60 }
 0x5eb   :  { %2723 = vmatpush.msrb.mxu3 %v6297_v50  ;;  %2783 = vmatpush.msra.mxu2 %v6302_v3 }
 0x5ec   :  { %2843 = vmatpush.msrb.mxu1 %v6386_v1  ;;  %2885 = vmatpush.msra.mxu0 %v6366_v55 }
 0x5ed   :  { %2860 = vmatpush.msra.mxu3 %v6326_v13  ;;  %2902 = vmatpush.msrb.mxu2 %v6312_v11 }
 0x5ee   :  { %2977 = vmatpush.msra.mxu1 %v6101_v61  ;;  %3037 = vmatpush.msrb.mxu0 %v6076_v46  ;;  %v7690_v61 = vld [vmem:[#allocation23_spill] sm:$0xff] }
 0x5ef   :  { %2861 = vmatpush.msra.mxu3 %v7681_v23  ;;  %2903 = vmatpush.msrb.mxu2 %v7682_v19  ;;  %v7691_v46 = vld [vmem:[#allocation7_spill] sm:$0xff] }
 0x5f0   :  { %2978 = vmatpush.msra.mxu1 %v7683_v38  ;;  %3038 = vmatpush.msrb.mxu0 %v7684_v5 }
 0x5f1   :  { %2862 = vmatpush.msra.mxu3 %v7685_v4  ;;  %2904 = vmatpush.msrb.mxu2 %v7686_v21 }
 0x5f2   :  { %2979 = vmatpush.msra.mxu1 %v7687_v58  ;;  %3039 = vmatpush.msrb.mxu0 %v7688_v14  ;;  %v7695_v14 = vld [vmem:[#allocation29_spill] sm:$0xff] }
 0x5f3   :  { %2863 = vmatpush.msra.mxu3 %v7689_v9  ;;  %2905 = vmatpush.msrb.mxu2 %v7690_v61 }
 0x5f4   :  { %2980 = vmatpush.msra.mxu1 %v7691_v46  ;;  %3040 = vmatpush.msrb.mxu0 %v7692_v41 }
 0x657   :  { %v2650_v38 = vpop.f32.mrf.mxu0 }
 0x65c   :  { %v2488_v10 = vpop.f32.mrf.mxu3  ;;  %v2548_v39 = vpop.f32.mrf.mxu2 }
 0x65d   :  { %v2509_v12 = vadd.f32 %v2508_v63, %v2488_v10  ;;  %v2569_v16 = vadd.f32 %v2568_v36, %v2548_v39  ;;  %v2608_v36 = vpop.f32.mrf.mxu1 }
 0x65f   :  { %v2511_v57 = vadd.f32 %v7693_v20, %v2509_v12  ;;  %v2571_v49 = vadd.f32 %v7694_v8, %v2569_v16 }
 0x661   :  { %v4323_v22 = vmul.f32 -1.442695, %v2511_v57  ;;  %v4326_v56 = vmul.f32 -1.442695, %v2571_v49 }
 0x663   :  { %4558 = vpow2.f32 %v4323_v22 }
 0x664   :  { %4560 = vpow2.f32 %v4326_v56  ;;  %v2670_v5 = vpop.f32.mrf.mxu2  ;;  %v2628_v63 = vpop.f32.mrf.mxu3 }
 0x665   :  { %v2671_v58 = vadd.f32 %v2670_v5, %v2650_v38  ;;  %v2629_v10 = vadd.f32 %v2628_v63, %v2608_v36 }
 0x667   :  { %v2673_v46 = vadd.f32 %v7695_v14, %v2671_v58  ;;  %v2631_v16 = vadd.f32 %v6518_v28, %v2629_v10 }
 0x669   :  { %v4559_v41 = vpop.eup %4558  ;;  %v4331_v6 = vmul.f32 -1.442695, %v2673_v46 }
 0x66a   :  { %v4561_v2 = vpop.eup %4560  ;;  %v2515_v61 = vadd.f32 1.0, %v4559_v41 }
 0x66b   :  { %v2575_v9 = vadd.f32 1.0, %v4561_v2  ;;  %4562 = vpow2.f32 %v4331_v6 }
 0x66c   :  { %4564 = vrcp.f32 %v2515_v61  ;;  %v2527_v58 = vand.u32 2147483648, %v2515_v61  ;;  %v2525_v6 = vand.u32 2147483647, %v2515_v61  ;;  %vm2521_vm12 = vweird.f32 %v2515_v61 }
 0x66d   :  { %4566 = vrcp.f32 %v2575_v9  ;;  %v2587_v2 = vand.u32 2147483648, %v2575_v9  ;;  %v2585_v63 = vand.u32 2147483647, %v2575_v9  ;;  %vm2581_vm13 = vweird.f32 %v2575_v9 }
 0x66e   :  { %v2528_v10 = vor.u32 1.1754944e-38, %v2527_v58  ;;  %vm2526_vm1 = vcmp.eq.f32.partialorder %v2525_v6, 8.507059e+37 }
 0x66f   :  { %v2588_v28 = vor.u32 1.1754944e-38, %v2587_v2  ;;  %vm2586_vm2 = vcmp.eq.f32.partialorder %v2585_v63, 8.507059e+37 }
 0x671   :  { %v4563_v39 = vpop.eup %4562 }
 0x672   :  { %v4565_v12 = vpop.eup %4564  ;;  %v2677_v57 = vadd.f32 1.0, %v4563_v39 }
 0x673   :  { %v4567_v49 = vpop.eup %4566  ;;  %v2517_v22 = vmul.f32 %v4565_v12, %v2515_v61  ;;  %vm2522_vm10 = vweird.f32 %v4565_v12 }
 0x674   :  { %v2577_v56 = vmul.f32 %v4567_v49, %v2575_v9  ;;  %4568 = vrcp.f32 %v2677_v57  ;;  %vm2582_vm11 = vweird.f32 %v4567_v49  ;;  %vm2523_vm14 = vmor %vm2521_vm12, %vm2522_vm10  ;;  %v2689_v58 = vand.u32 2147483648, %v2677_v57 }
 0x675   :  { %v2518_v38 = vsub.f32 1.0, %v2517_v22  ;;  %4570 = vtanh.f32 %v2631_v16  ;;  %vm2583_vm15 = vmor %vm2581_vm13, %vm2582_vm11  ;;  %vm2683_vm5 = vweird.f32 %v2677_v57 }
 0x676   :  { %v2578_v5 = vsub.f32 1.0, %v2577_v56  ;;  %v2690_v6 = vor.u32 1.1754944e-38, %v2689_v58 }
 0x677   :  { %v2519_v46 = vmul.f32 %v4565_v12, %v2518_v38 }
 0x678   :  { %v2579_v41 = vmul.f32 %v4567_v49, %v2578_v5 }
 0x679   :  { %v2520_v36 = vadd.f32 %v4565_v12, %v2519_v46 }
 0x67a   :  { %v4569_v14 = vpop.eup %4568  ;;  %v2580_v39 = vadd.f32 %v4567_v49, %v2579_v41  ;;  %v7696_v41 = vld [vmem:[#allocation13_spill] sm:$0xff] }
 0x67b   :  { %v2524_v22 = vsel %vm2523_vm14, %v4565_v12, %v2520_v36  ;;  %v2679_v56 = vmul.f32 %v4569_v14, %v2677_v57  ;;  %v4571_v16 = vpop.eup %4570  ;;  %vm2684_vm3 = vweird.f32 %v4569_v14  ;;  %v2687_v12 = vand.u32 2147483647, %v2677_v57 }
 0x67c   :  { %v2529_v8 = vsel %vm2526_vm1, %v2528_v10, %v2524_v22  ;;  %v2584_v38 = vsel %vm2583_vm15, %v4567_v49, %v2580_v39  ;;  %vm2685_vm6 = vmor %vm2683_vm5, %vm2684_vm3  ;;  %v7713_v10 = vld [vmem:[#allocation30_spill] sm:$0xff] }
 0x67d   :  { %v2589_v20 = vsel %vm2586_vm2, %v2588_v28, %v2584_v38  ;;  %v2694_v5 = vmul.f32 %v4571_v16, %v2529_v8  ;;  %v2680_v21 = vsub.f32 1.0, %v2679_v56  ;;  %vm2688_vm7 = vcmp.eq.f32.partialorder %v2687_v12, 8.507059e+37 }
 0x67e   :  { %v2693_v46 = vmul.f32 %v2589_v20, %v6551_v15 }
 0x67f   :  { %v2681_v61 = vmul.f32 %v4569_v14, %v2680_v21  ;;  %v7697_v21 = vld [vmem:[#allocation14_spill] sm:$0xff] }
 0x680   :  { %v6633_v4 = vadd.f32 %v2694_v5, %v2693_v46  ;;  %v2699_v20 = vmul.f32 %v6556_v7, %v7697_v21 }
 0x681   :  { %v2682_v9 = vadd.f32 %v4569_v14, %v2681_v61 }
 0x682   :  { %4572 = vtanh.f32 %v6633_v4 }
 0x683   :  { %v2686_v2 = vsel %vm2685_vm6, %v4569_v14, %v2682_v9 }
 0x684   :  { %v2691_v28 = vsel %vm2688_vm7, %v2690_v6, %v2686_v2  ;;  %v2701_v2 = vmul.f32 %v6633_v4, %v7696_v41 }
 0x688   :  { %v4573_v49 = vpop.eup %4572 }
 0x689   :  { %v2697_v8 = vmul.f32 %v4573_v49, %v2691_v28 }
 0x68b   :  { %v6637_v63 = vmul.f32 %v2697_v8, %v7696_v41 }
 0x68d   :  { %v6642_v36 = vadd.f32 %v2699_v20, %v6637_v63  ;;  %v2702_v20 = vmul.f32 %v6551_v15, %v7697_v21 }
 0x68f   :  { %4332 = vmatmul.msk.f32.vlgmr.msrb.gmra.mxu3 %vm108_vm8, %v6642_v36  ;;  %4335 = vmatmul.msk.f32.vlgmr.msra.gmra.mxu2 %vm108_vm8, %v6642_v36  ;;  %v6761_v4 = vadd.f32 %v2702_v20, %v2701_v2  ;;  %v6875_v2 = vld [vmem:[%s7379_s6 + $0xa0] sm:$0xff]  ;;  %v6914_v20 = vld [vmem:[%s7379_s6 + $0xd8] sm:$0xff] }
 0x690   :  { %4338 = vmatmul.msk.f32.vlgmr.msrb.gmra.mxu1 %vm108_vm8, %v6642_v36  ;;  %4340 = vmatmul.msk.f32.vlgmr.msra.gmra.mxu0 %vm108_vm8, %v6642_v36 }
 0x691   :  { %2953 = vmatpush.msrb.mxu3 %v6148_v24  ;;  %3013 = vmatpush.msra.mxu2 %v6153_v29  ;;  %v6675_v24 = vld [vmem:[%s7375_s1 + $0x8] sm:$0x3]  ;;  %v6702_v29 = vld [vmem:[%s7378_s5 + $0x18] sm:$0xff] }
 0x692   :  { %3073 = vmatpush.msrb.mxu1 %v6165_v52  ;;  %3115 = vmatpush.msra.mxu0 %v6160_v32  ;;  %7698 = vst [vmem:[#allocation16_spill] sm:$0xff] %v6702_v29  ;;  %v6708_v32 = vld [vmem:[%s7378_s5 + $0x38] sm:$0xff]  ;;  %v6716_v52 = vld [vmem:[%s7378_s5 + $0x10] sm:$0xff] }
 0x693   :  { %2954 = vmatpush.msrb.mxu3 %v6172_v30  ;;  %3014 = vmatpush.msra.mxu2 %v6177_v26  ;;  %7699 = vst [vmem:[#allocation15_spill] sm:$0xff] %v6708_v32  ;;  %v6722_v30 = vld [vmem:[%s7378_s5 + $0x30] sm:$0xff]  ;;  %v7702_v26 = vld [vmem:[#allocation19_spill] sm:$0xff] }
 0x694   :  { %3074 = vmatpush.msrb.mxu1 %v6189_v47  ;;  %3116 = vmatpush.msra.mxu0 %v6184_v48  ;;  %7700 = vst [vmem:[#allocation5_spill] sm:$0xff] %v6716_v52  ;;  %v7703_v48 = vld [vmem:[#allocation18_spill] sm:$0xff]  ;;  %v6730_v47 = vld [vmem:[%s7378_s5 + $0x8] sm:$0xff] }
 0x695   :  { %2955 = vmatpush.msrb.mxu3 %v6194_v37  ;;  %3015 = vmatpush.msra.mxu2 %v6199_v59  ;;  %7701 = vst [vmem:[#allocation2_spill] sm:$0xff] %v6722_v30  ;;  %v6736_v37 = vld [vmem:[%s7378_s5 + $0x28] sm:$0xff]  ;;  %v7706_v59 = vld [vmem:[#allocation24_spill] sm:$0xff] }
 0x696   :  { %3075 = vmatpush.msrb.mxu1 %v6213_v44  ;;  %3117 = vmatpush.msra.mxu0 %v6208_v18  ;;  %7704 = vst [vmem:[#allocation6_spill] sm:$0xff] %v6730_v47  ;;  %v7707_v18 = vld [vmem:[#allocation23_spill] sm:$0xff]  ;;  %v6744_v44 = vld [vmem:[%s7378_s5] sm:$0xff] }
 0x697   :  { %4339 = vmatmul.msk.f32.vlgmr.msra.gmra.mxu3 %vm132_vm0, %v6590_v0  ;;  %4341 = vmatmul.msk.f32.vlgmr.msrb.gmra.mxu2 %vm132_vm0, %v6590_v0  ;;  %7705 = vst [vmem:[#allocation3_spill] sm:$0xff] %v6736_v37 }
 0x698   :  { %2956 = vmatpush.msrb.mxu3 %v6218_v27  ;;  %3016 = vmatpush.msra.mxu2 %v6223_v42  ;;  %7708 = vst [vmem:[#allocation7_spill] sm:$0xff] %v6744_v44  ;;  %v6750_v27 = vld [vmem:[%s7378_s5 + $0x20] sm:$0xff]  ;;  %v2805_v42 = vpop.f32.mrf.mxu0 }
 0x699   :  { %3076 = vmatpush.msrb.mxu1 %v6267_v40  ;;  %3118 = vmatpush.msra.mxu0 %v6246_v33  ;;  %7709 = vst [vmem:[#allocation4_spill] sm:$0xff] %v6750_v27  ;;  %v7710_v40 = vld [vmem:[#allocation25_spill] sm:$0xff] }
 0x69a   :  { %4344 = vmatmul.msk.f32.vlgmr.msra.gmra.mxu1 %vm132_vm0, %v6675_v24  ;;  %4347 = vmatmul.msk.f32.vlgmr.msrb.gmra.mxu0 %vm132_vm0, %v6675_v24 }
 0x69b   :  { %2957 = vmatpush.msrb.mxu3 %v6232_v45  ;;  %3017 = vmatpush.msra.mxu2 %v6237_v17  ;;  %v2745_v45 = vpop.f32.mrf.mxu1 }
 0x69c   :  { %3077 = vmatpush.msrb.mxu1 %v6292_v54  ;;  %3119 = vmatpush.msra.mxu0 %v6287_v34 }
 0x69d   :  { %2958 = vmatpush.msrb.mxu3 %v6255_v35  ;;  %3018 = vmatpush.msra.mxu2 %v6260_v53 }
 0x69e   :  { %3078 = vmatpush.msrb.mxu1 %v6331_v25  ;;  %3120 = vmatpush.msra.mxu0 %v6318_v43 }
 0x69f   :  { %2959 = vmatpush.msrb.mxu3 %v6272_v51  ;;  %3019 = vmatpush.msra.mxu2 %v6277_v31  ;;  %v7711_v31 = vld [vmem:[#allocation26_spill] sm:$0xff] }
 0x6a0   :  { %3079 = vmatpush.msrb.mxu1 %v6355_v62  ;;  %3121 = vmatpush.msra.mxu0 %v6343_v60 }
 0x6a1   :  { %2960 = vmatpush.msrb.mxu3 %v6297_v50  ;;  %3020 = vmatpush.msra.mxu2 %v6302_v3 }
 0x6a2   :  { %3080 = vmatpush.msrb.mxu1 %v6386_v1  ;;  %3122 = vmatpush.msra.mxu0 %v6366_v55 }
 0x6a3   :  { %3097 = vmatpush.msra.mxu3 %v6326_v13  ;;  %3139 = vmatpush.msrb.mxu2 %v6312_v11  ;;  %v7712_v13 = vld [vmem:[#allocation29_spill] sm:$0xff] }
 0x6a4   :  { %3214 = vmatpush.msra.mxu1 %v6702_v29  ;;  %3274 = vmatpush.msrb.mxu0 %v6708_v32 }
 0x6a5   :  { %3098 = vmatpush.msra.mxu3 %v7681_v23  ;;  %3140 = vmatpush.msrb.mxu2 %v7682_v19 }
 0x6a6   :  { %3215 = vmatpush.msra.mxu1 %v6716_v52  ;;  %3275 = vmatpush.msrb.mxu0 %v6722_v30 }
 0x6a7   :  { %3099 = vmatpush.msra.mxu3 %v7702_v26  ;;  %3141 = vmatpush.msrb.mxu2 %v7703_v48 }
 0x6a8   :  { %3216 = vmatpush.msra.mxu1 %v6730_v47  ;;  %3276 = vmatpush.msrb.mxu0 %v6736_v37 }
 0x6a9   :  { %3100 = vmatpush.msra.mxu3 %v7706_v59  ;;  %3142 = vmatpush.msrb.mxu2 %v7707_v18 }
 0x6aa   :  { %3217 = vmatpush.msra.mxu1 %v6744_v44  ;;  %3277 = vmatpush.msrb.mxu0 %v6750_v27 }
 0x70d   :  { %v2887_v3 = vpop.f32.mrf.mxu0  ;;  %v2845_v23 = vpop.f32.mrf.mxu1 }
 0x712   :  { %v2725_v17 = vpop.f32.mrf.mxu3  ;;  %v2785_v33 = vpop.f32.mrf.mxu2 }
 0x713   :  { %v2746_v35 = vadd.f32 %v2745_v45, %v2725_v17  ;;  %v2806_v53 = vadd.f32 %v2805_v42, %v2785_v33 }
 0x715   :  { %v2748_v51 = vadd.f32 %v7710_v40, %v2746_v35  ;;  %v2808_v34 = vadd.f32 %v7711_v31, %v2806_v53 }
 0x717   :  { %v4334_v54 = vmul.f32 -1.442695, %v2748_v51  ;;  %v4337_v50 = vmul.f32 -1.442695, %v2808_v34 }
 0x719   :  { %4574 = vpow2.f32 %v4334_v54 }
 0x71a   :  { %4576 = vpow2.f32 %v4337_v50  ;;  %v2907_v11 = vpop.f32.mrf.mxu2  ;;  %v2865_v0 = vpop.f32.mrf.mxu3 }
 0x71b   :  { %v2908_v43 = vadd.f32 %v2907_v11, %v2887_v3  ;;  %v2866_v19 = vadd.f32 %v2865_v0, %v2845_v23  ;;  %v7716_v0 = vld [vmem:[#allocation17_spill] sm:$0xff] }
 0x71c   :  { %v2936_v23 = vmul.f32 %v6642_v36, %v7716_v0  ;;  %v6793_v36 = vld [vmem:[%s7379_s6 + $0x78] sm:$0xff] }
 0x71d   :  { %v2910_v25 = vadd.f32 %v7712_v13, %v2908_v43  ;;  %v2868_v39 = vadd.f32 %v7713_v10, %v2866_v19 }
 0x71f   :  { %v4575_v60 = vpop.eup %4574  ;;  %v4342_v62 = vmul.f32 -1.442695, %v2910_v25 }
 0x720   :  { %v4577_v55 = vpop.eup %4576  ;;  %v2752_v1 = vadd.f32 1.0, %v4575_v60 }
 0x721   :  { %v2812_v7 = vadd.f32 1.0, %v4577_v55  ;;  %4578 = vpow2.f32 %v4342_v62  ;;  %v7714_v62 = vld [vmem:[#allocation32_spill] sm:$0xff] }
 0x722   :  { %4580 = vrcp.f32 %v2752_v1  ;;  %v2764_v61 = vand.u32 2147483648, %v2752_v1  ;;  %v2762_v12 = vand.u32 2147483647, %v2752_v1  ;;  %vm2758_vm11 = vweird.f32 %v2752_v1 }
 0x723   :  { %4582 = vrcp.f32 %v2812_v7  ;;  %v2824_v9 = vand.u32 2147483648, %v2812_v7  ;;  %v2822_v49 = vand.u32 2147483647, %v2812_v7  ;;  %vm2818_vm12 = vweird.f32 %v2812_v7 }
 0x724   :  { %v2765_v26 = vor.u32 1.1754944e-38, %v2764_v61  ;;  %vm2763_vm15 = vcmp.eq.f32.partialorder %v2762_v12, 8.507059e+37  ;;  %v2704_v55 = vadd.f32 %v6637_v63, %v7714_v62  ;;  %v6787_v63 = vld [vmem:[%s7379_s6 + $0x38] sm:$0xff]  ;;  %v6847_v61 = vld [vmem:[%s7379_s6 + $0xa8] sm:$0xff]  ;;  %v6869_v12 = vld [vmem:[%s7379_s6 + $0x60] sm:$0xff]  ;;  %v2982_v62 = vpop.f32.mrf.mxu1 }
 0x725   :  { %v2825_v59 = vor.u32 1.1754944e-38, %v2824_v9  ;;  %vm2823_vm1 = vcmp.eq.f32.partialorder %v2822_v49, 8.507059e+37  ;;  %v6853_v9 = vld [vmem:[%s7379_s6 + $0xe8] sm:$0xff]  ;;  %v6896_v49 = vld [vmem:[%s7379_s6 + $0x18] sm:$0xff] }
 0x727   :  { %v4579_v14 = vpop.eup %4578 }
 0x728   :  { %v4581_v57 = vpop.eup %4580  ;;  %v2914_v22 = vadd.f32 1.0, %v4579_v14 }
 0x729   :  { %v4583_v56 = vpop.eup %4582  ;;  %v2754_v16 = vmul.f32 %v4581_v57, %v2752_v1  ;;  %vm2759_vm9 = vweird.f32 %v4581_v57  ;;  %v7715_v1 = vld [vmem:[#allocation11_spill] sm:$0xff] }
 0x72a   :  { %v2814_v38 = vmul.f32 %v4583_v56, %v2812_v7  ;;  %4584 = vrcp.f32 %v2914_v22  ;;  %vm2819_vm10 = vweird.f32 %v4583_v56  ;;  %vm2760_vm13 = vmor %vm2758_vm11, %vm2759_vm9  ;;  %v2926_v54 = vand.u32 2147483648, %v2914_v22 }
 0x72b   :  { %v2755_v5 = vsub.f32 1.0, %v2754_v16  ;;  %4586 = vtanh.f32 %v2868_v39  ;;  %vm2820_vm14 = vmor %vm2818_vm12, %vm2819_vm10  ;;  %vm2920_vm3 = vweird.f32 %v2914_v22  ;;  %v2924_v50 = vand.u32 2147483647, %v2914_v22  ;;  %v6805_v39 = vld [vmem:[%s7379_s6 + $0xf8] sm:$0xff]  ;;  %v6823_v16 = vld [vmem:[%s7379_s6 + $0xb0] sm:$0xff] }
 0x72c   :  { %v2815_v46 = vsub.f32 1.0, %v2814_v38  ;;  %v2927_v11 = vor.u32 1.1754944e-38, %v2926_v54  ;;  %v6829_v38 = vld [vmem:[%s7379_s6 + $0xf0] sm:$0xff] }
 0x72d   :  { %v2756_v58 = vmul.f32 %v4581_v57, %v2755_v5  ;;  %vm2925_vm6 = vcmp.eq.f32.partialorder %v2924_v50, 8.507059e+37  ;;  %v6835_v5 = vld [vmem:[%s7379_s6 + $0x28] sm:$0xff]  ;;  %v7006_v54 = vld [vmem:[%s7378_s5 + $0x50] sm:$0xff] }
 0x72e   :  { %v2816_v6 = vmul.f32 %v4583_v56, %v2815_v46  ;;  %v6841_v46 = vld [vmem:[%s7379_s6 + $0x68] sm:$0xff]  ;;  %7717 = vst [vmem:[#allocation13_spill] sm:$0xff] %v7006_v54  ;;  %v7012_v50 = vld [vmem:[%s7378_s5 + $0x70] sm:$0xff] }
 0x72f   :  { %v2757_v28 = vadd.f32 %v4581_v57, %v2756_v58  ;;  %v6863_v58 = vld [vmem:[%s7379_s6 + $0x20] sm:$0xff]  ;;  %7718 = vst [vmem:[#allocation14_spill] sm:$0xff] %v7012_v50 }
 0x730   :  { %v4585_v8 = vpop.eup %4584  ;;  %v2817_v48 = vadd.f32 %v4583_v56, %v2816_v6  ;;  %v6887_v6 = vld [vmem:[%s7375_s1 + $0x6] sm:$0x3] }
 0x731   :  { %v2761_v18 = vsel %vm2760_vm13, %v4581_v57, %v2757_v28  ;;  %v2916_v42 = vmul.f32 %v4585_v8, %v2914_v22  ;;  %v4587_v45 = vpop.eup %4586  ;;  %vm2921_vm2 = vweird.f32 %v4585_v8  ;;  %v6799_v57 = vld [vmem:[%s7379_s6 + $0xb8] sm:$0xff]  ;;  %v6811_v22 = vld [vmem:[%s7379_s6 + $0x30] sm:$0xff] }
 0x732   :  { %v2766_v41 = vsel %vm2763_vm15, %v2765_v26, %v2761_v18  ;;  %v2821_v17 = vsel %vm2820_vm14, %v4583_v56, %v2817_v48  ;;  %vm2922_vm5 = vmor %vm2920_vm3, %vm2921_vm2  ;;  %v6817_v56 = vld [vmem:[%s7379_s6 + $0x70] sm:$0xff]  ;;  %v6902_v28 = vld [vmem:[%s7379_s6 + $0x58] sm:$0xff] }
 0x733   :  { %v2826_v33 = vsel %vm2823_vm1, %v2825_v59, %v2821_v17  ;;  %v2931_v35 = vmul.f32 %v4587_v45, %v2766_v41  ;;  %v2917_v53 = vsub.f32 1.0, %v2916_v42  ;;  %v6920_v26 = vld [vmem:[%s7379_s6 + $0x10] sm:$0xff]  ;;  %v6944_v42 = vld [vmem:[%s7379_s6 + $0x8] sm:$0xff] }
 0x734   :  { %v2930_v51 = vmul.f32 %v2826_v33, %v6761_v4  ;;  %v6926_v48 = vld [vmem:[%s7379_s6 + $0x50] sm:$0xff]  ;;  %v6950_v45 = vld [vmem:[%s7379_s6 + $0x48] sm:$0xff]  ;;  %v6968_v33 = vld [vmem:[%s7379_s6] sm:$0xff] }
 0x735   :  { %v2918_v15 = vmul.f32 %v4585_v8, %v2917_v53  ;;  %v6932_v59 = vld [vmem:[%s7379_s6 + $0x90] sm:$0xff]  ;;  %v6956_v41 = vld [vmem:[%s7379_s6 + $0x88] sm:$0xff]  ;;  %v6980_v53 = vld [vmem:[%s7379_s6 + $0x80] sm:$0xff] }
 0x736   :  { %v6764_v21 = vadd.f32 %v2931_v35, %v2930_v51  ;;  %v6938_v18 = vld [vmem:[%s7379_s6 + $0xd0] sm:$0xff]  ;;  %v6962_v17 = vld [vmem:[%s7379_s6 + $0xc8] sm:$0xff]  ;;  %v6974_v35 = vld [vmem:[%s7379_s6 + $0x40] sm:$0xff] }
 0x737   :  { %v2919_v34 = vadd.f32 %v4585_v8, %v2918_v15  ;;  %v6986_v51 = vld [vmem:[%s7379_s6 + $0xc0] sm:$0xff]  ;;  %v6992_v15 = vld [vmem:[%s7378_s5 + $0x58] sm:$0xff] }
 0x738   :  { %4588 = vtanh.f32 %v6764_v21 }
 0x739   :  { %v2923_v3 = vsel %vm2922_vm5, %v4585_v8, %v2919_v34  ;;  %v6908_v8 = vld [vmem:[%s7379_s6 + $0x98] sm:$0xff] }
 0x73a   :  { %v2928_v25 = vsel %vm2925_vm6, %v2927_v11, %v2923_v3  ;;  %v6998_v34 = vld [vmem:[%s7378_s5 + $0x78] sm:$0xff]  ;;  %v7020_v3 = vld [vmem:[%s7378_s5 + $0x48] sm:$0xff] }
 0x73b   :  { %7719 = vst [vmem:[#allocation19_spill] sm:$0xff] %v7020_v3  ;;  %v7026_v11 = vld [vmem:[%s7378_s5 + $0x68] sm:$0xff] }
 0x73c   :  { %7720 = vst [vmem:[#allocation18_spill] sm:$0xff] %v7026_v11 }
 0x73e   :  { %v4589_v43 = vpop.eup %4588 }
 0x73f   :  { %v2934_v60 = vmul.f32 %v4589_v43, %v2928_v25  ;;  %v7034_v43 = vld [vmem:[%s7378_s5 + $0x40] sm:$0xff] }
 0x740   :  { %7721 = vst [vmem:[#allocation24_spill] sm:$0xff] %v7034_v43  ;;  %v7040_v25 = vld [vmem:[%s7378_s5 + $0x60] sm:$0xff] }
 0x741   :  { %v2935_v7 = vmul.f32 %v2934_v60, %v7715_v1  ;;  %7722 = vst [vmem:[#allocation23_spill] sm:$0xff] %v7040_v25  ;;  %v3042_v60 = vpop.f32.mrf.mxu0 }
 0x743   :  { %v6772_v19 = vadd.f32 %v2936_v23, %v2935_v7  ;;  %v6774_v14 = vadd.f32 %v2935_v7, %v2704_v55 }
 0x745   :  { %4343 = vmatmul.msk.f32.vlgmr.msrb.gmra.mxu3 %vm108_vm8, %v6772_v19  ;;  %4346 = vmatmul.msk.f32.vlgmr.msra.gmra.mxu2 %vm108_vm8, %v6772_v19 }
 0x746   :  { %4349 = vmatmul.msk.f32.vlgmr.msrb.gmra.mxu1 %vm108_vm8, %v6772_v19  ;;  %4351 = vmatmul.msk.f32.vlgmr.msra.gmra.mxu0 %vm108_vm8, %v6772_v19 }
 0x747   :  { %3190 = vmatpush.msrb.mxu3 %v6787_v63  ;;  %3250 = vmatpush.msra.mxu2 %v6793_v36 }
 0x748   :  { %3310 = vmatpush.msrb.mxu1 %v6799_v57  ;;  %3352 = vmatpush.msra.mxu0 %v6805_v39 }
 0x749   :  { %3191 = vmatpush.msrb.mxu3 %v6811_v22  ;;  %3251 = vmatpush.msra.mxu2 %v6817_v56 }
 0x74a   :  { %3311 = vmatpush.msrb.mxu1 %v6823_v16  ;;  %3353 = vmatpush.msra.mxu0 %v6829_v38 }
 0x74b   :  { %3192 = vmatpush.msrb.mxu3 %v6835_v5  ;;  %3252 = vmatpush.msra.mxu2 %v6841_v46 }
 0x74c   :  { %3312 = vmatpush.msrb.mxu1 %v6847_v61  ;;  %3354 = vmatpush.msra.mxu0 %v6853_v9 }
 0x74d   :  { %4350 = vmatmul.msk.f32.vlgmr.msra.gmra.mxu3 %vm132_vm0, %v6675_v24  ;;  %4352 = vmatmul.msk.f32.vlgmr.msrb.gmra.mxu2 %vm132_vm0, %v6675_v24  ;;  %v6881_v24 = vld [vmem:[%s7379_s6 + $0xe0] sm:$0xff] }
 0x74e   :  { %3193 = vmatpush.msrb.mxu3 %v6863_v58  ;;  %3253 = vmatpush.msra.mxu2 %v6869_v12 }
 0x74f   :  { %3313 = vmatpush.msrb.mxu1 %v6875_v2  ;;  %3355 = vmatpush.msra.mxu0 %v6881_v24 }
 0x750   :  { %4355 = vmatmul.msk.f32.vlgmr.msra.gmra.mxu1 %vm132_vm0, %v6887_v6  ;;  %4358 = vmatmul.msk.f32.vlgmr.msrb.gmra.mxu0 %vm132_vm0, %v6887_v6 }
 0x751   :  { %3194 = vmatpush.msrb.mxu3 %v6896_v49  ;;  %3254 = vmatpush.msra.mxu2 %v6902_v28 }
 0x752   :  { %3314 = vmatpush.msrb.mxu1 %v6908_v8  ;;  %3356 = vmatpush.msra.mxu0 %v6914_v20 }
 0x753   :  { %3195 = vmatpush.msrb.mxu3 %v6920_v26  ;;  %3255 = vmatpush.msra.mxu2 %v6926_v48 }
 0x754   :  { %3315 = vmatpush.msrb.mxu1 %v6932_v59  ;;  %3357 = vmatpush.msra.mxu0 %v6938_v18 }
 0x755   :  { %3196 = vmatpush.msrb.mxu3 %v6944_v42  ;;  %3256 = vmatpush.msra.mxu2 %v6950_v45 }
 0x756   :  { %3316 = vmatpush.msrb.mxu1 %v6956_v41  ;;  %3358 = vmatpush.msra.mxu0 %v6962_v17 }
 0x757   :  { %3197 = vmatpush.msrb.mxu3 %v6968_v33  ;;  %3257 = vmatpush.msra.mxu2 %v6974_v35 }
 0x758   :  { %3317 = vmatpush.msrb.mxu1 %v6980_v53  ;;  %3359 = vmatpush.msra.mxu0 %v6986_v51 }
 0x759   :  { %3334 = vmatpush.msra.mxu3 %v6992_v15  ;;  %3376 = vmatpush.msrb.mxu2 %v6998_v34 }
 0x75a   :  { %3451 = vmatpush.msra.mxu1 %v6702_v29  ;;  %3511 = vmatpush.msrb.mxu0 %v6708_v32 }
 0x75b   :  { %3335 = vmatpush.msra.mxu3 %v7006_v54  ;;  %3377 = vmatpush.msrb.mxu2 %v7012_v50 }
 0x75c   :  { %3452 = vmatpush.msra.mxu1 %v6716_v52  ;;  %3512 = vmatpush.msrb.mxu0 %v6722_v30 }
 0x75d   :  { %3336 = vmatpush.msra.mxu3 %v7020_v3  ;;  %3378 = vmatpush.msrb.mxu2 %v7026_v11 }
 0x75e   :  { %3453 = vmatpush.msra.mxu1 %v6730_v47  ;;  %3513 = vmatpush.msrb.mxu0 %v6736_v37 }
 0x75f   :  { %3337 = vmatpush.msra.mxu3 %v7034_v43  ;;  %3379 = vmatpush.msrb.mxu2 %v7040_v25 }
 0x760   :  { %3454 = vmatpush.msra.mxu1 %v6744_v44  ;;  %3514 = vmatpush.msrb.mxu0 %v6750_v27 }
 0x7c3   :  { %v3124_v30 = vpop.f32.mrf.mxu0 }
 0x7c8   :  { %v2962_v55 = vpop.f32.mrf.mxu3  ;;  %v3022_v7 = vpop.f32.mrf.mxu2 }
 0x7c9   :  { %v2983_v23 = vadd.f32 %v2982_v62, %v2962_v55  ;;  %v3043_v37 = vadd.f32 %v3042_v60, %v3022_v7  ;;  %v2938_v60 = vmul.f32 %v6764_v21, %v7715_v1 }
 0x7cb   :  { %v2985_v47 = vadd.f32 %v7710_v40, %v2983_v23  ;;  %v3045_v43 = vadd.f32 %v7711_v31, %v3043_v37  ;;  %v3082_v40 = vpop.f32.mrf.mxu1 }
 0x7cd   :  { %v4345_v11 = vmul.f32 -1.442695, %v2985_v47  ;;  %v4348_v3 = vmul.f32 -1.442695, %v3045_v43 }
 0x7cf   :  { %4590 = vpow2.f32 %v4345_v11 }
 0x7d0   :  { %4592 = vpow2.f32 %v4348_v3  ;;  %v3144_v25 = vpop.f32.mrf.mxu2  ;;  %v3102_v62 = vpop.f32.mrf.mxu3 }
 0x7d1   :  { %v3145_v52 = vadd.f32 %v3144_v25, %v3124_v30  ;;  %v3103_v37 = vadd.f32 %v3102_v62, %v3082_v40  ;;  %v2939_v62 = vmul.f32 %v6761_v4, %v7716_v0 }
 0x7d3   :  { %v3147_v44 = vadd.f32 %v7712_v13, %v3145_v52  ;;  %v3105_v11 = vadd.f32 %v7713_v10, %v3103_v37  ;;  %v7053_v21 = vadd.f32 %v2939_v62, %v2938_v60 }
 0x7d5   :  { %v4591_v27 = vpop.eup %4590  ;;  %v4353_v50 = vmul.f32 -1.442695, %v3147_v44 }
 0x7d6   :  { %v4593_v54 = vpop.eup %4592  ;;  %v2989_v32 = vadd.f32 1.0, %v4591_v27 }
 0x7d7   :  { %v3049_v29 = vadd.f32 1.0, %v4593_v54  ;;  %4594 = vpow2.f32 %v4353_v50 }
 0x7d8   :  { %4596 = vrcp.f32 %v2989_v32  ;;  %v3001_v13 = vand.u32 2147483648, %v2989_v32  ;;  %v2999_v50 = vand.u32 2147483647, %v2989_v32  ;;  %vm2995_vm10 = vweird.f32 %v2989_v32 }
 0x7d9   :  { %4598 = vrcp.f32 %v3049_v29  ;;  %v3061_v27 = vand.u32 2147483648, %v3049_v29  ;;  %v3059_v7 = vand.u32 2147483647, %v3049_v29  ;;  %vm3055_vm11 = vweird.f32 %v3049_v29 }
 0x7da   :  { %v3002_v40 = vor.u32 1.1754944e-38, %v3001_v13  ;;  %vm3000_vm14 = vcmp.eq.f32.partialorder %v2999_v50, 8.507059e+37 }
 0x7db   :  { %vm3060_vm15 = vcmp.eq.f32.partialorder %v3059_v7, 8.507059e+37 }
 0x7dd   :  { %v4595_v47 = vpop.eup %4594 }
 0x7de   :  { %v4597_v31 = vpop.eup %4596  ;;  %v3151_v3 = vadd.f32 1.0, %v4595_v47  ;;  %v3062_v47 = vor.u32 1.1754944e-38, %v3061_v27 }
 0x7df   :  { %v4599_v43 = vpop.eup %4598  ;;  %v2991_v30 = vmul.f32 %v4597_v31, %v2989_v32  ;;  %vm2996_vm7 = vweird.f32 %v4597_v31 }
 0x7e0   :  { %v3051_v25 = vmul.f32 %v4599_v43, %v3049_v29  ;;  %4600 = vrcp.f32 %v3151_v3  ;;  %vm3056_vm9 = vweird.f32 %v4599_v43  ;;  %vm2997_vm12 = vmor %vm2995_vm10, %vm2996_vm7  ;;  %vm3157_vm2 = vweird.f32 %v3151_v3 }
 0x7e1   :  { %v2992_v52 = vsub.f32 1.0, %v2991_v30  ;;  %4602 = vtanh.f32 %v3105_v11  ;;  %vm3057_vm13 = vmor %vm3055_vm11, %vm3056_vm9  ;;  %v3161_v27 = vand.u32 2147483647, %v3151_v3 }
 0x7e2   :  { %v3052_v44 = vsub.f32 1.0, %v3051_v25 }
 0x7e3   :  { %v2993_v54 = vmul.f32 %v4597_v31, %v2992_v52  ;;  %vm3162_vm5 = vcmp.eq.f32.partialorder %v3161_v27, 8.507059e+37  ;;  %v3219_v27 = vpop.f32.mrf.mxu1 }
 0x7e4   :  { %v3053_v55 = vmul.f32 %v4599_v43, %v3052_v44 }
 0x7e5   :  { %v2994_v10 = vadd.f32 %v4597_v31, %v2993_v54 }
 0x7e6   :  { %v4601_v23 = vpop.eup %4600  ;;  %v3054_v37 = vadd.f32 %v4599_v43, %v3053_v55 }
 0x7e7   :  { %v2998_v11 = vsel %vm2997_vm12, %v4597_v31, %v2994_v10  ;;  %v3153_v30 = vmul.f32 %v4601_v23, %v3151_v3  ;;  %v4603_v25 = vpop.eup %4602  ;;  %vm3158_vm1 = vweird.f32 %v4601_v23  ;;  %v3163_v31 = vand.u32 2147483648, %v3151_v3  ;;  %v7723_v10 = vld [vmem:[#allocation28_spill] sm:$0xff]  ;;  %v7727_v3 = vld [vmem:[#allocation13_spill] sm:$0xff] }
 0x7e8   :  { %v3003_v1 = vsel %vm3000_vm14, %v3002_v40, %v2998_v11  ;;  %v3058_v52 = vsel %vm3057_vm13, %v4599_v43, %v3054_v37  ;;  %vm3159_vm3 = vmor %vm3157_vm2, %vm3158_vm1  ;;  %v7724_v40 = vld [vmem:[#allocation27_spill] sm:$0xff] }
 0x7e9   :  { %v3063_v32 = vsel %vm3060_vm15, %v3062_v47, %v3058_v52  ;;  %v3168_v44 = vmul.f32 %v4603_v25, %v3003_v1  ;;  %v3154_v29 = vsub.f32 1.0, %v3153_v30  ;;  %v3164_v60 = vor.u32 1.1754944e-38, %v3163_v31  ;;  %v7729_v30 = vld [vmem:[#allocation5_spill] sm:$0xff]  ;;  %v7730_v25 = vld [vmem:[#allocation2_spill] sm:$0xff]  ;;  %v7731_v1 = vld [vmem:[#allocation19_spill] sm:$0xff]  ;;  %v3279_v31 = vpop.f32.mrf.mxu0 }
 0x7ea   :  { %v3167_v54 = vmul.f32 %v3063_v32, %v7053_v21  ;;  %v3173_v37 = vmul.f32 %v6772_v19, %v7724_v40  ;;  %v7098_v19 = vld [vmem:[%s7375_s1 + $0x4] sm:$0x3] }
 0x7eb   :  { %v3155_v4 = vmul.f32 %v4601_v23, %v3154_v29  ;;  %v7732_v52 = vld [vmem:[#allocation18_spill] sm:$0xff]  ;;  %v7735_v29 = vld [vmem:[#allocation24_spill] sm:$0xff] }
 0x7ec   :  { %v7056_v0 = vadd.f32 %v3168_v44, %v3167_v54  ;;  %v7733_v32 = vld [vmem:[#allocation6_spill] sm:$0xff]  ;;  %v7734_v44 = vld [vmem:[#allocation3_spill] sm:$0xff] }
 0x7ed   :  { %v3156_v13 = vadd.f32 %v4601_v23, %v3155_v4  ;;  %v7736_v54 = vld [vmem:[#allocation23_spill] sm:$0xff] }
 0x7ee   :  { %4604 = vtanh.f32 %v7056_v0  ;;  %v7737_v4 = vld [vmem:[#allocation7_spill] sm:$0xff] }
 0x7ef   :  { %v3160_v50 = vsel %vm3159_vm3, %v4601_v23, %v3156_v13  ;;  %v7728_v23 = vld [vmem:[#allocation14_spill] sm:$0xff]  ;;  %v7738_v13 = vld [vmem:[#allocation4_spill] sm:$0xff] }
 0x7f0   :  { %v3165_v55 = vsel %vm3162_vm5, %v3164_v60, %v3160_v50 }
 0x7f4   :  { %v4605_v43 = vpop.eup %4604 }
 0x7f5   :  { %v3171_v7 = vmul.f32 %v4605_v43, %v3165_v55 }
 0x7f7   :  { %v3172_v62 = vmul.f32 %v3171_v7, %v7723_v10  ;;  %v7139_v7 = vld [vmem:[%s7380_s7] ss:$0 sm:$0xff] }
 0x7f8   :  { %7739 = vst [vmem:[#allocation25_spill] sm:$0xff] %v7139_v7 }
 0x7f9   :  { %v7062_v47 = vadd.f32 %v3173_v37, %v3172_v62  ;;  %v7065_v11 = vadd.f32 %v3172_v62, %v6774_v14  ;;  %v7725_v14 = vld [vmem:[#allocation16_spill] sm:$0xff]  ;;  %v7145_v37 = vld [vmem:[%s7380_s7 + $0x1] ss:$0 sm:$0xff] }
 0x7fa   :  { %7740 = vst [vmem:[#allocation26_spill] sm:$0xff] %v7145_v37 }
 0x7fb   :  { %4354 = vmatmul.msk.f32.vlgmr.msrb.gmra.mxu3 %vm108_vm8, %v7062_v47  ;;  %4357 = vmatmul.msk.f32.vlgmr.msra.gmra.mxu2 %vm108_vm8, %v7062_v47 }
 0x7fc   :  { %4360 = vmatmul.msk.f32.vlgmr.msrb.gmra.mxu1 %vm108_vm8, %v7062_v47  ;;  %4362 = vmatmul.msk.f32.vlgmr.msra.gmra.mxu0 %vm108_vm8, %v7062_v47 }
 0x7fd   :  { %3427 = vmatpush.msrb.mxu3 %v6787_v63  ;;  %3487 = vmatpush.msra.mxu2 %v6793_v36 }
 0x7fe   :  { %3547 = vmatpush.msrb.mxu1 %v6799_v57  ;;  %3589 = vmatpush.msra.mxu0 %v6805_v39 }
 0x7ff   :  { %3428 = vmatpush.msrb.mxu3 %v6811_v22  ;;  %3488 = vmatpush.msra.mxu2 %v6817_v56 }
 0x800   :  { %3548 = vmatpush.msrb.mxu1 %v6823_v16  ;;  %3590 = vmatpush.msra.mxu0 %v6829_v38 }
 0x801   :  { %3429 = vmatpush.msrb.mxu3 %v6835_v5  ;;  %3489 = vmatpush.msra.mxu2 %v6841_v46 }
 0x802   :  { %3549 = vmatpush.msrb.mxu1 %v6847_v61  ;;  %3591 = vmatpush.msra.mxu0 %v6853_v9 }
 0x803   :  { %4361 = vmatmul.msk.f32.vlgmr.msra.gmra.mxu3 %vm132_vm0, %v6887_v6  ;;  %4363 = vmatmul.msk.f32.vlgmr.msrb.gmra.mxu2 %vm132_vm0, %v6887_v6  ;;  %v7726_v6 = vld [vmem:[#allocation15_spill] sm:$0xff] }
 0x804   :  { %3430 = vmatpush.msrb.mxu3 %v6863_v58  ;;  %3490 = vmatpush.msra.mxu2 %v6869_v12 }
 0x805   :  { %3550 = vmatpush.msrb.mxu1 %v6875_v2  ;;  %3592 = vmatpush.msra.mxu0 %v6881_v24 }
 0x806   :  { %4366 = vmatmul.msk.f32.vlgmr.msra.gmra.mxu1 %vm132_vm0, %v7098_v19  ;;  %4369 = vmatmul.msk.f32.vlgmr.msrb.gmra.mxu0 %vm132_vm0, %v7098_v19 }
 0x807   :  { %3431 = vmatpush.msrb.mxu3 %v6896_v49  ;;  %3491 = vmatpush.msra.mxu2 %v6902_v28 }
 0x808   :  { %3551 = vmatpush.msrb.mxu1 %v6908_v8  ;;  %3593 = vmatpush.msra.mxu0 %v6914_v20 }
 0x809   :  { %3432 = vmatpush.msrb.mxu3 %v6920_v26  ;;  %3492 = vmatpush.msra.mxu2 %v6926_v48 }
 0x80a   :  { %3552 = vmatpush.msrb.mxu1 %v6932_v59  ;;  %3594 = vmatpush.msra.mxu0 %v6938_v18 }
 0x80b   :  { %3433 = vmatpush.msrb.mxu3 %v6944_v42  ;;  %3493 = vmatpush.msra.mxu2 %v6950_v45 }
 0x80c   :  { %3553 = vmatpush.msrb.mxu1 %v6956_v41  ;;  %3595 = vmatpush.msra.mxu0 %v6962_v17 }
 0x80d   :  { %3434 = vmatpush.msrb.mxu3 %v6968_v33  ;;  %3494 = vmatpush.msra.mxu2 %v6974_v35 }
 0x80e   :  { %3554 = vmatpush.msrb.mxu1 %v6980_v53  ;;  %3596 = vmatpush.msra.mxu0 %v6986_v51 }
 0x80f   :  { %3571 = vmatpush.msra.mxu3 %v6992_v15  ;;  %3613 = vmatpush.msrb.mxu2 %v6998_v34 }
 0x810   :  { %3688 = vmatpush.msra.mxu1 %v7725_v14  ;;  %3748 = vmatpush.msrb.mxu0 %v7726_v6 }
 0x811   :  { %3572 = vmatpush.msra.mxu3 %v7727_v3  ;;  %3614 = vmatpush.msrb.mxu2 %v7728_v23 }
 0x812   :  { %3689 = vmatpush.msra.mxu1 %v7729_v30  ;;  %3749 = vmatpush.msrb.mxu0 %v7730_v25  ;;  %v3175_v25 = vmul.f32 %v7056_v0, %v7723_v10 }
 0x813   :  { %3573 = vmatpush.msra.mxu3 %v7731_v1  ;;  %3615 = vmatpush.msrb.mxu2 %v7732_v52 }
 0x814   :  { %3690 = vmatpush.msra.mxu1 %v7733_v32  ;;  %3750 = vmatpush.msrb.mxu0 %v7734_v44 }
 0x815   :  { %3574 = vmatpush.msra.mxu3 %v7735_v29  ;;  %3616 = vmatpush.msrb.mxu2 %v7736_v54 }
 0x816   :  { %3691 = vmatpush.msra.mxu1 %v7737_v4  ;;  %3751 = vmatpush.msrb.mxu0 %v7738_v13 }
 0x879   :  { %v3361_v29 = vpop.f32.mrf.mxu0 }
 0x87e   :  { %v3199_v50 = vpop.f32.mrf.mxu3  ;;  %v3259_v60 = vpop.f32.mrf.mxu2 }
 0x87f   :  { %v3220_v43 = vadd.f32 %v3219_v27, %v3199_v50  ;;  %v3280_v55 = vadd.f32 %v3279_v31, %v3259_v60  ;;  %v7151_v50 = vld [vmem:[%s7380_s7 + $0x3] ss:$0 sm:$0xff] }
 0x880   :  { %7741 = vst [vmem:[#allocation29_spill] sm:$0xff] %v7151_v50 }
 0x881   :  { %v3222_v62 = vadd.f32 %v7139_v7, %v3220_v43  ;;  %v3282_v13 = vadd.f32 %v7145_v37, %v3280_v55 }
 0x883   :  { %v4356_v4 = vmul.f32 -1.442695, %v3222_v62  ;;  %v4359_v54 = vmul.f32 -1.442695, %v3282_v13  ;;  %v7157_v62 = vld [vmem:[%s7380_s7 + $0x2] ss:$0 sm:$0xff] }
 0x884   :  { %7742 = vst [vmem:[#allocation30_spill] sm:$0xff] %v7157_v62 }
 0x885   :  { %4606 = vpow2.f32 %v4356_v4  ;;  %v3319_v4 = vpop.f32.mrf.mxu1 }
 0x886   :  { %4608 = vpow2.f32 %v4359_v54  ;;  %v3381_v31 = vpop.f32.mrf.mxu2  ;;  %v3339_v55 = vpop.f32.mrf.mxu3 }
 0x887   :  { %v3382_v27 = vadd.f32 %v3381_v31, %v3361_v29  ;;  %v3340_v54 = vadd.f32 %v3339_v55, %v3319_v4 }
 0x889   :  { %v3384_v60 = vadd.f32 %v7151_v50, %v3382_v27  ;;  %v3342_v31 = vadd.f32 %v7157_v62, %v3340_v54 }
 0x88b   :  { %v4607_v43 = vpop.eup %4606  ;;  %v4364_v7 = vmul.f32 -1.442695, %v3384_v60 }
 0x88c   :  { %v4609_v44 = vpop.eup %4608  ;;  %v3226_v32 = vadd.f32 1.0, %v4607_v43 }
 0x88d   :  { %v3286_v52 = vadd.f32 1.0, %v4609_v44  ;;  %4610 = vpow2.f32 %v4364_v7 }
 0x88e   :  { %4612 = vrcp.f32 %v3226_v32  ;;  %v3238_v37 = vand.u32 2147483648, %v3226_v32  ;;  %v3236_v4 = vand.u32 2147483647, %v3226_v32  ;;  %vm3232_vm9 = vweird.f32 %v3226_v32 }
 0x88f   :  { %4614 = vrcp.f32 %v3286_v52  ;;  %v3298_v1 = vand.u32 2147483648, %v3286_v52  ;;  %v3296_v23 = vand.u32 2147483647, %v3286_v52  ;;  %vm3292_vm10 = vweird.f32 %v3286_v52 }
 0x890   :  { %vm3237_vm13 = vcmp.eq.f32.partialorder %v3236_v4, 8.507059e+37  ;;  %v7744_v4 = vld [vmem:[#allocation21_spill] sm:$0xff] }
 0x891   :  { %vm3297_vm14 = vcmp.eq.f32.partialorder %v3296_v23, 8.507059e+37 }
 0x893   :  { %v4611_v13 = vpop.eup %4610 }
 0x894   :  { %v4613_v29 = vpop.eup %4612  ;;  %v3388_v27 = vadd.f32 1.0, %v4611_v13 }
 0x895   :  { %v4615_v60 = vpop.eup %4614  ;;  %v3228_v50 = vmul.f32 %v4613_v29, %v3226_v32  ;;  %vm3233_vm6 = vweird.f32 %v4613_v29 }
 0x896   :  { %v3288_v43 = vmul.f32 %v4615_v60, %v3286_v52  ;;  %4616 = vrcp.f32 %v3388_v27  ;;  %vm3293_vm7 = vweird.f32 %v4615_v60  ;;  %vm3234_vm11 = vmor %vm3232_vm9, %vm3233_vm6  ;;  %vm3394_vm1 = vweird.f32 %v3388_v27 }
 0x897   :  { %v3229_v44 = vsub.f32 1.0, %v3228_v50  ;;  %4618 = vtanh.f32 %v3342_v31  ;;  %v3176_v50 = vmul.f32 %v7053_v21, %v7724_v40  ;;  %vm3294_vm12 = vmor %vm3292_vm10, %vm3293_vm7 }
 0x898   :  { %v3289_v7 = vsub.f32 1.0, %v3288_v43  ;;  %v3239_v43 = vor.u32 1.1754944e-38, %v3238_v37  ;;  %v3398_v37 = vand.u32 2147483647, %v3388_v27 }
 0x899   :  { %v3230_v55 = vmul.f32 %v4613_v29, %v3229_v44  ;;  %v3299_v44 = vor.u32 1.1754944e-38, %v3298_v1  ;;  %v7164_v0 = vadd.f32 %v3176_v50, %v3175_v25  ;;  %v3400_v1 = vand.u32 2147483648, %v3388_v27 }
 0x89a   :  { %v3290_v30 = vmul.f32 %v4615_v60, %v3289_v7  ;;  %vm3399_vm3 = vcmp.eq.f32.partialorder %v3398_v37, 8.507059e+37  ;;  %v3456_v37 = vpop.f32.mrf.mxu1 }
 0x89b   :  { %v3231_v54 = vadd.f32 %v4613_v29, %v3230_v55 }
 0x89c   :  { %v4617_v13 = vpop.eup %4616  ;;  %v3291_v31 = vadd.f32 %v4615_v60, %v3290_v30 }
 0x89d   :  { %v3235_v62 = vsel %vm3234_vm11, %v4613_v29, %v3231_v54  ;;  %v3390_v3 = vmul.f32 %v4617_v13, %v3388_v27  ;;  %v4619_v6 = vpop.eup %4618  ;;  %vm3395_vm15 = vweird.f32 %v4617_v13  ;;  %v3401_v29 = vor.u32 1.1754944e-38, %v3400_v1  ;;  %v7747_v27 = vld [vmem:[#allocation13_spill] sm:$0xff]  ;;  %v3516_v1 = vpop.f32.mrf.mxu0 }
 0x89e   :  { %v3240_v10 = vsel %vm3237_vm13, %v3239_v43, %v3235_v62  ;;  %v3295_v7 = vsel %vm3294_vm12, %v4615_v60, %v3291_v31  ;;  %vm3396_vm2 = vmor %vm3394_vm1, %vm3395_vm15  ;;  %v7749_v43 = vld [vmem:[#allocation5_spill] sm:$0xff]  ;;  %v7750_v31 = vld [vmem:[#allocation2_spill] sm:$0xff] }
 0x89f   :  { %v3300_v32 = vsel %vm3297_vm14, %v3299_v44, %v3295_v7  ;;  %v3405_v55 = vmul.f32 %v4619_v6, %v3240_v10  ;;  %v3391_v52 = vsub.f32 1.0, %v3390_v3  ;;  %v7743_v3 = vld [vmem:[#allocation20_spill] sm:$0xff]  ;;  %v7751_v44 = vld [vmem:[#allocation19_spill] sm:$0xff]  ;;  %v7752_v10 = vld [vmem:[#allocation18_spill] sm:$0xff] }
 0x8a0   :  { %v3404_v14 = vmul.f32 %v3300_v32, %v7164_v0  ;;  %v7753_v7 = vld [vmem:[#allocation6_spill] sm:$0xff]  ;;  %v7754_v32 = vld [vmem:[#allocation3_spill] sm:$0xff] }
 0x8a1   :  { %v3392_v21 = vmul.f32 %v4617_v13, %v3391_v52  ;;  %v7756_v52 = vld [vmem:[#allocation23_spill] sm:$0xff] }
 0x8a2   :  { %v7167_v40 = vadd.f32 %v3405_v55, %v3404_v14  ;;  %v3410_v14 = vmul.f32 %v7062_v47, %v7744_v4  ;;  %v7209_v47 = vld [vmem:[%s7375_s1 + $0x2] sm:$0x3]  ;;  %v7755_v55 = vld [vmem:[#allocation24_spill] sm:$0xff] }
 0x8a3   :  { %v3393_v30 = vadd.f32 %v4617_v13, %v3392_v21  ;;  %v7757_v21 = vld [vmem:[#allocation7_spill] sm:$0xff] }
 0x8a4   :  { %4620 = vtanh.f32 %v7167_v40 }
 0x8a5   :  { %v3397_v25 = vsel %vm3396_vm2, %v4617_v13, %v3393_v30  ;;  %v7748_v13 = vld [vmem:[#allocation14_spill] sm:$0xff]  ;;  %v7758_v30 = vld [vmem:[#allocation4_spill] sm:$0xff] }
 0x8a6   :  { %v3402_v62 = vsel %vm3399_vm3, %v3401_v29, %v3397_v25 }
 0x8aa   :  { %v4621_v23 = vpop.eup %4620 }
 0x8ab   :  { %v3408_v6 = vmul.f32 %v4621_v23, %v3402_v62 }
 0x8ad   :  { %v3409_v60 = vmul.f32 %v3408_v6, %v7743_v3  ;;  %v7759_v6 = vld [vmem:[#allocation25_spill] sm:$0xff] }
 0x8af   :  { %v7173_v54 = vadd.f32 %v3410_v14, %v3409_v60  ;;  %v7176_v50 = vadd.f32 %v3409_v60, %v7065_v11  ;;  %v7745_v11 = vld [vmem:[#allocation16_spill] sm:$0xff]  ;;  %v7760_v14 = vld [vmem:[#allocation26_spill] sm:$0xff] }
 0x8b1   :  { %4365 = vmatmul.msk.f32.vlgmr.msrb.gmra.mxu3 %vm108_vm8, %v7173_v54  ;;  %4368 = vmatmul.msk.f32.vlgmr.msra.gmra.mxu2 %vm108_vm8, %v7173_v54 }
 0x8b2   :  { %4371 = vmatmul.msk.f32.vlgmr.msrb.gmra.mxu1 %vm108_vm8, %v7173_v54  ;;  %4373 = vmatmul.msk.f32.vlgmr.msra.gmra.mxu0 %vm108_vm8, %v7173_v54 }
 0x8b3   :  { %3664 = vmatpush.msrb.mxu3 %v6787_v63  ;;  %3724 = vmatpush.msra.mxu2 %v6793_v36 }
 0x8b4   :  { %3784 = vmatpush.msrb.mxu1 %v6799_v57  ;;  %3826 = vmatpush.msra.mxu0 %v6805_v39 }
 0x8b5   :  { %3665 = vmatpush.msrb.mxu3 %v6811_v22  ;;  %3725 = vmatpush.msra.mxu2 %v6817_v56 }
 0x8b6   :  { %3785 = vmatpush.msrb.mxu1 %v6823_v16  ;;  %3827 = vmatpush.msra.mxu0 %v6829_v38 }
 0x8b7   :  { %3666 = vmatpush.msrb.mxu3 %v6835_v5  ;;  %3726 = vmatpush.msra.mxu2 %v6841_v46 }
 0x8b8   :  { %3786 = vmatpush.msrb.mxu1 %v6847_v61  ;;  %3828 = vmatpush.msra.mxu0 %v6853_v9 }
 0x8b9   :  { %4372 = vmatmul.msk.f32.vlgmr.msra.gmra.mxu3 %vm132_vm0, %v7098_v19  ;;  %4374 = vmatmul.msk.f32.vlgmr.msrb.gmra.mxu2 %vm132_vm0, %v7098_v19  ;;  %v7746_v19 = vld [vmem:[#allocation15_spill] sm:$0xff] }
 0x8ba   :  { %3667 = vmatpush.msrb.mxu3 %v6863_v58  ;;  %3727 = vmatpush.msra.mxu2 %v6869_v12 }
 0x8bb   :  { %3787 = vmatpush.msrb.mxu1 %v6875_v2  ;;  %3829 = vmatpush.msra.mxu0 %v6881_v24 }
 0x8bc   :  { %4377 = vmatmul.msk.f32.vlgmr.msra.gmra.mxu1 %vm132_vm0, %v7209_v47  ;;  %4380 = vmatmul.msk.f32.vlgmr.msrb.gmra.mxu0 %vm132_vm0, %v7209_v47 }
 0x8bd   :  { %3668 = vmatpush.msrb.mxu3 %v6896_v49  ;;  %3728 = vmatpush.msra.mxu2 %v6902_v28 }
 0x8be   :  { %3788 = vmatpush.msrb.mxu1 %v6908_v8  ;;  %3830 = vmatpush.msra.mxu0 %v6914_v20 }
 0x8bf   :  { %3669 = vmatpush.msrb.mxu3 %v6920_v26  ;;  %3729 = vmatpush.msra.mxu2 %v6926_v48 }
 0x8c0   :  { %3789 = vmatpush.msrb.mxu1 %v6932_v59  ;;  %3831 = vmatpush.msra.mxu0 %v6938_v18 }
 0x8c1   :  { %3670 = vmatpush.msrb.mxu3 %v6944_v42  ;;  %3730 = vmatpush.msra.mxu2 %v6950_v45 }
 0x8c2   :  { %3790 = vmatpush.msrb.mxu1 %v6956_v41  ;;  %3832 = vmatpush.msra.mxu0 %v6962_v17 }
 0x8c3   :  { %3671 = vmatpush.msrb.mxu3 %v6968_v33  ;;  %3731 = vmatpush.msra.mxu2 %v6974_v35 }
 0x8c4   :  { %3791 = vmatpush.msrb.mxu1 %v6980_v53  ;;  %3833 = vmatpush.msra.mxu0 %v6986_v51 }
 0x8c5   :  { %3808 = vmatpush.msra.mxu3 %v6992_v15  ;;  %3850 = vmatpush.msrb.mxu2 %v6998_v34 }
 0x8c6   :  { %3925 = vmatpush.msra.mxu1 %v7745_v11  ;;  %3985 = vmatpush.msrb.mxu0 %v7746_v19 }
 0x8c7   :  { %3809 = vmatpush.msra.mxu3 %v7747_v27  ;;  %3851 = vmatpush.msrb.mxu2 %v7748_v13 }
 0x8c8   :  { %3926 = vmatpush.msra.mxu1 %v7749_v43  ;;  %3986 = vmatpush.msrb.mxu0 %v7750_v31 }
 0x8c9   :  { %3810 = vmatpush.msra.mxu3 %v7751_v44  ;;  %3852 = vmatpush.msrb.mxu2 %v7752_v10 }
 0x8ca   :  { %3927 = vmatpush.msra.mxu1 %v7753_v7  ;;  %3987 = vmatpush.msrb.mxu0 %v7754_v32 }
 0x8cb   :  { %3811 = vmatpush.msra.mxu3 %v7755_v55  ;;  %3853 = vmatpush.msrb.mxu2 %v7756_v52 }
 0x8cc   :  { %3928 = vmatpush.msra.mxu1 %v7757_v21  ;;  %3988 = vmatpush.msrb.mxu0 %v7758_v30  ;;  %v7761_v21 = vld [vmem:[#allocation29_spill] sm:$0xff] }
 0x92f   :  { %v3598_v31 = vpop.f32.mrf.mxu0 }
 0x934   :  { %v3436_v25 = vpop.f32.mrf.mxu3  ;;  %v3496_v29 = vpop.f32.mrf.mxu2 }
 0x935   :  { %v3457_v23 = vadd.f32 %v3456_v37, %v3436_v25  ;;  %v3517_v62 = vadd.f32 %v3516_v1, %v3496_v29  ;;  %v3556_v1 = vpop.f32.mrf.mxu1 }
 0x937   :  { %v3459_v60 = vadd.f32 %v7759_v6, %v3457_v23  ;;  %v3519_v11 = vadd.f32 %v7760_v14, %v3517_v62  ;;  %v7762_v62 = vld [vmem:[#allocation30_spill] sm:$0xff] }
 0x939   :  { %v4367_v19 = vmul.f32 -1.442695, %v3459_v60  ;;  %v4370_v43 = vmul.f32 -1.442695, %v3519_v11 }
 0x93b   :  { %4622 = vpow2.f32 %v4367_v19 }
 0x93c   :  { %4624 = vpow2.f32 %v4370_v43  ;;  %v3618_v7 = vpop.f32.mrf.mxu2  ;;  %v3576_v37 = vpop.f32.mrf.mxu3 }
 0x93d   :  { %v3619_v32 = vadd.f32 %v3618_v7, %v3598_v31  ;;  %v3577_v25 = vadd.f32 %v3576_v37, %v3556_v1  ;;  %v3412_v37 = vmul.f32 %v7167_v40, %v7743_v3 }
 0x93f   :  { %v3621_v52 = vadd.f32 %v7761_v21, %v3619_v32  ;;  %v3579_v60 = vadd.f32 %v7762_v62, %v3577_v25 }
 0x941   :  { %v4623_v30 = vpop.eup %4622  ;;  %v4375_v55 = vmul.f32 -1.442695, %v3621_v52 }
 0x942   :  { %v4625_v10 = vpop.eup %4624  ;;  %v3463_v44 = vadd.f32 1.0, %v4623_v30 }
 0x943   :  { %v3523_v13 = vadd.f32 1.0, %v4625_v10  ;;  %4626 = vpow2.f32 %v4375_v55 }
 0x944   :  { %4628 = vrcp.f32 %v3463_v44  ;;  %v3475_v32 = vand.u32 2147483648, %v3463_v44  ;;  %v3473_v55 = vand.u32 2147483647, %v3463_v44  ;;  %vm3469_vm7 = vweird.f32 %v3463_v44 }
 0x945   :  { %4630 = vrcp.f32 %v3523_v13  ;;  %v3535_v10 = vand.u32 2147483648, %v3523_v13  ;;  %v3533_v21 = vand.u32 2147483647, %v3523_v13  ;;  %vm3529_vm9 = vweird.f32 %v3523_v13 }
 0x946   :  { %vm3474_vm12 = vcmp.eq.f32.partialorder %v3473_v55, 8.507059e+37 }
 0x947   :  { %vm3534_vm13 = vcmp.eq.f32.partialorder %v3533_v21, 8.507059e+37 }
 0x949   :  { %v4627_v29 = vpop.eup %4626 }
 0x94a   :  { %v4629_v23 = vpop.eup %4628  ;;  %v3625_v11 = vadd.f32 1.0, %v4627_v29 }
 0x94b   :  { %v4631_v19 = vpop.eup %4630  ;;  %v3465_v43 = vmul.f32 %v4629_v23, %v3463_v44  ;;  %vm3470_vm5 = vweird.f32 %v4629_v23 }
 0x94c   :  { %v3525_v31 = vmul.f32 %v4631_v19, %v3523_v13  ;;  %4632 = vrcp.f32 %v3625_v11  ;;  %vm3530_vm6 = vweird.f32 %v4631_v19  ;;  %vm3471_vm10 = vmor %vm3469_vm7, %vm3470_vm5  ;;  %vm3631_vm15 = vweird.f32 %v3625_v11 }
 0x94d   :  { %v3466_v7 = vsub.f32 1.0, %v3465_v43  ;;  %4634 = vtanh.f32 %v3579_v60  ;;  %v3413_v43 = vmul.f32 %v7164_v0, %v7744_v4  ;;  %vm3531_vm11 = vmor %vm3529_vm9, %vm3530_vm6 }
 0x94e   :  { %v3526_v52 = vsub.f32 1.0, %v3525_v31  ;;  %v3476_v31 = vor.u32 1.1754944e-38, %v3475_v32 }
 0x94f   :  { %v3467_v30 = vmul.f32 %v4629_v23, %v3466_v7  ;;  %v3536_v7 = vor.u32 1.1754944e-38, %v3535_v10  ;;  %v7255_v40 = vadd.f32 %v3413_v43, %v3412_v37  ;;  %v3635_v10 = vand.u32 2147483647, %v3625_v11 }
 0x950   :  { %v3527_v1 = vmul.f32 %v4631_v19, %v3526_v52 }
 0x951   :  { %v3468_v25 = vadd.f32 %v4629_v23, %v3467_v30  ;;  %vm3636_vm2 = vcmp.eq.f32.partialorder %v3635_v10, 8.507059e+37 }
 0x952   :  { %v4633_v29 = vpop.eup %4632  ;;  %v3528_v60 = vadd.f32 %v4631_v19, %v3527_v1  ;;  %v7764_v1 = vld [vmem:[#allocation9_spill] sm:$0xff] }
 0x953   :  { %v3472_v62 = vsel %vm3471_vm10, %v4629_v23, %v3468_v25  ;;  %v3627_v14 = vmul.f32 %v4633_v29, %v3625_v11  ;;  %v4635_v6 = vpop.eup %4634  ;;  %vm3632_vm14 = vweird.f32 %v4633_v29  ;;  %v3637_v23 = vand.u32 2147483648, %v3625_v11 }
 0x954   :  { %v3477_v3 = vsel %vm3474_vm12, %v3476_v31, %v3472_v62  ;;  %v3532_v52 = vsel %vm3531_vm11, %v4631_v19, %v3528_v60  ;;  %vm3633_vm1 = vmor %vm3631_vm15, %vm3632_vm14 }
 0x955   :  { %v3537_v44 = vsel %vm3534_vm13, %v3536_v7, %v3532_v52  ;;  %v3642_v30 = vmul.f32 %v4635_v6, %v3477_v3  ;;  %v3628_v13 = vsub.f32 1.0, %v3627_v14  ;;  %v3638_v62 = vor.u32 1.1754944e-38, %v3637_v23  ;;  %v7763_v14 = vld [vmem:[#allocation8_spill] sm:$0xff] }
 0x956   :  { %v3641_v27 = vmul.f32 %v3537_v44, %v7255_v40 }
 0x957   :  { %v3629_v0 = vmul.f32 %v4633_v29, %v3628_v13 }
 0x958   :  { %v7258_v4 = vadd.f32 %v3642_v30, %v3641_v27  ;;  %v3647_v27 = vmul.f32 %v7173_v54, %v7764_v1  ;;  %v7774_v54 = vld [vmem:[#allocation30_spill] sm:$0xff] }
 0x959   :  { %v3630_v32 = vadd.f32 %v4633_v29, %v3629_v0 }
 0x95a   :  { %4636 = vtanh.f32 %v7258_v4  ;;  %v3649_v13 = vmul.f32 %v7258_v4, %v7763_v14 }
 0x95b   :  { %v3634_v55 = vsel %vm3633_vm1, %v4633_v29, %v3630_v32 }
 0x95c   :  { %v3639_v19 = vsel %vm3636_vm2, %v3638_v62, %v3634_v55  ;;  %v3650_v55 = vmul.f32 %v7255_v40, %v7764_v1 }
 0x95e   :  { %v7338_v4 = vadd.f32 %v3650_v55, %v3649_v13 }
 0x960   :  { %v4637_v21 = vpop.eup %4636 }
 0x961   :  { %v3645_v6 = vmul.f32 %v4637_v21, %v3639_v19 }
 0x963   :  { %v3646_v37 = vmul.f32 %v3645_v6, %v7763_v14 }
 0x965   :  { %v7264_v25 = vadd.f32 %v3647_v27, %v3646_v37  ;;  %v7267_v43 = vadd.f32 %v3646_v37, %v7176_v50 }
 0x967   :  { %4376 = vmatmul.msk.f32.vlgmr.msrb.gmra.mxu3 %vm108_vm8, %v7264_v25  ;;  %4379 = vmatmul.msk.f32.vlgmr.msra.gmra.mxu2 %vm108_vm8, %v7264_v25 }
 0x968   :  { %4382 = vmatmul.msk.f32.vlgmr.msrb.gmra.mxu1 %vm108_vm8, %v7264_v25  ;;  %4384 = vmatmul.msk.f32.vlgmr.msra.gmra.mxu0 %vm108_vm8, %v7264_v25 }
 0x969   :  { %3901 = vmatpush.msrb.mxu3 %v6787_v63  ;;  %3961 = vmatpush.msra.mxu2 %v6793_v36  ;;  %v7300_v63 = vld [vmem:[%s7375_s1] sm:$0x3]  ;;  %v7765_v36 = vld [vmem:[#allocation13_spill] sm:$0xff] }
 0x96a   :  { %4021 = vmatpush.msrb.mxu1 %v6799_v57  ;;  %4063 = vmatpush.msra.mxu0 %v6805_v39  ;;  %v7766_v57 = vld [vmem:[#allocation14_spill] sm:$0xff]  ;;  %v7767_v39 = vld [vmem:[#allocation19_spill] sm:$0xff] }
 0x96b   :  { %3902 = vmatpush.msrb.mxu3 %v6811_v22  ;;  %3962 = vmatpush.msra.mxu2 %v6817_v56  ;;  %v7768_v22 = vld [vmem:[#allocation18_spill] sm:$0xff]  ;;  %v7769_v56 = vld [vmem:[#allocation24_spill] sm:$0xff] }
 0x96c   :  { %4022 = vmatpush.msrb.mxu1 %v6823_v16  ;;  %4064 = vmatpush.msra.mxu0 %v6829_v38  ;;  %v7770_v16 = vld [vmem:[#allocation23_spill] sm:$0xff]  ;;  %v3753_v38 = vpop.f32.mrf.mxu0 }
 0x96d   :  { %3903 = vmatpush.msrb.mxu3 %v6835_v5  ;;  %3963 = vmatpush.msra.mxu2 %v6841_v46  ;;  %v3693_v5 = vpop.f32.mrf.mxu1 }
 0x96e   :  { %4023 = vmatpush.msrb.mxu1 %v6847_v61  ;;  %4065 = vmatpush.msra.mxu0 %v6853_v9 }
 0x96f   :  { %4383 = vmatmul.msk.f32.vlgmr.msra.gmra.mxu3 %vm132_vm0, %v7209_v47  ;;  %4385 = vmatmul.msk.f32.vlgmr.msrb.gmra.mxu2 %vm132_vm0, %v7209_v47 }
 0x970   :  { %3904 = vmatpush.msrb.mxu3 %v6863_v58  ;;  %3964 = vmatpush.msra.mxu2 %v6869_v12  ;;  %v7771_v12 = vld [vmem:[#allocation25_spill] sm:$0xff] }
 0x971   :  { %4024 = vmatpush.msrb.mxu1 %v6875_v2  ;;  %4066 = vmatpush.msra.mxu0 %v6881_v24  ;;  %v7772_v24 = vld [vmem:[#allocation26_spill] sm:$0xff] }
 0x972   :  { %4388 = vmatmul.msk.f32.vlgmr.msra.gmra.mxu1 %vm132_vm0, %v7300_v63  ;;  %4391 = vmatmul.msk.f32.vlgmr.msrb.gmra.mxu0 %vm132_vm0, %v7300_v63 }
 0x973   :  { %3905 = vmatpush.msrb.mxu3 %v6896_v49  ;;  %3965 = vmatpush.msra.mxu2 %v6902_v28 }
 0x974   :  { %4025 = vmatpush.msrb.mxu1 %v6908_v8  ;;  %4067 = vmatpush.msra.mxu0 %v6914_v20 }
 0x975   :  { %3906 = vmatpush.msrb.mxu3 %v6920_v26  ;;  %3966 = vmatpush.msra.mxu2 %v6926_v48 }
 0x976   :  { %4026 = vmatpush.msrb.mxu1 %v6932_v59  ;;  %4068 = vmatpush.msra.mxu0 %v6938_v18  ;;  %v7773_v59 = vld [vmem:[#allocation29_spill] sm:$0xff] }
 0x977   :  { %3907 = vmatpush.msrb.mxu3 %v6944_v42  ;;  %3967 = vmatpush.msra.mxu2 %v6950_v45 }
 0x978   :  { %4027 = vmatpush.msrb.mxu1 %v6956_v41  ;;  %4069 = vmatpush.msra.mxu0 %v6962_v17 }
 0x979   :  { %3908 = vmatpush.msrb.mxu3 %v6968_v33  ;;  %3968 = vmatpush.msra.mxu2 %v6974_v35 }
 0x97a   :  { %4028 = vmatpush.msrb.mxu1 %v6980_v53  ;;  %4070 = vmatpush.msra.mxu0 %v6986_v51 }
 0x97b   :  { %4045 = vmatpush.msra.mxu3 %v6992_v15  ;;  %4087 = vmatpush.msrb.mxu2 %v6998_v34 }
 0x97d   :  { %4046 = vmatpush.msra.mxu3 %v7765_v36  ;;  %4088 = vmatpush.msrb.mxu2 %v7766_v57 }
 0x97f   :  { %4047 = vmatpush.msra.mxu3 %v7767_v39  ;;  %4089 = vmatpush.msrb.mxu2 %v7768_v22 }
 0x981   :  { %4048 = vmatpush.msra.mxu3 %v7769_v56  ;;  %4090 = vmatpush.msrb.mxu2 %v7770_v16 }
 0x9e5   :  { %v3835_v20 = vpop.f32.mrf.mxu0  ;;  %v3793_v53 = vpop.f32.mrf.mxu1 }
 0x9ea   :  { %v3673_v46 = vpop.f32.mrf.mxu3  ;;  %v3733_v61 = vpop.f32.mrf.mxu2 }
 0x9eb   :  { %v3694_v9 = vadd.f32 %v3693_v5, %v3673_v46  ;;  %v3754_v58 = vadd.f32 %v3753_v38, %v3733_v61 }
 0x9ed   :  { %v3696_v2 = vadd.f32 %v7771_v12, %v3694_v9  ;;  %v3756_v49 = vadd.f32 %v7772_v24, %v3754_v58 }
 0x9ef   :  { %v4378_v28 = vmul.f32 -1.442695, %v3696_v2  ;;  %v4381_v8 = vmul.f32 -1.442695, %v3756_v49  ;;  %v7775_v49 = vld [vmem:[#allocation12_spill] sm:$0xff] }
 0x9f1   :  { %4638 = vpow2.f32 %v4378_v28 }
 0x9f2   :  { %4640 = vpow2.f32 %v4381_v8  ;;  %v3855_v26 = vpop.f32.mrf.mxu2  ;;  %v3813_v35 = vpop.f32.mrf.mxu3  ;;  %v7776_v8 = vld [vmem:[#allocation10_spill] sm:$0xff] }
 0x9f3   :  { %v3856_v48 = vadd.f32 %v3855_v26, %v3835_v20  ;;  %v3814_v51 = vadd.f32 %v3813_v35, %v3793_v53  ;;  %v3884_v20 = vmul.f32 %v7264_v25, %v7776_v8  ;;  %v3930_v25 = vpop.f32.mrf.mxu1 }
 0x9f5   :  { %v3858_v18 = vadd.f32 %v7773_v59, %v3856_v48  ;;  %v3816_v50 = vadd.f32 %v7774_v54, %v3814_v51 }
 0x9f7   :  { %v4639_v42 = vpop.eup %4638  ;;  %v4386_v45 = vmul.f32 -1.442695, %v3858_v18  ;;  %v3990_v18 = vpop.f32.mrf.mxu0 }
 0x9f8   :  { %v4641_v41 = vpop.eup %4640  ;;  %v3700_v17 = vadd.f32 1.0, %v4639_v42 }
 0x9f9   :  { %v3760_v33 = vadd.f32 1.0, %v4641_v41  ;;  %4642 = vpow2.f32 %v4386_v45 }
 0x9fa   :  { %4644 = vrcp.f32 %v3700_v17  ;;  %v3712_v3 = vand.u32 2147483648, %v3700_v17  ;;  %v3710_v30 = vand.u32 2147483647, %v3700_v17  ;;  %vm3706_vm6 = vweird.f32 %v3700_v17 }
 0x9fb   :  { %4646 = vrcp.f32 %v3760_v33  ;;  %v3772_v52 = vand.u32 2147483648, %v3760_v33  ;;  %v3770_v32 = vand.u32 2147483647, %v3760_v33  ;;  %vm3766_vm7 = vweird.f32 %v3760_v33 }
 0x9fc   :  { %v3713_v62 = vor.u32 1.1754944e-38, %v3712_v3  ;;  %vm3711_vm11 = vcmp.eq.f32.partialorder %v3710_v30, 8.507059e+37 }
 0x9fd   :  { %v3773_v19 = vor.u32 1.1754944e-38, %v3772_v52  ;;  %vm3771_vm12 = vcmp.eq.f32.partialorder %v3770_v32, 8.507059e+37 }
 0x9ff   :  { %v4643_v15 = vpop.eup %4642 }
 0xa00   :  { %v4645_v34 = vpop.eup %4644  ;;  %v3862_v47 = vadd.f32 1.0, %v4643_v15 }
 0xa01   :  { %v4647_v11 = vpop.eup %4646  ;;  %v3702_v29 = vmul.f32 %v4645_v34, %v3700_v17  ;;  %vm3707_vm3 = vweird.f32 %v4645_v34 }
 0xa02   :  { %v3762_v31 = vmul.f32 %v4647_v11, %v3760_v33  ;;  %4648 = vrcp.f32 %v3862_v47  ;;  %vm3767_vm5 = vweird.f32 %v4647_v11  ;;  %vm3708_vm9 = vmor %vm3706_vm6, %vm3707_vm3  ;;  %v3874_v38 = vand.u32 2147483648, %v3862_v47 }
 0xa03   :  { %v3703_v60 = vsub.f32 1.0, %v3702_v29  ;;  %4650 = vtanh.f32 %v3816_v50  ;;  %vm3768_vm10 = vmor %vm3766_vm7, %vm3767_vm5  ;;  %vm3868_vm14 = vweird.f32 %v3862_v47  ;;  %v3872_v5 = vand.u32 2147483647, %v3862_v47 }
 0xa04   :  { %v3763_v7 = vsub.f32 1.0, %v3762_v31  ;;  %v3875_v61 = vor.u32 1.1754944e-38, %v3874_v38 }
 0xa05   :  { %v3704_v44 = vmul.f32 %v4645_v34, %v3703_v60  ;;  %vm3873_vm1 = vcmp.eq.f32.partialorder %v3872_v5, 8.507059e+37 }
 0xa06   :  { %v3764_v0 = vmul.f32 %v4647_v11, %v3763_v7 }
 0xa07   :  { %v3705_v23 = vadd.f32 %v4645_v34, %v3704_v44 }
 0xa08   :  { %v4649_v10 = vpop.eup %4648  ;;  %v3765_v21 = vadd.f32 %v4647_v11, %v3764_v0 }
 0xa09   :  { %v3709_v6 = vsel %vm3708_vm9, %v4645_v34, %v3705_v23  ;;  %v3864_v37 = vmul.f32 %v4649_v10, %v3862_v47  ;;  %v4651_v27 = vpop.eup %4650  ;;  %vm3869_vm13 = vweird.f32 %v4649_v10 }
 0xa0a   :  { %v3714_v14 = vsel %vm3711_vm11, %v3713_v62, %v3709_v6  ;;  %v3769_v36 = vsel %vm3768_vm10, %v4647_v11, %v3765_v21  ;;  %vm3870_vm15 = vmor %vm3868_vm14, %vm3869_vm13 }
 0xa0b   :  { %v3774_v57 = vsel %vm3771_vm12, %v3773_v19, %v3769_v36  ;;  %v3879_v39 = vmul.f32 %v4651_v27, %v3714_v14  ;;  %v3865_v22 = vsub.f32 1.0, %v3864_v37  ;;  %v3887_v27 = vmul.f32 %v7338_v4, %v7776_v8 }
 0xa0c   :  { %v3878_v56 = vmul.f32 %v3774_v57, %v7338_v4 }
 0xa0d   :  { %v3866_v40 = vmul.f32 %v4649_v10, %v3865_v22 }
 0xa0e   :  { %v7341_v1 = vadd.f32 %v3879_v39, %v3878_v56 }
 0xa0f   :  { %v3867_v16 = vadd.f32 %v4649_v10, %v3866_v40 }
 0xa10   :  { %4652 = vtanh.f32 %v7341_v1  ;;  %v3886_v21 = vmul.f32 %v7341_v1, %v7775_v49 }
 0xa11   :  { %v3871_v46 = vsel %vm3870_vm15, %v4649_v10, %v3867_v16 }
 0xa12   :  { %v3876_v58 = vsel %vm3873_vm1, %v3875_v61, %v3871_v46  ;;  %v3888_v40 = vadd.f32 %v3887_v27, %v3886_v21 }
 0xa16   :  { %v4653_v9 = vpop.eup %4652 }
 0xa17   :  { %v3882_v2 = vmul.f32 %v4653_v9, %v3876_v58 }
 0xa19   :  { %v3883_v28 = vmul.f32 %v3882_v2, %v7775_v49 }
 0xa1b   :  { %v3885_v26 = vadd.f32 %v3884_v20, %v3883_v28  ;;  %v7348_v48 = vadd.f32 %v3883_v28, %v7267_v43 }
 0xa1d   :  { %4387 = vmatmul.msk.f32.vlgmr.msrb.gmra.mxu3 %vm108_vm8, %v3885_v26  ;;  %4390 = vmatmul.msk.f32.vlgmr.msra.gmra.mxu2 %vm108_vm8, %v3885_v26 }
 0xa1e   :  { %4393 = vmatmul.msk.f32.vlgmr.msrb.gmra.mxu1 %vm108_vm8, %v3885_v26  ;;  %4395 = vmatmul.msk.f32.vlgmr.msra.gmra.mxu0 %vm108_vm8, %v3885_v26 }
 0xa25   :  { %4394 = vmatmul.msk.f32.vlgmr.msra.gmra.mxu3 %vm132_vm0, %v7300_v63  ;;  %4396 = vmatmul.msk.f32.vlgmr.msrb.gmra.mxu2 %vm132_vm0, %v7300_v63 }
 0xa9b   :  { %v4072_v51 = vpop.f32.mrf.mxu0 }
 0xaa0   :  { %v3910_v42 = vpop.f32.mrf.mxu3  ;;  %v3970_v45 = vpop.f32.mrf.mxu2 }
 0xaa1   :  { %v3931_v43 = vadd.f32 %v3930_v25, %v3910_v42  ;;  %v3991_v41 = vadd.f32 %v3990_v18, %v3970_v45  ;;  %v7777_v25 = vld [vmem:[#allocation22_spill] sm:$0xff] }
 0xaa3   :  { %v3933_v17 = vadd.f32 %v7771_v12, %v3931_v43  ;;  %v3993_v33 = vadd.f32 %v7772_v24, %v3991_v41  ;;  %v4030_v12 = vpop.f32.mrf.mxu1  ;;  %v7778_v43 = vld [vmem:[#allocation31_spill] sm:$0xff] }
 0xaa5   :  { %v4389_v35 = vmul.f32 -1.442695, %v3933_v17  ;;  %v4392_v53 = vmul.f32 -1.442695, %v3993_v33 }
 0xaa7   :  { %4654 = vpow2.f32 %v4389_v35 }
 0xaa8   :  { %4656 = vpow2.f32 %v4392_v53  ;;  %v4092_v15 = vpop.f32.mrf.mxu2  ;;  %v4050_v60 = vpop.f32.mrf.mxu3 }
 0xaa9   :  { %v4093_v34 = vadd.f32 %v4092_v15, %v4072_v51  ;;  %v4051_v24 = vadd.f32 %v4050_v60, %v4030_v12 }
 0xaab   :  { %v4095_v50 = vadd.f32 %v7773_v59, %v4093_v34  ;;  %v4053_v52 = vadd.f32 %v7774_v54, %v4051_v24 }
 0xaad   :  { %v4655_v63 = vpop.eup %4654  ;;  %v4397_v47 = vmul.f32 -1.442695, %v4095_v50 }
 0xaae   :  { %v4657_v11 = vpop.eup %4656  ;;  %v3937_v29 = vadd.f32 1.0, %v4655_v63 }
 0xaaf   :  { %v3997_v31 = vadd.f32 1.0, %v4657_v11  ;;  %4658 = vpow2.f32 %v4397_v47 }
 0xab0   :  { %4660 = vrcp.f32 %v3937_v29  ;;  %v3949_v23 = vand.u32 2147483648, %v3937_v29  ;;  %v3947_v62 = vand.u32 2147483647, %v3937_v29  ;;  %vm3943_vm2 = vweird.f32 %v3937_v29 }
 0xab1   :  { %4662 = vrcp.f32 %v3997_v31  ;;  %v4009_v10 = vand.u32 2147483648, %v3997_v31  ;;  %v4007_v6 = vand.u32 2147483647, %v3997_v31  ;;  %vm4003_vm3 = vweird.f32 %v3997_v31 }
 0xab2   :  { %v3950_v14 = vor.u32 1.1754944e-38, %v3949_v23  ;;  %vm3948_vm7 = vcmp.eq.f32.partialorder %v3947_v62, 8.507059e+37 }
 0xab3   :  { %v4010_v57 = vor.u32 1.1754944e-38, %v4009_v10  ;;  %vm4008_vm9 = vcmp.eq.f32.partialorder %v4007_v6, 8.507059e+37 }
 0xab5   :  { %v4659_v7 = vpop.eup %4658 }
 0xab6   :  { %v4661_v3 = vpop.eup %4660  ;;  %v4099_v44 = vadd.f32 1.0, %v4659_v7 }
 0xab7   :  { %v4663_v30 = vpop.eup %4662  ;;  %v3939_v13 = vmul.f32 %v4661_v3, %v3937_v29  ;;  %vm3944_vm0 = vweird.f32 %v4661_v3 }
 0xab8   :  { %v3999_v0 = vmul.f32 %v4663_v30, %v3997_v31  ;;  %4664 = vrcp.f32 %v4099_v44  ;;  %vm4004_vm8 = vweird.f32 %v4663_v30  ;;  %vm3945_vm5 = vmor %vm3943_vm2, %vm3944_vm0  ;;  %v4111_v2 = vand.u32 2147483648, %v4099_v44 }
 0xab9   :  { %v3940_v59 = vsub.f32 1.0, %v3939_v13  ;;  %4666 = vtanh.f32 %v4053_v52  ;;  %vm4005_vm6 = vmor %vm4003_vm3, %vm4004_vm8  ;;  %vm4105_vm11 = vweird.f32 %v4099_v44  ;;  %v4109_v49 = vand.u32 2147483647, %v4099_v44 }
 0xaba   :  { %v4000_v32 = vsub.f32 1.0, %v3999_v0  ;;  %v4112_v8 = vor.u32 1.1754944e-38, %v4111_v2 }
 0xabb   :  { %v3941_v55 = vmul.f32 %v4661_v3, %v3940_v59  ;;  %vm4110_vm13 = vcmp.eq.f32.partialorder %v4109_v49, 8.507059e+37 }
 0xabc   :  { %v4001_v19 = vmul.f32 %v4663_v30, %v4000_v32 }
 0xabd   :  { %v3942_v54 = vadd.f32 %v4661_v3, %v3941_v55 }
 0xabe   :  { %v4665_v37 = vpop.eup %4664  ;;  %v4002_v36 = vadd.f32 %v4663_v30, %v4001_v19 }
 0xabf   :  { %v3946_v39 = vsel %vm3945_vm5, %v4661_v3, %v3942_v54  ;;  %v4101_v22 = vmul.f32 %v4665_v37, %v4099_v44  ;;  %v4667_v56 = vpop.eup %4666  ;;  %vm4106_vm10 = vweird.f32 %v4665_v37 }
 0xac0   :  { %v3951_v1 = vsel %vm3948_vm7, %v3950_v14, %v3946_v39  ;;  %v4006_v16 = vsel %vm4005_vm6, %v4663_v30, %v4002_v36  ;;  %vm4107_vm12 = vmor %vm4105_vm11, %vm4106_vm10 }
 0xac1   :  { %v4011_v38 = vsel %vm4008_vm9, %v4010_v57, %v4006_v16  ;;  %v4116_v5 = vmul.f32 %v4667_v56, %v3951_v1  ;;  %v4102_v46 = vsub.f32 1.0, %v4101_v22 }
 0xac2   :  { %v4115_v61 = vmul.f32 %v4011_v38, %v3888_v40 }
 0xac3   :  { %v4103_v9 = vmul.f32 %v4665_v37, %v4102_v46 }
 0xac4   :  { %v4117_v58 = vadd.f32 %v4116_v5, %v4115_v61 }
 0xac5   :  { %v4104_v4 = vadd.f32 %v4665_v37, %v4103_v9 }
 0xac6   :  { %4668 = vtanh.f32 %v4117_v58 }
 0xac7   :  { %v4108_v28 = vsel %vm4107_vm12, %v4665_v37, %v4104_v4 }
 0xac8   :  { %v4113_v26 = vsel %vm4110_vm13, %v4112_v8, %v4108_v28 }
 0xacc   :  { %v4669_v20 = vpop.eup %4668 }
 0xacd   :  { %v4119_v18 = vmul.f32 %v4669_v20, %v4113_v26 }
 0xacf   :  { %v4120_v42 = vmul.f32 %v4119_v18, %v7777_v25 }
 0xad1   :  { %v4121_v45 = vadd.f32 %v4120_v42, %v7348_v48 }
 0xad3   :  { %v4130_v41 = vmul.f32 %v7778_v43, %v4121_v45 }
 0xad5   :  { %4398 = vst.msk [vmem:[%s7381_s8 + $0x2] sm:$0x3] %vm4128_vm4, %v4130_v41 }

</bundles_post_ra>
